<compile_context>
chip_gen: v5e
topology: v5e:2x2
jax: 0.10.0
libtpu: 0.0.40
codegen_flags: <defaults>
</compile_context>

<pallas_src>
import functools

import jax
import jax.numpy as jnp
import numpy as np
from jax import lax
from jax.experimental import pallas as pl
from jax.experimental.pallas import tpu as pltpu

EPS = 1e-5
SLOPE = 0.01               # nn.LeakyReLU() default negative_slope
MXU_DTYPE = jnp.bfloat16   # MXU operand dtype (accumulation stays f32)


# --------------------------------------------------------------------------
# Bilinear 2x upsample (align_corners=False), separable 1-D matrices.
# --------------------------------------------------------------------------
def _upsample_matrix_1d(n_in, n_out):
    """(n_out, n_in) bilinear interpolation matrix, PyTorch align_corners=False."""
    U = np.zeros((n_out, n_in), np.float32)
    for i in range(n_out):
        src = max((i + 0.5) * (n_in / n_out) - 0.5, 0.0)
        i0 = min(int(np.floor(src)), n_in - 1)
        i1 = min(i0 + 1, n_in - 1)
        w1 = src - i0
        U[i, i0] += 1.0 - w1
        U[i, i1] += w1
    return U


# --------------------------------------------------------------------------
# In-kernel helpers (pure functions on values / refs).
# --------------------------------------------------------------------------
def _adain_lrelu_3d(x, m_style, s_style):
    """adaIN + LeakyReLU. x: (C, H, W) f32, styles: (C, 1). Two-pass variance."""
    _, H, W = x.shape
    n = H * W
    mean = jnp.sum(jnp.sum(x, axis=2, keepdims=True), axis=1, keepdims=True) / n
    d = x - mean
    var = jnp.sum(jnp.sum(d * d, axis=2, keepdims=True), axis=1, keepdims=True) / (n - 1)
    scale = s_style[:, :, None] / (jnp.sqrt(var) + EPS)     # exact divide (tiny)
    y = d * scale + m_style[:, :, None]
    return jnp.where(y >= 0.0, y, SLOPE * y)


def _adain_lrelu_flat(h, m_style, s_style):
    """adaIN + LeakyReLU on a lane-dense (C, S) f32 block; styles (C, 1)."""
    n = h.shape[1]
    mean = jnp.sum(h, axis=1, keepdims=True) / n
    d = h - mean
    var = jnp.sum(d * d, axis=1, keepdims=True) / (n - 1)
    y = d * (s_style / (jnp.sqrt(var) + EPS)) + m_style
    return jnp.where(y >= 0.0, y, SLOPE * y)


def _upsample2x(a, uwt, uh):
    """Separable 2x bilinear upsample: (C, H, W) f32 -> (C, 2H, 2W) f32.

    W direction: one lane-dim matmul (C*H, W) @ (W, 2W).
    H direction: channel-batched matmul (C, 2H, H) @ (C, H, 2W).
    (H is assumed a multiple of 8 so the leading-dim merge is layout-free.)
    """
    C, H, W = a.shape
    y = jnp.dot(a.reshape(C * H, W).astype(MXU_DTYPE), uwt,
                preferred_element_type=jnp.float32)          # (C*H, 2W)
    y = y.reshape(C, H, 2 * W)
    uhb = jnp.broadcast_to(uh, (C, 2 * H, H))
    return lax.dot_general(uhb, y.astype(MXU_DTYPE),
                           dimension_numbers=(((2,), (1,)), ((0,), (0,))),
                           preferred_element_type=jnp.float32)  # (C, 2H, 2W)


def _conv3x3_from_padded(pad_ref, w_taps_ref, bias, mask_l, mask_r, *, W2, S2, pad):
    """3x3 'same' conv as 9 accumulated MXU matmuls.

    pad_ref    : VMEM ref (Cin, pad + S2 + pad) f32, zeros in the pads and the
                 row-major flattened activation in the centre.  The zero pads
                 provide the out-of-range rows for the +/-1 vertical taps, so
                 only the horizontal (column) masks are needed.
    w_taps_ref : (9, Cout, Cin) bf16 ref, tap t = kh*3 + kw.
    bias       : (Cout, 1) f32.
    mask_l/r   : (1, S2) f32 {0,1} column-validity masks for ow = -1 / +1.
    """
    src = pad_ref[...]                                        # (Cin, pad+S2+pad)
    cout = w_taps_ref.shape[1]
    acc = jnp.zeros((cout, S2), jnp.float32) + bias
    for kh in range(3):
        for kw in range(3):
            off = (kh - 1) * W2 + (kw - 1)
            tap = src[:, pad + off: pad + off + S2]
            if kw == 0:
                tap = tap * mask_l                            # j-1 invalid at j == 0
            elif kw == 2:
                tap = tap * mask_r                            # j+1 invalid at j == W2-1
            acc = acc + jnp.dot(w_taps_ref[kh * 3 + kw], tap.astype(MXU_DTYPE),
                                preferred_element_type=jnp.float32)
    return acc


# --------------------------------------------------------------------------
# Fused ResBlock_Ada_Up kernel: adaIN1 + LReLU + up2x + conv1 + adaIN2 +
# LReLU + conv2 + (1x1 bypass on up2x(x)).
# --------------------------------------------------------------------------
def _resblock_fused_kernel(x_ref, psi_ref, uwt_ref, uh_ref, colmask_ref,
                           w1_ref, b1_ref, w2_ref, b2_ref, wb_ref, bb_ref,
                           o_ref, ya_ref, xu_ref, z_ref,
                           *, in_nc, hid_nc, H, W, pad):
    H2, W2 = 2 * H, 2 * W
    S2 = H2 * W2

    x = x_ref[...].astype(jnp.float32)                        # (Cin, H, W)
    psi = psi_ref[...].astype(jnp.float32)                    # (2in+2hid, 1)
    m1, s1 = psi[0:in_nc], psi[in_nc:2 * in_nc]
    m2 = psi[2 * in_nc:2 * in_nc + hid_nc]
    s2 = psi[2 * in_nc + hid_nc:2 * in_nc + 2 * hid_nc]

    uwt, uh = uwt_ref[...], uh_ref[...]
    mask_l = colmask_ref[0:1, :]
    mask_r = colmask_ref[1:2, :]

    # ---- stage 1: adaIN + LeakyReLU + separable 2x bilinear upsample -------
    ya3 = _upsample2x(_adain_lrelu_3d(x, m1, s1), uwt, uh)    # (Cin, H2, W2)
    xu3 = _upsample2x(x, uwt, uh)                             # bypass input

    # Flatten spatial into lane-dense (C, S2) rows of the VMEM scratch buffers
    # (row-by-row stores; ya_ref keeps zero pads for the conv taps).
    ya_ref[...] = jnp.zeros_like(ya_ref)
    for i in range(H2):
        ya_ref[:, pad + i * W2: pad + (i + 1) * W2] = ya3[:, i, :]
        xu_ref[:, i * W2:(i + 1) * W2] = xu3[:, i, :]

    # ---- stage 2: conv1 (9 tap matmuls) + adaIN + LeakyReLU ----------------
    h = _conv3x3_from_padded(ya_ref, w1_ref, b1_ref[...], mask_l, mask_r,
                             W2=W2, S2=S2, pad=pad)           # (Chid, S2)
    z = _adain_lrelu_flat(h, m2, s2)

    z_ref[...] = jnp.zeros_like(z_ref)
    z_ref[:, pad: pad + S2] = z

    # ---- stage 3: conv2 + fused 1x1 bypass on the upsampled raw input ------
    o = _conv3x3_from_padded(z_ref, w2_ref, b2_ref[...], mask_l, mask_r,
                             W2=W2, S2=S2, pad=pad)           # (Cout, S2)
    o = o + jnp.dot(wb_ref[...], xu_ref[...].astype(MXU_DTYPE),
                    preferred_element_type=jnp.float32) + bb_ref[...]

    o_ref[...] = o.astype(o_ref.dtype)


# --------------------------------------------------------------------------
# Wrapper (XLA-side layout plumbing only).
# --------------------------------------------------------------------------
def _conv_weight_taps(w_oihw):
    """OIHW (Cout, Cin, 3, 3) -> (9, Cout, Cin), tap index t = kh*3 + kw."""
    cout, cin, kh, kw = w_oihw.shape
    return jnp.transpose(w_oihw, (2, 3, 0, 1)).reshape(kh * kw, cout, cin)


@functools.partial(jax.jit, static_argnames=("in_nc", "hid_nc", "out_nc"))
def resblock_ada_up_forward(params, x_nchw, style, *, in_nc, hid_nc, out_nc):
    B, _, H, W = x_nchw.shape
    H2, W2 = 2 * H, 2 * W
    S2 = H2 * W2
    pad = ((W2 + 1 + 127) // 128) * 128    # lane pad (128-aligned, >= W2+1)
    cp = 2 * in_nc + 2 * hid_nc

    # psi = bmm(p, style): tiny -> plain XLA einsum (packed adaIN scalars).
    psi = jnp.einsum("ck,bk->bc", params["p"], style[..., 0],
                     precision=lax.Precision.HIGHEST)[..., None]     # (B, Cp, 1)

    w1t = _conv_weight_taps(params["w1"]).astype(MXU_DTYPE)          # (9, hid, in)
    w2t = _conv_weight_taps(params["w2"]).astype(MXU_DTYPE)          # (9, out, hid)
    wb = params["w_bypass"].reshape(out_nc, in_nc).astype(MXU_DTYPE)
    b1 = params["b1"].reshape(-1, 1).astype(jnp.float32)
    b2 = params["b2"].reshape(-1, 1).astype(jnp.float32)
    bb = params["b_bypass"].reshape(-1, 1).astype(jnp.float32)
    uh = params["uh"].astype(MXU_DTYPE)                              # (2H, H)
    uwt = params["uwt"].astype(MXU_DTYPE)                            # (W, 2W)

    # {0,1} column-validity masks for the +/-1 horizontal conv taps.
    col = jnp.arange(S2, dtype=jnp.int32) % W2
    colmask = jnp.stack([(col >= 1), (col <= W2 - 2)]).astype(jnp.float32)  # (2, S2)

    kernel = functools.partial(_resblock_fused_kernel,
                               in_nc=in_nc, hid_nc=hid_nc, H=H, W=W, pad=pad)

    out_flat = pl.pallas_call(
        kernel,
        out_shape=jax.ShapeDtypeStruct((B, out_nc, S2), jnp.float32),
        grid=(B,),
        in_specs=[
            pl.BlockSpec((None, in_nc, H, W), lambda b: (b, 0, 0, 0)),    # x
            pl.BlockSpec((None, cp, 1), lambda b: (b, 0, 0)),             # psi
            pl.BlockSpec((W, W2), lambda b: (0, 0)),                      # uwt
            pl.BlockSpec((H2, H), lambda b: (0, 0)),                      # uh
            pl.BlockSpec((2, S2), lambda b: (0, 0)),                      # colmask
            pl.BlockSpec((9, hid_nc, in_nc), lambda b: (0, 0, 0)),        # w1 taps
            pl.BlockSpec((hid_nc, 1), lambda b: (0, 0)),                  # b1
            pl.BlockSpec((9, out_nc, hid_nc), lambda b: (0, 0, 0)),       # w2 taps
            pl.BlockSpec((out_nc, 1), lambda b: (0, 0)),                  # b2
            pl.BlockSpec((out_nc, in_nc), lambda b: (0, 0)),              # wb
            pl.BlockSpec((out_nc, 1), lambda b: (0, 0)),                  # bb
        ],
        out_specs=pl.BlockSpec((None, out_nc, S2), lambda b: (b, 0, 0)),
        scratch_shapes=[
            pltpu.VMEM((in_nc, pad + S2 + pad), jnp.float32),   # padded y (conv1 in)
            pltpu.VMEM((in_nc, S2), jnp.float32),               # upsampled raw x
            pltpu.VMEM((hid_nc, pad + S2 + pad), jnp.float32),  # padded z (conv2 in)
        ],
        compiler_params=pltpu.CompilerParams(
            dimension_semantics=("parallel",)),
    )(x_nchw, psi, uwt, uh, colmask, w1t, b1, w2t, b2, wb, bb)

    return out_flat.reshape(B, out_nc, H2, W2)                        # NCHW


# --------------------------------------------------------------------------
# Pure-JAX reference (gather-based upsample + lax conv), for validation.
# --------------------------------------------------------------------------
def _lin_coords(n_in, n_out):
    i = jnp.arange(n_out, dtype=jnp.float32)
    src = jnp.maximum((i + 0.5) * (n_in / n_out) - 0.5, 0.0)
    i0 = jnp.clip(jnp.floor(src).astype(jnp.int32), 0, n_in - 1)
    i1 = jnp.clip(i0 + 1, 0, n_in - 1)
    w1 = src - i0.astype(jnp.float32)
    return i0, i1, 1.0 - w1, w1


def upsample_bilinear_2x_ref(x):                                      # NCHW
    B, C, H, W = x.shape
    h0, h1, wh0, wh1 = _lin_coords(H, 2 * H)
    w0, w1, ww0, ww1 = _lin_coords(W, 2 * W)
    xh = (x[:, :, h0, :] * wh0[None, None, :, None]
          + x[:, :, h1, :] * wh1[None, None, :, None])
    return (xh[:, :, :, w0] * ww0[None, None, None, :]
            + xh[:, :, :, w1] * ww1[None, None, None, :])


def _conv_ref(x, w, b, pad):
    dn = lax.conv_dimension_numbers(x.shape, w.shape, ("NCHW", "OIHW", "NCHW"))
    y = lax.conv_general_dilated(x, w, (1, 1), [(pad, pad), (pad, pad)],
                                 dimension_numbers=dn,
                                 precision=lax.Precision.HIGHEST)
    return y + b[None, :, None, None]


def _adain_lrelu_ref(x, ms, ss, eps=EPS, slope=SLOPE):
    B, C, H, W = x.shape
    n = H * W
    mean = jnp.mean(x, axis=(2, 3), keepdims=True)
    var = jnp.sum((x - mean) ** 2, axis=(2, 3), keepdims=True) / (n - 1)
    std = jnp.sqrt(var)
    y = ss[..., None] * (x - mean) / (std + eps) + ms[..., None]
    return jnp.where(y >= 0.0, y, slope * y)


def forward_reference(params, x, style, *, in_nc, hid_nc, out_nc):
    psi = jnp.einsum("ck,bkn->bcn", params["p"], style,
                     precision=lax.Precision.HIGHEST)                 # (B, Cp, 1)
    mean1, std1 = psi[:, :in_nc, :], psi[:, in_nc:2 * in_nc, :]
    mean2 = psi[:, 2 * in_nc:2 * in_nc + hid_nc, :]
    std2 = psi[:, 2 * in_nc + hid_nc:, :]
    res = _conv_ref(upsample_bilinear_2x_ref(x), params["w_bypass"],
                    params["b_bypass"], 0)
    out = _adain_lrelu_ref(x, mean1, std1)
    out = upsample_bilinear_2x_ref(out)
    out = _conv_ref(out, params["w1"], params["b1"], 1)
    out = _adain_lrelu_ref(out, mean2, std2)
    out = _conv_ref(out, params["w2"], params["b2"], 1) + res
    return out


# --------------------------------------------------------------------------
if __name__ == "__main__":
    B, in_nc, hid_nc, out_nc, H, W = 2, 4, 8, 4, 16, 16
    STYLE_DIM = 512                      # fixed by the module (self.p columns)

    key = jax.random.PRNGKey(0)
    k = jax.random.split(key, 10)
    params = {
        # self.p ~ N(0, 0.02)
        "p": 0.02 * jax.random.normal(k[0], (2 * in_nc + 2 * hid_nc, STYLE_DIM),
                                      jnp.float32),
        # conv weights in PyTorch OIHW layout
        "w1": 0.05 * jax.random.normal(k[1], (hid_nc, in_nc, 3, 3), jnp.float32),
        "b1": 0.05 * jax.random.normal(k[2], (hid_nc,), jnp.float32),
        "w2": 0.05 * jax.random.normal(k[3], (out_nc, hid_nc, 3, 3), jnp.float32),
        "b2": 0.05 * jax.random.normal(k[4], (out_nc,), jnp.float32),
        "w_bypass": 0.05 * jax.random.normal(k[5], (out_nc, in_nc, 1, 1), jnp.float32),
        "b_bypass": 0.05 * jax.random.normal(k[6], (out_nc,), jnp.float32),
        # separable bilinear 2x upsample (align_corners=False) constants
        "uh": jnp.asarray(_upsample_matrix_1d(H, 2 * H)),       # (2H, H)
        "uwt": jnp.asarray(_upsample_matrix_1d(W, 2 * W).T),    # (W, 2W)
    }
    x = jax.random.normal(k[7], (B, in_nc, H, W), jnp.float32)        # NCHW
    style = jax.random.normal(k[8], (B, STYLE_DIM, 1), jnp.float32)   # (B, 512, 1)

    out = jax.block_until_ready(
        resblock_ada_up_forward(params, x, style,
                                in_nc=in_nc, hid_nc=hid_nc, out_nc=out_nc))
    ref = jax.block_until_ready(
        forward_reference(params, x, style,
                          in_nc=in_nc, hid_nc=hid_nc, out_nc=out_nc))

    assert out.shape == (B, out_nc, 2 * H, 2 * W), out.shape
    # bf16 MXU operands (f32 accumulate, f32 elementwise math) vs f32 reference.
    if not np.allclose(np.asarray(out), np.asarray(ref), rtol=2e-2, atol=2e-2):
        max_err = float(np.max(np.abs(np.asarray(out) - np.asarray(ref))))
        raise AssertionError(f"Pallas output mismatch vs reference, max_err={max_err}")

    print("KERNEL_OK")
</pallas_src>

<mosaic_0001>
module attributes {stable_mosaic.version = 11 : i64} {
  func.func @_resblock_fused_kernel(%arg0: i32, %arg1: memref<1x4x16x16xf32, #tpu.memory_space<vmem>>, %arg2: memref<1x24x1xf32, #tpu.memory_space<vmem>>, %arg3: memref<16x32xbf16, #tpu.memory_space<vmem>>, %arg4: memref<32x16xbf16, #tpu.memory_space<vmem>>, %arg5: memref<2x1024xf32, #tpu.memory_space<vmem>>, %arg6: memref<9x8x4xbf16, #tpu.memory_space<vmem>>, %arg7: memref<8x1xf32, #tpu.memory_space<vmem>>, %arg8: memref<9x4x8xbf16, #tpu.memory_space<vmem>>, %arg9: memref<4x1xf32, #tpu.memory_space<vmem>>, %arg10: memref<4x4xbf16, #tpu.memory_space<vmem>>, %arg11: memref<4x1xf32, #tpu.memory_space<vmem>>, %arg12: memref<1x4x1024xf32, #tpu.memory_space<vmem>>, %arg13: memref<4x1280xf32, #tpu.memory_space<vmem>>, %arg14: memref<4x1024xf32, #tpu.memory_space<vmem>>, %arg15: memref<8x1280xf32, #tpu.memory_space<vmem>>) attributes {dimension_semantics = [#tpu.dimension_semantics<parallel>], iteration_bounds = array<i64: 2>, scalar_prefetch = 0 : i64, scratch_operands = 3 : i64, tpu.core_type = #tpu.core_type<tc>, window_params = [{transform_indices = @transform_0, window_bounds = array<i64: 1, 4, 16, 16>}, {transform_indices = @transform_1, window_bounds = array<i64: 1, 24, 1>}, {pipeline_mode = #tpu.pipeline_mode<synchronous>, transform_indices = @transform_2, window_bounds = array<i64: 16, 32>}, {pipeline_mode = #tpu.pipeline_mode<synchronous>, transform_indices = @transform_3, window_bounds = array<i64: 32, 16>}, {pipeline_mode = #tpu.pipeline_mode<synchronous>, transform_indices = @transform_4, window_bounds = array<i64: 2, 1024>}, {pipeline_mode = #tpu.pipeline_mode<synchronous>, transform_indices = @transform_5, window_bounds = array<i64: 9, 8, 4>}, {pipeline_mode = #tpu.pipeline_mode<synchronous>, transform_indices = @transform_6, window_bounds = array<i64: 8, 1>}, {pipeline_mode = #tpu.pipeline_mode<synchronous>, transform_indices = @transform_7, window_bounds = array<i64: 9, 4, 8>}, {pipeline_mode = #tpu.pipeline_mode<synchronous>, transform_indices = @transform_8, window_bounds = array<i64: 4, 1>}, {pipeline_mode = #tpu.pipeline_mode<synchronous>, transform_indices = @transform_9, window_bounds = array<i64: 4, 4>}, {pipeline_mode = #tpu.pipeline_mode<synchronous>, transform_indices = @transform_10, window_bounds = array<i64: 4, 1>}, {transform_indices = @transform_11, window_bounds = array<i64: 1, 4, 1024>}]} {
    %c0 = arith.constant 0 : index
    %c0_0 = arith.constant 0 : index
    %c0_1 = arith.constant 0 : index
    %c0_2 = arith.constant 0 : index
    %0 = vector.load %arg1[%c0, %c0_0, %c0_1, %c0_2] : memref<1x4x16x16xf32, #tpu.memory_space<vmem>>, vector<1x4x16x16xf32>
    %1 = vector.shape_cast %0 : vector<1x4x16x16xf32> to vector<4x16x16xf32>
    %c0_3 = arith.constant 0 : index
    %c0_4 = arith.constant 0 : index
    %c0_5 = arith.constant 0 : index
    %2 = vector.load %arg2[%c0_3, %c0_4, %c0_5] : memref<1x24x1xf32, #tpu.memory_space<vmem>>, vector<1x24x1xf32>
    %3 = vector.shape_cast %2 : vector<1x24x1xf32> to vector<24x1xf32>
    %4 = vector.extract_strided_slice %3 {offsets = [0, 0], sizes = [4, 1], strides = [1, 1]} : vector<24x1xf32> to vector<4x1xf32>
    %5 = vector.extract_strided_slice %3 {offsets = [4, 0], sizes = [4, 1], strides = [1, 1]} : vector<24x1xf32> to vector<4x1xf32>
    %6 = vector.extract_strided_slice %3 {offsets = [8, 0], sizes = [8, 1], strides = [1, 1]} : vector<24x1xf32> to vector<8x1xf32>
    %7 = vector.extract_strided_slice %3 {offsets = [16, 0], sizes = [8, 1], strides = [1, 1]} : vector<24x1xf32> to vector<8x1xf32>
    %c0_6 = arith.constant 0 : index
    %c0_7 = arith.constant 0 : index
    %8 = vector.load %arg3[%c0_6, %c0_7] : memref<16x32xbf16, #tpu.memory_space<vmem>>, vector<16x32xbf16>
    %c0_8 = arith.constant 0 : index
    %c0_9 = arith.constant 0 : index
    %9 = vector.load %arg4[%c0_8, %c0_9] : memref<32x16xbf16, #tpu.memory_space<vmem>>, vector<32x16xbf16>
    %c0_10 = arith.constant 0 : index
    %c0_11 = arith.constant 0 : index
    %10 = vector.load %arg5[%c0_10, %c0_11] : memref<2x1024xf32, #tpu.memory_space<vmem>>, vector<1x1024xf32>
    %c1 = arith.constant 1 : index
    %c0_12 = arith.constant 0 : index
    %11 = vector.load %arg5[%c1, %c0_12] : memref<2x1024xf32, #tpu.memory_space<vmem>>, vector<1x1024xf32>
    %cst = arith.constant dense<0.000000e+00> : vector<4x16xf32>
    %12 = vector.multi_reduction <add>, %1, %cst [2] : vector<4x16x16xf32> to vector<4x16xf32>
    %13 = vector.shape_cast %12 : vector<4x16xf32> to vector<4x16x1xf32>
    %cst_13 = arith.constant dense<0.000000e+00> : vector<4x1xf32>
    %14 = vector.multi_reduction <add>, %13, %cst_13 [1] : vector<4x16x1xf32> to vector<4x1xf32>
    %15 = vector.shape_cast %14 : vector<4x1xf32> to vector<4x1x1xf32>
    %cst_14 = arith.constant 2.560000e+02 : f32
    %16 = vector.broadcast %cst_14 : f32 to vector<4x1x1xf32>
    %17 = arith.divf %15, %16 : vector<4x1x1xf32>
    %18 = vector.broadcast %17 : vector<4x1x1xf32> to vector<4x16x16xf32>
    %19 = arith.subf %1, %18 : vector<4x16x16xf32>
    %20 = arith.mulf %19, %19 : vector<4x16x16xf32>
    %cst_15 = arith.constant dense<0.000000e+00> : vector<4x16xf32>
    %21 = vector.multi_reduction <add>, %20, %cst_15 [2] : vector<4x16x16xf32> to vector<4x16xf32>
    %22 = vector.shape_cast %21 : vector<4x16xf32> to vector<4x16x1xf32>
    %cst_16 = arith.constant dense<0.000000e+00> : vector<4x1xf32>
    %23 = vector.multi_reduction <add>, %22, %cst_16 [1] : vector<4x16x1xf32> to vector<4x1xf32>
    %24 = vector.shape_cast %23 : vector<4x1xf32> to vector<4x1x1xf32>
    %cst_17 = arith.constant 2.550000e+02 : f32
    %25 = vector.broadcast %cst_17 : f32 to vector<4x1x1xf32>
    %26 = arith.divf %24, %25 : vector<4x1x1xf32>
    %27 = vector.shape_cast %5 : vector<4x1xf32> to vector<4x1x1xf32>
    %28 = math.sqrt %26 : vector<4x1x1xf32>
    %cst_18 = arith.constant 9.99999974E-6 : f32
    %29 = vector.broadcast %cst_18 : f32 to vector<4x1x1xf32>
    %30 = arith.addf %28, %29 : vector<4x1x1xf32>
    %31 = arith.divf %27, %30 : vector<4x1x1xf32>
    %32 = vector.broadcast %31 : vector<4x1x1xf32> to vector<4x16x16xf32>
    %33 = arith.mulf %19, %32 : vector<4x16x16xf32>
    %34 = vector.shape_cast %4 : vector<4x1xf32> to vector<4x1x1xf32>
    %35 = vector.broadcast %34 : vector<4x1x1xf32> to vector<4x16x16xf32>
    %36 = arith.addf %33, %35 : vector<4x16x16xf32>
    %cst_19 = arith.constant 0.000000e+00 : f32
    %37 = vector.broadcast %cst_19 : f32 to vector<4x16x16xf32>
    %38 = arith.cmpf oge, %36, %37 : vector<4x16x16xf32>
    %cst_20 = arith.constant 0.00999999977 : f32
    %39 = vector.broadcast %cst_20 : f32 to vector<4x16x16xf32>
    %40 = arith.mulf %39, %36 : vector<4x16x16xf32>
    %41 = arith.select %38, %36, %40 : vector<4x16x16xi1>, vector<4x16x16xf32>
    %42 = vector.shape_cast %41 : vector<4x16x16xf32> to vector<64x16xf32>
    %43 = arith.truncf %42 : vector<64x16xf32> to vector<64x16xbf16>
    %cst_21 = arith.constant dense<0.000000e+00> : vector<64x32xf32>
    %44 = tpu.matmul %43, %8, %cst_21 {dimension_numbers = #tpu.dot_dimension_numbers<[1], [0], [0], [1], [0, 0, 1, 1], [], []>} : vector<64x16xbf16>, vector<16x32xbf16>, vector<64x32xf32> -> vector<64x32xf32>
    %45 = vector.shape_cast %44 : vector<64x32xf32> to vector<4x16x32xf32>
    %46 = vector.shape_cast %9 : vector<32x16xbf16> to vector<1x32x16xbf16>
    %47 = vector.broadcast %46 : vector<1x32x16xbf16> to vector<4x32x16xbf16>
    %48 = arith.truncf %45 : vector<4x16x32xf32> to vector<4x16x32xbf16>
    %cst_22 = arith.constant dense<0.000000e+00> : vector<4x32x32xf32>
    %49 = tpu.matmul %47, %48, %cst_22 {dimension_numbers = #tpu.dot_dimension_numbers<[2], [1], [1], [2], [0, 0, 0, 1, 1, 2], [0], [0]>} : vector<4x32x16xbf16>, vector<4x16x32xbf16>, vector<4x32x32xf32> -> vector<4x32x32xf32>
    %50 = vector.shape_cast %1 : vector<4x16x16xf32> to vector<64x16xf32>
    %51 = arith.truncf %50 : vector<64x16xf32> to vector<64x16xbf16>
    %cst_23 = arith.constant dense<0.000000e+00> : vector<64x32xf32>
    %52 = tpu.matmul %51, %8, %cst_23 {dimension_numbers = #tpu.dot_dimension_numbers<[1], [0], [0], [1], [0, 0, 1, 1], [], []>} : vector<64x16xbf16>, vector<16x32xbf16>, vector<64x32xf32> -> vector<64x32xf32>
    %53 = vector.shape_cast %52 : vector<64x32xf32> to vector<4x16x32xf32>
    %54 = vector.shape_cast %9 : vector<32x16xbf16> to vector<1x32x16xbf16>
    %55 = vector.broadcast %54 : vector<1x32x16xbf16> to vector<4x32x16xbf16>
    %56 = arith.truncf %53 : vector<4x16x32xf32> to vector<4x16x32xbf16>
    %cst_24 = arith.constant dense<0.000000e+00> : vector<4x32x32xf32>
    %57 = tpu.matmul %55, %56, %cst_24 {dimension_numbers = #tpu.dot_dimension_numbers<[2], [1], [1], [2], [0, 0, 0, 1, 1, 2], [0], [0]>} : vector<4x32x16xbf16>, vector<4x16x32xbf16>, vector<4x32x32xf32> -> vector<4x32x32xf32>
    %cst_25 = arith.constant 0.000000e+00 : f32
    %58 = vector.broadcast %cst_25 : f32 to vector<4x1280xf32>
    %c0_26 = arith.constant 0 : index
    %c0_27 = arith.constant 0 : index
    %59 = vector.load %arg13[%c0_26, %c0_27] : memref<4x1280xf32, #tpu.memory_space<vmem>>, vector<4x1280xf32>
    tpu.vector_store %arg13[%c0_26, %c0_27], %58 {strides = array<i32>} : memref<4x1280xf32, #tpu.memory_space<vmem>>, vector<4x1280xf32>,
    %60 = vector.extract_strided_slice %49 {offsets = [0, 0, 0], sizes = [4, 1, 32], strides = [1, 1, 1]} : vector<4x32x32xf32> to vector<4x1x32xf32>
    %61 = vector.shape_cast %60 : vector<4x1x32xf32> to vector<4x32xf32>
    %c0_28 = arith.constant 0 : index
    %c128 = arith.constant 128 : index
    %62 = vector.load %arg13[%c0_28, %c128] : memref<4x1280xf32, #tpu.memory_space<vmem>>, vector<4x32xf32>
    tpu.vector_store %arg13[%c0_28, %c128], %61 {strides = array<i32>} : memref<4x1280xf32, #tpu.memory_space<vmem>>, vector<4x32xf32>,
    %63 = vector.extract_strided_slice %57 {offsets = [0, 0, 0], sizes = [4, 1, 32], strides = [1, 1, 1]} : vector<4x32x32xf32> to vector<4x1x32xf32>
    %64 = vector.shape_cast %63 : vector<4x1x32xf32> to vector<4x32xf32>
    %c0_29 = arith.constant 0 : index
    %c0_30 = arith.constant 0 : index
    %65 = vector.load %arg14[%c0_29, %c0_30] : memref<4x1024xf32, #tpu.memory_space<vmem>>, vector<4x32xf32>
    tpu.vector_store %arg14[%c0_29, %c0_30], %64 {strides = array<i32>} : memref<4x1024xf32, #tpu.memory_space<vmem>>, vector<4x32xf32>,
    %66 = vector.extract_strided_slice %49 {offsets = [0, 1, 0], sizes = [4, 1, 32], strides = [1, 1, 1]} : vector<4x32x32xf32> to vector<4x1x32xf32>
    %67 = vector.shape_cast %66 : vector<4x1x32xf32> to vector<4x32xf32>
    %c0_31 = arith.constant 0 : index
    %c160 = arith.constant 160 : index
    %68 = vector.load %arg13[%c0_31, %c160] : memref<4x1280xf32, #tpu.memory_space<vmem>>, vector<4x32xf32>
    tpu.vector_store %arg13[%c0_31, %c160], %67 {strides = array<i32>} : memref<4x1280xf32, #tpu.memory_space<vmem>>, vector<4x32xf32>,
    %69 = vector.extract_strided_slice %57 {offsets = [0, 1, 0], sizes = [4, 1, 32], strides = [1, 1, 1]} : vector<4x32x32xf32> to vector<4x1x32xf32>
    %70 = vector.shape_cast %69 : vector<4x1x32xf32> to vector<4x32xf32>
    %c0_32 = arith.constant 0 : index
    %c32 = arith.constant 32 : index
    %71 = vector.load %arg14[%c0_32, %c32] : memref<4x1024xf32, #tpu.memory_space<vmem>>, vector<4x32xf32>
    tpu.vector_store %arg14[%c0_32, %c32], %70 {strides = array<i32>} : memref<4x1024xf32, #tpu.memory_space<vmem>>, vector<4x32xf32>,
    %72 = vector.extract_strided_slice %49 {offsets = [0, 2, 0], sizes = [4, 1, 32], strides = [1, 1, 1]} : vector<4x32x32xf32> to vector<4x1x32xf32>
    %73 = vector.shape_cast %72 : vector<4x1x32xf32> to vector<4x32xf32>
    %c0_33 = arith.constant 0 : index
    %c192 = arith.constant 192 : index
    %74 = vector.load %arg13[%c0_33, %c192] : memref<4x1280xf32, #tpu.memory_space<vmem>>, vector<4x32xf32>
    tpu.vector_store %arg13[%c0_33, %c192], %73 {strides = array<i32>} : memref<4x1280xf32, #tpu.memory_space<vmem>>, vector<4x32xf32>,
    %75 = vector.extract_strided_slice %57 {offsets = [0, 2, 0], sizes = [4, 1, 32], strides = [1, 1, 1]} : vector<4x32x32xf32> to vector<4x1x32xf32>
    %76 = vector.shape_cast %75 : vector<4x1x32xf32> to vector<4x32xf32>
    %c0_34 = arith.constant 0 : index
    %c64 = arith.constant 64 : index
    %77 = vector.load %arg14[%c0_34, %c64] : memref<4x1024xf32, #tpu.memory_space<vmem>>, vector<4x32xf32>
    tpu.vector_store %arg14[%c0_34, %c64], %76 {strides = array<i32>} : memref<4x1024xf32, #tpu.memory_space<vmem>>, vector<4x32xf32>,
    %78 = vector.extract_strided_slice %49 {offsets = [0, 3, 0], sizes = [4, 1, 32], strides = [1, 1, 1]} : vector<4x32x32xf32> to vector<4x1x32xf32>
    %79 = vector.shape_cast %78 : vector<4x1x32xf32> to vector<4x32xf32>
    %c0_35 = arith.constant 0 : index
    %c224 = arith.constant 224 : index
    %80 = vector.load %arg13[%c0_35, %c224] : memref<4x1280xf32, #tpu.memory_space<vmem>>, vector<4x32xf32>
    tpu.vector_store %arg13[%c0_35, %c224], %79 {strides = array<i32>} : memref<4x1280xf32, #tpu.memory_space<vmem>>, vector<4x32xf32>,
    %81 = vector.extract_strided_slice %57 {offsets = [0, 3, 0], sizes = [4, 1, 32], strides = [1, 1, 1]} : vector<4x32x32xf32> to vector<4x1x32xf32>
    %82 = vector.shape_cast %81 : vector<4x1x32xf32> to vector<4x32xf32>
    %c0_36 = arith.constant 0 : index
    %c96 = arith.constant 96 : index
    %83 = vector.load %arg14[%c0_36, %c96] : memref<4x1024xf32, #tpu.memory_space<vmem>>, vector<4x32xf32>
    tpu.vector_store %arg14[%c0_36, %c96], %82 {strides = array<i32>} : memref<4x1024xf32, #tpu.memory_space<vmem>>, vector<4x32xf32>,
    %84 = vector.extract_strided_slice %49 {offsets = [0, 4, 0], sizes = [4, 1, 32], strides = [1, 1, 1]} : vector<4x32x32xf32> to vector<4x1x32xf32>
    %85 = vector.shape_cast %84 : vector<4x1x32xf32> to vector<4x32xf32>
    %c0_37 = arith.constant 0 : index
    %c256 = arith.constant 256 : index
    %86 = vector.load %arg13[%c0_37, %c256] : memref<4x1280xf32, #tpu.memory_space<vmem>>, vector<4x32xf32>
    tpu.vector_store %arg13[%c0_37, %c256], %85 {strides = array<i32>} : memref<4x1280xf32, #tpu.memory_space<vmem>>, vector<4x32xf32>,
    %87 = vector.extract_strided_slice %57 {offsets = [0, 4, 0], sizes = [4, 1, 32], strides = [1, 1, 1]} : vector<4x32x32xf32> to vector<4x1x32xf32>
    %88 = vector.shape_cast %87 : vector<4x1x32xf32> to vector<4x32xf32>
    %c0_38 = arith.constant 0 : index
    %c128_39 = arith.constant 128 : index
    %89 = vector.load %arg14[%c0_38, %c128_39] : memref<4x1024xf32, #tpu.memory_space<vmem>>, vector<4x32xf32>
    tpu.vector_store %arg14[%c0_38, %c128_39], %88 {strides = array<i32>} : memref<4x1024xf32, #tpu.memory_space<vmem>>, vector<4x32xf32>,
    %90 = vector.extract_strided_slice %49 {offsets = [0, 5, 0], sizes = [4, 1, 32], strides = [1, 1, 1]} : vector<4x32x32xf32> to vector<4x1x32xf32>
    %91 = vector.shape_cast %90 : vector<4x1x32xf32> to vector<4x32xf32>
    %c0_40 = arith.constant 0 : index
    %c288 = arith.constant 288 : index
    %92 = vector.load %arg13[%c0_40, %c288] : memref<4x1280xf32, #tpu.memory_space<vmem>>, vector<4x32xf32>
    tpu.vector_store %arg13[%c0_40, %c288], %91 {strides = array<i32>} : memref<4x1280xf32, #tpu.memory_space<vmem>>, vector<4x32xf32>,
    %93 = vector.extract_strided_slice %57 {offsets = [0, 5, 0], sizes = [4, 1, 32], strides = [1, 1, 1]} : vector<4x32x32xf32> to vector<4x1x32xf32>
    %94 = vector.shape_cast %93 : vector<4x1x32xf32> to vector<4x32xf32>
    %c0_41 = arith.constant 0 : index
    %c160_42 = arith.constant 160 : index
    %95 = vector.load %arg14[%c0_41, %c160_42] : memref<4x1024xf32, #tpu.memory_space<vmem>>, vector<4x32xf32>
    tpu.vector_store %arg14[%c0_41, %c160_42], %94 {strides = array<i32>} : memref<4x1024xf32, #tpu.memory_space<vmem>>, vector<4x32xf32>,
    %96 = vector.extract_strided_slice %49 {offsets = [0, 6, 0], sizes = [4, 1, 32], strides = [1, 1, 1]} : vector<4x32x32xf32> to vector<4x1x32xf32>
    %97 = vector.shape_cast %96 : vector<4x1x32xf32> to vector<4x32xf32>
    %c0_43 = arith.constant 0 : index
    %c320 = arith.constant 320 : index
    %98 = vector.load %arg13[%c0_43, %c320] : memref<4x1280xf32, #tpu.memory_space<vmem>>, vector<4x32xf32>
    tpu.vector_store %arg13[%c0_43, %c320], %97 {strides = array<i32>} : memref<4x1280xf32, #tpu.memory_space<vmem>>, vector<4x32xf32>,
    %99 = vector.extract_strided_slice %57 {offsets = [0, 6, 0], sizes = [4, 1, 32], strides = [1, 1, 1]} : vector<4x32x32xf32> to vector<4x1x32xf32>
    %100 = vector.shape_cast %99 : vector<4x1x32xf32> to vector<4x32xf32>
    %c0_44 = arith.constant 0 : index
    %c192_45 = arith.constant 192 : index
    %101 = vector.load %arg14[%c0_44, %c192_45] : memref<4x1024xf32, #tpu.memory_space<vmem>>, vector<4x32xf32>
    tpu.vector_store %arg14[%c0_44, %c192_45], %100 {strides = array<i32>} : memref<4x1024xf32, #tpu.memory_space<vmem>>, vector<4x32xf32>,
    %102 = vector.extract_strided_slice %49 {offsets = [0, 7, 0], sizes = [4, 1, 32], strides = [1, 1, 1]} : vector<4x32x32xf32> to vector<4x1x32xf32>
    %103 = vector.shape_cast %102 : vector<4x1x32xf32> to vector<4x32xf32>
    %c0_46 = arith.constant 0 : index
    %c352 = arith.constant 352 : index
    %104 = vector.load %arg13[%c0_46, %c352] : memref<4x1280xf32, #tpu.memory_space<vmem>>, vector<4x32xf32>
    tpu.vector_store %arg13[%c0_46, %c352], %103 {strides = array<i32>} : memref<4x1280xf32, #tpu.memory_space<vmem>>, vector<4x32xf32>,
    %105 = vector.extract_strided_slice %57 {offsets = [0, 7, 0], sizes = [4, 1, 32], strides = [1, 1, 1]} : vector<4x32x32xf32> to vector<4x1x32xf32>
    %106 = vector.shape_cast %105 : vector<4x1x32xf32> to vector<4x32xf32>
    %c0_47 = arith.constant 0 : index
    %c224_48 = arith.constant 224 : index
    %107 = vector.load %arg14[%c0_47, %c224_48] : memref<4x1024xf32, #tpu.memory_space<vmem>>, vector<4x32xf32>
    tpu.vector_store %arg14[%c0_47, %c224_48], %106 {strides = array<i32>} : memref<4x1024xf32, #tpu.memory_space<vmem>>, vector<4x32xf32>,
    %108 = vector.extract_strided_slice %49 {offsets = [0, 8, 0], sizes = [4, 1, 32], strides = [1, 1, 1]} : vector<4x32x32xf32> to vector<4x1x32xf32>
    %109 = vector.shape_cast %108 : vector<4x1x32xf32> to vector<4x32xf32>
    %c0_49 = arith.constant 0 : index
    %c384 = arith.constant 384 : index
    %110 = vector.load %arg13[%c0_49, %c384] : memref<4x1280xf32, #tpu.memory_space<vmem>>, vector<4x32xf32>
    tpu.vector_store %arg13[%c0_49, %c384], %109 {strides = array<i32>} : memref<4x1280xf32, #tpu.memory_space<vmem>>, vector<4x32xf32>,
    %111 = vector.extract_strided_slice %57 {offsets = [0, 8, 0], sizes = [4, 1, 32], strides = [1, 1, 1]} : vector<4x32x32xf32> to vector<4x1x32xf32>
    %112 = vector.shape_cast %111 : vector<4x1x32xf32> to vector<4x32xf32>
    %c0_50 = arith.constant 0 : index
    %c256_51 = arith.constant 256 : index
    %113 = vector.load %arg14[%c0_50, %c256_51] : memref<4x1024xf32, #tpu.memory_space<vmem>>, vector<4x32xf32>
    tpu.vector_store %arg14[%c0_50, %c256_51], %112 {strides = array<i32>} : memref<4x1024xf32, #tpu.memory_space<vmem>>, vector<4x32xf32>,
    %114 = vector.extract_strided_slice %49 {offsets = [0, 9, 0], sizes = [4, 1, 32], strides = [1, 1, 1]} : vector<4x32x32xf32> to vector<4x1x32xf32>
    %115 = vector.shape_cast %114 : vector<4x1x32xf32> to vector<4x32xf32>
    %c0_52 = arith.constant 0 : index
    %c416 = arith.constant 416 : index
    %116 = vector.load %arg13[%c0_52, %c416] : memref<4x1280xf32, #tpu.memory_space<vmem>>, vector<4x32xf32>
    tpu.vector_store %arg13[%c0_52, %c416], %115 {strides = array<i32>} : memref<4x1280xf32, #tpu.memory_space<vmem>>, vector<4x32xf32>,
    %117 = vector.extract_strided_slice %57 {offsets = [0, 9, 0], sizes = [4, 1, 32], strides = [1, 1, 1]} : vector<4x32x32xf32> to vector<4x1x32xf32>
    %118 = vector.shape_cast %117 : vector<4x1x32xf32> to vector<4x32xf32>
    %c0_53 = arith.constant 0 : index
    %c288_54 = arith.constant 288 : index
    %119 = vector.load %arg14[%c0_53, %c288_54] : memref<4x1024xf32, #tpu.memory_space<vmem>>, vector<4x32xf32>
    tpu.vector_store %arg14[%c0_53, %c288_54], %118 {strides = array<i32>} : memref<4x1024xf32, #tpu.memory_space<vmem>>, vector<4x32xf32>,
    %120 = vector.extract_strided_slice %49 {offsets = [0, 10, 0], sizes = [4, 1, 32], strides = [1, 1, 1]} : vector<4x32x32xf32> to vector<4x1x32xf32>
    %121 = vector.shape_cast %120 : vector<4x1x32xf32> to vector<4x32xf32>
    %c0_55 = arith.constant 0 : index
    %c448 = arith.constant 448 : index
    %122 = vector.load %arg13[%c0_55, %c448] : memref<4x1280xf32, #tpu.memory_space<vmem>>, vector<4x32xf32>
    tpu.vector_store %arg13[%c0_55, %c448], %121 {strides = array<i32>} : memref<4x1280xf32, #tpu.memory_space<vmem>>, vector<4x32xf32>,
    %123 = vector.extract_strided_slice %57 {offsets = [0, 10, 0], sizes = [4, 1, 32], strides = [1, 1, 1]} : vector<4x32x32xf32> to vector<4x1x32xf32>
    %124 = vector.shape_cast %123 : vector<4x1x32xf32> to vector<4x32xf32>
    %c0_56 = arith.constant 0 : index
    %c320_57 = arith.constant 320 : index
    %125 = vector.load %arg14[%c0_56, %c320_57] : memref<4x1024xf32, #tpu.memory_space<vmem>>, vector<4x32xf32>
    tpu.vector_store %arg14[%c0_56, %c320_57], %124 {strides = array<i32>} : memref<4x1024xf32, #tpu.memory_space<vmem>>, vector<4x32xf32>,
    %126 = vector.extract_strided_slice %49 {offsets = [0, 11, 0], sizes = [4, 1, 32], strides = [1, 1, 1]} : vector<4x32x32xf32> to vector<4x1x32xf32>
    %127 = vector.shape_cast %126 : vector<4x1x32xf32> to vector<4x32xf32>
    %c0_58 = arith.constant 0 : index
    %c480 = arith.constant 480 : index
    %128 = vector.load %arg13[%c0_58, %c480] : memref<4x1280xf32, #tpu.memory_space<vmem>>, vector<4x32xf32>
    tpu.vector_store %arg13[%c0_58, %c480], %127 {strides = array<i32>} : memref<4x1280xf32, #tpu.memory_space<vmem>>, vector<4x32xf32>,
    %129 = vector.extract_strided_slice %57 {offsets = [0, 11, 0], sizes = [4, 1, 32], strides = [1, 1, 1]} : vector<4x32x32xf32> to vector<4x1x32xf32>
    %130 = vector.shape_cast %129 : vector<4x1x32xf32> to vector<4x32xf32>
    %c0_59 = arith.constant 0 : index
    %c352_60 = arith.constant 352 : index
    %131 = vector.load %arg14[%c0_59, %c352_60] : memref<4x1024xf32, #tpu.memory_space<vmem>>, vector<4x32xf32>
    tpu.vector_store %arg14[%c0_59, %c352_60], %130 {strides = array<i32>} : memref<4x1024xf32, #tpu.memory_space<vmem>>, vector<4x32xf32>,
    %132 = vector.extract_strided_slice %49 {offsets = [0, 12, 0], sizes = [4, 1, 32], strides = [1, 1, 1]} : vector<4x32x32xf32> to vector<4x1x32xf32>
    %133 = vector.shape_cast %132 : vector<4x1x32xf32> to vector<4x32xf32>
    %c0_61 = arith.constant 0 : index
    %c512 = arith.constant 512 : index
    %134 = vector.load %arg13[%c0_61, %c512] : memref<4x1280xf32, #tpu.memory_space<vmem>>, vector<4x32xf32>
    tpu.vector_store %arg13[%c0_61, %c512], %133 {strides = array<i32>} : memref<4x1280xf32, #tpu.memory_space<vmem>>, vector<4x32xf32>,
    %135 = vector.extract_strided_slice %57 {offsets = [0, 12, 0], sizes = [4, 1, 32], strides = [1, 1, 1]} : vector<4x32x32xf32> to vector<4x1x32xf32>
    %136 = vector.shape_cast %135 : vector<4x1x32xf32> to vector<4x32xf32>
    %c0_62 = arith.constant 0 : index
    %c384_63 = arith.constant 384 : index
    %137 = vector.load %arg14[%c0_62, %c384_63] : memref<4x1024xf32, #tpu.memory_space<vmem>>, vector<4x32xf32>
    tpu.vector_store %arg14[%c0_62, %c384_63], %136 {strides = array<i32>} : memref<4x1024xf32, #tpu.memory_space<vmem>>, vector<4x32xf32>,
    %138 = vector.extract_strided_slice %49 {offsets = [0, 13, 0], sizes = [4, 1, 32], strides = [1, 1, 1]} : vector<4x32x32xf32> to vector<4x1x32xf32>
    %139 = vector.shape_cast %138 : vector<4x1x32xf32> to vector<4x32xf32>
    %c0_64 = arith.constant 0 : index
    %c544 = arith.constant 544 : index
    %140 = vector.load %arg13[%c0_64, %c544] : memref<4x1280xf32, #tpu.memory_space<vmem>>, vector<4x32xf32>
    tpu.vector_store %arg13[%c0_64, %c544], %139 {strides = array<i32>} : memref<4x1280xf32, #tpu.memory_space<vmem>>, vector<4x32xf32>,
    %141 = vector.extract_strided_slice %57 {offsets = [0, 13, 0], sizes = [4, 1, 32], strides = [1, 1, 1]} : vector<4x32x32xf32> to vector<4x1x32xf32>
    %142 = vector.shape_cast %141 : vector<4x1x32xf32> to vector<4x32xf32>
    %c0_65 = arith.constant 0 : index
    %c416_66 = arith.constant 416 : index
    %143 = vector.load %arg14[%c0_65, %c416_66] : memref<4x1024xf32, #tpu.memory_space<vmem>>, vector<4x32xf32>
    tpu.vector_store %arg14[%c0_65, %c416_66], %142 {strides = array<i32>} : memref<4x1024xf32, #tpu.memory_space<vmem>>, vector<4x32xf32>,
    %144 = vector.extract_strided_slice %49 {offsets = [0, 14, 0], sizes = [4, 1, 32], strides = [1, 1, 1]} : vector<4x32x32xf32> to vector<4x1x32xf32>
    %145 = vector.shape_cast %144 : vector<4x1x32xf32> to vector<4x32xf32>
    %c0_67 = arith.constant 0 : index
    %c576 = arith.constant 576 : index
    %146 = vector.load %arg13[%c0_67, %c576] : memref<4x1280xf32, #tpu.memory_space<vmem>>, vector<4x32xf32>
    tpu.vector_store %arg13[%c0_67, %c576], %145 {strides = array<i32>} : memref<4x1280xf32, #tpu.memory_space<vmem>>, vector<4x32xf32>,
    %147 = vector.extract_strided_slice %57 {offsets = [0, 14, 0], sizes = [4, 1, 32], strides = [1, 1, 1]} : vector<4x32x32xf32> to vector<4x1x32xf32>
    %148 = vector.shape_cast %147 : vector<4x1x32xf32> to vector<4x32xf32>
    %c0_68 = arith.constant 0 : index
    %c448_69 = arith.constant 448 : index
    %149 = vector.load %arg14[%c0_68, %c448_69] : memref<4x1024xf32, #tpu.memory_space<vmem>>, vector<4x32xf32>
    tpu.vector_store %arg14[%c0_68, %c448_69], %148 {strides = array<i32>} : memref<4x1024xf32, #tpu.memory_space<vmem>>, vector<4x32xf32>,
    %150 = vector.extract_strided_slice %49 {offsets = [0, 15, 0], sizes = [4, 1, 32], strides = [1, 1, 1]} : vector<4x32x32xf32> to vector<4x1x32xf32>
    %151 = vector.shape_cast %150 : vector<4x1x32xf32> to vector<4x32xf32>
    %c0_70 = arith.constant 0 : index
    %c608 = arith.constant 608 : index
    %152 = vector.load %arg13[%c0_70, %c608] : memref<4x1280xf32, #tpu.memory_space<vmem>>, vector<4x32xf32>
    tpu.vector_store %arg13[%c0_70, %c608], %151 {strides = array<i32>} : memref<4x1280xf32, #tpu.memory_space<vmem>>, vector<4x32xf32>,
    %153 = vector.extract_strided_slice %57 {offsets = [0, 15, 0], sizes = [4, 1, 32], strides = [1, 1, 1]} : vector<4x32x32xf32> to vector<4x1x32xf32>
    %154 = vector.shape_cast %153 : vector<4x1x32xf32> to vector<4x32xf32>
    %c0_71 = arith.constant 0 : index
    %c480_72 = arith.constant 480 : index
    %155 = vector.load %arg14[%c0_71, %c480_72] : memref<4x1024xf32, #tpu.memory_space<vmem>>, vector<4x32xf32>
    tpu.vector_store %arg14[%c0_71, %c480_72], %154 {strides = array<i32>} : memref<4x1024xf32, #tpu.memory_space<vmem>>, vector<4x32xf32>,
    %156 = vector.extract_strided_slice %49 {offsets = [0, 16, 0], sizes = [4, 1, 32], strides = [1, 1, 1]} : vector<4x32x32xf32> to vector<4x1x32xf32>
    %157 = vector.shape_cast %156 : vector<4x1x32xf32> to vector<4x32xf32>
    %c0_73 = arith.constant 0 : index
    %c640 = arith.constant 640 : index
    %158 = vector.load %arg13[%c0_73, %c640] : memref<4x1280xf32, #tpu.memory_space<vmem>>, vector<4x32xf32>
    tpu.vector_store %arg13[%c0_73, %c640], %157 {strides = array<i32>} : memref<4x1280xf32, #tpu.memory_space<vmem>>, vector<4x32xf32>,
    %159 = vector.extract_strided_slice %57 {offsets = [0, 16, 0], sizes = [4, 1, 32], strides = [1, 1, 1]} : vector<4x32x32xf32> to vector<4x1x32xf32>
    %160 = vector.shape_cast %159 : vector<4x1x32xf32> to vector<4x32xf32>
    %c0_74 = arith.constant 0 : index
    %c512_75 = arith.constant 512 : index
    %161 = vector.load %arg14[%c0_74, %c512_75] : memref<4x1024xf32, #tpu.memory_space<vmem>>, vector<4x32xf32>
    tpu.vector_store %arg14[%c0_74, %c512_75], %160 {strides = array<i32>} : memref<4x1024xf32, #tpu.memory_space<vmem>>, vector<4x32xf32>,
    %162 = vector.extract_strided_slice %49 {offsets = [0, 17, 0], sizes = [4, 1, 32], strides = [1, 1, 1]} : vector<4x32x32xf32> to vector<4x1x32xf32>
    %163 = vector.shape_cast %162 : vector<4x1x32xf32> to vector<4x32xf32>
    %c0_76 = arith.constant 0 : index
    %c672 = arith.constant 672 : index
    %164 = vector.load %arg13[%c0_76, %c672] : memref<4x1280xf32, #tpu.memory_space<vmem>>, vector<4x32xf32>
    tpu.vector_store %arg13[%c0_76, %c672], %163 {strides = array<i32>} : memref<4x1280xf32, #tpu.memory_space<vmem>>, vector<4x32xf32>,
    %165 = vector.extract_strided_slice %57 {offsets = [0, 17, 0], sizes = [4, 1, 32], strides = [1, 1, 1]} : vector<4x32x32xf32> to vector<4x1x32xf32>
    %166 = vector.shape_cast %165 : vector<4x1x32xf32> to vector<4x32xf32>
    %c0_77 = arith.constant 0 : index
    %c544_78 = arith.constant 544 : index
    %167 = vector.load %arg14[%c0_77, %c544_78] : memref<4x1024xf32, #tpu.memory_space<vmem>>, vector<4x32xf32>
    tpu.vector_store %arg14[%c0_77, %c544_78], %166 {strides = array<i32>} : memref<4x1024xf32, #tpu.memory_space<vmem>>, vector<4x32xf32>,
    %168 = vector.extract_strided_slice %49 {offsets = [0, 18, 0], sizes = [4, 1, 32], strides = [1, 1, 1]} : vector<4x32x32xf32> to vector<4x1x32xf32>
    %169 = vector.shape_cast %168 : vector<4x1x32xf32> to vector<4x32xf32>
    %c0_79 = arith.constant 0 : index
    %c704 = arith.constant 704 : index
    %170 = vector.load %arg13[%c0_79, %c704] : memref<4x1280xf32, #tpu.memory_space<vmem>>, vector<4x32xf32>
    tpu.vector_store %arg13[%c0_79, %c704], %169 {strides = array<i32>} : memref<4x1280xf32, #tpu.memory_space<vmem>>, vector<4x32xf32>,
    %171 = vector.extract_strided_slice %57 {offsets = [0, 18, 0], sizes = [4, 1, 32], strides = [1, 1, 1]} : vector<4x32x32xf32> to vector<4x1x32xf32>
    %172 = vector.shape_cast %171 : vector<4x1x32xf32> to vector<4x32xf32>
    %c0_80 = arith.constant 0 : index
    %c576_81 = arith.constant 576 : index
    %173 = vector.load %arg14[%c0_80, %c576_81] : memref<4x1024xf32, #tpu.memory_space<vmem>>, vector<4x32xf32>
    tpu.vector_store %arg14[%c0_80, %c576_81], %172 {strides = array<i32>} : memref<4x1024xf32, #tpu.memory_space<vmem>>, vector<4x32xf32>,
    %174 = vector.extract_strided_slice %49 {offsets = [0, 19, 0], sizes = [4, 1, 32], strides = [1, 1, 1]} : vector<4x32x32xf32> to vector<4x1x32xf32>
    %175 = vector.shape_cast %174 : vector<4x1x32xf32> to vector<4x32xf32>
    %c0_82 = arith.constant 0 : index
    %c736 = arith.constant 736 : index
    %176 = vector.load %arg13[%c0_82, %c736] : memref<4x1280xf32, #tpu.memory_space<vmem>>, vector<4x32xf32>
    tpu.vector_store %arg13[%c0_82, %c736], %175 {strides = array<i32>} : memref<4x1280xf32, #tpu.memory_space<vmem>>, vector<4x32xf32>,
    %177 = vector.extract_strided_slice %57 {offsets = [0, 19, 0], sizes = [4, 1, 32], strides = [1, 1, 1]} : vector<4x32x32xf32> to vector<4x1x32xf32>
    %178 = vector.shape_cast %177 : vector<4x1x32xf32> to vector<4x32xf32>
    %c0_83 = arith.constant 0 : index
    %c608_84 = arith.constant 608 : index
    %179 = vector.load %arg14[%c0_83, %c608_84] : memref<4x1024xf32, #tpu.memory_space<vmem>>, vector<4x32xf32>
    tpu.vector_store %arg14[%c0_83, %c608_84], %178 {strides = array<i32>} : memref<4x1024xf32, #tpu.memory_space<vmem>>, vector<4x32xf32>,
    %180 = vector.extract_strided_slice %49 {offsets = [0, 20, 0], sizes = [4, 1, 32], strides = [1, 1, 1]} : vector<4x32x32xf32> to vector<4x1x32xf32>
    %181 = vector.shape_cast %180 : vector<4x1x32xf32> to vector<4x32xf32>
    %c0_85 = arith.constant 0 : index
    %c768 = arith.constant 768 : index
    %182 = vector.load %arg13[%c0_85, %c768] : memref<4x1280xf32, #tpu.memory_space<vmem>>, vector<4x32xf32>
    tpu.vector_store %arg13[%c0_85, %c768], %181 {strides = array<i32>} : memref<4x1280xf32, #tpu.memory_space<vmem>>, vector<4x32xf32>,
    %183 = vector.extract_strided_slice %57 {offsets = [0, 20, 0], sizes = [4, 1, 32], strides = [1, 1, 1]} : vector<4x32x32xf32> to vector<4x1x32xf32>
    %184 = vector.shape_cast %183 : vector<4x1x32xf32> to vector<4x32xf32>
    %c0_86 = arith.constant 0 : index
    %c640_87 = arith.constant 640 : index
    %185 = vector.load %arg14[%c0_86, %c640_87] : memref<4x1024xf32, #tpu.memory_space<vmem>>, vector<4x32xf32>
    tpu.vector_store %arg14[%c0_86, %c640_87], %184 {strides = array<i32>} : memref<4x1024xf32, #tpu.memory_space<vmem>>, vector<4x32xf32>,
    %186 = vector.extract_strided_slice %49 {offsets = [0, 21, 0], sizes = [4, 1, 32], strides = [1, 1, 1]} : vector<4x32x32xf32> to vector<4x1x32xf32>
    %187 = vector.shape_cast %186 : vector<4x1x32xf32> to vector<4x32xf32>
    %c0_88 = arith.constant 0 : index
    %c800 = arith.constant 800 : index
    %188 = vector.load %arg13[%c0_88, %c800] : memref<4x1280xf32, #tpu.memory_space<vmem>>, vector<4x32xf32>
    tpu.vector_store %arg13[%c0_88, %c800], %187 {strides = array<i32>} : memref<4x1280xf32, #tpu.memory_space<vmem>>, vector<4x32xf32>,
    %189 = vector.extract_strided_slice %57 {offsets = [0, 21, 0], sizes = [4, 1, 32], strides = [1, 1, 1]} : vector<4x32x32xf32> to vector<4x1x32xf32>
    %190 = vector.shape_cast %189 : vector<4x1x32xf32> to vector<4x32xf32>
    %c0_89 = arith.constant 0 : index
    %c672_90 = arith.constant 672 : index
    %191 = vector.load %arg14[%c0_89, %c672_90] : memref<4x1024xf32, #tpu.memory_space<vmem>>, vector<4x32xf32>
    tpu.vector_store %arg14[%c0_89, %c672_90], %190 {strides = array<i32>} : memref<4x1024xf32, #tpu.memory_space<vmem>>, vector<4x32xf32>,
    %192 = vector.extract_strided_slice %49 {offsets = [0, 22, 0], sizes = [4, 1, 32], strides = [1, 1, 1]} : vector<4x32x32xf32> to vector<4x1x32xf32>
    %193 = vector.shape_cast %192 : vector<4x1x32xf32> to vector<4x32xf32>
    %c0_91 = arith.constant 0 : index
    %c832 = arith.constant 832 : index
    %194 = vector.load %arg13[%c0_91, %c832] : memref<4x1280xf32, #tpu.memory_space<vmem>>, vector<4x32xf32>
    tpu.vector_store %arg13[%c0_91, %c832], %193 {strides = array<i32>} : memref<4x1280xf32, #tpu.memory_space<vmem>>, vector<4x32xf32>,
    %195 = vector.extract_strided_slice %57 {offsets = [0, 22, 0], sizes = [4, 1, 32], strides = [1, 1, 1]} : vector<4x32x32xf32> to vector<4x1x32xf32>
    %196 = vector.shape_cast %195 : vector<4x1x32xf32> to vector<4x32xf32>
    %c0_92 = arith.constant 0 : index
    %c704_93 = arith.constant 704 : index
    %197 = vector.load %arg14[%c0_92, %c704_93] : memref<4x1024xf32, #tpu.memory_space<vmem>>, vector<4x32xf32>
    tpu.vector_store %arg14[%c0_92, %c704_93], %196 {strides = array<i32>} : memref<4x1024xf32, #tpu.memory_space<vmem>>, vector<4x32xf32>,
    %198 = vector.extract_strided_slice %49 {offsets = [0, 23, 0], sizes = [4, 1, 32], strides = [1, 1, 1]} : vector<4x32x32xf32> to vector<4x1x32xf32>
    %199 = vector.shape_cast %198 : vector<4x1x32xf32> to vector<4x32xf32>
    %c0_94 = arith.constant 0 : index
    %c864 = arith.constant 864 : index
    %200 = vector.load %arg13[%c0_94, %c864] : memref<4x1280xf32, #tpu.memory_space<vmem>>, vector<4x32xf32>
    tpu.vector_store %arg13[%c0_94, %c864], %199 {strides = array<i32>} : memref<4x1280xf32, #tpu.memory_space<vmem>>, vector<4x32xf32>,
    %201 = vector.extract_strided_slice %57 {offsets = [0, 23, 0], sizes = [4, 1, 32], strides = [1, 1, 1]} : vector<4x32x32xf32> to vector<4x1x32xf32>
    %202 = vector.shape_cast %201 : vector<4x1x32xf32> to vector<4x32xf32>
    %c0_95 = arith.constant 0 : index
    %c736_96 = arith.constant 736 : index
    %203 = vector.load %arg14[%c0_95, %c736_96] : memref<4x1024xf32, #tpu.memory_space<vmem>>, vector<4x32xf32>
    tpu.vector_store %arg14[%c0_95, %c736_96], %202 {strides = array<i32>} : memref<4x1024xf32, #tpu.memory_space<vmem>>, vector<4x32xf32>,
    %204 = vector.extract_strided_slice %49 {offsets = [0, 24, 0], sizes = [4, 1, 32], strides = [1, 1, 1]} : vector<4x32x32xf32> to vector<4x1x32xf32>
    %205 = vector.shape_cast %204 : vector<4x1x32xf32> to vector<4x32xf32>
    %c0_97 = arith.constant 0 : index
    %c896 = arith.constant 896 : index
    %206 = vector.load %arg13[%c0_97, %c896] : memref<4x1280xf32, #tpu.memory_space<vmem>>, vector<4x32xf32>
    tpu.vector_store %arg13[%c0_97, %c896], %205 {strides = array<i32>} : memref<4x1280xf32, #tpu.memory_space<vmem>>, vector<4x32xf32>,
    %207 = vector.extract_strided_slice %57 {offsets = [0, 24, 0], sizes = [4, 1, 32], strides = [1, 1, 1]} : vector<4x32x32xf32> to vector<4x1x32xf32>
    %208 = vector.shape_cast %207 : vector<4x1x32xf32> to vector<4x32xf32>
    %c0_98 = arith.constant 0 : index
    %c768_99 = arith.constant 768 : index
    %209 = vector.load %arg14[%c0_98, %c768_99] : memref<4x1024xf32, #tpu.memory_space<vmem>>, vector<4x32xf32>
    tpu.vector_store %arg14[%c0_98, %c768_99], %208 {strides = array<i32>} : memref<4x1024xf32, #tpu.memory_space<vmem>>, vector<4x32xf32>,
    %210 = vector.extract_strided_slice %49 {offsets = [0, 25, 0], sizes = [4, 1, 32], strides = [1, 1, 1]} : vector<4x32x32xf32> to vector<4x1x32xf32>
    %211 = vector.shape_cast %210 : vector<4x1x32xf32> to vector<4x32xf32>
    %c0_100 = arith.constant 0 : index
    %c928 = arith.constant 928 : index
    %212 = vector.load %arg13[%c0_100, %c928] : memref<4x1280xf32, #tpu.memory_space<vmem>>, vector<4x32xf32>
    tpu.vector_store %arg13[%c0_100, %c928], %211 {strides = array<i32>} : memref<4x1280xf32, #tpu.memory_space<vmem>>, vector<4x32xf32>,
    %213 = vector.extract_strided_slice %57 {offsets = [0, 25, 0], sizes = [4, 1, 32], strides = [1, 1, 1]} : vector<4x32x32xf32> to vector<4x1x32xf32>
    %214 = vector.shape_cast %213 : vector<4x1x32xf32> to vector<4x32xf32>
    %c0_101 = arith.constant 0 : index
    %c800_102 = arith.constant 800 : index
    %215 = vector.load %arg14[%c0_101, %c800_102] : memref<4x1024xf32, #tpu.memory_space<vmem>>, vector<4x32xf32>
    tpu.vector_store %arg14[%c0_101, %c800_102], %214 {strides = array<i32>} : memref<4x1024xf32, #tpu.memory_space<vmem>>, vector<4x32xf32>,
    %216 = vector.extract_strided_slice %49 {offsets = [0, 26, 0], sizes = [4, 1, 32], strides = [1, 1, 1]} : vector<4x32x32xf32> to vector<4x1x32xf32>
    %217 = vector.shape_cast %216 : vector<4x1x32xf32> to vector<4x32xf32>
    %c0_103 = arith.constant 0 : index
    %c960 = arith.constant 960 : index
    %218 = vector.load %arg13[%c0_103, %c960] : memref<4x1280xf32, #tpu.memory_space<vmem>>, vector<4x32xf32>
    tpu.vector_store %arg13[%c0_103, %c960], %217 {strides = array<i32>} : memref<4x1280xf32, #tpu.memory_space<vmem>>, vector<4x32xf32>,
    %219 = vector.extract_strided_slice %57 {offsets = [0, 26, 0], sizes = [4, 1, 32], strides = [1, 1, 1]} : vector<4x32x32xf32> to vector<4x1x32xf32>
    %220 = vector.shape_cast %219 : vector<4x1x32xf32> to vector<4x32xf32>
    %c0_104 = arith.constant 0 : index
    %c832_105 = arith.constant 832 : index
    %221 = vector.load %arg14[%c0_104, %c832_105] : memref<4x1024xf32, #tpu.memory_space<vmem>>, vector<4x32xf32>
    tpu.vector_store %arg14[%c0_104, %c832_105], %220 {strides = array<i32>} : memref<4x1024xf32, #tpu.memory_space<vmem>>, vector<4x32xf32>,
    %222 = vector.extract_strided_slice %49 {offsets = [0, 27, 0], sizes = [4, 1, 32], strides = [1, 1, 1]} : vector<4x32x32xf32> to vector<4x1x32xf32>
    %223 = vector.shape_cast %222 : vector<4x1x32xf32> to vector<4x32xf32>
    %c0_106 = arith.constant 0 : index
    %c992 = arith.constant 992 : index
    %224 = vector.load %arg13[%c0_106, %c992] : memref<4x1280xf32, #tpu.memory_space<vmem>>, vector<4x32xf32>
    tpu.vector_store %arg13[%c0_106, %c992], %223 {strides = array<i32>} : memref<4x1280xf32, #tpu.memory_space<vmem>>, vector<4x32xf32>,
    %225 = vector.extract_strided_slice %57 {offsets = [0, 27, 0], sizes = [4, 1, 32], strides = [1, 1, 1]} : vector<4x32x32xf32> to vector<4x1x32xf32>
    %226 = vector.shape_cast %225 : vector<4x1x32xf32> to vector<4x32xf32>
    %c0_107 = arith.constant 0 : index
    %c864_108 = arith.constant 864 : index
    %227 = vector.load %arg14[%c0_107, %c864_108] : memref<4x1024xf32, #tpu.memory_space<vmem>>, vector<4x32xf32>
    tpu.vector_store %arg14[%c0_107, %c864_108], %226 {strides = array<i32>} : memref<4x1024xf32, #tpu.memory_space<vmem>>, vector<4x32xf32>,
    %228 = vector.extract_strided_slice %49 {offsets = [0, 28, 0], sizes = [4, 1, 32], strides = [1, 1, 1]} : vector<4x32x32xf32> to vector<4x1x32xf32>
    %229 = vector.shape_cast %228 : vector<4x1x32xf32> to vector<4x32xf32>
    %c0_109 = arith.constant 0 : index
    %c1024 = arith.constant 1024 : index
    %230 = vector.load %arg13[%c0_109, %c1024] : memref<4x1280xf32, #tpu.memory_space<vmem>>, vector<4x32xf32>
    tpu.vector_store %arg13[%c0_109, %c1024], %229 {strides = array<i32>} : memref<4x1280xf32, #tpu.memory_space<vmem>>, vector<4x32xf32>,
    %231 = vector.extract_strided_slice %57 {offsets = [0, 28, 0], sizes = [4, 1, 32], strides = [1, 1, 1]} : vector<4x32x32xf32> to vector<4x1x32xf32>
    %232 = vector.shape_cast %231 : vector<4x1x32xf32> to vector<4x32xf32>
    %c0_110 = arith.constant 0 : index
    %c896_111 = arith.constant 896 : index
    %233 = vector.load %arg14[%c0_110, %c896_111] : memref<4x1024xf32, #tpu.memory_space<vmem>>, vector<4x32xf32>
    tpu.vector_store %arg14[%c0_110, %c896_111], %232 {strides = array<i32>} : memref<4x1024xf32, #tpu.memory_space<vmem>>, vector<4x32xf32>,
    %234 = vector.extract_strided_slice %49 {offsets = [0, 29, 0], sizes = [4, 1, 32], strides = [1, 1, 1]} : vector<4x32x32xf32> to vector<4x1x32xf32>
    %235 = vector.shape_cast %234 : vector<4x1x32xf32> to vector<4x32xf32>
    %c0_112 = arith.constant 0 : index
    %c1056 = arith.constant 1056 : index
    %236 = vector.load %arg13[%c0_112, %c1056] : memref<4x1280xf32, #tpu.memory_space<vmem>>, vector<4x32xf32>
    tpu.vector_store %arg13[%c0_112, %c1056], %235 {strides = array<i32>} : memref<4x1280xf32, #tpu.memory_space<vmem>>, vector<4x32xf32>,
    %237 = vector.extract_strided_slice %57 {offsets = [0, 29, 0], sizes = [4, 1, 32], strides = [1, 1, 1]} : vector<4x32x32xf32> to vector<4x1x32xf32>
    %238 = vector.shape_cast %237 : vector<4x1x32xf32> to vector<4x32xf32>
    %c0_113 = arith.constant 0 : index
    %c928_114 = arith.constant 928 : index
    %239 = vector.load %arg14[%c0_113, %c928_114] : memref<4x1024xf32, #tpu.memory_space<vmem>>, vector<4x32xf32>
    tpu.vector_store %arg14[%c0_113, %c928_114], %238 {strides = array<i32>} : memref<4x1024xf32, #tpu.memory_space<vmem>>, vector<4x32xf32>,
    %240 = vector.extract_strided_slice %49 {offsets = [0, 30, 0], sizes = [4, 1, 32], strides = [1, 1, 1]} : vector<4x32x32xf32> to vector<4x1x32xf32>
    %241 = vector.shape_cast %240 : vector<4x1x32xf32> to vector<4x32xf32>
    %c0_115 = arith.constant 0 : index
    %c1088 = arith.constant 1088 : index
    %242 = vector.load %arg13[%c0_115, %c1088] : memref<4x1280xf32, #tpu.memory_space<vmem>>, vector<4x32xf32>
    tpu.vector_store %arg13[%c0_115, %c1088], %241 {strides = array<i32>} : memref<4x1280xf32, #tpu.memory_space<vmem>>, vector<4x32xf32>,
    %243 = vector.extract_strided_slice %57 {offsets = [0, 30, 0], sizes = [4, 1, 32], strides = [1, 1, 1]} : vector<4x32x32xf32> to vector<4x1x32xf32>
    %244 = vector.shape_cast %243 : vector<4x1x32xf32> to vector<4x32xf32>
    %c0_116 = arith.constant 0 : index
    %c960_117 = arith.constant 960 : index
    %245 = vector.load %arg14[%c0_116, %c960_117] : memref<4x1024xf32, #tpu.memory_space<vmem>>, vector<4x32xf32>
    tpu.vector_store %arg14[%c0_116, %c960_117], %244 {strides = array<i32>} : memref<4x1024xf32, #tpu.memory_space<vmem>>, vector<4x32xf32>,
    %246 = vector.extract_strided_slice %49 {offsets = [0, 31, 0], sizes = [4, 1, 32], strides = [1, 1, 1]} : vector<4x32x32xf32> to vector<4x1x32xf32>
    %247 = vector.shape_cast %246 : vector<4x1x32xf32> to vector<4x32xf32>
    %c0_118 = arith.constant 0 : index
    %c1120 = arith.constant 1120 : index
    %248 = vector.load %arg13[%c0_118, %c1120] : memref<4x1280xf32, #tpu.memory_space<vmem>>, vector<4x32xf32>
    tpu.vector_store %arg13[%c0_118, %c1120], %247 {strides = array<i32>} : memref<4x1280xf32, #tpu.memory_space<vmem>>, vector<4x32xf32>,
    %249 = vector.extract_strided_slice %57 {offsets = [0, 31, 0], sizes = [4, 1, 32], strides = [1, 1, 1]} : vector<4x32x32xf32> to vector<4x1x32xf32>
    %250 = vector.shape_cast %249 : vector<4x1x32xf32> to vector<4x32xf32>
    %c0_119 = arith.constant 0 : index
    %c992_120 = arith.constant 992 : index
    %251 = vector.load %arg14[%c0_119, %c992_120] : memref<4x1024xf32, #tpu.memory_space<vmem>>, vector<4x32xf32>
    tpu.vector_store %arg14[%c0_119, %c992_120], %250 {strides = array<i32>} : memref<4x1024xf32, #tpu.memory_space<vmem>>, vector<4x32xf32>,
    %c0_121 = arith.constant 0 : index
    %c0_122 = arith.constant 0 : index
    %252 = vector.load %arg7[%c0_121, %c0_122] : memref<8x1xf32, #tpu.memory_space<vmem>>, vector<8x1xf32>
    %c0_123 = arith.constant 0 : index
    %c0_124 = arith.constant 0 : index
    %253 = vector.load %arg13[%c0_123, %c0_124] : memref<4x1280xf32, #tpu.memory_space<vmem>>, vector<4x1280xf32>
    %cst_125 = arith.constant 0.000000e+00 : f32
    %254 = vector.broadcast %cst_125 : f32 to vector<8x1024xf32>
    %255 = vector.broadcast %252 : vector<8x1xf32> to vector<8x1024xf32>
    %256 = arith.addf %254, %255 : vector<8x1024xf32>
    %257 = vector.extract_strided_slice %253 {offsets = [0, 95], sizes = [4, 1024], strides = [1, 1]} : vector<4x1280xf32> to vector<4x1024xf32>
    %258 = vector.broadcast %10 : vector<1x1024xf32> to vector<4x1024xf32>
    %259 = arith.mulf %257, %258 : vector<4x1024xf32>
    %c0_126 = arith.constant 0 : index
    %c0_127 = arith.constant 0 : index
    %c0_128 = arith.constant 0 : index
    %260 = vector.load %arg6[%c0_126, %c0_127, %c0_128] : memref<9x8x4xbf16, #tpu.memory_space<vmem>>, vector<1x8x4xbf16>
    %261 = vector.shape_cast %260 : vector<1x8x4xbf16> to vector<8x4xbf16>
    %262 = arith.truncf %259 : vector<4x1024xf32> to vector<4x1024xbf16>
    %cst_129 = arith.constant dense<0.000000e+00> : vector<8x1024xf32>
    %263 = tpu.matmul %261, %262, %cst_129 {dimension_numbers = #tpu.dot_dimension_numbers<[1], [0], [0], [1], [0, 0, 1, 1], [], []>} : vector<8x4xbf16>, vector<4x1024xbf16>, vector<8x1024xf32> -> vector<8x1024xf32>
    %264 = arith.addf %256, %263 : vector<8x1024xf32>
    %265 = vector.extract_strided_slice %253 {offsets = [0, 96], sizes = [4, 1024], strides = [1, 1]} : vector<4x1280xf32> to vector<4x1024xf32>
    %c1_130 = arith.constant 1 : index
    %c0_131 = arith.constant 0 : index
    %c0_132 = arith.constant 0 : index
    %266 = vector.load %arg6[%c1_130, %c0_131, %c0_132] : memref<9x8x4xbf16, #tpu.memory_space<vmem>>, vector<1x8x4xbf16>
    %267 = vector.shape_cast %266 : vector<1x8x4xbf16> to vector<8x4xbf16>
    %268 = arith.truncf %265 : vector<4x1024xf32> to vector<4x1024xbf16>
    %cst_133 = arith.constant dense<0.000000e+00> : vector<8x1024xf32>
    %269 = tpu.matmul %267, %268, %cst_133 {dimension_numbers = #tpu.dot_dimension_numbers<[1], [0], [0], [1], [0, 0, 1, 1], [], []>} : vector<8x4xbf16>, vector<4x1024xbf16>, vector<8x1024xf32> -> vector<8x1024xf32>
    %270 = arith.addf %264, %269 : vector<8x1024xf32>
    %271 = vector.extract_strided_slice %253 {offsets = [0, 97], sizes = [4, 1024], strides = [1, 1]} : vector<4x1280xf32> to vector<4x1024xf32>
    %272 = vector.broadcast %11 : vector<1x1024xf32> to vector<4x1024xf32>
    %273 = arith.mulf %271, %272 : vector<4x1024xf32>
    %c2 = arith.constant 2 : index
    %c0_134 = arith.constant 0 : index
    %c0_135 = arith.constant 0 : index
    %274 = vector.load %arg6[%c2, %c0_134, %c0_135] : memref<9x8x4xbf16, #tpu.memory_space<vmem>>, vector<1x8x4xbf16>
    %275 = vector.shape_cast %274 : vector<1x8x4xbf16> to vector<8x4xbf16>
    %276 = arith.truncf %273 : vector<4x1024xf32> to vector<4x1024xbf16>
    %cst_136 = arith.constant dense<0.000000e+00> : vector<8x1024xf32>
    %277 = tpu.matmul %275, %276, %cst_136 {dimension_numbers = #tpu.dot_dimension_numbers<[1], [0], [0], [1], [0, 0, 1, 1], [], []>} : vector<8x4xbf16>, vector<4x1024xbf16>, vector<8x1024xf32> -> vector<8x1024xf32>
    %278 = arith.addf %270, %277 : vector<8x1024xf32>
    %279 = vector.extract_strided_slice %253 {offsets = [0, 127], sizes = [4, 1024], strides = [1, 1]} : vector<4x1280xf32> to vector<4x1024xf32>
    %280 = vector.broadcast %10 : vector<1x1024xf32> to vector<4x1024xf32>
    %281 = arith.mulf %279, %280 : vector<4x1024xf32>
    %c3 = arith.constant 3 : index
    %c0_137 = arith.constant 0 : index
    %c0_138 = arith.constant 0 : index
    %282 = vector.load %arg6[%c3, %c0_137, %c0_138] : memref<9x8x4xbf16, #tpu.memory_space<vmem>>, vector<1x8x4xbf16>
    %283 = vector.shape_cast %282 : vector<1x8x4xbf16> to vector<8x4xbf16>
    %284 = arith.truncf %281 : vector<4x1024xf32> to vector<4x1024xbf16>
    %cst_139 = arith.constant dense<0.000000e+00> : vector<8x1024xf32>
    %285 = tpu.matmul %283, %284, %cst_139 {dimension_numbers = #tpu.dot_dimension_numbers<[1], [0], [0], [1], [0, 0, 1, 1], [], []>} : vector<8x4xbf16>, vector<4x1024xbf16>, vector<8x1024xf32> -> vector<8x1024xf32>
    %286 = arith.addf %278, %285 : vector<8x1024xf32>
    %287 = vector.extract_strided_slice %253 {offsets = [0, 128], sizes = [4, 1024], strides = [1, 1]} : vector<4x1280xf32> to vector<4x1024xf32>
    %c4 = arith.constant 4 : index
    %c0_140 = arith.constant 0 : index
    %c0_141 = arith.constant 0 : index
    %288 = vector.load %arg6[%c4, %c0_140, %c0_141] : memref<9x8x4xbf16, #tpu.memory_space<vmem>>, vector<1x8x4xbf16>
    %289 = vector.shape_cast %288 : vector<1x8x4xbf16> to vector<8x4xbf16>
    %290 = arith.truncf %287 : vector<4x1024xf32> to vector<4x1024xbf16>
    %cst_142 = arith.constant dense<0.000000e+00> : vector<8x1024xf32>
    %291 = tpu.matmul %289, %290, %cst_142 {dimension_numbers = #tpu.dot_dimension_numbers<[1], [0], [0], [1], [0, 0, 1, 1], [], []>} : vector<8x4xbf16>, vector<4x1024xbf16>, vector<8x1024xf32> -> vector<8x1024xf32>
    %292 = arith.addf %286, %291 : vector<8x1024xf32>
    %293 = vector.extract_strided_slice %253 {offsets = [0, 129], sizes = [4, 1024], strides = [1, 1]} : vector<4x1280xf32> to vector<4x1024xf32>
    %294 = vector.broadcast %11 : vector<1x1024xf32> to vector<4x1024xf32>
    %295 = arith.mulf %293, %294 : vector<4x1024xf32>
    %c5 = arith.constant 5 : index
    %c0_143 = arith.constant 0 : index
    %c0_144 = arith.constant 0 : index
    %296 = vector.load %arg6[%c5, %c0_143, %c0_144] : memref<9x8x4xbf16, #tpu.memory_space<vmem>>, vector<1x8x4xbf16>
    %297 = vector.shape_cast %296 : vector<1x8x4xbf16> to vector<8x4xbf16>
    %298 = arith.truncf %295 : vector<4x1024xf32> to vector<4x1024xbf16>
    %cst_145 = arith.constant dense<0.000000e+00> : vector<8x1024xf32>
    %299 = tpu.matmul %297, %298, %cst_145 {dimension_numbers = #tpu.dot_dimension_numbers<[1], [0], [0], [1], [0, 0, 1, 1], [], []>} : vector<8x4xbf16>, vector<4x1024xbf16>, vector<8x1024xf32> -> vector<8x1024xf32>
    %300 = arith.addf %292, %299 : vector<8x1024xf32>
    %301 = vector.extract_strided_slice %253 {offsets = [0, 159], sizes = [4, 1024], strides = [1, 1]} : vector<4x1280xf32> to vector<4x1024xf32>
    %302 = vector.broadcast %10 : vector<1x1024xf32> to vector<4x1024xf32>
    %303 = arith.mulf %301, %302 : vector<4x1024xf32>
    %c6 = arith.constant 6 : index
    %c0_146 = arith.constant 0 : index
    %c0_147 = arith.constant 0 : index
    %304 = vector.load %arg6[%c6, %c0_146, %c0_147] : memref<9x8x4xbf16, #tpu.memory_space<vmem>>, vector<1x8x4xbf16>
    %305 = vector.shape_cast %304 : vector<1x8x4xbf16> to vector<8x4xbf16>
    %306 = arith.truncf %303 : vector<4x1024xf32> to vector<4x1024xbf16>
    %cst_148 = arith.constant dense<0.000000e+00> : vector<8x1024xf32>
    %307 = tpu.matmul %305, %306, %cst_148 {dimension_numbers = #tpu.dot_dimension_numbers<[1], [0], [0], [1], [0, 0, 1, 1], [], []>} : vector<8x4xbf16>, vector<4x1024xbf16>, vector<8x1024xf32> -> vector<8x1024xf32>
    %308 = arith.addf %300, %307 : vector<8x1024xf32>
    %309 = vector.extract_strided_slice %253 {offsets = [0, 160], sizes = [4, 1024], strides = [1, 1]} : vector<4x1280xf32> to vector<4x1024xf32>
    %c7 = arith.constant 7 : index
    %c0_149 = arith.constant 0 : index
    %c0_150 = arith.constant 0 : index
    %310 = vector.load %arg6[%c7, %c0_149, %c0_150] : memref<9x8x4xbf16, #tpu.memory_space<vmem>>, vector<1x8x4xbf16>
    %311 = vector.shape_cast %310 : vector<1x8x4xbf16> to vector<8x4xbf16>
    %312 = arith.truncf %309 : vector<4x1024xf32> to vector<4x1024xbf16>
    %cst_151 = arith.constant dense<0.000000e+00> : vector<8x1024xf32>
    %313 = tpu.matmul %311, %312, %cst_151 {dimension_numbers = #tpu.dot_dimension_numbers<[1], [0], [0], [1], [0, 0, 1, 1], [], []>} : vector<8x4xbf16>, vector<4x1024xbf16>, vector<8x1024xf32> -> vector<8x1024xf32>
    %314 = arith.addf %308, %313 : vector<8x1024xf32>
    %315 = vector.extract_strided_slice %253 {offsets = [0, 161], sizes = [4, 1024], strides = [1, 1]} : vector<4x1280xf32> to vector<4x1024xf32>
    %316 = vector.broadcast %11 : vector<1x1024xf32> to vector<4x1024xf32>
    %317 = arith.mulf %315, %316 : vector<4x1024xf32>
    %c8 = arith.constant 8 : index
    %c0_152 = arith.constant 0 : index
    %c0_153 = arith.constant 0 : index
    %318 = vector.load %arg6[%c8, %c0_152, %c0_153] : memref<9x8x4xbf16, #tpu.memory_space<vmem>>, vector<1x8x4xbf16>
    %319 = vector.shape_cast %318 : vector<1x8x4xbf16> to vector<8x4xbf16>
    %320 = arith.truncf %317 : vector<4x1024xf32> to vector<4x1024xbf16>
    %cst_154 = arith.constant dense<0.000000e+00> : vector<8x1024xf32>
    %321 = tpu.matmul %319, %320, %cst_154 {dimension_numbers = #tpu.dot_dimension_numbers<[1], [0], [0], [1], [0, 0, 1, 1], [], []>} : vector<8x4xbf16>, vector<4x1024xbf16>, vector<8x1024xf32> -> vector<8x1024xf32>
    %322 = arith.addf %314, %321 : vector<8x1024xf32>
    %cst_155 = arith.constant dense<0.000000e+00> : vector<8xf32>
    %323 = vector.multi_reduction <add>, %322, %cst_155 [1] : vector<8x1024xf32> to vector<8xf32>
    %324 = vector.shape_cast %323 : vector<8xf32> to vector<8x1xf32>
    %cst_156 = arith.constant 1.024000e+03 : f32
    %325 = vector.broadcast %cst_156 : f32 to vector<8x1xf32>
    %326 = arith.divf %324, %325 : vector<8x1xf32>
    %327 = vector.broadcast %326 : vector<8x1xf32> to vector<8x1024xf32>
    %328 = arith.subf %322, %327 : vector<8x1024xf32>
    %329 = arith.mulf %328, %328 : vector<8x1024xf32>
    %cst_157 = arith.constant dense<0.000000e+00> : vector<8xf32>
    %330 = vector.multi_reduction <add>, %329, %cst_157 [1] : vector<8x1024xf32> to vector<8xf32>
    %331 = vector.shape_cast %330 : vector<8xf32> to vector<8x1xf32>
    %cst_158 = arith.constant 1.023000e+03 : f32
    %332 = vector.broadcast %cst_158 : f32 to vector<8x1xf32>
    %333 = arith.divf %331, %332 : vector<8x1xf32>
    %334 = math.sqrt %333 : vector<8x1xf32>
    %cst_159 = arith.constant 9.99999974E-6 : f32
    %335 = vector.broadcast %cst_159 : f32 to vector<8x1xf32>
    %336 = arith.addf %334, %335 : vector<8x1xf32>
    %337 = arith.divf %7, %336 : vector<8x1xf32>
    %338 = vector.broadcast %337 : vector<8x1xf32> to vector<8x1024xf32>
    %339 = arith.mulf %328, %338 : vector<8x1024xf32>
    %340 = vector.broadcast %6 : vector<8x1xf32> to vector<8x1024xf32>
    %341 = arith.addf %339, %340 : vector<8x1024xf32>
    %cst_160 = arith.constant 0.000000e+00 : f32
    %342 = vector.broadcast %cst_160 : f32 to vector<8x1024xf32>
    %343 = arith.cmpf oge, %341, %342 : vector<8x1024xf32>
    %cst_161 = arith.constant 0.00999999977 : f32
    %344 = vector.broadcast %cst_161 : f32 to vector<8x1024xf32>
    %345 = arith.mulf %344, %341 : vector<8x1024xf32>
    %346 = arith.select %343, %341, %345 : vector<8x1024xi1>, vector<8x1024xf32>
    %cst_162 = arith.constant 0.000000e+00 : f32
    %347 = vector.broadcast %cst_162 : f32 to vector<8x1280xf32>
    %c0_163 = arith.constant 0 : index
    %c0_164 = arith.constant 0 : index
    %348 = vector.load %arg15[%c0_163, %c0_164] : memref<8x1280xf32, #tpu.memory_space<vmem>>, vector<8x1280xf32>
    tpu.vector_store %arg15[%c0_163, %c0_164], %347 {strides = array<i32>} : memref<8x1280xf32, #tpu.memory_space<vmem>>, vector<8x1280xf32>,
    %c0_165 = arith.constant 0 : index
    %c128_166 = arith.constant 128 : index
    %349 = vector.load %arg15[%c0_165, %c128_166] : memref<8x1280xf32, #tpu.memory_space<vmem>>, vector<8x1024xf32>
    tpu.vector_store %arg15[%c0_165, %c128_166], %346 {strides = array<i32>} : memref<8x1280xf32, #tpu.memory_space<vmem>>, vector<8x1024xf32>,
    %c0_167 = arith.constant 0 : index
    %c0_168 = arith.constant 0 : index
    %350 = vector.load %arg9[%c0_167, %c0_168] : memref<4x1xf32, #tpu.memory_space<vmem>>, vector<4x1xf32>
    %c0_169 = arith.constant 0 : index
    %c0_170 = arith.constant 0 : index
    %351 = vector.load %arg15[%c0_169, %c0_170] : memref<8x1280xf32, #tpu.memory_space<vmem>>, vector<8x1280xf32>
    %cst_171 = arith.constant 0.000000e+00 : f32
    %352 = vector.broadcast %cst_171 : f32 to vector<4x1024xf32>
    %353 = vector.broadcast %350 : vector<4x1xf32> to vector<4x1024xf32>
    %354 = arith.addf %352, %353 : vector<4x1024xf32>
    %355 = vector.extract_strided_slice %351 {offsets = [0, 95], sizes = [8, 1024], strides = [1, 1]} : vector<8x1280xf32> to vector<8x1024xf32>
    %356 = vector.broadcast %10 : vector<1x1024xf32> to vector<8x1024xf32>
    %357 = arith.mulf %355, %356 : vector<8x1024xf32>
    %c0_172 = arith.constant 0 : index
    %c0_173 = arith.constant 0 : index
    %c0_174 = arith.constant 0 : index
    %358 = vector.load %arg8[%c0_172, %c0_173, %c0_174] : memref<9x4x8xbf16, #tpu.memory_space<vmem>>, vector<1x4x8xbf16>
    %359 = vector.shape_cast %358 : vector<1x4x8xbf16> to vector<4x8xbf16>
    %360 = arith.truncf %357 : vector<8x1024xf32> to vector<8x1024xbf16>
    %cst_175 = arith.constant dense<0.000000e+00> : vector<4x1024xf32>
    %361 = tpu.matmul %359, %360, %cst_175 {dimension_numbers = #tpu.dot_dimension_numbers<[1], [0], [0], [1], [0, 0, 1, 1], [], []>} : vector<4x8xbf16>, vector<8x1024xbf16>, vector<4x1024xf32> -> vector<4x1024xf32>
    %362 = arith.addf %354, %361 : vector<4x1024xf32>
    %363 = vector.extract_strided_slice %351 {offsets = [0, 96], sizes = [8, 1024], strides = [1, 1]} : vector<8x1280xf32> to vector<8x1024xf32>
    %c1_176 = arith.constant 1 : index
    %c0_177 = arith.constant 0 : index
    %c0_178 = arith.constant 0 : index
    %364 = vector.load %arg8[%c1_176, %c0_177, %c0_178] : memref<9x4x8xbf16, #tpu.memory_space<vmem>>, vector<1x4x8xbf16>
    %365 = vector.shape_cast %364 : vector<1x4x8xbf16> to vector<4x8xbf16>
    %366 = arith.truncf %363 : vector<8x1024xf32> to vector<8x1024xbf16>
    %cst_179 = arith.constant dense<0.000000e+00> : vector<4x1024xf32>
    %367 = tpu.matmul %365, %366, %cst_179 {dimension_numbers = #tpu.dot_dimension_numbers<[1], [0], [0], [1], [0, 0, 1, 1], [], []>} : vector<4x8xbf16>, vector<8x1024xbf16>, vector<4x1024xf32> -> vector<4x1024xf32>
    %368 = arith.addf %362, %367 : vector<4x1024xf32>
    %369 = vector.extract_strided_slice %351 {offsets = [0, 97], sizes = [8, 1024], strides = [1, 1]} : vector<8x1280xf32> to vector<8x1024xf32>
    %370 = vector.broadcast %11 : vector<1x1024xf32> to vector<8x1024xf32>
    %371 = arith.mulf %369, %370 : vector<8x1024xf32>
    %c2_180 = arith.constant 2 : index
    %c0_181 = arith.constant 0 : index
    %c0_182 = arith.constant 0 : index
    %372 = vector.load %arg8[%c2_180, %c0_181, %c0_182] : memref<9x4x8xbf16, #tpu.memory_space<vmem>>, vector<1x4x8xbf16>
    %373 = vector.shape_cast %372 : vector<1x4x8xbf16> to vector<4x8xbf16>
    %374 = arith.truncf %371 : vector<8x1024xf32> to vector<8x1024xbf16>
    %cst_183 = arith.constant dense<0.000000e+00> : vector<4x1024xf32>
    %375 = tpu.matmul %373, %374, %cst_183 {dimension_numbers = #tpu.dot_dimension_numbers<[1], [0], [0], [1], [0, 0, 1, 1], [], []>} : vector<4x8xbf16>, vector<8x1024xbf16>, vector<4x1024xf32> -> vector<4x1024xf32>
    %376 = arith.addf %368, %375 : vector<4x1024xf32>
    %377 = vector.extract_strided_slice %351 {offsets = [0, 127], sizes = [8, 1024], strides = [1, 1]} : vector<8x1280xf32> to vector<8x1024xf32>
    %378 = vector.broadcast %10 : vector<1x1024xf32> to vector<8x1024xf32>
    %379 = arith.mulf %377, %378 : vector<8x1024xf32>
    %c3_184 = arith.constant 3 : index
    %c0_185 = arith.constant 0 : index
    %c0_186 = arith.constant 0 : index
    %380 = vector.load %arg8[%c3_184, %c0_185, %c0_186] : memref<9x4x8xbf16, #tpu.memory_space<vmem>>, vector<1x4x8xbf16>
    %381 = vector.shape_cast %380 : vector<1x4x8xbf16> to vector<4x8xbf16>
    %382 = arith.truncf %379 : vector<8x1024xf32> to vector<8x1024xbf16>
    %cst_187 = arith.constant dense<0.000000e+00> : vector<4x1024xf32>
    %383 = tpu.matmul %381, %382, %cst_187 {dimension_numbers = #tpu.dot_dimension_numbers<[1], [0], [0], [1], [0, 0, 1, 1], [], []>} : vector<4x8xbf16>, vector<8x1024xbf16>, vector<4x1024xf32> -> vector<4x1024xf32>
    %384 = arith.addf %376, %383 : vector<4x1024xf32>
    %385 = vector.extract_strided_slice %351 {offsets = [0, 128], sizes = [8, 1024], strides = [1, 1]} : vector<8x1280xf32> to vector<8x1024xf32>
    %c4_188 = arith.constant 4 : index
    %c0_189 = arith.constant 0 : index
    %c0_190 = arith.constant 0 : index
    %386 = vector.load %arg8[%c4_188, %c0_189, %c0_190] : memref<9x4x8xbf16, #tpu.memory_space<vmem>>, vector<1x4x8xbf16>
    %387 = vector.shape_cast %386 : vector<1x4x8xbf16> to vector<4x8xbf16>
    %388 = arith.truncf %385 : vector<8x1024xf32> to vector<8x1024xbf16>
    %cst_191 = arith.constant dense<0.000000e+00> : vector<4x1024xf32>
    %389 = tpu.matmul %387, %388, %cst_191 {dimension_numbers = #tpu.dot_dimension_numbers<[1], [0], [0], [1], [0, 0, 1, 1], [], []>} : vector<4x8xbf16>, vector<8x1024xbf16>, vector<4x1024xf32> -> vector<4x1024xf32>
    %390 = arith.addf %384, %389 : vector<4x1024xf32>
    %391 = vector.extract_strided_slice %351 {offsets = [0, 129], sizes = [8, 1024], strides = [1, 1]} : vector<8x1280xf32> to vector<8x1024xf32>
    %392 = vector.broadcast %11 : vector<1x1024xf32> to vector<8x1024xf32>
    %393 = arith.mulf %391, %392 : vector<8x1024xf32>
    %c5_192 = arith.constant 5 : index
    %c0_193 = arith.constant 0 : index
    %c0_194 = arith.constant 0 : index
    %394 = vector.load %arg8[%c5_192, %c0_193, %c0_194] : memref<9x4x8xbf16, #tpu.memory_space<vmem>>, vector<1x4x8xbf16>
    %395 = vector.shape_cast %394 : vector<1x4x8xbf16> to vector<4x8xbf16>
    %396 = arith.truncf %393 : vector<8x1024xf32> to vector<8x1024xbf16>
    %cst_195 = arith.constant dense<0.000000e+00> : vector<4x1024xf32>
    %397 = tpu.matmul %395, %396, %cst_195 {dimension_numbers = #tpu.dot_dimension_numbers<[1], [0], [0], [1], [0, 0, 1, 1], [], []>} : vector<4x8xbf16>, vector<8x1024xbf16>, vector<4x1024xf32> -> vector<4x1024xf32>
    %398 = arith.addf %390, %397 : vector<4x1024xf32>
    %399 = vector.extract_strided_slice %351 {offsets = [0, 159], sizes = [8, 1024], strides = [1, 1]} : vector<8x1280xf32> to vector<8x1024xf32>
    %400 = vector.broadcast %10 : vector<1x1024xf32> to vector<8x1024xf32>
    %401 = arith.mulf %399, %400 : vector<8x1024xf32>
    %c6_196 = arith.constant 6 : index
    %c0_197 = arith.constant 0 : index
    %c0_198 = arith.constant 0 : index
    %402 = vector.load %arg8[%c6_196, %c0_197, %c0_198] : memref<9x4x8xbf16, #tpu.memory_space<vmem>>, vector<1x4x8xbf16>
    %403 = vector.shape_cast %402 : vector<1x4x8xbf16> to vector<4x8xbf16>
    %404 = arith.truncf %401 : vector<8x1024xf32> to vector<8x1024xbf16>
    %cst_199 = arith.constant dense<0.000000e+00> : vector<4x1024xf32>
    %405 = tpu.matmul %403, %404, %cst_199 {dimension_numbers = #tpu.dot_dimension_numbers<[1], [0], [0], [1], [0, 0, 1, 1], [], []>} : vector<4x8xbf16>, vector<8x1024xbf16>, vector<4x1024xf32> -> vector<4x1024xf32>
    %406 = arith.addf %398, %405 : vector<4x1024xf32>
    %407 = vector.extract_strided_slice %351 {offsets = [0, 160], sizes = [8, 1024], strides = [1, 1]} : vector<8x1280xf32> to vector<8x1024xf32>
    %c7_200 = arith.constant 7 : index
    %c0_201 = arith.constant 0 : index
    %c0_202 = arith.constant 0 : index
    %408 = vector.load %arg8[%c7_200, %c0_201, %c0_202] : memref<9x4x8xbf16, #tpu.memory_space<vmem>>, vector<1x4x8xbf16>
    %409 = vector.shape_cast %408 : vector<1x4x8xbf16> to vector<4x8xbf16>
    %410 = arith.truncf %407 : vector<8x1024xf32> to vector<8x1024xbf16>
    %cst_203 = arith.constant dense<0.000000e+00> : vector<4x1024xf32>
    %411 = tpu.matmul %409, %410, %cst_203 {dimension_numbers = #tpu.dot_dimension_numbers<[1], [0], [0], [1], [0, 0, 1, 1], [], []>} : vector<4x8xbf16>, vector<8x1024xbf16>, vector<4x1024xf32> -> vector<4x1024xf32>
    %412 = arith.addf %406, %411 : vector<4x1024xf32>
    %413 = vector.extract_strided_slice %351 {offsets = [0, 161], sizes = [8, 1024], strides = [1, 1]} : vector<8x1280xf32> to vector<8x1024xf32>
    %414 = vector.broadcast %11 : vector<1x1024xf32> to vector<8x1024xf32>
    %415 = arith.mulf %413, %414 : vector<8x1024xf32>
    %c8_204 = arith.constant 8 : index
    %c0_205 = arith.constant 0 : index
    %c0_206 = arith.constant 0 : index
    %416 = vector.load %arg8[%c8_204, %c0_205, %c0_206] : memref<9x4x8xbf16, #tpu.memory_space<vmem>>, vector<1x4x8xbf16>
    %417 = vector.shape_cast %416 : vector<1x4x8xbf16> to vector<4x8xbf16>
    %418 = arith.truncf %415 : vector<8x1024xf32> to vector<8x1024xbf16>
    %cst_207 = arith.constant dense<0.000000e+00> : vector<4x1024xf32>
    %419 = tpu.matmul %417, %418, %cst_207 {dimension_numbers = #tpu.dot_dimension_numbers<[1], [0], [0], [1], [0, 0, 1, 1], [], []>} : vector<4x8xbf16>, vector<8x1024xbf16>, vector<4x1024xf32> -> vector<4x1024xf32>
    %420 = arith.addf %412, %419 : vector<4x1024xf32>
    %c0_208 = arith.constant 0 : index
    %c0_209 = arith.constant 0 : index
    %421 = vector.load %arg10[%c0_208, %c0_209] : memref<4x4xbf16, #tpu.memory_space<vmem>>, vector<4x4xbf16>
    %c0_210 = arith.constant 0 : index
    %c0_211 = arith.constant 0 : index
    %422 = vector.load %arg14[%c0_210, %c0_211] : memref<4x1024xf32, #tpu.memory_space<vmem>>, vector<4x1024xf32>
    %423 = arith.truncf %422 : vector<4x1024xf32> to vector<4x1024xbf16>
    %cst_212 = arith.constant dense<0.000000e+00> : vector<4x1024xf32>
    %424 = tpu.matmul %421, %423, %cst_212 {dimension_numbers = #tpu.dot_dimension_numbers<[1], [0], [0], [1], [0, 0, 1, 1], [], []>} : vector<4x4xbf16>, vector<4x1024xbf16>, vector<4x1024xf32> -> vector<4x1024xf32>
    %425 = arith.addf %420, %424 : vector<4x1024xf32>
    %c0_213 = arith.constant 0 : index
    %c0_214 = arith.constant 0 : index
    %426 = vector.load %arg11[%c0_213, %c0_214] : memref<4x1xf32, #tpu.memory_space<vmem>>, vector<4x1xf32>
    %427 = vector.broadcast %426 : vector<4x1xf32> to vector<4x1024xf32>
    %428 = arith.addf %425, %427 : vector<4x1024xf32>
    %c0_215 = arith.constant 0 : index
    %c0_216 = arith.constant 0 : index
    %c0_217 = arith.constant 0 : index
    %429 = vector.load %arg12[%c0_215, %c0_216, %c0_217] : memref<1x4x1024xf32, #tpu.memory_space<vmem>>, vector<1x4x1024xf32>
    %430 = vector.shape_cast %429 : vector<1x4x1024xf32> to vector<4x1024xf32>
    %431 = vector.shape_cast %428 : vector<4x1024xf32> to vector<1x4x1024xf32>
    tpu.vector_store %arg12[%c0_215, %c0_216, %c0_217], %431 {strides = array<i32>} : memref<1x4x1024xf32, #tpu.memory_space<vmem>>, vector<1x4x1024xf32>,
    return
  }
  func.func @transform_0(%arg0: i32) -> (i32, i32, i32, i32) {
    %c0_i32 = arith.constant 0 : i32
    %c0_i32_0 = arith.constant 0 : i32
    %c0_i32_1 = arith.constant 0 : i32
    %c0_i32_2 = arith.constant 0 : i32
    return %arg0, %c0_i32, %c0_i32_0, %c0_i32_1 : i32, i32, i32, i32
  }
  func.func @transform_1(%arg0: i32) -> (i32, i32, i32) {
    %c0_i32 = arith.constant 0 : i32
    %c0_i32_0 = arith.constant 0 : i32
    %c0_i32_1 = arith.constant 0 : i32
    return %arg0, %c0_i32, %c0_i32_0 : i32, i32, i32
  }
  func.func @transform_2(%arg0: i32) -> (i32, i32) {
    %c0_i32 = arith.constant 0 : i32
    %c0_i32_0 = arith.constant 0 : i32
    %c0_i32_1 = arith.constant 0 : i32
    return %c0_i32, %c0_i32_0 : i32, i32
  }
  func.func @transform_3(%arg0: i32) -> (i32, i32) {
    %c0_i32 = arith.constant 0 : i32
    %c0_i32_0 = arith.constant 0 : i32
    %c0_i32_1 = arith.constant 0 : i32
    return %c0_i32, %c0_i32_0 : i32, i32
  }
  func.func @transform_4(%arg0: i32) -> (i32, i32) {
    %c0_i32 = arith.constant 0 : i32
    %c0_i32_0 = arith.constant 0 : i32
    %c0_i32_1 = arith.constant 0 : i32
    return %c0_i32, %c0_i32_0 : i32, i32
  }
  func.func @transform_5(%arg0: i32) -> (i32, i32, i32) {
    %c0_i32 = arith.constant 0 : i32
    %c0_i32_0 = arith.constant 0 : i32
    %c0_i32_1 = arith.constant 0 : i32
    %c0_i32_2 = arith.constant 0 : i32
    return %c0_i32, %c0_i32_0, %c0_i32_1 : i32, i32, i32
  }
  func.func @transform_6(%arg0: i32) -> (i32, i32) {
    %c0_i32 = arith.constant 0 : i32
    %c0_i32_0 = arith.constant 0 : i32
    %c0_i32_1 = arith.constant 0 : i32
    return %c0_i32, %c0_i32_0 : i32, i32
  }
  func.func @transform_7(%arg0: i32) -> (i32, i32, i32) {
    %c0_i32 = arith.constant 0 : i32
    %c0_i32_0 = arith.constant 0 : i32
    %c0_i32_1 = arith.constant 0 : i32
    %c0_i32_2 = arith.constant 0 : i32
    return %c0_i32, %c0_i32_0, %c0_i32_1 : i32, i32, i32
  }
  func.func @transform_8(%arg0: i32) -> (i32, i32) {
    %c0_i32 = arith.constant 0 : i32
    %c0_i32_0 = arith.constant 0 : i32
    %c0_i32_1 = arith.constant 0 : i32
    return %c0_i32, %c0_i32_0 : i32, i32
  }
  func.func @transform_9(%arg0: i32) -> (i32, i32) {
    %c0_i32 = arith.constant 0 : i32
    %c0_i32_0 = arith.constant 0 : i32
    %c0_i32_1 = arith.constant 0 : i32
    return %c0_i32, %c0_i32_0 : i32, i32
  }
  func.func @transform_10(%arg0: i32) -> (i32, i32) {
    %c0_i32 = arith.constant 0 : i32
    %c0_i32_0 = arith.constant 0 : i32
    %c0_i32_1 = arith.constant 0 : i32
    return %c0_i32, %c0_i32_0 : i32, i32
  }
  func.func @transform_11(%arg0: i32) -> (i32, i32, i32) {
    %c0_i32 = arith.constant 0 : i32
    %c0_i32_0 = arith.constant 0 : i32
    %c0_i32_1 = arith.constant 0 : i32
    return %arg0, %c0_i32, %c0_i32_0 : i32, i32, i32
  }
}

</mosaic_0001>

<bundles_post_ra>
// kernel: resblock_ada_up_forward.1
= control target key start
LH: loop header
LB: loop body
LE: loop exit
PB: predicated region body
PF: predicated region fallthrough
CT: control target
= control target key end

     0   :  { %16 = vsyncpa [#allocation6], 0  ;;  %s10507_s0 = inlined_call_operand.hbm [shape: f32[2,4,16,16], index: 0, kind: input, shape index: {}]   ;;  %s10508_s1 = inlined_call_operand.vmem [shape: f32[2,24,1], index: 1, kind: input, shape index: {}]   ;;  %s10509_s2 = inlined_call_operand.vmem [shape: bf16[16,32], index: 2, kind: input, shape index: {}]   ;;  %s10510_s3 = inlined_call_operand.vmem [shape: bf16[32,16], index: 3, kind: input, shape index: {}]   ;;  %s10511_s4 = inlined_call_operand.vmem [shape: f32[2,1024], index: 4, kind: input, shape index: {}]   ;;  %s10512_s5 = inlined_call_operand.vmem [shape: bf16[9,8,4], index: 5, kind: input, shape index: {}]   ;;  %s10513_s6 = inlined_call_operand.vmem [shape: f32[8,1], index: 6, kind: input, shape index: {}]   ;;  %s10514_s7 = inlined_call_operand.vmem [shape: bf16[9,4,8], index: 7, kind: input, shape index: {}]   ;;  %s10515_s8 = inlined_call_operand.vmem [shape: f32[4,1], index: 8, kind: input, shape index: {}]   ;;  %s10516_s9 = inlined_call_operand.vmem [shape: bf16[4,4], index: 9, kind: input, shape index: {}]   ;;  %s10517_s10 = inlined_call_operand.vmem [shape: f32[4,1], index: 10, kind: input, shape index: {}]   ;;  %s10518_s11 = inlined_call_operand.vmem [shape: f32[2,4,1024], index: 11, kind: output, shape index: {}]  }
   0x1   :  { %18 = vsyncpa [#allocation6 + $0x1], 0  ;;  %s7168_s17 = smov 0   ;;  %s7170_s18 = smov 0  }
   0x2   :  { %s7172_s19 = smov 0   ;;  %s7174_s20 = smov 0  }
   0x3 LB: > { %10581 = sst [smem:[#allocation8_spill]] %s7084_s19  ;;  %s7187_s21 = sadd.s32 4294967295, %s7088_s20   ;;  %s7088_s20 = sphi %s7174_s20, %s10806_s20   ;;  %s7084_s19 = sphi %s7172_s19, %s10803_s19   ;;  %s7080_s18 = sphi %s7170_s18, %s10805_s18   ;;  %s7076_s17 = sphi %s7168_s17, %s10804_s17  }
   0x4   : > { %s7190_s22 = sadd.s32 1, %s7088_s20   ;;  %s31_s24 = sadd.s32 1, %s7084_s19 }
   0x5   : > { %s28_s23 = ssub.s32 %s7088_s20, %s7190_s22  ;;  %p38_p1 = scmp.ne.s32.totalorder %s7084_s19, %s7080_s18 }
   0x6   : > { %p29_p0 = scmp.eq.s32.totalorder %s28_s23, 0  ;;  %p39_p2 = scmp.eq.s32.totalorder %s7088_s20, 0 }
   0x7   : > { %p44_p3 = scmp.ne.s32.totalorder %s7080_s18, %s7076_s17  ;;  %p45_p5 = scmp.eq.s32.totalorder %s7187_s21, 0 }
   0x8   : > { %s7200_s25 = scalar_select %p29_p0, %s7084_s19, %s31_s24  }
   0x9   : > { %p7202_p4 = por %p39_p2, %p38_p1  ;;  %p6921_p6 = scmp.lt.s32.totalorder %s7088_s20, 2 }
   0xa   : > { %10582 = sst [smem:[#allocation9_spill]] %s7200_s25  ;;  %p7208_p7 = por %p45_p5, %p44_p3 }
   0xb   : > { %s336_s28 = sand.u32 1, %s7084_s19   ;;  %s6909_s30 = sshll.u32 %s7088_s20, 6 }
   0xc   : > { %s6694_s29 = sshll.u32 %s336_s28, 6  ;;  %s345_s14 = scalar_lea.hbm %s10507_s0, %s6909_s30 }
   0xd   : > { %s340_s15 = scalar_lea.vmem [#allocation5], %s6694_s29  ;;  %s346_s17 = sshll.u32 %s345_s14, 4  ;;  %s347_s17 = int_to_ptr.hbm [resolvable:$true] %s346_s17 }
   0xe   : > { %s348_s16 = sshll.u32 %s340_s15, 4  ;;  %p7219_p8 = pnand %p6921_p6, %p7202_p4  ;;  %s349_s16 = int_to_ptr.vmem [resolvable:$true] %s348_s16 }
   0xf   : > { %p6697_p9 = scmp.ge.s32.totalorder %s7088_s20, 1  ;;  %s337_s24 = scalar_lea.sflag [#allocation6], %s336_s28 }
  0x10   : > { %s7024_s25 = sshra.s32 %s347_s17, 4  ;;  %p7028_p11 = pneg %p7219_p8  ;;  %s7025_s25 = int_to_ptr.hbm [resolvable:$true] %s7024_s25 }
  0x11   : > { %s7026_s19 = scalar_lea.hbm %s7025_s25, 64  ;;  %s7031_s12 = scalar_lea.hbm %s10507_s0, 128 }
  0x12   : > { %p7027_p10 = scmp.ne.s32.totalorder %s7025_s25, %s7026_s19  ;;  %p7032_p0 = scmp.lt.s32.totalorder %s7025_s25, %s10507_s0 }
  0x13   : > { %p7033_p1 = scmp.lt.s32.totalorder %s7031_s12, %s7026_s19 }
  0x14   : > { %p7029_p12 = pnand %p7028_p11, %p7027_p10 }
  0x15   : > { %p7034_p2 = por %p7033_p1, %p7032_p0 }
  0x16   : > { %p7030_p13 = pneg %p7029_p12 }
  0x18   : > { %p7035_p3 = pnand %p7034_p2, %p7030_p13 }
  0x1a   : > { %7038 = shalt.err (!%p7035_p3)
}
  0x1b   : > { %s7090_s28 = smov 128   ;;  %s7091_s14 = smov 8  }
  0x1c   : > { %6920 = dma.hbm_to_vmem [thread:$0]  (!%p7219_p8), %s347_s17, 1024, %s349_s16, %s337_s24, %s7090_s28, %s7090_s28, %s7091_s14  }
  0x1d   : > { %p364_p4 = scmp.lt.s32.totalorder %s7088_s20, 3 }
  0x1f   : > { %p365_p5 = pnand %p6697_p9, %p364_p4 }
  0x21   : > { %368 = sbr.rel (%p365_p5) target bundleno = 3418 (0xd5a), region = 64 }
  0x26   : > { %s370_s15 = sand.u32 1, %s7080_s18  }
  0x27   : > { %s6698_s29 = sshll.u32 %s370_s15, 6  ;;  %s371_s25 = scalar_lea.sflag [#allocation6], %s370_s15 }
  0x28   : > { %s7238_s19 = scalar_lea.vmem [#allocation5], %s6698_s29 }
  0x29   : > { %7071 = dma.done.wait (%p7208_p7), %s371_s25, 1024  }
  0x2a   : > { %7073 = vsyncadd (%p7208_p7), %s371_s25, 4294966272  ;;  %vm450_vm0 = vcmask 130048   ;;  %v7245_v0 = vld [vmem:[%s7238_s19 + $0x10] sm:$0xff]  ;;  %v7248_v1 = vld [vmem:[%s7238_s19] sm:$0xff]  ;;  %v7092_v8 = vmov 256.0   ;;  %p419_p6 = scmp.lt.s32.totalorder %s7187_s21, 1 }
  0x2b   : > { %v457_v2 = vsel %vm450_vm0, %v7245_v0, 0.0  ;;  %v451_v3 = vsel %vm450_vm0, %v7248_v1, 0.0  ;;  %v7255_v4 = vld [vmem:[%s7238_s19 + $0x18] sm:$0xff]  ;;  %v7258_v5 = vld [vmem:[%s7238_s19 + $0x8] sm:$0xff]  ;;  %6995 = vrcp.f32 %v7092_v8  ;;  %v7093_v47 = vmov 255.0   ;;  %s7095_s15 = smov 95  }
  0x2c   : > { %458 = vadd.xlane.f32.xlu1 %v457_v2  ;;  %452 = vadd.xlane.f32.xlu0 %v451_v3  ;;  %v460_v6 = vsel %vm450_vm0, %v7255_v4, 0.0  ;;  %v454_v7 = vsel %vm450_vm0, %v7258_v5, 0.0  ;;  %6997 = vrcp.f32 %v7093_v47  ;;  %s10808_s21 = smov (!%p419_p6, %s7187_s21), 1  ;;  %v7094_v56 = vmov 0   ;;  %s7097_s29 = smov 96  }
  0x2d   : > { %s6914_s20 = smul.u32 24, %s10808_s21  ;;  %6972 = vset.pattern.permute.xlu0 %v7094_v56  ;;  %6974 = vset.pattern.permute.xlu1 %v7094_v56  ;;  %s7098_s25 = smov 32  }
  0x2e   : > { %6973 = vset.pattern.permute.xlu2 %v7094_v56  ;;  %s7100_s24 = smov 33   ;;  %s7101_s30 = smov 97  }
  0x2f   : > { %s7300_s17 = scalar_lea.vmem %s10508_s1, %s6914_s20  ;;  %s7102_s12 = smov 127  }
  0x30   : > { %v7303_v55 = vld [vmem:[%s7300_s17] sm:$0xff]  ;;  %s7103_s26 = smov 31   ;;  %s7104_s27 = smov 1  }
  0x31   : > { %v6996_v11 = vpop.eup %6995  ;;  %594 = vst [vmem:[#allocation1] sm:$0xff] %v7303_v55  ;;  %v754_v57 = vperm.slane %v7303_v55, 0  ;;  %v751_v58 = vrot.slane %v7303_v55, 1 }
  0x32   : > { %v504_v12 = vmul.f32 256.0, %v6996_v11  ;;  %vm508_vm1 = vweird.f32 %v6996_v11  ;;  %v6998_v48 = vpop.eup %6997 }
  0x33   : > { %v583_v49 = vmul.f32 255.0, %v6998_v48  ;;  %v755_v61 = vperm.slane %v751_v58, 0  ;;  %vm587_vm2 = vweird.f32 %v6998_v48 }
  0x34   : > { %461 = vadd.xlane.f32.xlu1 %v460_v6  ;;  %455 = vadd.xlane.f32.xlu0 %v454_v7  ;;  %v505_v15 = vsub.f32 1.0, %v504_v12 }
  0x35   : > { %v584_v51 = vsub.f32 1.0, %v583_v49 }
  0x36   : > { %v506_v20 = vmul.f32 %v6996_v11, %v505_v15 }
  0x37   : > { %v585_v60 = vmul.f32 %v6998_v48, %v584_v51 }
  0x38   : > { %v507_v25 = vadd.f32 %v6996_v11, %v506_v20 }
  0x39   : > { %v586_v2 = vadd.f32 %v6998_v48, %v585_v60 }
  0x3a   : > { %v7264_v30 = vsel %vm508_vm1, %v6996_v11, %v507_v25 }
  0x9f   : > { %v459_v9 = vpop.xlane.xlu1 %458  ;;  %v453_v10 = vpop.xlane.xlu0 %452 }
  0xa7   : > { %v462_v13 = vpop.xlane.xlu1 %461  ;;  %v456_v14 = vpop.xlane.xlu0 %455 }
  0xa8   : > { %v482_v16 = vadd.f32 %v462_v13, %v459_v9  ;;  %v475_v17 = vadd.f32 %v456_v14, %v453_v10  ;;  %v7308_v9 = vsel %vm587_vm2, %v6998_v48, %v586_v2 }
  0xaa   : > { %v483_v18 = vrot.slane %v482_v16, 4  ;;  %v476_v19 = vrot.slane %v475_v17, 4 }
  0xac   : > { %v484_v21 = vadd.f32 %v483_v18, %v482_v16  ;;  %v477_v22 = vadd.f32 %v476_v19, %v475_v17 }
  0xae   : > { %v485_v23 = vrot.slane %v484_v21, 2  ;;  %v478_v24 = vrot.slane %v477_v22, 2 }
  0xb0   : > { %v486_v26 = vadd.f32 %v485_v23, %v484_v21  ;;  %v479_v27 = vadd.f32 %v478_v24, %v477_v22 }
  0xb2   : > { %v487_v28 = vrot.slane %v486_v26, 1  ;;  %v480_v29 = vrot.slane %v479_v27, 1 }
  0xb4   : > { %v488_v31 = vadd.f32 %v487_v28, %v486_v26  ;;  %v481_v32 = vadd.f32 %v480_v29, %v479_v27 }
  0xb6   : > { %v511_v33 = vmul.f32 %v7264_v30, %v488_v31  ;;  %v510_v34 = vmul.f32 %v7264_v30, %v481_v32 }
  0xb8   : > { %v7269_v35 = vsub.f32 %v7255_v4, %v511_v33  ;;  %v7272_v36 = vsub.f32 %v7245_v0, %v511_v33  ;;  %v7275_v37 = vsub.f32 %v7248_v1, %v510_v34  ;;  %v7287_v44 = vsub.f32 %v7258_v5, %v510_v34 }
  0xba   : > { %v525_v38 = vmul.f32 %v7269_v35, %v7269_v35  ;;  %v524_v39 = vmul.f32 %v7272_v36, %v7272_v36  ;;  %v522_v40 = vmul.f32 %v7275_v37, %v7275_v37  ;;  %v523_v45 = vmul.f32 %v7287_v44, %v7287_v44 }
  0xbc   : > { %v539_v41 = vsel %vm450_vm0, %v525_v38, 0.0  ;;  %v536_v42 = vsel %vm450_vm0, %v524_v39, 0.0  ;;  %v530_v43 = vsel %vm450_vm0, %v522_v40, 0.0  ;;  %v533_v46 = vsel %vm450_vm0, %v523_v45, 0.0 }
  0xbd   : > { %540 = vadd.xlane.f32.xlu1 %v539_v41  ;;  %537 = vadd.xlane.f32.xlu0 %v536_v42 }
  0xbe   : > { %531 = vadd.xlane.f32.xlu2 %v530_v43 }
  0xc6   : > { %534 = vadd.xlane.f32.xlu2 %v533_v46 }
  0xd1   : > { %759 = vperm.xlu0 %6972, %v754_v57  }
  0xde   : > { %763 = vperm.xlu2 %6973, %v755_v61  }
 0x130   : > { %v541_v50 = vpop.xlane.xlu1 %540  ;;  %v538_v52 = vpop.xlane.xlu0 %537 }
 0x131   : > { %v532_v53 = vpop.xlane.xlu2 %531  ;;  %v561_v54 = vadd.f32 %v541_v50, %v538_v52 }
 0x133   : > { %v562_v59 = vrot.slane %v561_v54, 4 }
 0x135   : > { %v563_v62 = vadd.f32 %v562_v59, %v561_v54 }
 0x137   : > { %v564_v63 = vrot.slane %v563_v62, 2 }
 0x139   : > { %v565_v3 = vadd.f32 %v564_v63, %v563_v62  ;;  %v535_v6 = vpop.xlane.xlu2 %534 }
 0x13a   : > { %v554_v7 = vadd.f32 %v535_v6, %v532_v53  ;;  %v598_v53 = vld [vmem:[#allocation1 + $0x5] ss:$9 sm:$0xff] }
 0x13b   : > { %v566_v8 = vrot.slane %v565_v3, 1 }
 0x13c   : > { %v555_v10 = vrot.slane %v554_v7, 4 }
 0x13d   : > { %v567_v11 = vadd.f32 %v566_v8, %v565_v3 }
 0x13e   : > { %v556_v12 = vadd.f32 %v555_v10, %v554_v7  ;;  %v596_v7 = vld [vmem:[#allocation1 + $0x4] ss:$9 sm:$0xff] }
 0x13f   : > { %v590_v13 = vmul.f32 %v7308_v9, %v567_v11 }
 0x140   : > { %v557_v14 = vrot.slane %v556_v12, 2 }
 0x141   : > { %6999 = vrsqrt.f32 %v590_v13  ;;  %vm626_vm3 = vcmp.eq.f32.partialorder %v590_v13, inf  ;;  %v629_v28 = vand.u32 2147483648, %v590_v13  ;;  %vm628_vm4 = vcmp.eq.f32.partialorder %v590_v13, 0.0 }
 0x142   : > { %v558_v15 = vadd.f32 %v557_v14, %v556_v12  ;;  %v7313_v14 = vld [vmem:[%s7238_s19 + $0x30] sm:$0xff] }
 0x144   : > { %v559_v16 = vrot.slane %v558_v15, 1 }
 0x146   : > { %v560_v17 = vadd.f32 %v559_v16, %v558_v15  ;;  %v469_v15 = vsel %vm450_vm0, %v7313_v14, 0.0  ;;  %v7318_v16 = vld [vmem:[%s7238_s19 + $0x28] sm:$0xff] }
 0x147   : > { %v7000_v18 = vpop.eup %6999  ;;  %470 = vadd.xlane.f32.xlu0 %v469_v15 }
 0x148   : > { %v620_v19 = vmul.f32 %v7000_v18, %v590_v13  ;;  %v589_v20 = vmul.f32 %v7308_v9, %v560_v17  ;;  %v466_v17 = vsel %vm450_vm0, %v7318_v16, 0.0 }
 0x14a   : > { %7001 = vrsqrt.f32 %v589_v20  ;;  %v621_v21 = vmul.f32 %v7000_v18, %v620_v19  ;;  %vm614_vm5 = vcmp.eq.f32.partialorder %v589_v20, inf  ;;  %v617_v41 = vand.u32 2147483648, %v589_v20 }
 0x14b   : > { %vm616_vm6 = vcmp.eq.f32.partialorder %v589_v20, 0.0 }
 0x14c   : > { %v622_v22 = vmul.f32 0.5, %v621_v21 }
 0x14e   : > { %v623_v23 = vsub.f32 1.5, %v622_v22  ;;  %v7335_v22 = vld [vmem:[%s10509_s2] sm:$0xff] }
 0x14f   : > { %835 = vmatpush.bf16.msra.mxu0 %v7335_v22 }
 0x150   : > { %v7002_v24 = vpop.eup %7001  ;;  %v624_v25 = vmul.f32 %v7000_v18, %v623_v23  ;;  %v7323_v18 = vld [vmem:[%s7238_s19 + $0x20] sm:$0xff]  ;;  %v764_v23 = vpop.permute.xlu2 %763 }
 0x151   : > { %v608_v26 = vmul.f32 %v7002_v24, %v589_v20  ;;  %v463_v19 = vsel %vm450_vm0, %v7323_v18, 0.0 }
 0x152   : > { %v625_v27 = vmul.f32 %v624_v25, %v590_v13  ;;  %v760_v25 = vpop.permute.xlu0 %759 }
 0x153   : > { %v609_v29 = vmul.f32 %v7002_v24, %v608_v26 }
 0x154   : > { %v627_v31 = vsel %vm626_vm3, %v590_v13, %v625_v27 }
 0x155   : > { %v630_v32 = vsel %vm628_vm4, %v629_v28, %v627_v31  ;;  %v610_v33 = vmul.f32 0.5, %v609_v29 }
 0x156   : > { %v656_v34 = vadd.f32 1e-05, %v630_v32 }
 0x157   : > { %v611_v38 = vsub.f32 1.5, %v610_v33 }
 0x158   : > { %7003 = vrcp.f32 %v656_v34  ;;  %v685_v49 = vand.u32 2147483648, %v656_v34  ;;  %v683_v51 = vand.u32 2147483647, %v656_v34  ;;  %vm679_vm8 = vweird.f32 %v656_v34 }
 0x159   : > { %v612_v39 = vmul.f32 %v7002_v24, %v611_v38 }
 0x15a   : > { %v686_v54 = vor.u32 1.1754944e-38, %v685_v49  ;;  %vm684_vm10 = vcmp.eq.f32.partialorder %v683_v51, 8.507059e+37 }
 0x15b   : > { %v613_v40 = vmul.f32 %v612_v39, %v589_v20 }
 0x15d   : > { %v615_v42 = vsel %vm614_vm5, %v589_v20, %v613_v40  ;;  %v7328_v20 = vld [vmem:[%s7238_s19 + $0x38] sm:$0xff]  ;;  %s7099_s19 = smov 64  }
 0x15e   : > { %v7004_v43 = vpop.eup %7003  ;;  %v618_v45 = vsel %vm616_vm6, %v617_v41, %v615_v42  ;;  %v472_v21 = vsel %vm450_vm0, %v7328_v20, 0.0 }
 0x15f   : > { %v675_v46 = vmul.f32 %v7004_v43, %v656_v34  ;;  %v655_v47 = vadd.f32 1e-05, %v618_v45  ;;  %vm680_vm7 = vweird.f32 %v7004_v43 }
 0x160   : > { %vm681_vm9 = vmor %vm679_vm8, %vm680_vm7 }
 0x161   : > { %v676_v48 = vsub.f32 1.0, %v675_v46  ;;  %7005 = vrcp.f32 %v655_v47  ;;  %v670_v63 = vand.u32 2147483648, %v655_v47  ;;  %v668_v3 = vand.u32 2147483647, %v655_v47 }
 0x162   : > { %vm664_vm12 = vweird.f32 %v655_v47 }
 0x163   : > { %v677_v50 = vmul.f32 %v7004_v43, %v676_v48  ;;  %v671_v8 = vor.u32 1.1754944e-38, %v670_v63  ;;  %vm669_vm14 = vcmp.eq.f32.partialorder %v668_v3, 8.507059e+37 }
 0x165   : > { %v678_v52 = vadd.f32 %v7004_v43, %v677_v50 }
 0x167   : > { %v7006_v56 = vpop.eup %7005  ;;  %v682_v57 = vsel %vm681_vm9, %v7004_v43, %v678_v52 }
 0x168   : > { %v687_v58 = vsel %vm684_vm10, %v686_v54, %v682_v57  ;;  %v660_v59 = vmul.f32 %v7006_v56, %v655_v47  ;;  %vm665_vm11 = vweird.f32 %v7006_v56 }
 0x169   : > { %v688_v60 = vmul.f32 %v687_v58, %v598_v53  ;;  %vm666_vm13 = vmor %vm664_vm12, %vm665_vm11 }
 0x16a   : > { %v661_v61 = vsub.f32 1.0, %v660_v59 }
 0x16b   : > { %v724_v62 = vperm.slane %v688_v60, 0 }
 0x16c   : > { %v662_v2 = vmul.f32 %v7006_v56, %v661_v61 }
 0x16d   : > { %732 = vperm.xlu1 %6974, %v724_v62  }
 0x16e   : > { %v663_v6 = vadd.f32 %v7006_v56, %v662_v2 }
 0x170   : > { %v667_v10 = vsel %vm666_vm13, %v7006_v56, %v663_v6 }
 0x171   : > { %v672_v11 = vsel %vm669_vm14, %v671_v8, %v667_v10 }
 0x172   : > { %v673_v12 = vmul.f32 %v672_v11, %v596_v7 }
 0x174   : > { %v723_v13 = vperm.slane %v673_v12, 0 }
 0x176   : > { %728 = vperm.xlu2 %6973, %v723_v13  }
 0x197   : > { %467 = vadd.xlane.f32.xlu1 %v466_v17 }
 0x19f   : > { %464 = vadd.xlane.f32.xlu2 %v463_v19 }
 0x1a7   : > { %473 = vadd.xlane.f32.xlu2 %v472_v21 }
 0x1ba   : > { %v471_v53 = vpop.xlane.xlu0 %470 }
 0x1d0   : > { %v729_v24 = vpop.permute.xlu2 %728 }
 0x1d1   : > { %v743_v26 = vmul.f32 %v729_v24, %v7275_v37  ;;  %v744_v27 = vmul.f32 %v729_v24, %v7287_v44 }
 0x1d3   : > { %v774_v28 = vadd.f32 %v760_v25, %v743_v26  ;;  %v775_v29 = vadd.f32 %v760_v25, %v744_v27 }
 0x1d5   : > { %v790_v31 = vmul.f32 0.01, %v774_v28  ;;  %v791_v32 = vmul.f32 0.01, %v775_v29  ;;  %vm782_vm15 = vcmp.ge.f32.partialorder %v774_v28, 0.0  ;;  %vm783_vm1 = vcmp.ge.f32.partialorder %v775_v29, 0.0 }
 0x1d7   : > { %v798_v33 = vsel %vm782_vm15, %v774_v28, %v790_v31  ;;  %v799_v34 = vsel %vm783_vm1, %v775_v29, %v791_v32 }
 0x1d8   : > { %v806_v38 = vpack.c.bf16 %v799_v34, %v798_v33 }
 0x1da   : > { %6707 = vmatmul.msk.bf16.vlgmr.msra.gmra.mxu0 %vm450_vm0, %v806_v38 }
 0x1df   : > { %v733_v39 = vpop.permute.xlu1 %732 }
 0x1e0   : > { %v745_v40 = vmul.f32 %v733_v39, %v7272_v36  ;;  %v746_v41 = vmul.f32 %v733_v39, %v7269_v35 }
 0x1e2   : > { %v776_v42 = vadd.f32 %v764_v23, %v745_v40  ;;  %v777_v37 = vadd.f32 %v764_v23, %v746_v41 }
 0x1e4   : > { %vm784_vm2 = vcmp.ge.f32.partialorder %v776_v42, 0.0  ;;  %vm785_vm3 = vcmp.ge.f32.partialorder %v777_v37, 0.0  ;;  %v792_v44 = vmul.f32 0.01, %v776_v42  ;;  %v793_v43 = vmul.f32 0.01, %v777_v37 }
 0x1e6   : > { %v800_v45 = vsel %vm784_vm2, %v776_v42, %v792_v44  ;;  %v801_v46 = vsel %vm785_vm3, %v777_v37, %v793_v43  ;;  %v7375_v44 = vld [vmem:[%s10510_s3] sm:$0xff] }
 0x1e7   : > { %v807_v47 = vpack.c.bf16 %v801_v46, %v800_v45 }
 0x1ea   : > { %6708 = vmatmul.msk.bf16.gmra.mxu0 %vm450_vm0, %v807_v47  ;;  %v7384_v47 = vld [vmem:[%s10510_s3 + $0x8] sm:$0xff] }
 0x20a   : > { %v468_v48 = vpop.xlane.xlu1 %467 }
 0x212   : > { %v465_v49 = vpop.xlane.xlu2 %464 }
 0x213   : > { %v489_v50 = vadd.f32 %v468_v48, %v465_v49 }
 0x215   : > { %v490_v51 = vrot.slane %v489_v50, 4 }
 0x217   : > { %v491_v52 = vadd.f32 %v490_v51, %v489_v50 }
 0x219   : > { %v492_v36 = vrot.slane %v491_v52, 2 }
 0x21a   : > { %v474_v54 = vpop.xlane.xlu2 %473 }
 0x21b   : > { %v493_v35 = vadd.f32 %v492_v36, %v491_v52  ;;  %v496_v56 = vadd.f32 %v474_v54, %v471_v53 }
 0x21d   : > { %v494_v57 = vrot.slane %v493_v35, 1  ;;  %v497_v58 = vrot.slane %v496_v56, 4 }
 0x21f   : > { %v495_v59 = vadd.f32 %v494_v57, %v493_v35  ;;  %v498_v60 = vadd.f32 %v497_v58, %v496_v56 }
 0x221   : > { %v499_v61 = vrot.slane %v498_v60, 2  ;;  %v512_v62 = vmul.f32 %v7264_v30, %v495_v59  ;;  %v981_v59 = vpack.c.bf16 %v7258_v5, %v7248_v1  ;;  %v982_v1 = vpack.c.bf16 %v7255_v4, %v7245_v0 }
 0x223   : > { %v500_v63 = vadd.f32 %v499_v61, %v498_v60  ;;  %v7346_v2 = vsub.f32 %v7318_v16, %v512_v62  ;;  %v7349_v3 = vsub.f32 %v7323_v18, %v512_v62 }
 0x225   : > { %v501_v6 = vrot.slane %v500_v63, 1  ;;  %v527_v7 = vmul.f32 %v7346_v2, %v7346_v2  ;;  %v526_v8 = vmul.f32 %v7349_v3, %v7349_v3 }
 0x227   : > { %v502_v10 = vadd.f32 %v501_v6, %v500_v63  ;;  %v545_v11 = vsel %vm450_vm0, %v527_v7, 0.0  ;;  %v542_v12 = vsel %vm450_vm0, %v526_v8, 0.0 }
 0x228   : > { %546 = vadd.xlane.f32.xlu2 %v545_v11  ;;  %543 = vadd.xlane.f32.xlu1 %v542_v12 }
 0x229   : > { %v513_v13 = vmul.f32 %v7264_v30, %v502_v10  ;;  %v752_v30 = vrot.slane %v7303_v55, 2 }
 0x22b   : > { %v7359_v15 = vsub.f32 %v7328_v20, %v513_v13  ;;  %v7362_v17 = vsub.f32 %v7313_v14, %v513_v13  ;;  %v756_v25 = vperm.slane %v752_v30, 0 }
 0x22d   : > { %v529_v19 = vmul.f32 %v7359_v15, %v7359_v15  ;;  %v528_v21 = vmul.f32 %v7362_v17, %v7362_v17 }
 0x22f   : > { %v551_v23 = vsel %vm450_vm0, %v529_v19, 0.0  ;;  %v548_v24 = vsel %vm450_vm0, %v528_v21, 0.0 }
 0x230   : > { %552 = vadd.xlane.f32.xlu2 %v551_v23  ;;  %549 = vadd.xlane.f32.xlu1 %v548_v24 }
 0x249   : > { %767 = vperm.xlu1 %6974, %v756_v25  }
 0x257   : > { %v837_v26 = vpop.f32.mrf.mxu0 }
 0x258   : > { %v857_v27 = vpack.c.bf16 %v837_v26, %v837_v26 }
 0x25a   : > { %v877_v31 = vunpack.c.l.b16 %v857_v27 }
 0x25f   : > { %v839_v28 = vpop.f32.mrf.mxu0 }
 0x260   : > { %v858_v29 = vpack.c.bf16 %v839_v28, %v839_v28 }
 0x262   : > { %v878_v32 = vunpack.c.l.b16 %v858_v29 }
 0x264   : > { %v879_v33 = vpack.c.b16 %v878_v32, %v877_v31 }
 0x266   : > { %894 = vmatpush.bf16.msra.mxu1 %v879_v33 }
 0x267   : > { %v842_v34 = vpop.f32.mrf.mxu0 }
 0x268   : > { %v859_v38 = vpack.c.bf16 %v842_v34, %v842_v34 }
 0x269   : > { %6719 = vmatmul.msk.bf16.vlgmr.msra.gmra.mxu1 %vm450_vm0, %v7375_v44 }
 0x26a   : > { %v908_v41 = vunpack.c.l.b16 %v859_v38 }
 0x26f   : > { %v844_v39 = vpop.f32.mrf.mxu0 }
 0x270   : > { %v860_v40 = vpack.c.bf16 %v844_v39, %v844_v39 }
 0x272   : > { %v909_v42 = vunpack.c.l.b16 %v860_v40 }
 0x274   : > { %v910_v37 = vpack.c.b16 %v909_v42, %v908_v41  ;;  %v600_v42 = vld [vmem:[#allocation1 + $0x6] ss:$9 sm:$0xff] }
 0x276   : > { %919 = vmatpush.bf16.msra.mxu2 %v910_v37 }
 0x279   : > { %6721 = vmatmul.msk.bf16.vlgmr.msra.gmra.mxu2 %vm450_vm0, %v7375_v44  ;;  %6720 = vmatmul.msk.bf16.gmra.mxu1 %vm450_vm0, %v7384_v47 }
 0x27a   : > { %1004 = vmatpush.bf16.msrb.mxu2 %v7335_v22 }
 0x289   : > { %6722 = vmatmul.msk.bf16.gmra.mxu2 %vm450_vm0, %v7384_v47 }
 0x299   : > { %6727 = vmatmul.msk.bf16.vlgmr.msrb.gmra.mxu2 %vm450_vm0, %v981_v59 }
 0x29b   : > { %v547_v43 = vpop.xlane.xlu2 %546  ;;  %v544_v45 = vpop.xlane.xlu1 %543 }
 0x29c   : > { %v568_v46 = vadd.f32 %v547_v43, %v544_v45 }
 0x29e   : > { %v569_v22 = vrot.slane %v568_v46, 4 }
 0x2a0   : > { %v570_v48 = vadd.f32 %v569_v22, %v568_v46 }
 0x2a2   : > { %v571_v49 = vrot.slane %v570_v48, 2 }
 0x2a3   : > { %v553_v50 = vpop.xlane.xlu2 %552  ;;  %v550_v51 = vpop.xlane.xlu1 %549 }
 0x2a4   : > { %v572_v52 = vadd.f32 %v571_v49, %v570_v48  ;;  %v575_v53 = vadd.f32 %v553_v50, %v550_v51 }
 0x2a6   : > { %v573_v36 = vrot.slane %v572_v52, 1  ;;  %v576_v54 = vrot.slane %v575_v53, 4 }
 0x2a8   : > { %v574_v35 = vadd.f32 %v573_v36, %v572_v52  ;;  %v577_v56 = vadd.f32 %v576_v54, %v575_v53  ;;  %v753_v36 = vrot.slane %v7303_v55, 3 }
 0x2a9   : > { %6728 = vmatmul.msk.bf16.gmra.mxu2 %vm450_vm0, %v982_v1 }
 0x2aa   : > { %v591_v57 = vmul.f32 %v7308_v9, %v574_v35  ;;  %v578_v58 = vrot.slane %v577_v56, 2 }
 0x2ac   : > { %7007 = vrsqrt.f32 %v591_v57  ;;  %v579_v60 = vadd.f32 %v578_v58, %v577_v56  ;;  %vm638_vm4 = vcmp.eq.f32.partialorder %v591_v57, inf  ;;  %v641_v23 = vand.u32 2147483648, %v591_v57  ;;  %v602_v56 = vld [vmem:[#allocation1 + $0x7] ss:$9 sm:$0xff] }
 0x2ad   : > { %vm640_vm5 = vcmp.eq.f32.partialorder %v591_v57, 0.0  ;;  %v757_v58 = vperm.slane %v753_v36, 0 }
 0x2ae   : > { %v580_v61 = vrot.slane %v579_v60, 1 }
 0x2b0   : > { %v581_v62 = vadd.f32 %v580_v61, %v579_v60 }
 0x2b2   : > { %v7008_v63 = vpop.eup %7007  ;;  %v592_v6 = vmul.f32 %v7308_v9, %v581_v62 }
 0x2b3   : > { %v632_v7 = vmul.f32 %v7008_v63, %v591_v57 }
 0x2b4   : > { %7009 = vrsqrt.f32 %v592_v6  ;;  %vm650_vm6 = vcmp.eq.f32.partialorder %v592_v6, inf  ;;  %v653_v28 = vand.u32 2147483648, %v592_v6  ;;  %vm652_vm7 = vcmp.eq.f32.partialorder %v592_v6, 0.0 }
 0x2b5   : > { %v633_v8 = vmul.f32 %v7008_v63, %v632_v7 }
 0x2b7   : > { %v634_v10 = vmul.f32 0.5, %v633_v8 }
 0x2b9   : > { %v635_v11 = vsub.f32 1.5, %v634_v10 }
 0x2ba   : > { %v7010_v12 = vpop.eup %7009 }
 0x2bb   : > { %v644_v13 = vmul.f32 %v7010_v12, %v592_v6  ;;  %v636_v19 = vmul.f32 %v7008_v63, %v635_v11  ;;  %v983_v11 = vpack.c.bf16 %v7318_v16, %v7323_v18 }
 0x2bd   : > { %v637_v5 = vmul.f32 %v636_v19, %v591_v57  ;;  %v645_v21 = vmul.f32 %v7010_v12, %v644_v13  ;;  %6729 = vmatmul.msk.bf16.gmra.mxu2 %vm450_vm0, %v983_v11 }
 0x2bf   : > { %v639_v24 = vsel %vm638_vm4, %v591_v57, %v637_v5  ;;  %v646_v30 = vmul.f32 0.5, %v645_v21  ;;  %v768_v21 = vpop.permute.xlu1 %767 }
 0x2c0   : > { %v642_v25 = vsel %vm640_vm5, %v641_v23, %v639_v24  ;;  %vm1144_vm5 = vcmask 1041409  }
 0x2c1   : > { %v657_v9 = vadd.f32 1e-05, %v642_v25  ;;  %v647_v26 = vsub.f32 1.5, %v646_v30 }
 0x2c3   : > { %7011 = vrcp.f32 %v657_v9  ;;  %v648_v27 = vmul.f32 %v7010_v12, %v647_v26  ;;  %v700_v38 = vand.u32 2147483648, %v657_v9  ;;  %v698_v40 = vand.u32 2147483647, %v657_v9 }
 0x2c4   : > { %vm694_vm9 = vweird.f32 %v657_v9 }
 0x2c5   : > { %v649_v29 = vmul.f32 %v648_v27, %v592_v6  ;;  %v701_v37 = vor.u32 1.1754944e-38, %v700_v38  ;;  %vm699_vm11 = vcmp.eq.f32.partialorder %v698_v40, 8.507059e+37 }
 0x2c7   : > { %v651_v31 = vsel %vm650_vm6, %v592_v6, %v649_v29  ;;  %vm1146_vm6 = vcmask 1045509  }
 0x2c8   : > { %v654_v4 = vsel %vm652_vm7, %v653_v28, %v651_v31  ;;  %vm1149_vm7 = vcmask 1042434  }
 0x2c9   : > { %v7012_v0 = vpop.eup %7011  ;;  %v658_v33 = vadd.f32 1e-05, %v654_v4 }
 0x2ca   : > { %v690_v32 = vmul.f32 %v7012_v0, %v657_v9  ;;  %vm695_vm8 = vweird.f32 %v7012_v0 }
 0x2cb   : > { %7013 = vrcp.f32 %v658_v33  ;;  %vm696_vm10 = vmor %vm694_vm9, %vm695_vm8  ;;  %v715_v49 = vand.u32 2147483648, %v658_v33  ;;  %vm709_vm12 = vweird.f32 %v658_v33  ;;  %v713_v51 = vand.u32 2147483647, %v658_v33 }
 0x2cc   : > { %v691_v34 = vsub.f32 1.0, %v690_v32  ;;  %vm10580_vm8 = vcmask 1043459   ;;  %vm1151_vm9 = vcmask 1046534  }
 0x2cd   : > { %v716_v54 = vor.u32 1.1754944e-38, %v715_v49  ;;  %vm714_vm15 = vcmp.eq.f32.partialorder %v713_v51, 8.507059e+37 }
 0x2ce   : > { %v692_v39 = vmul.f32 %v7012_v0, %v691_v34 }
 0x2d0   : > { %v693_v41 = vadd.f32 %v7012_v0, %v692_v39 }
 0x2d1   : > { %v7014_v43 = vpop.eup %7013 }
 0x2d2   : > { %v697_v45 = vsel %vm696_vm10, %v7012_v0, %v693_v41  ;;  %v705_v22 = vmul.f32 %v7014_v43, %v658_v33  ;;  %vm710_vm13 = vweird.f32 %v7014_v43  ;;  %vm10559_vm10 = vcmask 1047559  }
 0x2d3   : > { %v702_v46 = vsel %vm699_vm11, %v701_v37, %v697_v45  ;;  %vm711_vm14 = vmor %vm709_vm12, %vm710_vm13  ;;  %vm1159_vm11 = vcmask 257024   ;;  %vm10544_vm12 = vcmask 519424   ;;  %vm10543_vm13 = vcmask 781824  }
 0x2d4   : > { %v703_v48 = vmul.f32 %v702_v46, %v600_v42  ;;  %v706_v50 = vsub.f32 1.0, %v705_v22 }
 0x2d6   : > { %v725_v52 = vperm.slane %v703_v48, 0  ;;  %v707_v53 = vmul.f32 %v7014_v43, %v706_v50 }
 0x2d8   : > { %736 = vperm.xlu0 %6972, %v725_v52   ;;  %v708_v35 = vadd.f32 %v7014_v43, %v707_v53 }
 0x2da   : > { %v712_v57 = vsel %vm711_vm14, %v7014_v43, %v708_v35  ;;  %vm10541_vm14 = vcmask 1044224  }
 0x2db   : > { %v717_v59 = vsel %vm714_vm15, %v716_v54, %v712_v57  ;;  %vm2407_vm15 = vcmask 777216  }
 0x2dc   : > { %v718_v60 = vmul.f32 %v717_v59, %v602_v56 }
 0x2de   : > { %v726_v61 = vperm.slane %v718_v60, 0 }
 0x2e0   : > { %771 = vperm.xlu0 %6972, %v757_v58   ;;  %740 = vperm.xlu2 %6973, %v726_v61  }
 0x2e6   : > { %v7418_v32 = vpop.f32.mrf.mxu1 }
 0x2e7   : > { %1257 = vst.sshfl [vmem:[#allocation1] sm:$0xff pattern:$0x75316420] %v7418_v32 }
 0x2fc   : > { %v7399_v62 = vpop.f32.mrf.mxu2 }
 0x2fd   : > { %1260 = vst.sshfl [vmem:[#allocation1 + $0x10] sm:$0xff pattern:$0x75316420] %v7399_v62 }
 0x304   : > { %v7402_v63 = vpop.f32.mrf.mxu2  ;;  %v7429_v11 = vld [vmem:[#allocation1 + $0x11] ss:$2 sm:$0xff] }
 0x30c   : > { %v7404_v6 = vpop.f32.mrf.mxu2 }
 0x314   : > { %v7406_v55 = vpop.f32.mrf.mxu2 }
 0x31c   : > { %v1006_v7 = vpop.f32.mrf.mxu2 }
 0x324   : > { %v1008_v8 = vpop.f32.mrf.mxu2 }
 0x32c   : > { %v1011_v10 = vpop.f32.mrf.mxu2 }
 0x32d   : > { %v1028_v12 = vpack.c.bf16 %v1011_v10, %v1011_v10 }
 0x32f   : > { %v1061_v23 = vunpack.c.l.b16 %v1028_v12 }
 0x334   : > { %v1013_v5 = vpop.f32.mrf.mxu2 }
 0x335   : > { %v1029_v24 = vpack.c.bf16 %v1013_v5, %v1013_v5 }
 0x337   : > { %v1062_v9 = vunpack.c.l.b16 %v1029_v24 }
 0x339   : > { %v1063_v16 = vpack.c.b16 %v1062_v9, %v1061_v23 }
 0x33a   : > { %v741_v29 = vpop.permute.xlu2 %740 }
 0x33b   : > { %1072 = vmatpush.bf16.msrb.mxu0 %v1063_v16  ;;  %v749_v0 = vmul.f32 %v741_v29, %v7362_v17  ;;  %v750_v4 = vmul.f32 %v741_v29, %v7359_v15  ;;  %v1027_v15 = vpack.c.bf16 %v1008_v8, %v1008_v8 }
 0x33d   : > { %v1037_v45 = vunpack.c.l.b16 %v1027_v15 }
 0x340   : > { %v1016_v17 = vpop.f32.mrf.mxu2 }
 0x341   : > { %v1030_v36 = vpack.c.bf16 %v1016_v17, %v1016_v17 }
 0x343   : > { %v1086_v57 = vunpack.c.l.b16 %v1030_v36  ;;  %v10520_v36 = vrot.slane %v7404_v6, 7 }
 0x348   : > { %v1018_v52 = vpop.f32.mrf.mxu2 }
 0x349   : > { %v1031_v54 = vpack.c.bf16 %v1018_v52, %v1018_v52  ;;  %v1204_v52 = vrot.slane %v7399_v62, 1 }
 0x34a   : > { %v737_v13 = vpop.permute.xlu0 %736 }
 0x34b   : > { %v747_v19 = vmul.f32 %v737_v13, %v7349_v3  ;;  %v748_v1 = vmul.f32 %v737_v13, %v7346_v2  ;;  %v984_v2 = vpack.c.bf16 %v7328_v20, %v7313_v14  ;;  %v1026_v20 = vpack.c.bf16 %v1006_v7, %v1006_v7 }
 0x34c   : > { %v1087_v58 = vunpack.c.l.b16 %v1031_v54 }
 0x34d   : > { %v778_v30 = vadd.f32 %v768_v21, %v747_v19  ;;  %v779_v25 = vadd.f32 %v768_v21, %v748_v1  ;;  %6730 = vmatmul.msk.bf16.gmra.mxu2 %vm450_vm0, %v984_v2  ;;  %v1036_v43 = vunpack.c.l.b16 %v1026_v20 }
 0x34e   : > { %v1088_v8 = vpack.c.b16 %v1087_v58, %v1086_v57 }
 0x34f   : > { %vm786_vm1 = vcmp.ge.f32.partialorder %v778_v30, 0.0  ;;  %vm787_vm2 = vcmp.ge.f32.partialorder %v779_v25, 0.0  ;;  %v794_v26 = vmul.f32 0.01, %v778_v30  ;;  %v795_v27 = vmul.f32 0.01, %v779_v25 }
 0x350   : > { %v1038_v50 = vpack.c.b16 %v1037_v45, %v1036_v43 }
 0x351   : > { %v802_v18 = vsel %vm786_vm1, %v778_v30, %v794_v26  ;;  %v803_v28 = vsel %vm787_vm2, %v779_v25, %v795_v27  ;;  %vm2493_vm1 = vcmask 269312   ;;  %vm10578_vm2 = vcmask 1041408  }
 0x352   : > { %v808_v31 = vpack.c.bf16 %v803_v28, %v802_v18  ;;  %v772_v3 = vpop.permute.xlu0 %771 }
 0x353   : > { %v780_v33 = vadd.f32 %v772_v3, %v749_v0  ;;  %v781_v34 = vadd.f32 %v772_v3, %v750_v4 }
 0x354   : > { %6709 = vmatmul.msk.bf16.gmra.mxu0 %vm450_vm0, %v808_v31 }
 0x355   : > { %v796_v38 = vmul.f32 0.01, %v780_v33  ;;  %v797_v39 = vmul.f32 0.01, %v781_v34  ;;  %vm788_vm3 = vcmp.ge.f32.partialorder %v780_v33, 0.0  ;;  %vm789_vm4 = vcmp.ge.f32.partialorder %v781_v34, 0.0 }
 0x357   : > { %v804_v40 = vsel %vm788_vm3, %v780_v33, %v796_v38  ;;  %v805_v41 = vsel %vm789_vm4, %v781_v34, %v797_v39  ;;  %vm2889_vm3 = vcmask 793600   ;;  %vm10577_vm4 = vcmask 31744  }
 0x358   : > { %v809_v42 = vpack.c.bf16 %v805_v41, %v804_v40  ;;  %v7515_v41 = vpop.f32.mrf.mxu1 }
 0x360   : > { %v7531_v43 = vpop.f32.mrf.mxu1 }
 0x364   : > { %6710 = vmatmul.msk.bf16.gmra.mxu0 %vm450_vm0, %v809_v42  ;;  %v7096_v42 = vmov 0.0  }
 0x365   : > { %1136 = vst [vmem:[#allocation2 + $0x10] sm:$0xff] %v7096_v42 }
 0x366   : > { %1134 = vst [vmem:[#allocation2] sm:$0xff] %v7096_v42 }
 0x367   : > { %1135 = vst [vmem:[#allocation2 + $0x8] sm:$0xff] %v7096_v42 }
 0x368   : > { %1137 = vst [vmem:[#allocation2 + $0x18] sm:$0xff] %v7096_v42  ;;  %v7547_v54 = vpop.f32.mrf.mxu1 }
 0x369   : > { %1138 = vst [vmem:[#allocation2 + $0x20] sm:$0xff] %v7096_v42 }
 0x374   : > { %6733 = vmatmul.msk.bf16.vlgmr.msrb.gmra.mxu0 %vm450_vm0, %v7375_v44 }
 0x384   : > { %6734 = vmatmul.msk.bf16.gmra.mxu0 %vm450_vm0, %v7384_v47 }
 0x3d0   : > { %v1021_v60 = vpop.f32.mrf.mxu2 }
 0x3d1   : > { %v847_v14 = vpop.f32.mrf.mxu0  ;;  %v1032_v19 = vpack.c.bf16 %v1021_v60, %v1021_v60 }
 0x3d2   : > { %v861_v37 = vpack.c.bf16 %v847_v14, %v847_v14 }
 0x3d3   : > { %v1111_v5 = vunpack.c.l.b16 %v1032_v19 }
 0x3d4   : > { %v933_v48 = vunpack.c.l.b16 %v861_v37 }
 0x3d8   : > { %v1023_v13 = vpop.f32.mrf.mxu2 }
 0x3d9   : > { %v849_v46 = vpop.f32.mrf.mxu0  ;;  %v1033_v1 = vpack.c.bf16 %v1023_v13, %v1023_v13 }
 0x3da   : > { %v862_v22 = vpack.c.bf16 %v849_v46, %v849_v46  ;;  %v1176_v46 = vrot.slane %v7418_v32, 1 }
 0x3db   : > { %v1112_v21 = vunpack.c.l.b16 %v1033_v1  ;;  %v10521_v1 = vrot.slane %v7402_v63, 7 }
 0x3dc   : > { %v934_v49 = vunpack.c.l.b16 %v862_v22  ;;  %v1230_v22 = vrot.slane %v7418_v32, 3 }
 0x3dd   : > { %v1113_v23 = vpack.c.b16 %v1112_v21, %v1111_v5  ;;  %v7571_v5 = vsel %vm1144_vm5, %v10520_v36, %v7531_v43 }
 0x3de   : > { %v935_v51 = vpack.c.b16 %v934_v49, %v933_v48  ;;  %v1231_v48 = vrot.slane %v7399_v62, 2  ;;  %v1483_v49 = vrot.slane %v7515_v41, 1 }
 0x3e0   : > { %944 = vmatpush.bf16.msra.mxu3 %v935_v51  ;;  %v1203_v51 = vrot.slane %v7418_v32, 2  ;;  %v1484_v58 = vsel %vm1144_vm5, %v7402_v63, %v1483_v49 }
 0x3e1   : > { %v852_v53 = vpop.f32.mrf.mxu0  ;;  %v1485_v42 = vsel %vm1146_vm6, %v7402_v63, %v1484_v58  ;;  %v1787_v58 = vrot.slane %v7531_v43, 1 }
 0x3e2   : > { %v863_v35 = vpack.c.bf16 %v852_v53, %v852_v53  ;;  %v1143_v53 = vrot.slane %v7399_v62, 7 }
 0x3e3   : > { %6723 = vmatmul.msk.bf16.vlgmr.msra.gmra.mxu3 %vm450_vm0, %v7375_v44 }
 0x3e4   : > { %1047 = vmatpush.bf16.msrb.mxu3 %v1038_v50  ;;  %v958_v61 = vunpack.c.l.b16 %v863_v35  ;;  %v1177_v35 = vsel %vm1144_vm5, %v7399_v62, %v1176_v46  ;;  %v1145_v13 = vsel %vm1144_vm5, %v1143_v53, %v7418_v32 }
 0x3e8   : > { %1122 = vmatpush.bf16.msra.mxu3 %v1113_v23 }
 0x3e9   : > { %v854_v56 = vpop.f32.mrf.mxu0 }
 0x3ea   : > { %v864_v59 = vpack.c.bf16 %v854_v56, %v854_v56  ;;  %v1232_v56 = vsel %vm1144_vm5, %v1231_v48, %v1230_v22 }
 0x3eb   : > { %v1233_v21 = vsel %vm1146_vm6, %v1231_v48, %v1232_v56  ;;  %v1147_v48 = vsel %vm1146_vm6, %v1143_v53, %v1145_v13  ;;  %v2091_v13 = vrot.slane %v7547_v54, 1 }
 0x3ec   : > { %v959_v7 = vunpack.c.l.b16 %v864_v59  ;;  %v1535_v59 = vrot.slane %v7515_v41, 3 }
 0x3ee   : > { %v960_v10 = vpack.c.b16 %v959_v7, %v958_v61  ;;  %v1205_v61 = vsel %vm1144_vm5, %v1204_v52, %v1203_v51  ;;  %v1536_v7 = vrot.slane %v7402_v63, 2  ;;  %v1259_v51 = vld [vmem:[#allocation1 + $0x1] ss:$2 sm:$0xff] }
 0x3f0   : > { %969 = vmatpush.bf16.msrb.mxu1 %v960_v10  ;;  %v1510_v10 = vrot.slane %v7402_v63, 1  ;;  %v1537_v46 = vsel %vm1144_vm5, %v1536_v7, %v1535_v59  ;;  %v1269_v59 = vrot.slane %v7429_v11, 7 }
 0x3f1   : > { %v7431_v12 = vpop.f32.mrf.mxu0 }
 0x3f2   : > { %1283 = vst.sshfl [vmem:[#allocation1 + $0x10] sm:$0xff pattern:$0x75316420] %v7431_v12 }
 0x3f3   : > { %6724 = vmatmul.msk.bf16.gmra.mxu3 %vm450_vm0, %v7384_v47  ;;  %6725 = vmatmul.msk.bf16.vlgmr.msrb.gmra.mxu1 %vm450_vm0, %v7375_v44 }
 0x3f4   : > { %1097 = vmatpush.bf16.msra.mxu1 %v1088_v8  ;;  %v1509_v8 = vrot.slane %v7515_v41, 2 }
 0x3f6   : > { %v1511_v22 = vsel %vm1144_vm5, %v1510_v10, %v1509_v8 }
 0x3f9   : > { %v7438_v24 = vld [vmem:[#allocation1 + $0x11] ss:$2 sm:$0xff]  ;;  %v7471_v18 = vpop.f32.mrf.mxu0 }
 0x3fa   : > { %1306 = vst.sshfl [vmem:[#allocation1 + $0x10] sm:$0xff pattern:$0x75316420] %v7399_v62 }
 0x3fb   : > { %10589 = vst [vmem:[#allocation13_spill] sm:$0xff] %v7471_v18 }
 0x401   : > { %v7441_v30 = vld [vmem:[#allocation1 + $0x11] ss:$2 sm:$0xff] }
 0x402   : > { %1331 = vst.sshfl [vmem:[#allocation1 + $0x10] sm:$0xff pattern:$0x75316420] %v7431_v12 }
 0x403   : > { %6726 = vmatmul.msk.bf16.gmra.mxu1 %vm450_vm0, %v7384_v47  ;;  %6731 = vmatmul.msk.bf16.vlgmr.msrb.gmra.mxu3 %vm450_vm0, %v7375_v44 }
 0x409   : > { %v7448_v25 = vld [vmem:[#allocation1 + $0x11] ss:$2 sm:$0xff] }
 0x40a   : > { %10586 = vst [vmem:[#allocation10_spill] sm:$0xff] %v7448_v25 }
 0x40b   : > { %1356 = vst.sshfl [vmem:[#allocation1 + $0x10] sm:$0xff pattern:$0x75316420] %v7399_v62 }
 0x412   : > { %v7451_v9 = vld [vmem:[#allocation1 + $0x11] ss:$2 sm:$0xff] }
 0x413   : > { %1381 = vst.sshfl [vmem:[#allocation1 + $0x10] sm:$0xff pattern:$0x75316420] %v7431_v12  ;;  %6732 = vmatmul.msk.bf16.gmra.mxu3 %vm450_vm0, %v7384_v47  ;;  %6735 = vmatmul.msk.bf16.vlgmr.msra.gmra.mxu1 %vm450_vm0, %v7375_v44 }
 0x41a   : > { %v7458_v26 = vld [vmem:[#allocation1 + $0x11] ss:$2 sm:$0xff] }
 0x41b   : > { %10587 = vst [vmem:[#allocation11_spill] sm:$0xff] %v7458_v26 }
 0x41c   : > { %1406 = vst.sshfl [vmem:[#allocation1 + $0x10] sm:$0xff pattern:$0x75316420] %v7399_v62 }
 0x423   : > { %v7461_v27 = vld [vmem:[#allocation1 + $0x11] ss:$2 sm:$0xff]  ;;  %6736 = vmatmul.msk.bf16.gmra.mxu1 %vm450_vm0, %v7384_v47  ;;  %6737 = vmatmul.msk.bf16.vlgmr.msra.gmra.mxu3 %vm450_vm0, %v7375_v44  ;;  %v447_v44 = vld [vmem:[%s10511_s4] ss:$2 sm:$0xff] }
 0x424   : > { %1431 = vst.sshfl [vmem:[#allocation1 + $0x10] sm:$0xff pattern:$0x75316420] %v7431_v12  ;;  %v7487_v3 = vperm.slane %v447_v44, 1  ;;  %v7491_v0 = vperm.slane %v447_v44, 0  ;;  %v7494_v4 = vperm.slane %v447_v44, 3 }
 0x425   : > { %v7501_v34 = vperm.slane %v447_v44, 2  ;;  %v7517_v14 = vperm.slane %v447_v44, 5  ;;  %v7519_v20 = vperm.slane %v447_v44, 4 }
 0x426   : > { %10591 = vst [vmem:[#allocation15_spill] sm:$0xff] %v7491_v0  ;;  %v2387_v38 = vrot.slane %v7494_v4, 4 }
 0x427   : > { %10592 = vst [vmem:[#allocation16_spill] sm:$0xff] %v7517_v14  ;;  %v2388_v17 = vrot.slane %v7517_v14, 4 }
 0x428   : > { %10593 = vst [vmem:[#allocation17_spill] sm:$0xff] %v7519_v20 }
 0x42b   : > { %v7468_v16 = vld [vmem:[#allocation1 + $0x11] ss:$2 sm:$0xff] }
 0x42c   : > { %10588 = vst [vmem:[#allocation12_spill] sm:$0xff] %v7468_v16 }
 0x42d   : > { %1564 = vst.sshfl [vmem:[#allocation1 + $0x10] sm:$0xff pattern:$0x75316420] %v7402_v63 }
 0x433   : > { %6738 = vmatmul.msk.bf16.gmra.mxu3 %vm450_vm0, %v7384_v47  ;;  %v2386_v47 = vrot.slane %v7487_v3, 4  ;;  %vm2390_vm0 = vcmask 1043456  }
 0x434   : > { %v7473_v28 = vld [vmem:[#allocation1 + $0x11] ss:$2 sm:$0xff]  ;;  %v7508_v39 = vsel %vm2390_vm0, %v7501_v34, %v2387_v38  ;;  %v7527_v37 = vsel %vm2390_vm0, %v7519_v20, %v2388_v17  ;;  %v1206_v38 = vsel %vm1146_vm6, %v1204_v52, %v1205_v61 }
 0x435   : > { %1587 = vst.sshfl [vmem:[#allocation1 + $0x10] sm:$0xff pattern:$0x75316420] %v7471_v18  ;;  %v7499_v33 = vsel %vm2390_vm0, %v7491_v0, %v2386_v47  ;;  %2397 = vrot.lane.b32.xlu0 %v7508_v39, %s7095_s15  ;;  %2399 = vrot.lane.b32.xlu2 %v7527_v37, %s7095_s15  ;;  %v1178_v47 = vsel %vm1146_vm6, %v7399_v62, %v1177_v35  ;;  %v7593_v35 = vpop.f32.mrf.mxu0 }
 0x436   : > { %2395 = vrot.lane.b32.xlu1 %v7499_v33, %s7095_s15  ;;  %v1458_v62 = vsel %vm1144_vm5, %v10521_v1, %v7515_v41  ;;  %10596 = vst [vmem:[#allocation20_spill] sm:$0xff] %v7593_v35 }
 0x43c   : > { %v7478_v29 = vld [vmem:[#allocation1 + $0x11] ss:$2 sm:$0xff] }
 0x43d   : > { %1610 = vst.sshfl [vmem:[#allocation1 + $0x10] sm:$0xff pattern:$0x75316420] %v7402_v63 }
 0x444   : > { %v7481_v31 = vld [vmem:[#allocation1 + $0x11] ss:$2 sm:$0xff] }
 0x445   : > { %1635 = vst.sshfl [vmem:[#allocation1 + $0x10] sm:$0xff pattern:$0x75316420] %v7471_v18 }
 0x44c   : > { %v7489_v2 = vld [vmem:[#allocation1 + $0x11] ss:$2 sm:$0xff] }
 0x44d   : > { %10590 = vst [vmem:[#allocation14_spill] sm:$0xff] %v7489_v2 }
 0x44e   : > { %1660 = vst.sshfl [vmem:[#allocation1 + $0x10] sm:$0xff pattern:$0x75316420] %v7402_v63 }
 0x455   : > { %v7512_v40 = vld [vmem:[#allocation1 + $0x11] ss:$2 sm:$0xff] }
 0x456   : > { %1685 = vst.sshfl [vmem:[#allocation1 + $0x10] sm:$0xff pattern:$0x75316420] %v7471_v18 }
 0x45d   : > { %v7521_v15 = vld [vmem:[#allocation1 + $0x11] ss:$2 sm:$0xff] }
 0x45e   : > { %10594 = vst [vmem:[#allocation18_spill] sm:$0xff] %v7521_v15 }
 0x45f   : > { %1710 = vst.sshfl [vmem:[#allocation1 + $0x10] sm:$0xff pattern:$0x75316420] %v7402_v63 }
 0x466   : > { %v7533_v45 = vld [vmem:[#allocation1 + $0x11] ss:$2 sm:$0xff]  ;;  %v7540_v50 = vpop.f32.mrf.mxu3 }
 0x467   : > { %1735 = vst.sshfl [vmem:[#allocation1 + $0x10] sm:$0xff pattern:$0x75316420] %v7471_v18  ;;  %v1234_v57 = vrot.slane %v7540_v50, 1  ;;  %v1179_v19 = vrot.slane %v7540_v50, 7  ;;  %v1148_v23 = vrot.slane %v7540_v50, 6  ;;  %v1207_v11 = vsel %vm1149_vm7, %v7540_v50, %v1206_v38 }
 0x468   : > { %1263 = vst.sshfl [vmem:[#allocation1 + $0x20] sm:$0xff pattern:$0x75316420] %v7540_v50  ;;  %v1839_v38 = vrot.slane %v7531_v43, 3 }
 0x469   : > { %v1235_v44 = vsel %vm1149_vm7, %v1234_v57, %v1233_v21  ;;  %v1180_v49 = vsel %vm1149_vm7, %v1179_v19, %v1178_v47  ;;  %v1150_v53 = vsel %vm1149_vm7, %v1148_v23, %v1147_v48 }
 0x46a   : > { %v1236_v56 = vsel %vm1151_vm9, %v1234_v57, %v1235_v44  ;;  %v1181_v44 = vsel %vm1151_vm9, %v1179_v19, %v1180_v49  ;;  %v1152_v19 = vsel %vm1151_vm9, %v1148_v23, %v1150_v53  ;;  %v1270_v23 = vsel %vm1144_vm5, %v1269_v59, %v1259_v51 }
 0x46b   : > { %v10597_v51 = vrot.slane %v7402_v63, 7 }
 0x46d   : > { %v1459_v15 = vsel %vm1146_vm6, %v10597_v51, %v1458_v62  ;;  %v1813_v62 = vrot.slane %v7531_v43, 2 }
 0x46e   : > { %v7556_v60 = vld [vmem:[#allocation1 + $0x11] ss:$2 sm:$0xff]  ;;  %v7581_v17 = vpop.f32.mrf.mxu3 }
 0x46f   : > { %10595 = vst [vmem:[#allocation19_spill] sm:$0xff] %v7556_v60  ;;  %v7604_v21 = vld [vmem:[#allocation1 + $0x21] ss:$2 sm:$0xff]  ;;  %v1486_v1 = vrot.slane %v7581_v17, 7  ;;  %v1460_v26 = vrot.slane %v7581_v17, 6 }
 0x470   : > { %1868 = vst.sshfl [vmem:[#allocation1 + $0x10] sm:$0xff pattern:$0x75316420] %v7404_v6  ;;  %v7591_v52 = vpop.f32.mrf.mxu1 }
 0x471   : > { %1266 = vst.sshfl [vmem:[#allocation1 + $0x30] sm:$0xff pattern:$0x75316420] %v7591_v52  ;;  %v1237_v61 = vsel %vm10580_vm8, %v7591_v52, %v1236_v56  ;;  %v1182_v8 = vrot.slane %v7591_v52, 6  ;;  %v1153_v48 = vrot.slane %v7591_v52, 5  ;;  %v1209_v36 = vrot.slane %v7591_v52, 7 }
 0x472   : > { %v1238_v57 = vsel %vm10559_vm10, %v7591_v52, %v1237_v61  ;;  %v1840_v61 = vrot.slane %v7404_v6, 2 }
 0x473   : > { %1239 = vrot.lane.b32.xlu1 %v1238_v57, %s7097_s29  ;;  %v1183_v56 = vsel %vm10580_vm8, %v1182_v8, %v1181_v44  ;;  %v1155_v16 = vsel %vm10580_vm8, %v1153_v48, %v1152_v19  ;;  %v1788_v57 = vsel %vm1144_vm5, %v7404_v6, %v1787_v58  ;;  %v1512_v19 = vsel %vm1146_vm6, %v1510_v10, %v1511_v22 }
 0x474   : > { %v1184_v49 = vsel %vm10559_vm10, %v1182_v8, %v1183_v56  ;;  %v1157_v44 = vsel %vm10559_vm10, %v1153_v48, %v1155_v16  ;;  %v1208_v8 = vsel %vm1151_vm9, %v7540_v50, %v1207_v11  ;;  %v1538_v56 = vsel %vm1146_vm6, %v1536_v7, %v1537_v46 }
 0x475   : > { %1185 = vrot.lane.b32.xlu0 %v1184_v49, %s7098_s25  ;;  %1160 = vst.msk [vmem:[#allocation2 + $0x4] sm:$0xf] %vm1159_vm11, %v1157_v44  ;;  %v1272_v49 = vrot.slane %v7604_v21, 6  ;;  %v1210_v58 = vsel %vm10580_vm8, %v1209_v36, %v1208_v8  ;;  %v1487_v16 = vsel %vm1149_vm7, %v1486_v1, %v1485_v42  ;;  %v1539_v48 = vrot.slane %v7581_v17, 1 }
 0x476   : > { %v7630_v53 = vpop.f32.mrf.mxu3  ;;  %v1841_v7 = vsel %vm1144_vm5, %v1840_v61, %v1839_v38  ;;  %v1789_v10 = vsel %vm1146_vm6, %v7404_v6, %v1788_v57  ;;  %v7651_v46 = vsel %vm1144_vm5, %v7406_v55, %v2091_v13  ;;  %v1271_v22 = vsel %vm1146_vm6, %v1269_v59, %v1270_v23 }
 0x477   : > { %v7611_v47 = vld [vmem:[#allocation1 + $0x11] ss:$2 sm:$0xff]  ;;  %v1843_v63 = vrot.slane %v7630_v53, 1  ;;  %v1461_v11 = vsel %vm1149_vm7, %v1460_v26, %v1459_v15  ;;  %v1211_v38 = vsel %vm10559_vm10, %v1209_v36, %v1210_v58  ;;  %v1488_v44 = vsel %vm1151_vm9, %v1486_v1, %v1487_v16 }
 0x478   : > { %1891 = vst.sshfl [vmem:[#allocation1 + $0x10] sm:$0xff pattern:$0x75316420] %v7593_v35  ;;  %v7644_v60 = vpop.f32.mrf.mxu1  ;;  %v1268_v42 = vld [vmem:[#allocation1 + $0x31] ss:$2 sm:$0xff]  ;;  %v1814_v57 = vrot.slane %v7404_v6, 1  ;;  %v1273_v13 = vsel %vm1149_vm7, %v1272_v49, %v1271_v22  ;;  %v1540_v23 = vsel %vm1149_vm7, %v1539_v48, %v1538_v56  ;;  %v1842_v51 = vsel %vm1146_vm6, %v1840_v61, %v1841_v7 }
 0x479   : > { %v1489_v21 = vrot.slane %v7644_v60, 6  ;;  %v1463_v15 = vrot.slane %v7644_v60, 5  ;;  %v1764_v1 = vrot.slane %v7630_v53, 6  ;;  %v1462_v58 = vsel %vm1151_vm9, %v1460_v26, %v1461_v11 }
 0x47a   : > { %v1275_v16 = vrot.slane %v1268_v42, 5  ;;  %v1844_v22 = vsel %vm1149_vm7, %v1843_v63, %v1842_v51  ;;  %v2065_v56 = vrot.slane %v7406_v55, 7  ;;  %v1274_v61 = vsel %vm1151_vm9, %v1272_v49, %v1273_v13 }
 0x47b   : > { %1212 = vrot.lane.b32.xlu1 %v1211_v38, %s7099_s19  ;;  %v1490_v59 = vsel %vm10580_vm8, %v1489_v21, %v1488_v44  ;;  %v1464_v38 = vsel %vm10580_vm8, %v1463_v15, %v1462_v58  ;;  %v1541_v44 = vsel %vm1151_vm9, %v1539_v48, %v1540_v23  ;;  %v2117_v11 = vrot.slane %v7547_v54, 2 }
 0x47c   : > { %v1491_v36 = vsel %vm10559_vm10, %v1489_v21, %v1490_v59  ;;  %v1790_v21 = vrot.slane %v7630_v53, 7  ;;  %v1465_v59 = vsel %vm10559_vm10, %v1463_v15, %v1464_v38  ;;  %v1276_v26 = vsel %vm10580_vm8, %v1275_v16, %v1274_v61 }
 0x47d   : > { %1492 = vrot.lane.b32.xlu0 %v1491_v36, %s7098_s25  ;;  %v1542_v42 = vsel %vm10580_vm8, %v7644_v60, %v1541_v44  ;;  %v2118_v51 = vrot.slane %v7406_v55, 1  ;;  %v10598_v49 = vrot.slane %v7404_v6, 7  ;;  %1467 = vst.msk [vmem:[#allocation2 + $0xc] sm:$0xf] %vm1159_vm11, %v1465_v59  ;;  %v1845_v23 = vsel %vm1151_vm9, %v1843_v63, %v1844_v22 }
 0x47e   : > { %v7678_v7 = vpop.f32.mrf.mxu3  ;;  %v1815_v15 = vsel %vm1144_vm5, %v1814_v57, %v1813_v62  ;;  %v1277_v58 = vsel %vm10559_vm10, %v1275_v16, %v1276_v26  ;;  %v1513_v61 = vsel %vm1149_vm7, %v7581_v17, %v1512_v19  ;;  %v2066_v44 = vsel %vm1144_vm5, %v2065_v56, %v7547_v54 }
 0x47f   : > { %v7661_v8 = vld [vmem:[#allocation1 + $0x11] ss:$2 sm:$0xff]  ;;  %v1763_v13 = vsel %vm1146_vm6, %v10598_v49, %v7571_v5  ;;  %v1515_v5 = vrot.slane %v7644_v60, 7  ;;  %1279 = vst.msk [vmem:[#allocation2 + $0x8] sm:$0xf] %vm1159_vm11, %v1277_v58  ;;  %v1543_v63 = vsel %vm10559_vm10, %v7644_v60, %v1542_v42  ;;  %v1791_v16 = vsel %vm1149_vm7, %v1790_v21, %v1789_v10 }
 0x480   : > { %1914 = vst.sshfl [vmem:[#allocation1 + $0x10] sm:$0xff pattern:$0x75316420] %v7404_v6  ;;  %v7693_v48 = vpop.f32.mrf.mxu1  ;;  %v1765_v36 = vsel %vm1149_vm7, %v1764_v1, %v1763_v13  ;;  %v2094_v26 = vrot.slane %v7678_v7, 7  ;;  %v2068_v49 = vrot.slane %v7678_v7, 6  ;;  %v1514_v10 = vsel %vm1151_vm9, %v7581_v17, %v1513_v61 }
 0x481   : > { %v1846_v38 = vsel %vm10580_vm8, %v7693_v48, %v1845_v23  ;;  %v1767_v59 = vrot.slane %v7693_v48, 5  ;;  %v1793_v19 = vrot.slane %v7693_v48, 6  ;;  %v1766_v42 = vsel %vm1151_vm9, %v1764_v1, %v1765_v36 }
 0x482   : > { %v1847_v62 = vsel %vm10559_vm10, %v7693_v48, %v1846_v38  ;;  %v2119_v13 = vsel %vm1144_vm5, %v2118_v51, %v2117_v11  ;;  %v1516_v58 = vsel %vm10580_vm8, %v1515_v5, %v1514_v10  ;;  %v2093_v1 = vsel %vm1146_vm6, %v7406_v55, %v7651_v46 }
 0x483   : > { %1544 = vrot.lane.b32.xlu1 %v1543_v63, %s7097_s29  ;;  %1848 = vrot.lane.b32.xlu2 %v1847_v62, %s7097_s29  ;;  %v1768_v23 = vsel %vm10580_vm8, %v1767_v59, %v1766_v42  ;;  %v1792_v62 = vsel %vm1151_vm9, %v1790_v21, %v1791_v16  ;;  %v1816_v36 = vsel %vm1146_vm6, %v1814_v57, %v1815_v15  ;;  %v1245_v15 = vrot.slane %v7431_v12, 2 }
 0x484   : > { %v1769_v38 = vsel %vm10559_vm10, %v1767_v59, %v1768_v23  ;;  %v2067_v11 = vsel %vm1146_vm6, %v2065_v56, %v2066_v44  ;;  %v1794_v61 = vsel %vm10580_vm8, %v1793_v19, %v1792_v62  ;;  %v2095_v59 = vsel %vm1149_vm7, %v2094_v26, %v2093_v1 }
 0x485   : > { %1771 = vst.msk [vmem:[#allocation2 + $0x14] sm:$0xf] %vm1159_vm11, %v1769_v38  ;;  %v2120_v42 = vsel %vm1146_vm6, %v2118_v51, %v2119_v13  ;;  %v2069_v21 = vsel %vm1149_vm7, %v2068_v49, %v2067_v11  ;;  %v1517_v46 = vsel %vm10559_vm10, %v1515_v5, %v1516_v58  ;;  %v1817_v57 = vsel %vm1149_vm7, %v7630_v53, %v1816_v36 }
 0x486   : > { %v7728_v63 = vpop.f32.mrf.mxu3  ;;  %v1218_v56 = vrot.slane %v7431_v12, 1  ;;  %v1819_v10 = vrot.slane %v7693_v48, 7  ;;  %v2121_v51 = vsel %vm1149_vm7, %v7678_v7, %v2120_v42  ;;  %v1795_v23 = vsel %vm10559_vm10, %v1793_v19, %v1794_v61 }
 0x487   : > { %v7712_v22 = vld [vmem:[#allocation1 + $0x11] ss:$2 sm:$0xff]  ;;  %1280 = vst.sshfl [vmem:[#allocation1] sm:$0xff pattern:$0x75316420] %v7728_v63  ;;  %v2096_v5 = vsel %vm1151_vm9, %v2094_v26, %v2095_v59  ;;  %v2070_v38 = vsel %vm1151_vm9, %v2068_v49, %v2069_v21  ;;  %v1244_v62 = vrot.slane %v7728_v63, 3  ;;  %v1818_v59 = vsel %vm1151_vm9, %v7630_v53, %v1817_v57 }
 0x488   : > { %1939 = vst.sshfl [vmem:[#allocation1 + $0x10] sm:$0xff pattern:$0x75316420] %v7593_v35  ;;  %v7742_v16 = vpop.f32.mrf.mxu1  ;;  %v1217_v26 = vrot.slane %v7728_v63, 2  ;;  %v1190_v61 = vrot.slane %v7728_v63, 1 }
 0x489   : > { %v2097_v44 = vrot.slane %v7742_v16, 6  ;;  %v2071_v13 = vrot.slane %v7742_v16, 5  ;;  %v2123_v36 = vrot.slane %v7742_v16, 7 }
 0x48b   : > { %1518 = vrot.lane.b32.xlu1 %v1517_v46, %s7099_s19  ;;  %1796 = vrot.lane.b32.xlu2 %v1795_v23, %s7098_s25  ;;  %v2098_v1 = vsel %vm10580_vm8, %v2097_v44, %v2096_v5  ;;  %v2072_v19 = vsel %vm10580_vm8, %v2071_v13, %v2070_v38  ;;  %v1820_v46 = vsel %vm10580_vm8, %v1819_v10, %v1818_v59 }
 0x48c   : > { %v2099_v11 = vsel %vm10559_vm10, %v2097_v44, %v2098_v1  ;;  %v2073_v49 = vsel %vm10559_vm10, %v2071_v13, %v2072_v19  ;;  %v2122_v44 = vsel %vm1151_vm9, %v7678_v7, %v2121_v51  ;;  %v1246_v23 = vsel %vm1144_vm5, %v1245_v15, %v1244_v62 }
 0x48d   : > { %2100 = vrot.lane.b32.xlu0 %v2099_v11, %s7098_s25  ;;  %2075 = vst.msk [vmem:[#allocation2 + $0x1c] sm:$0xf] %vm1159_vm11, %v2073_v49  ;;  %v2124_v13 = vsel %vm10580_vm8, %v2123_v36, %v2122_v44  ;;  %v1219_v5 = vsel %vm1144_vm5, %v1218_v56, %v1217_v26  ;;  %v1191_v38 = vsel %vm1144_vm5, %v7431_v12, %v1190_v61 }
 0x48e   : > { %v7774_v42 = vld [vmem:[#allocation1 + $0x1] ss:$2 sm:$0xff]  ;;  %v7776_v21 = vpop.f32.mrf.mxu3  ;;  %v1821_v1 = vsel %vm10559_vm10, %v1819_v10, %v1820_v46  ;;  %v2125_v51 = vsel %vm10559_vm10, %v2123_v36, %v2124_v13  ;;  %v1247_v49 = vsel %vm1146_vm6, %v1245_v15, %v1246_v23  ;;  %v1220_v26 = vsel %vm1146_vm6, %v1218_v56, %v1219_v5 }
 0x48f   : > { %v7756_v58 = vld [vmem:[#allocation1 + $0x11] ss:$2 sm:$0xff]  ;;  %10600 = vst [vmem:[#allocation22_spill] sm:$0xff] %v7776_v21  ;;  %v1192_v61 = vsel %vm1146_vm6, %v7431_v12, %v1191_v38 }
 0x490   : > { %10599 = vst [vmem:[#allocation21_spill] sm:$0xff] %v7756_v58  ;;  %v7785_v57 = vpop.f32.mrf.mxu1 }
 0x491   : > { %1964 = vst.sshfl [vmem:[#allocation1 + $0x10] sm:$0xff pattern:$0x75316420] %v7404_v6  ;;  %v1248_v19 = vrot.slane %v7785_v57, 1  ;;  %v1193_v62 = vrot.slane %v7785_v57, 7  ;;  %v1221_v36 = vsel %vm1149_vm7, %v7785_v57, %v1220_v26  ;;  %v1168_v26 = vrot.slane %v7785_v57, 6 }
 0x492   : > { %1303 = vst.sshfl [vmem:[#allocation1] sm:$0xff pattern:$0x75316420] %v7418_v32  ;;  %v1222_v56 = vsel %vm1151_vm9, %v7785_v57, %v1221_v36 }
 0x493   : > { %1286 = vst.sshfl [vmem:[#allocation1 + $0x20] sm:$0xff pattern:$0x75316420] %v7785_v57  ;;  %1822 = vrot.lane.b32.xlu2 %v1821_v1, %s7099_s19  ;;  %2126 = vrot.lane.b32.xlu1 %v2125_v51, %s7099_s19  ;;  %v1249_v10 = vsel %vm1149_vm7, %v1248_v19, %v1247_v49  ;;  %v1194_v59 = vsel %vm1149_vm7, %v1193_v62, %v1192_v61  ;;  %v1165_v51 = vrot.slane %v7431_v12, 7 }
 0x494   : > { %v1250_v15 = vsel %vm1151_vm9, %v1248_v19, %v1249_v10  ;;  %v1195_v46 = vsel %vm1151_vm9, %v1193_v62, %v1194_v59  ;;  %v1292_v59 = vrot.slane %v7438_v24, 7 }
 0x496   : > { %v7813_v13 = vpop.f32.mrf.mxu3 }
 0x497   : > { %10601 = vst [vmem:[#allocation23_spill] sm:$0xff] %v7813_v13 }
 0x498   : > { %v7793_v11 = vld [vmem:[#allocation1 + $0x11] ss:$2 sm:$0xff]  ;;  %v7834_v62 = vpop.f32.mrf.mxu1 }
 0x499   : > { %1989 = vst.sshfl [vmem:[#allocation1 + $0x10] sm:$0xff pattern:$0x75316420] %v7593_v35  ;;  %v7811_v44 = vld [vmem:[#allocation1 + $0x1] ss:$2 sm:$0xff] }
 0x49a   : > { %1328 = vst.sshfl [vmem:[#allocation1] sm:$0xff pattern:$0x75316420] %v7728_v63  ;;  %v7816_v23 = vld [vmem:[#allocation1 + $0x21] ss:$2 sm:$0xff] }
 0x49b   : > { %1309 = vst.sshfl [vmem:[#allocation1 + $0x20] sm:$0xff pattern:$0x75316420] %v7540_v50 }
 0x49c   : > { %10605 = vst [vmem:[#allocation27_spill] sm:$0xff] %v7834_v62 }
 0x49e   : > { %v7824_v1 = vpop.f32.mrf.mxu3 }
 0x49f   : > { %10604 = vst [vmem:[#allocation26_spill] sm:$0xff] %v7824_v1 }
 0x4a0   : > { %v7819_v5 = vld [vmem:[#allocation1 + $0x11] ss:$2 sm:$0xff] }
 0x4a1   : > { %10602 = vst [vmem:[#allocation24_spill] sm:$0xff] %v7819_v5  ;;  %v7822_v38 = vld [vmem:[#allocation1 + $0x1] ss:$2 sm:$0xff] }
 0x4a2   : > { %2014 = vst.sshfl [vmem:[#allocation1 + $0x10] sm:$0xff pattern:$0x75316420] %v7404_v6  ;;  %v7827_v19 = vld [vmem:[#allocation1 + $0x21] ss:$2 sm:$0xff]  ;;  %v1166_v6 = vsel %vm1144_vm5, %v1165_v51, %v7728_v63 }
 0x4a3   : > { %10603 = vst [vmem:[#allocation25_spill] sm:$0xff] %v7822_v38  ;;  %v1472_v38 = vrot.slane %v7471_v18, 7  ;;  %v1167_v2 = vsel %vm1146_vm6, %v1165_v51, %v1166_v6  ;;  %v1295_v51 = vrot.slane %v7816_v23, 6  ;;  %v7882_v18 = vpop.f32.mrf.mxu1 }
 0x4a4   : > { %1353 = vst.sshfl [vmem:[#allocation1] sm:$0xff pattern:$0x75316420] %v7418_v32  ;;  %v1169_v24 = vsel %vm1149_vm7, %v1168_v26, %v1167_v2 }
 0x4a5   : > { %1334 = vst.sshfl [vmem:[#allocation1 + $0x20] sm:$0xff pattern:$0x75316420] %v7785_v57  ;;  %v1473_v2 = vsel %vm1144_vm5, %v1472_v38, %v7776_v21 }
 0x4a6   : > { %v7841_v61 = vpop.f32.mrf.mxu3  ;;  %10611 = vst [vmem:[#allocation33_spill] sm:$0xff] %v7882_v18 }
 0x4a7   : > { %v1251_v12 = vsel %vm10580_vm8, %v7841_v61, %v1250_v15  ;;  %v1196_v36 = vrot.slane %v7841_v61, 6  ;;  %v1223_v58 = vrot.slane %v7841_v61, 7  ;;  %1289 = vst.sshfl [vmem:[#allocation1 + $0x30] sm:$0xff pattern:$0x75316420] %v7841_v61  ;;  %v1171_v0 = vrot.slane %v7841_v61, 5 }
 0x4a8   : > { %v7854_v25 = vsel %vm10559_vm10, %v7841_v61, %v1251_v12  ;;  %v1293_v12 = vsel %vm1144_vm5, %v1292_v59, %v7774_v42 }
 0x4a9   : > { %v7831_v49 = vld [vmem:[#allocation1 + $0x11] ss:$2 sm:$0xff]  ;;  %10607 = vst [vmem:[#allocation29_spill] sm:$0xff] %v7854_v25  ;;  %v1197_v15 = vsel %vm10580_vm8, %v1196_v36, %v1195_v46  ;;  %v1224_v6 = vsel %vm10580_vm8, %v1223_v58, %v1222_v56  ;;  %v1475_v25 = vrot.slane %v7834_v62, 6  ;;  %v1315_v56 = vrot.slane %v7811_v44, 1 }
 0x4aa   : > { %2039 = vst.sshfl [vmem:[#allocation1 + $0x10] sm:$0xff pattern:$0x75316420] %v7593_v35  ;;  %v7873_v46 = vsel %vm10559_vm10, %v1223_v58, %v1224_v6  ;;  %v1294_v58 = vsel %vm1146_vm6, %v1292_v59, %v1293_v12  ;;  %v7898_v59 = vpop.f32.mrf.mxu0 }
 0x4ab   : > { %v7839_v10 = vld [vmem:[#allocation1 + $0x1] ss:$2 sm:$0xff]  ;;  %10609 = vst [vmem:[#allocation31_spill] sm:$0xff] %v7873_v46  ;;  %v1296_v6 = vsel %vm1149_vm7, %v1295_v51, %v1294_v58  ;;  %v1474_v46 = vsel %vm1146_vm6, %v1472_v38, %v1473_v2  ;;  %v1316_v38 = vsel %vm1144_vm5, %v7441_v30, %v1315_v56 }
 0x4ac   : > { %1378 = vst.sshfl [vmem:[#allocation1] sm:$0xff pattern:$0x75316420] %v7728_v63  ;;  %v7849_v5 = vld [vmem:[#allocation1 + $0x21] ss:$2 sm:$0xff]  ;;  %v1297_v12 = vsel %vm1151_vm9, %v1295_v51, %v1296_v6  ;;  %v1317_v51 = vsel %vm1146_vm6, %v7441_v30, %v1316_v38  ;;  %v7932_v38 = vpop.f32.mrf.mxu1 }
 0x4ad   : > { %10606 = vst [vmem:[#allocation28_spill] sm:$0xff] %v7849_v5  ;;  %v7865_v5 = vsel %vm10559_vm10, %v1196_v36, %v1197_v15  ;;  %v1170_v36 = vsel %vm1151_vm9, %v1168_v26, %v1169_v24 }
 0x4ae   : > { %1359 = vst.sshfl [vmem:[#allocation1 + $0x20] sm:$0xff pattern:$0x75316420] %v7540_v50  ;;  %v1172_v15 = vsel %vm10580_vm8, %v1171_v0, %v1170_v36  ;;  %v7884_v42 = vpop.f32.mrf.mxu3  ;;  %v1291_v23 = vld [vmem:[#allocation1 + $0x31] ss:$2 sm:$0xff]  ;;  %v1776_v36 = vrot.slane %v7593_v35, 7 }
 0x4af   : > { %10608 = vst [vmem:[#allocation30_spill] sm:$0xff] %v7865_v5  ;;  %v1173_v26 = vsel %vm10559_vm10, %v1171_v0, %v1172_v15  ;;  %v1298_v44 = vrot.slane %v1291_v23, 5  ;;  %v1318_v0 = vrot.slane %v7827_v19, 7  ;;  %v1478_v2 = vrot.slane %v7884_v42, 5 }
 0x4b0   : > { %10612 = vst [vmem:[#allocation34_spill] sm:$0xff] %v7884_v42  ;;  %v1777_v58 = vsel %vm1144_vm5, %v1776_v36, %v7813_v13  ;;  %v1779_v19 = vrot.slane %v7882_v18, 6 }
 0x4b1   : > { %v7862_v20 = vld [vmem:[#allocation1 + $0x11] ss:$2 sm:$0xff]  ;;  %1312 = vst.sshfl [vmem:[#allocation1 + $0x30] sm:$0xff pattern:$0x75316420] %v7591_v52 }
 0x4b2   : > { %2172 = vst.sshfl [vmem:[#allocation1 + $0x10] sm:$0xff pattern:$0x75316420] %v7406_v55 }
 0x4b3   : > { %v7880_v5 = vld [vmem:[#allocation1 + $0x1] ss:$2 sm:$0xff]  ;;  %10613 = vst [vmem:[#allocation35_spill] sm:$0xff] %v7898_v59 }
 0x4b4   : > { %10610 = vst [vmem:[#allocation32_spill] sm:$0xff] %v7880_v5  ;;  %v1476_v5 = vsel %vm1149_vm7, %v1475_v25, %v1474_v46  ;;  %v1299_v46 = vsel %vm10580_vm8, %v1298_v44, %v1297_v12 }
 0x4b5   : > { %1403 = vst.sshfl [vmem:[#allocation1] sm:$0xff pattern:$0x75316420] %v7418_v32  ;;  %v7892_v24 = vld [vmem:[#allocation1 + $0x21] ss:$2 sm:$0xff]  ;;  %v1477_v15 = vsel %vm1151_vm9, %v1475_v25, %v1476_v5  ;;  %v1300_v23 = vsel %vm10559_vm10, %v1298_v44, %v1299_v46  ;;  %v1319_v25 = vsel %vm1149_vm7, %v1318_v0, %v1317_v51  ;;  %v2080_v44 = vrot.slane %v7898_v59, 7 }
 0x4b6   : > { %1384 = vst.sshfl [vmem:[#allocation1 + $0x20] sm:$0xff pattern:$0x75316420] %v7785_v57  ;;  %v1479_v56 = vsel %vm10580_vm8, %v1478_v2, %v1477_v15  ;;  %v7922_v12 = vpop.f32.mrf.mxu3  ;;  %v1778_v46 = vsel %vm1146_vm6, %v1776_v36, %v1777_v58 }
 0x4b7   : > { %1175 = vst.msk [vmem:[#allocation3] sm:$0xf] %vm1159_vm11, %v1173_v26  ;;  %v1480_v6 = vsel %vm10559_vm10, %v1478_v2, %v1479_v56  ;;  %v1780_v15 = vsel %vm1149_vm7, %v1779_v19, %v1778_v46  ;;  %v1782_v51 = vrot.slane %v7922_v12, 5  ;;  %v2081_v58 = vsel %vm1144_vm5, %v2080_v44, %v7824_v1 }
 0x4b8   : > { %1302 = vst.msk [vmem:[#allocation3 + $0x4] sm:$0xf] %vm1159_vm11, %v1300_v23  ;;  %v1314_v5 = vld [vmem:[#allocation1 + $0x31] ss:$2 sm:$0xff]  ;;  %v1320_v23 = vsel %vm1151_vm9, %v1318_v0, %v1319_v25 }
 0x4b9   : > { %v7900_v32 = vld [vmem:[#allocation1 + $0x11] ss:$2 sm:$0xff]  ;;  %10614 = vst [vmem:[#allocation36_spill] sm:$0xff] %v7922_v12  ;;  %v1321_v2 = vrot.slane %v1314_v5, 6  ;;  %v1781_v5 = vsel %vm1151_vm9, %v1779_v19, %v1780_v15 }
 0x4ba   : > { %2195 = vst.sshfl [vmem:[#allocation1 + $0x10] sm:$0xff pattern:$0x75316420] %v7898_v59 }
 0x4bb   : > { %1482 = vst.msk [vmem:[#allocation3 + $0x8] sm:$0xf] %vm1159_vm11, %v1480_v6  ;;  %v2083_v6 = vrot.slane %v7932_v38, 6 }
 0x4bc   : > { %v7920_v26 = vld [vmem:[#allocation1 + $0x1] ss:$2 sm:$0xff]  ;;  %1337 = vst.sshfl [vmem:[#allocation1 + $0x30] sm:$0xff pattern:$0x75316420] %v7841_v61 }
 0x4bd   : > { %1428 = vst.sshfl [vmem:[#allocation1] sm:$0xff pattern:$0x75316420] %v7728_v63  ;;  %v7929_v30 = vld [vmem:[#allocation1 + $0x21] ss:$2 sm:$0xff]  ;;  %v1322_v63 = vsel %vm10580_vm8, %v1321_v2, %v1320_v23  ;;  %v1365_v23 = vrot.slane %v7839_v10, 2 }
 0x4be   : > { %10615 = vst [vmem:[#allocation37_spill] sm:$0xff] %v7929_v30  ;;  %v1323_v36 = vsel %vm10559_vm10, %v1321_v2, %v1322_v63  ;;  %v7952_v46 = vpop.f32.mrf.mxu3  ;;  %v2082_v2 = vsel %vm1146_vm6, %v2080_v44, %v2081_v58 }
 0x4bf   : > { %10616 = vst [vmem:[#allocation38_spill] sm:$0xff] %v7932_v38  ;;  %1324 = vrot.lane.b32.xlu1 %v1323_v36, %s7098_s25  ;;  %v2084_v19 = vsel %vm1149_vm7, %v2083_v6, %v2082_v2  ;;  %v2086_v36 = vrot.slane %v7952_v46, 5 }
 0x4c0   : > { %1409 = vst.sshfl [vmem:[#allocation1 + $0x20] sm:$0xff pattern:$0x75316420] %v7540_v50  ;;  %v1783_v50 = vsel %vm10580_vm8, %v1782_v51, %v1781_v5  ;;  %v2085_v58 = vsel %vm1151_vm9, %v2083_v6, %v2084_v19 }
 0x4c1   : > { %v7937_v56 = vld [vmem:[#allocation1 + $0x11] ss:$2 sm:$0xff]  ;;  %v1784_v0 = vsel %vm10559_vm10, %v1782_v51, %v1783_v50  ;;  %10618 = vst [vmem:[#allocation40_spill] sm:$0xff] %v7952_v46  ;;  %v1366_v51 = vrot.slane %v7451_v9, 1  ;;  %v2087_v5 = vsel %vm10580_vm8, %v2086_v36, %v2085_v58  ;;  %v1415_v58 = vrot.slane %v7920_v26, 3 }
 0x4c2   : > { %2218 = vst.sshfl [vmem:[#allocation1 + $0x10] sm:$0xff pattern:$0x75316420] %v7406_v55  ;;  %v2088_v50 = vsel %vm10559_vm10, %v2086_v36, %v2087_v5  ;;  %v2143_v26 = vrot.slane %v7547_v54, 3 }
 0x4c3   : > { %1786 = vst.msk [vmem:[#allocation3 + $0x10] sm:$0xf] %vm1159_vm11, %v1784_v0  ;;  %v7958_v63 = vld [vmem:[#allocation1 + $0x31] ss:$2 sm:$0xff]  ;;  %v1367_v44 = vsel %vm1144_vm5, %v1366_v51, %v1365_v23 }
 0x4c4   : > { %v7950_v25 = vld [vmem:[#allocation1 + $0x1] ss:$2 sm:$0xff]  ;;  %10619 = vst [vmem:[#allocation41_spill] sm:$0xff] %v7958_v63  ;;  %v1368_v0 = vsel %vm1146_vm6, %v1366_v51, %v1367_v44 }
 0x4c5   : > { %10617 = vst [vmem:[#allocation39_spill] sm:$0xff] %v7950_v25 }
 0x4c6   : > { %1561 = vst.sshfl [vmem:[#allocation1] sm:$0xff pattern:$0x75316420] %v7515_v41 }
 0x4c7   : > { %v1411_v15 = vld [vmem:[#allocation1 + $0x21] ss:$2 sm:$0xff]  ;;  %1362 = vst.sshfl [vmem:[#allocation1 + $0x30] sm:$0xff pattern:$0x75316420] %v7591_v52 }
 0x4c8   : > { %1434 = vst.sshfl [vmem:[#allocation1 + $0x20] sm:$0xff pattern:$0x75316420] %v7785_v57  ;;  %v1369_v57 = vsel %vm1149_vm7, %v7892_v24, %v1368_v0 }
 0x4c9   : > { %v7965_v10 = vld [vmem:[#allocation1 + $0x11] ss:$2 sm:$0xff]  ;;  %2090 = vst.msk [vmem:[#allocation3 + $0x18] sm:$0xf] %vm1159_vm11, %v2088_v50  ;;  %v1370_v19 = vsel %vm1151_vm9, %v7892_v24, %v1369_v57  ;;  %v1416_v50 = vrot.slane %v7461_v27, 2  ;;  %v8006_v27 = vpop.permute.xlu2 %2399 }
 0x4ca   : > { %2243 = vst.sshfl [vmem:[#allocation1 + $0x10] sm:$0xff pattern:$0x75316420] %v7898_v59 }
 0x4cb   : > { %v1417_v57 = vsel %vm1144_vm5, %v1416_v50, %v1415_v58  ;;  %v2147_v58 = vrot.slane %v7678_v7, 1 }
 0x4cd   : > { %v1563_v9 = vld [vmem:[#allocation1 + $0x1] ss:$2 sm:$0xff] }
 0x4ce   : > { %1584 = vst.sshfl [vmem:[#allocation1] sm:$0xff pattern:$0x75316420] %v7776_v21  ;;  %v1364_v2 = vld [vmem:[#allocation1 + $0x31] ss:$2 sm:$0xff] }
 0x4cf   : > { %v7977_v23 = vld [vmem:[#allocation1 + $0x21] ss:$2 sm:$0xff]  ;;  %1387 = vst.sshfl [vmem:[#allocation1 + $0x30] sm:$0xff pattern:$0x75316420] %v7841_v61  ;;  %v1371_v6 = vrot.slane %v1364_v2, 7 }
 0x4d0   : > { %10620 = vst [vmem:[#allocation42_spill] sm:$0xff] %v7977_v23  ;;  %v1419_v2 = vrot.slane %v1411_v15, 1 }
 0x4d1   : > { %1567 = vst.sshfl [vmem:[#allocation1 + $0x20] sm:$0xff pattern:$0x75316420] %v7581_v17  ;;  %v7983_v51 = vld [vmem:[#allocation1 + $0x11] ss:$2 sm:$0xff]  ;;  %v1372_v36 = vsel %vm10580_vm8, %v1371_v6, %v1370_v19  ;;  %v2144_v19 = vrot.slane %v7406_v55, 2 }
 0x4d2   : > { %2268 = vst.sshfl [vmem:[#allocation1 + $0x10] sm:$0xff pattern:$0x75316420] %v7406_v55  ;;  %v1373_v44 = vsel %vm10559_vm10, %v1371_v6, %v1372_v36  ;;  %v1418_v36 = vsel %vm1146_vm6, %v1416_v50, %v1417_v57 }
 0x4d3   : > { %1374 = vrot.lane.b32.xlu2 %v1373_v44, %s7099_s19  ;;  %v1420_v44 = vsel %vm1149_vm7, %v1419_v2, %v1418_v36  ;;  %v2145_v15 = vsel %vm1144_vm5, %v2144_v19, %v2143_v26 }
 0x4d4   : > { %v1421_v25 = vsel %vm1151_vm9, %v1419_v2, %v1420_v44  ;;  %v2146_v57 = vsel %vm1146_vm6, %v2144_v19, %v2145_v15  ;;  %v8028_v2 = vpop.permute.xlu1 %2395 }
 0x4d5   : > { %v7990_v5 = vld [vmem:[#allocation1 + $0x1] ss:$2 sm:$0xff]  ;;  %v2148_v36 = vsel %vm1149_vm7, %v2147_v58, %v2146_v57 }
 0x4d6   : > { %1607 = vst.sshfl [vmem:[#allocation1] sm:$0xff pattern:$0x75316420] %v7515_v41  ;;  %v7994_v0 = vld [vmem:[#allocation1 + $0x31] ss:$2 sm:$0xff] }
 0x4d7   : > { %10621 = vst [vmem:[#allocation43_spill] sm:$0xff] %v7994_v0 }
 0x4d8   : > { %v7996_v24 = vld [vmem:[#allocation1 + $0x21] ss:$2 sm:$0xff]  ;;  %1412 = vst.sshfl [vmem:[#allocation1 + $0x30] sm:$0xff pattern:$0x75316420] %v7591_v52 }
 0x4d9   : > { %1590 = vst.sshfl [vmem:[#allocation1 + $0x20] sm:$0xff pattern:$0x75316420] %v7834_v62  ;;  %v8001_v6 = vld [vmem:[#allocation1 + $0x11] ss:$2 sm:$0xff] }
 0x4da   : > { %2293 = vst.sshfl [vmem:[#allocation1 + $0x10] sm:$0xff pattern:$0x75316420] %v7898_v59 }
 0x4dd   : > { %v8010_v52 = vld [vmem:[#allocation1 + $0x1] ss:$2 sm:$0xff]  ;;  %v8030_v44 = vpop.permute.xlu2 %1848 }
 0x4de   : > { %1632 = vst.sshfl [vmem:[#allocation1] sm:$0xff pattern:$0x75316420] %v7776_v21 }
 0x4df   : > { %v1414_v23 = vld [vmem:[#allocation1 + $0x31] ss:$2 sm:$0xff] }
 0x4e0   : > { %v8016_v35 = vld [vmem:[#allocation1 + $0x21] ss:$2 sm:$0xff]  ;;  %1437 = vst.sshfl [vmem:[#allocation1 + $0x30] sm:$0xff pattern:$0x75316420] %v7841_v61  ;;  %v1422_v0 = vsel %vm10580_vm8, %v1414_v23, %v1421_v25  ;;  %v8032_v61 = vpop.permute.xlu0 %2397  ;;  %v2149_v25 = vsel %vm1151_vm9, %v2147_v58, %v2148_v36 }
 0x4e1   : > { %1613 = vst.sshfl [vmem:[#allocation1 + $0x20] sm:$0xff pattern:$0x75316420] %v7581_v17  ;;  %v1423_v50 = vsel %vm10559_vm10, %v1414_v23, %v1422_v0  ;;  %v8023_v26 = vld [vmem:[#allocation1 + $0x11] ss:$2 sm:$0xff]  ;;  %v2150_v23 = vsel %vm10580_vm8, %v7742_v16, %v2149_v25 }
 0x4e2   : > { %1424 = vrot.lane.b32.xlu2 %v1423_v50, %s7097_s29  ;;  %2318 = vst.sshfl [vmem:[#allocation1 + $0x10] sm:$0xff pattern:$0x75316420] %v7406_v55  ;;  %v1573_v55 = vrot.slane %v7473_v28, 7  ;;  %v2151_v15 = vsel %vm10559_vm10, %v7742_v16, %v2150_v23  ;;  %v1576_v50 = vrot.slane %v7996_v24, 6  ;;  %v1596_v24 = vrot.slane %v7478_v29, 7 }
 0x4e4   : > { %v1574_v58 = vsel %vm1144_vm5, %v1573_v55, %v1563_v9 }
 0x4e5   : > { %v8035_v30 = vld [vmem:[#allocation1 + $0x1] ss:$2 sm:$0xff]  ;;  %v1240_v36 = vpop.permute.xlu1 %1239  ;;  %v1797_v25 = vpop.permute.xlu2 %1796  ;;  %v1575_v28 = vsel %vm1146_vm6, %v1573_v55, %v1574_v58 }
 0x4e6   : > { %10622 = vst [vmem:[#allocation44_spill] sm:$0xff] %v8035_v30  ;;  %v1577_v23 = vsel %vm1149_vm7, %v1576_v50, %v1575_v28  ;;  %v1599_v28 = vrot.slane %v8016_v35, 6 }
 0x4e7   : > { %1657 = vst.sshfl [vmem:[#allocation1] sm:$0xff pattern:$0x75316420] %v7515_v41  ;;  %v8040_v0 = vld [vmem:[#allocation1 + $0x31] ss:$2 sm:$0xff]  ;;  %v1578_v55 = vsel %vm1151_vm9, %v1576_v50, %v1577_v23  ;;  %v1619_v50 = vrot.slane %v8010_v52, 1 }
 0x4e8   : > { %10623 = vst [vmem:[#allocation45_spill] sm:$0xff] %v8040_v0  ;;  %v8042_v19 = vld [vmem:[#allocation1 + $0x21] ss:$2 sm:$0xff] }
 0x4e9   : > { %1570 = vst.sshfl [vmem:[#allocation1 + $0x30] sm:$0xff pattern:$0x75316420] %v7644_v60  ;;  %v8052_v57 = vld [vmem:[#allocation1 + $0x11] ss:$2 sm:$0xff]  ;;  %v1620_v52 = vsel %vm1144_vm5, %v7481_v31, %v1619_v50 }
 0x4ea   : > { %1638 = vst.sshfl [vmem:[#allocation1 + $0x20] sm:$0xff pattern:$0x75316420] %v7834_v62  ;;  %2152 = vrot.lane.b32.xlu2 %v2151_v15, %s7097_s29  ;;  %v1186_v15 = vpop.permute.xlu0 %1185 }
 0x4eb   : > { %2343 = vst.sshfl [vmem:[#allocation1 + $0x10] sm:$0xff pattern:$0x75316420] %v7898_v59 }
 0x4ec   : > { %1799 = vst.msk [vmem:[#allocation2 + $0x14] sm:$0xf] %vm10544_vm12, %v1797_v25  ;;  %v1597_v25 = vsel %vm1144_vm5, %v1596_v24, %v7990_v5 }
 0x4ed   : > { %1189 = vst.msk [vmem:[#allocation2 + $0x4] sm:$0xf] %vm10544_vm12, %v1186_v15 }
 0x4ee   : > { %v8056_v0 = vld [vmem:[#allocation1 + $0x1] ss:$2 sm:$0xff] }
 0x4ef   : > { %1682 = vst.sshfl [vmem:[#allocation1] sm:$0xff pattern:$0x75316420] %v7776_v21 }
 0x4f0   : > { %v1572_v9 = vld [vmem:[#allocation1 + $0x31] ss:$2 sm:$0xff] }
 0x4f1   : > { %v8062_v63 = vld [vmem:[#allocation1 + $0x21] ss:$2 sm:$0xff]  ;;  %1593 = vst.sshfl [vmem:[#allocation1 + $0x30] sm:$0xff pattern:$0x75316420] %v7884_v42  ;;  %v1579_v59 = vrot.slane %v1572_v9, 5  ;;  %v1598_v9 = vsel %vm1146_vm6, %v1596_v24, %v1597_v25 }
 0x4f2   : > { %10624 = vst [vmem:[#allocation46_spill] sm:$0xff] %v8062_v63  ;;  %v1213_v63 = vpop.permute.xlu1 %1212  ;;  %v1600_v23 = vsel %vm1149_vm7, %v1599_v28, %v1598_v9 }
 0x4f3   : > { %1663 = vst.sshfl [vmem:[#allocation1 + $0x20] sm:$0xff pattern:$0x75316420] %v7581_v17  ;;  %v1580_v58 = vsel %vm10580_vm8, %v1579_v59, %v1578_v55  ;;  %v1601_v24 = vsel %vm1151_vm9, %v1599_v28, %v1600_v23  ;;  %v1622_v55 = vrot.slane %v8042_v19, 7 }
 0x4f4   : > { %v1581_v29 = vsel %vm10559_vm10, %v1579_v59, %v1580_v58  ;;  %1216 = vst.msk [vmem:[#allocation2 + $0x4] sm:$0xf] %vm10543_vm13, %v1213_v63  ;;  %v1823_v59 = vpop.permute.xlu2 %1822  ;;  %v1493_v63 = vpop.permute.xlu0 %1492 }
 0x4f5   : > { %1583 = vst.msk [vmem:[#allocation2 + $0x10] sm:$0xf] %vm1159_vm11, %v1581_v29 }
 0x4f6   : > { %v8075_v30 = vld [vmem:[#allocation1 + $0x1] ss:$2 sm:$0xff]  ;;  %1243 = vst.msk [vmem:[#allocation2 + $0x4] sm:$0xf] %vm10541_vm14, %v1240_v36  ;;  %v1621_v36 = vsel %vm1146_vm6, %v7481_v31, %v1620_v52  ;;  %v1670_v52 = vrot.slane %v7512_v40, 1 }
 0x4f7   : > { %10625 = vst [vmem:[#allocation47_spill] sm:$0xff] %v8075_v30  ;;  %v1623_v29 = vsel %vm1149_vm7, %v1622_v55, %v1621_v36 }
 0x4f8   : > { %1707 = vst.sshfl [vmem:[#allocation1] sm:$0xff pattern:$0x75316420] %v7515_v41  ;;  %v1595_v5 = vld [vmem:[#allocation1 + $0x31] ss:$2 sm:$0xff] }
 0x4f9   : > { %1616 = vst.sshfl [vmem:[#allocation1 + $0x30] sm:$0xff pattern:$0x75316420] %v7644_v60  ;;  %v1602_v15 = vrot.slane %v1595_v5, 5 }
 0x4fa   : > { %v1665_v35 = vld [vmem:[#allocation1 + $0x21] ss:$2 sm:$0xff]  ;;  %1825 = vst.msk [vmem:[#allocation2 + $0x14] sm:$0xf] %vm10543_vm13, %v1823_v59  ;;  %v1545_v25 = vpop.permute.xlu1 %1544 }
 0x4fb   : > { %1688 = vst.sshfl [vmem:[#allocation1 + $0x20] sm:$0xff pattern:$0x75316420] %v7834_v62  ;;  %v1603_v41 = vsel %vm10580_vm8, %v1602_v15, %v1601_v24 }
 0x4fc   : > { %v1604_v58 = vsel %vm10559_vm10, %v1602_v15, %v1603_v41  ;;  %1851 = vst.msk [vmem:[#allocation2 + $0x14] sm:$0xf] %vm10541_vm14, %v8030_v44  ;;  %v1624_v44 = vsel %vm1151_vm9, %v1622_v55, %v1623_v29  ;;  %v1669_v15 = vrot.slane %v8056_v0, 2 }
 0x4fd   : > { %1495 = vst.msk [vmem:[#allocation2 + $0xc] sm:$0xf] %vm10544_vm12, %v1493_v63 }
 0x4fe   : > { %1606 = vst.msk [vmem:[#allocation3 + $0xc] sm:$0xf] %vm1159_vm11, %v1604_v58  ;;  %v1671_v55 = vsel %vm1144_vm5, %v1670_v52, %v1669_v15 }
 0x4ff   : > { %v1709_v28 = vld [vmem:[#allocation1 + $0x1] ss:$2 sm:$0xff]  ;;  %v2101_v63 = vpop.permute.xlu0 %2100  ;;  %v1672_v0 = vsel %vm1146_vm6, %v1670_v52, %v1671_v55 }
 0x500   : > { %1732 = vst.sshfl [vmem:[#allocation1] sm:$0xff pattern:$0x75316420] %v7776_v21  ;;  %v1618_v19 = vld [vmem:[#allocation1 + $0x31] ss:$2 sm:$0xff]  ;;  %v1673_v36 = vsel %vm1149_vm7, %v1665_v35, %v1672_v0 }
 0x501   : > { %1641 = vst.sshfl [vmem:[#allocation1 + $0x30] sm:$0xff pattern:$0x75316420] %v7884_v42  ;;  %v1625_v50 = vrot.slane %v1618_v19, 6  ;;  %v1674_v19 = vsel %vm1151_vm9, %v1665_v35, %v1673_v36 }
 0x502   : > { %v8099_v9 = vld [vmem:[#allocation1 + $0x21] ss:$2 sm:$0xff]  ;;  %v1519_v5 = vpop.permute.xlu1 %1518  ;;  %2103 = vst.msk [vmem:[#allocation2 + $0x1c] sm:$0xf] %vm10544_vm12, %v2101_v63 }
 0x503   : > { %10626 = vst [vmem:[#allocation48_spill] sm:$0xff] %v8099_v9  ;;  %v1626_v23 = vsel %vm10580_vm8, %v1625_v50, %v1624_v44 }
 0x504   : > { %1713 = vst.sshfl [vmem:[#allocation1 + $0x20] sm:$0xff pattern:$0x75316420] %v7581_v17  ;;  %v1627_v31 = vsel %vm10559_vm10, %v1625_v50, %v1626_v23  ;;  %v1719_v23 = vrot.slane %v1709_v28, 3 }
 0x505   : > { %1628 = vrot.lane.b32.xlu0 %v1627_v31, %s7098_s25  ;;  %1521 = vst.msk [vmem:[#allocation2 + $0xc] sm:$0xf] %vm10543_vm13, %v1519_v5  ;;  %v1720_v5 = vrot.slane %v7533_v45, 2 }
 0x506   : > { %1547 = vst.msk [vmem:[#allocation2 + $0xc] sm:$0xf] %vm10541_vm14, %v1545_v25 }
 0x507   : > { %v8107_v59 = vld [vmem:[#allocation1 + $0x1] ss:$2 sm:$0xff]  ;;  %v1721_v52 = vsel %vm1144_vm5, %v1720_v5, %v1719_v23 }
 0x508   : > { %10627 = vst [vmem:[#allocation49_spill] sm:$0xff] %v8107_v59  ;;  %v8112_v24 = vld [vmem:[#allocation1 + $0x31] ss:$2 sm:$0xff]  ;;  %v1722_v55 = vsel %vm1146_vm6, %v1720_v5, %v1721_v52 }
 0x509   : > { %1865 = vst.sshfl [vmem:[#allocation1] sm:$0xff pattern:$0x75316420] %v7531_v43 }
 0x50a   : > { %10628 = vst [vmem:[#allocation50_spill] sm:$0xff] %v8112_v24  ;;  %v2127_v41 = vpop.permute.xlu1 %2126 }
 0x50b   : > { %v1715_v17 = vld [vmem:[#allocation1 + $0x21] ss:$2 sm:$0xff]  ;;  %1666 = vst.sshfl [vmem:[#allocation1 + $0x30] sm:$0xff pattern:$0x75316420] %v7644_v60 }
 0x50c   : > { %1738 = vst.sshfl [vmem:[#allocation1 + $0x20] sm:$0xff pattern:$0x75316420] %v7834_v62  ;;  %v1723_v35 = vrot.slane %v1715_v17, 1 }
 0x50d   : > { %2129 = vst.msk [vmem:[#allocation2 + $0x1c] sm:$0xf] %vm10543_vm13, %v2127_v41 }
 0x50e   : > { %v1724_v41 = vsel %vm1149_vm7, %v1723_v35, %v1722_v55  ;;  %v1900_v55 = vrot.slane %v7661_v8, 7 }
 0x50f   : > { %v1725_v0 = vsel %vm1151_vm9, %v1723_v35, %v1724_v41 }
 0x510   : > { %v1867_v58 = vld [vmem:[#allocation1 + $0x1] ss:$2 sm:$0xff] }
 0x511   : > { %1888 = vst.sshfl [vmem:[#allocation1] sm:$0xff pattern:$0x75316420] %v7813_v13 }
 0x512   : > { %v1668_v29 = vld [vmem:[#allocation1 + $0x31] ss:$2 sm:$0xff] }
 0x513   : > { %v8124_v40 = vld [vmem:[#allocation1 + $0x21] ss:$2 sm:$0xff]  ;;  %1691 = vst.sshfl [vmem:[#allocation1 + $0x30] sm:$0xff pattern:$0x75316420] %v7884_v42  ;;  %v1675_v25 = vrot.slane %v1668_v29, 7 }
 0x514   : > { %10629 = vst [vmem:[#allocation51_spill] sm:$0xff] %v8124_v40 }
 0x515   : > { %1871 = vst.sshfl [vmem:[#allocation1 + $0x20] sm:$0xff pattern:$0x75316420] %v7630_v53  ;;  %v1676_v50 = vsel %vm10580_vm8, %v1675_v25, %v1674_v19 }
 0x516   : > { %v1677_v44 = vsel %vm10559_vm10, %v1675_v25, %v1676_v50  ;;  %v1877_v50 = vrot.slane %v7611_v47, 7 }
 0x517   : > { %1678 = vrot.lane.b32.xlu0 %v1677_v44, %s7099_s19 }
 0x518   : > { %v1890_v31 = vld [vmem:[#allocation1 + $0x1] ss:$2 sm:$0xff]  ;;  %v1878_v44 = vsel %vm1144_vm5, %v1877_v50, %v1867_v58 }
 0x519   : > { %1911 = vst.sshfl [vmem:[#allocation1] sm:$0xff pattern:$0x75316420] %v7531_v43  ;;  %v1879_v5 = vsel %vm1146_vm6, %v1877_v50, %v1878_v44 }
 0x51a   : > { %v8134_v15 = vld [vmem:[#allocation1 + $0x31] ss:$2 sm:$0xff] }
 0x51b   : > { %10630 = vst [vmem:[#allocation52_spill] sm:$0xff] %v8134_v15 }
 0x51c   : > { %v1873_v63 = vld [vmem:[#allocation1 + $0x21] ss:$2 sm:$0xff]  ;;  %1716 = vst.sshfl [vmem:[#allocation1 + $0x30] sm:$0xff pattern:$0x75316420] %v7644_v60 }
 0x51d   : > { %1894 = vst.sshfl [vmem:[#allocation1 + $0x20] sm:$0xff pattern:$0x75316420] %v7882_v18  ;;  %v1880_v23 = vrot.slane %v1873_v63, 6 }
 0x51f   : > { %v1881_v35 = vsel %vm1149_vm7, %v1880_v23, %v1879_v5 }
 0x520   : > { %v1913_v28 = vld [vmem:[#allocation1 + $0x1] ss:$2 sm:$0xff]  ;;  %v1882_v58 = vsel %vm1151_vm9, %v1880_v23, %v1881_v35 }
 0x521   : > { %1936 = vst.sshfl [vmem:[#allocation1] sm:$0xff pattern:$0x75316420] %v7813_v13  ;;  %v1923_v5 = vrot.slane %v1913_v28, 1 }
 0x523   : > { %v1718_v45 = vld [vmem:[#allocation1 + $0x31] ss:$2 sm:$0xff] }
 0x524   : > { %v1896_v36 = vld [vmem:[#allocation1 + $0x21] ss:$2 sm:$0xff]  ;;  %1741 = vst.sshfl [vmem:[#allocation1 + $0x30] sm:$0xff pattern:$0x75316420] %v7884_v42  ;;  %v1726_v60 = vsel %vm10580_vm8, %v1718_v45, %v1725_v0  ;;  %v1901_v0 = vsel %vm1144_vm5, %v1900_v55, %v1890_v31 }
 0x525   : > { %1917 = vst.sshfl [vmem:[#allocation1 + $0x20] sm:$0xff pattern:$0x75316420] %v7630_v53  ;;  %v1727_v17 = vsel %vm10559_vm10, %v1718_v45, %v1726_v60  ;;  %v1903_v60 = vrot.slane %v1896_v36, 6  ;;  %v1902_v50 = vsel %vm1146_vm6, %v1900_v55, %v1901_v0  ;;  %v1924_v55 = vsel %vm1144_vm5, %v7712_v22, %v1923_v5 }
 0x526   : > { %1728 = vrot.lane.b32.xlu0 %v1727_v17, %s7097_s29 }
 0x528   : > { %v8148_v29 = vld [vmem:[#allocation1 + $0x1] ss:$2 sm:$0xff] }
 0x529   : > { %10631 = vst [vmem:[#allocation53_spill] sm:$0xff] %v8148_v29 }
 0x52a   : > { %1961 = vst.sshfl [vmem:[#allocation1] sm:$0xff pattern:$0x75316420] %v7531_v43 }
 0x52b   : > { %v8151_v25 = vld [vmem:[#allocation1 + $0x31] ss:$2 sm:$0xff] }
 0x52c   : > { %10632 = vst [vmem:[#allocation54_spill] sm:$0xff] %v8151_v25  ;;  %v1919_v19 = vld [vmem:[#allocation1 + $0x21] ss:$2 sm:$0xff] }
 0x52d   : > { %1874 = vst.sshfl [vmem:[#allocation1 + $0x30] sm:$0xff pattern:$0x75316420] %v7693_v48  ;;  %v1375_v8 = vpop.permute.xlu2 %1374  ;;  %v1926_v28 = vrot.slane %v1919_v19, 7 }
 0x52e   : > { %1942 = vst.sshfl [vmem:[#allocation1 + $0x20] sm:$0xff pattern:$0x75316420] %v7882_v18 }
 0x531   : > { %v8158_v52 = vld [vmem:[#allocation1 + $0x1] ss:$2 sm:$0xff]  ;;  %v1325_v35 = vpop.permute.xlu1 %1324 }
 0x532   : > { %1986 = vst.sshfl [vmem:[#allocation1] sm:$0xff pattern:$0x75316420] %v7813_v13 }
 0x533   : > { %1327 = vst.msk [vmem:[#allocation2 + $0x8] sm:$0xf] %vm10544_vm12, %v1325_v35 }
 0x534   : > { %v1876_v41 = vld [vmem:[#allocation1 + $0x31] ss:$2 sm:$0xff]  ;;  %1377 = vst.msk [vmem:[#allocation2 + $0x8] sm:$0xf] %vm10543_vm13, %v1375_v8 }
 0x535   : > { %v8163_v45 = vld [vmem:[#allocation1 + $0x21] ss:$2 sm:$0xff]  ;;  %1897 = vst.sshfl [vmem:[#allocation1 + $0x30] sm:$0xff pattern:$0x75316420] %v7922_v12  ;;  %v1883_v47 = vrot.slane %v1876_v41, 5  ;;  %v1904_v41 = vsel %vm1149_vm7, %v1903_v60, %v1902_v50 }
 0x536   : > { %10633 = vst [vmem:[#allocation55_spill] sm:$0xff] %v8163_v45  ;;  %v1905_v36 = vsel %vm1151_vm9, %v1903_v60, %v1904_v41  ;;  %v1925_v60 = vsel %vm1146_vm6, %v7712_v22, %v1924_v55  ;;  %v10538_v50 = vrot.slane %v8028_v2, 4 }
 0x537   : > { %1967 = vst.sshfl [vmem:[#allocation1 + $0x20] sm:$0xff pattern:$0x75316420] %v7630_v53  ;;  %v1884_v63 = vsel %vm10580_vm8, %v1883_v47, %v1882_v58  ;;  %v1927_v19 = vsel %vm1149_vm7, %v1926_v28, %v1925_v60 }
 0x538   : > { %v1885_v17 = vsel %vm10559_vm10, %v1883_v47, %v1884_v63  ;;  %v10537_v63 = vrot.slane %v8032_v61, 4  ;;  %v1928_v22 = vsel %vm1151_vm9, %v1926_v28, %v1927_v19  ;;  %v1973_v28 = vrot.slane %v8158_v52, 2 }
 0x539   : > { %1887 = vst.msk [vmem:[#allocation2 + $0x18] sm:$0xf] %vm1159_vm11, %v1885_v17  ;;  %v8173_v44 = vld [vmem:[#allocation1 + $0x1] ss:$2 sm:$0xff]  ;;  %v1974_v19 = vrot.slane %v7793_v11, 1 }
 0x53a   : > { %10634 = vst [vmem:[#allocation56_spill] sm:$0xff] %v8173_v44  ;;  %v2409_v41 = vsel %vm2390_vm0, %v10538_v50, %v10537_v63  ;;  %v2024_v63 = vrot.slane %v7831_v49, 2 }
 0x53b   : > { %2011 = vst.sshfl [vmem:[#allocation1] sm:$0xff pattern:$0x75316420] %v7531_v43 }
 0x53c   : > { %v1899_v23 = vld [vmem:[#allocation1 + $0x31] ss:$2 sm:$0xff]  ;;  %v1425_v0 = vpop.permute.xlu2 %1424 }
 0x53d   : > { %1920 = vst.sshfl [vmem:[#allocation1 + $0x30] sm:$0xff pattern:$0x75316420] %v7693_v48  ;;  %v1906_v31 = vrot.slane %v1899_v23, 5 }
 0x53e   : > { %v1969_v58 = vld [vmem:[#allocation1 + $0x21] ss:$2 sm:$0xff]  ;;  %1427 = vst.msk [vmem:[#allocation2 + $0x8] sm:$0xf] %vm10541_vm14, %v1425_v0 }
 0x53f   : > { %1992 = vst.sshfl [vmem:[#allocation1 + $0x20] sm:$0xff pattern:$0x75316420] %v7882_v18  ;;  %v1907_v47 = vsel %vm10580_vm8, %v1906_v31, %v1905_v36 }
 0x540   : > { %v1908_v43 = vsel %vm10559_vm10, %v1906_v31, %v1907_v47  ;;  %v2410_v31 = vsel %vm2407_vm15, %v2409_v41, %v8032_v61 }
 0x541   : > { %1910 = vst.msk [vmem:[#allocation3 + $0x14] sm:$0xf] %vm1159_vm11, %v1908_v43 }
 0x542   : > { %v2013_v17 = vld [vmem:[#allocation1 + $0x1] ss:$2 sm:$0xff] }
 0x543   : > { %2036 = vst.sshfl [vmem:[#allocation1] sm:$0xff pattern:$0x75316420] %v7813_v13 }
 0x544   : > { %v1922_v8 = vld [vmem:[#allocation1 + $0x31] ss:$2 sm:$0xff]  ;;  %v2153_v47 = vpop.permute.xlu2 %2152 }
 0x545   : > { %1945 = vst.sshfl [vmem:[#allocation1 + $0x30] sm:$0xff pattern:$0x75316420] %v7922_v12  ;;  %v1929_v23 = vrot.slane %v1922_v8, 6  ;;  %v8208_v55 = vld [vmem:[#allocation2 + $0x8] sm:$0xff]  ;;  %v1975_v8 = vsel %vm1144_vm5, %v1974_v19, %v1973_v28 }
 0x546   : > { %v8194_v5 = vld [vmem:[#allocation1 + $0x21] ss:$2 sm:$0xff]  ;;  %2155 = vst.msk [vmem:[#allocation2 + $0x1c] sm:$0xf] %vm10541_vm14, %v2153_v47 }
 0x547   : > { %10635 = vst [vmem:[#allocation57_spill] sm:$0xff] %v8194_v5  ;;  %v1930_v35 = vsel %vm10580_vm8, %v1929_v23, %v1928_v22 }
 0x548   : > { %2017 = vst.sshfl [vmem:[#allocation1 + $0x20] sm:$0xff pattern:$0x75316420] %v7630_v53  ;;  %v1931_v36 = vsel %vm10559_vm10, %v1929_v23, %v1930_v35  ;;  %v2421_v53 = vmul.f32 %v2410_v31, %v8208_v55  ;;  %v1976_v23 = vsel %vm1146_vm6, %v1974_v19, %v1975_v8  ;;  %v2049_v35 = vrot.slane %v7862_v20, 2 }
 0x549   : > { %1932 = vrot.lane.b32.xlu1 %v1931_v36, %s7098_s25  ;;  %v1977_v52 = vsel %vm1149_vm7, %v1969_v58, %v1976_v23 }
 0x54a   : > { %v2038_v43 = vld [vmem:[#allocation1 + $0x1] ss:$2 sm:$0xff]  ;;  %2433 = vst [vmem:[#allocation1 + $0x10] ss:$2 sm:$0xff] %v2421_v53 }
 0x54b   : > { %2169 = vst.sshfl [vmem:[#allocation1] sm:$0xff pattern:$0x75316420] %v7547_v54  ;;  %v2048_v41 = vrot.slane %v2038_v43, 3  ;;  %v1978_v43 = vsel %vm1151_vm9, %v1969_v58, %v1977_v52 }
 0x54c   : > { %v8215_v0 = vld [vmem:[#allocation1 + $0x31] ss:$2 sm:$0xff] }
 0x54d   : > { %10636 = vst [vmem:[#allocation58_spill] sm:$0xff] %v8215_v0  ;;  %v2050_v47 = vsel %vm1144_vm5, %v2049_v35, %v2048_v41  ;;  %v2023_v41 = vrot.slane %v2013_v17, 3 }
 0x54e   : > { %1970 = vst.sshfl [vmem:[#allocation1 + $0x30] sm:$0xff pattern:$0x75316420] %v7693_v48  ;;  %v2051_v23 = vsel %vm1146_vm6, %v2049_v35, %v2050_v47 }
 0x54f   : > { %v2019_v60 = vld [vmem:[#allocation1 + $0x21] ss:$2 sm:$0xff] }
 0x550   : > { %2042 = vst.sshfl [vmem:[#allocation1 + $0x20] sm:$0xff pattern:$0x75316420] %v7882_v18  ;;  %v2027_v35 = vrot.slane %v2019_v60, 1 }
 0x551   : > { %v8229_v53 = vld.sshfl [vmem:[#allocation1 + $0x10] sm:$0xff pattern:$0x75316420]  ;;  %v8232_v19 = vld.sshfl [vmem:[#allocation1 + $0x18] sm:$0xff pattern:$0x75316420] }
 0x552   : > { %v2171_v22 = vld [vmem:[#allocation1 + $0x1] ss:$2 sm:$0xff]  ;;  %2652 = vst [vmem:[#allocation1 + $0x10] ss:$2 sm:$0xff] %v8208_v55 }
 0x553   : > { %2192 = vst.sshfl [vmem:[#allocation1] sm:$0xff pattern:$0x75316420] %v7824_v1 }
 0x555   : > { %v1972_v31 = vld [vmem:[#allocation1 + $0x31] ss:$2 sm:$0xff] }
 0x556   : > { %1995 = vst.sshfl [vmem:[#allocation1 + $0x30] sm:$0xff pattern:$0x75316420] %v7922_v12  ;;  %v1979_v11 = vrot.slane %v1972_v31, 7 }
 0x557   : > { %v2044_v36 = vld [vmem:[#allocation1 + $0x21] ss:$2 sm:$0xff] }
 0x558   : > { %2175 = vst.sshfl [vmem:[#allocation1 + $0x20] sm:$0xff pattern:$0x75316420] %v7678_v7  ;;  %v1980_v28 = vsel %vm10580_vm8, %v1979_v11, %v1978_v43  ;;  %v2052_v20 = vrot.slane %v2044_v36, 1 }
 0x559   : > { %v1981_v8 = vsel %vm10559_vm10, %v1979_v11, %v1980_v28  ;;  %v2025_v11 = vsel %vm1144_vm5, %v2024_v63, %v2023_v41 }
 0x55a   : > { %1982 = vrot.lane.b32.xlu2 %v1981_v8, %s7099_s19  ;;  %v2053_v31 = vsel %vm1149_vm7, %v2052_v20, %v2051_v23  ;;  %v2194_v52 = vld [vmem:[#allocation1 + $0x1] ss:$2 sm:$0xff]  ;;  %v2026_v17 = vsel %vm1146_vm6, %v2024_v63, %v2025_v11 }
 0x55b   : > { %v2054_v58 = vsel %vm1151_vm9, %v2052_v20, %v2053_v31  ;;  %2215 = vst.sshfl [vmem:[#allocation1] sm:$0xff pattern:$0x75316420] %v7547_v54  ;;  %v2028_v47 = vsel %vm1149_vm7, %v2027_v35, %v2026_v17  ;;  %v2181_v31 = vrot.slane %v7900_v32, 7 }
 0x55c   : > { %v2029_v20 = vsel %vm1151_vm9, %v2027_v35, %v2028_v47 }
 0x55d   : > { %v8242_v43 = vld [vmem:[#allocation1 + $0x31] ss:$2 sm:$0xff]  ;;  %v2182_v17 = vsel %vm1144_vm5, %v2181_v31, %v2171_v22 }
 0x55e   : > { %10637 = vst [vmem:[#allocation59_spill] sm:$0xff] %v8242_v43 }
 0x55f   : > { %v2177_v36 = vld [vmem:[#allocation1 + $0x21] ss:$2 sm:$0xff]  ;;  %2020 = vst.sshfl [vmem:[#allocation1 + $0x30] sm:$0xff pattern:$0x75316420] %v7693_v48 }
 0x560   : > { %2198 = vst.sshfl [vmem:[#allocation1 + $0x20] sm:$0xff pattern:$0x75316420] %v7932_v38  ;;  %v2184_v47 = vrot.slane %v2177_v36, 6 }
 0x562   : > { %v2217_v28 = vld [vmem:[#allocation1 + $0x1] ss:$2 sm:$0xff] }
 0x563   : > { %2240 = vst.sshfl [vmem:[#allocation1] sm:$0xff pattern:$0x75316420] %v7824_v1 }
 0x566   : > { %v2022_v49 = vld [vmem:[#allocation1 + $0x31] ss:$2 sm:$0xff] }
 0x567   : > { %v2200_v8 = vld [vmem:[#allocation1 + $0x21] ss:$2 sm:$0xff]  ;;  %2045 = vst.sshfl [vmem:[#allocation1 + $0x30] sm:$0xff pattern:$0x75316420] %v7922_v12  ;;  %v2030_v48 = vsel %vm10580_vm8, %v2022_v49, %v2029_v20  ;;  %v2183_v20 = vsel %vm1146_vm6, %v2181_v31, %v2182_v17 }
 0x568   : > { %2221 = vst.sshfl [vmem:[#allocation1 + $0x20] sm:$0xff pattern:$0x75316420] %v7678_v7  ;;  %v2031_v60 = vsel %vm10559_vm10, %v2022_v49, %v2030_v48  ;;  %v2207_v0 = vrot.slane %v2200_v8, 6 }
 0x569   : > { %2032 = vrot.lane.b32.xlu0 %v2031_v60, %s7097_s29  ;;  %v2185_v60 = vsel %vm1149_vm7, %v2184_v47, %v2183_v20 }
 0x56a   : > { %v2242_v63 = vld [vmem:[#allocation1 + $0x1] ss:$2 sm:$0xff]  ;;  %v2186_v22 = vsel %vm1151_vm9, %v2184_v47, %v2185_v60 }
 0x56b   : > { %2265 = vst.sshfl [vmem:[#allocation1] sm:$0xff pattern:$0x75316420] %v7547_v54  ;;  %v2252_v49 = vrot.slane %v2242_v63, 1  ;;  %v2204_v63 = vrot.slane %v7937_v56, 7 }
 0x56d   : > { %v2205_v20 = vsel %vm1144_vm5, %v2204_v63, %v2194_v52 }
 0x56e   : > { %v2047_v23 = vld [vmem:[#allocation1 + $0x31] ss:$2 sm:$0xff]  ;;  %v2206_v56 = vsel %vm1146_vm6, %v2204_v63, %v2205_v20 }
 0x56f   : > { %v8257_v41 = vld [vmem:[#allocation1 + $0x21] ss:$2 sm:$0xff]  ;;  %2178 = vst.sshfl [vmem:[#allocation1 + $0x30] sm:$0xff pattern:$0x75316420] %v7742_v16  ;;  %v2055_v11 = vsel %vm10580_vm8, %v2047_v23, %v2054_v58  ;;  %v2253_v58 = vsel %vm1144_vm5, %v7983_v51, %v2252_v49 }
 0x570   : > { %2246 = vst.sshfl [vmem:[#allocation1 + $0x20] sm:$0xff pattern:$0x75316420] %v7932_v38  ;;  %v8264_v35 = vsel %vm10559_vm10, %v2047_v23, %v2055_v11  ;;  %v2254_v11 = vsel %vm1146_vm6, %v7983_v51, %v2253_v58  ;;  %v2208_v51 = vsel %vm1149_vm7, %v2207_v0, %v2206_v56 }
 0x571   : > { %10638 = vst [vmem:[#allocation60_spill] sm:$0xff] %v8264_v35 }
 0x572   : > { %v8268_v48 = vld [vmem:[#allocation1 + $0x1] ss:$2 sm:$0xff] }
 0x573   : > { %2290 = vst.sshfl [vmem:[#allocation1] sm:$0xff pattern:$0x75316420] %v7824_v1 }
 0x576   : > { %v2180_v32 = vld [vmem:[#allocation1 + $0x31] ss:$2 sm:$0xff] }
 0x577   : > { %v2248_v50 = vld [vmem:[#allocation1 + $0x21] ss:$2 sm:$0xff]  ;;  %2201 = vst.sshfl [vmem:[#allocation1 + $0x30] sm:$0xff pattern:$0x75316420] %v7952_v46  ;;  %v2187_v23 = vrot.slane %v2180_v32, 5 }
 0x578   : > { %2271 = vst.sshfl [vmem:[#allocation1 + $0x20] sm:$0xff pattern:$0x75316420] %v7678_v7  ;;  %v2255_v36 = vrot.slane %v2248_v50, 7  ;;  %v2227_v50 = vrot.slane %v2217_v28, 1 }
 0x579   : > { %v2188_v31 = vsel %vm10580_vm8, %v2187_v23, %v2186_v22  ;;  %v1629_v22 = vpop.permute.xlu0 %1628 }
 0x57a   : > { %v2189_v17 = vsel %vm10559_vm10, %v2187_v23, %v2188_v31  ;;  %v2256_v49 = vsel %vm1149_vm7, %v2255_v36, %v2254_v11  ;;  %v2292_v47 = vld [vmem:[#allocation1 + $0x1] ss:$2 sm:$0xff]  ;;  %1631 = vst.msk [vmem:[#allocation2 + $0x10] sm:$0xf] %vm10544_vm12, %v1629_v22  ;;  %v2228_v28 = vsel %vm1144_vm5, %v7965_v10, %v2227_v50  ;;  %v2230_v23 = vrot.slane %v8257_v41, 7 }
 0x57b   : > { %2191 = vst.msk [vmem:[#allocation2 + $0x20] sm:$0xf] %vm1159_vm11, %v2189_v17  ;;  %v2257_v32 = vsel %vm1151_vm9, %v2255_v36, %v2256_v49  ;;  %v2302_v52 = vrot.slane %v2292_v47, 2  ;;  %v2303_v36 = vrot.slane %v8023_v26, 1  ;;  %v10639_v11 = vrot.slane %v8028_v2, 4  ;;  %v8303_v49 = vld [vmem:[#allocation2] sm:$0xff] }
 0x57c   : > { %2315 = vst.sshfl [vmem:[#allocation1] sm:$0xff pattern:$0x75316420] %v7547_v54  ;;  %v2209_v54 = vsel %vm1151_vm9, %v2207_v0, %v2208_v51  ;;  %v2229_v20 = vsel %vm1146_vm6, %v7965_v10, %v2228_v28  ;;  %v7023_v22 = vld [vmem:[%s10511_s4] ss:$2 sm:$0xff] }
 0x57d   : > { %v2408_v17 = vsel %vm2407_vm15, %v10639_v11, %v8028_v2  ;;  %v2304_v41 = vsel %vm1144_vm5, %v2303_v36, %v2302_v52  ;;  %v2231_v26 = vsel %vm1149_vm7, %v2230_v23, %v2229_v20  ;;  %v8319_v51 = vperm.slane %v7023_v22, 7 }
 0x57e   : > { %v2203_v60 = vld [vmem:[#allocation1 + $0x31] ss:$2 sm:$0xff]  ;;  %v2420_v2 = vmul.f32 %v2408_v17, %v8303_v49  ;;  %v2232_v10 = vsel %vm1151_vm9, %v2230_v23, %v2231_v26  ;;  %v2278_v11 = vrot.slane %v8001_v6, 1 }
 0x57f   : > { %v2273_v58 = vld [vmem:[#allocation1 + $0x21] ss:$2 sm:$0xff]  ;;  %2224 = vst.sshfl [vmem:[#allocation1 + $0x30] sm:$0xff pattern:$0x75316420] %v7742_v16  ;;  %v2210_v8 = vrot.slane %v2203_v60, 5  ;;  %v2305_v60 = vsel %vm1146_vm6, %v2303_v36, %v2304_v41 }
 0x580   : > { %2296 = vst.sshfl [vmem:[#allocation1 + $0x20] sm:$0xff pattern:$0x75316420] %v7932_v38  ;;  %v2389_v23 = vrot.slane %v8319_v51, 4 }
 0x581   : > { %v2211_v63 = vsel %vm10580_vm8, %v2210_v8, %v2209_v54  ;;  %10640 = vst [vmem:[#allocation61_spill] sm:$0xff] %v8319_v51 }
 0x582   : > { %v2212_v31 = vsel %vm10559_vm10, %v2210_v8, %v2211_v63  ;;  %v2277_v63 = vrot.slane %v8268_v48, 2 }
 0x583   : > { %2214 = vst.msk [vmem:[#allocation3 + $0x1c] sm:$0xf] %vm1159_vm11, %v2212_v31  ;;  %v2317_v0 = vld [vmem:[#allocation1 + $0x1] ss:$2 sm:$0xff]  ;;  %vm2712_vm11 = vcmask 261120  }
 0x584   : > { %2340 = vst.sshfl [vmem:[#allocation1] sm:$0xff pattern:$0x75316420] %v7824_v1  ;;  %v2279_v26 = vsel %vm1144_vm5, %v2278_v11, %v2277_v63  ;;  %v2327_v63 = vrot.slane %v2317_v0, 3 }
 0x585   : > { %2431 = vst [vmem:[#allocation1] ss:$2 sm:$0xff] %v2420_v2  ;;  %v2280_v6 = vsel %vm1146_vm6, %v2278_v11, %v2279_v26  ;;  %v8350_v2 = vld [vmem:[%s10511_s4 + $0x1] ss:$2 sm:$0xff]  ;;  %v2328_v11 = vrot.slane %v8052_v57, 2  ;;  %v10644_v26 = vrot.slane %v8032_v61, 4 }
 0x586   : > { %v2226_v47 = vld [vmem:[#allocation1 + $0x31] ss:$2 sm:$0xff] }
 0x587   : > { %v2298_v50 = vld [vmem:[#allocation1 + $0x21] ss:$2 sm:$0xff]  ;;  %2249 = vst.sshfl [vmem:[#allocation1 + $0x30] sm:$0xff pattern:$0x75316420] %v7952_v46  ;;  %v2233_v56 = vrot.slane %v2226_v47, 6  ;;  %v2329_v0 = vsel %vm1144_vm5, %v2328_v11, %v2327_v63 }
 0x588   : > { %2321 = vst.sshfl [vmem:[#allocation1 + $0x20] sm:$0xff pattern:$0x75316420] %v7678_v7  ;;  %v2306_v52 = vsel %vm1149_vm7, %v2298_v50, %v2305_v60  ;;  %v8326_v7 = vperm.slane %v7023_v22, 6  ;;  %v8355_v22 = vperm.slane %v8350_v2, 1  ;;  %v8400_v63 = vperm.slane %v8350_v2, 3 }
 0x589   : > { %v2234_v8 = vsel %vm10580_vm8, %v2233_v56, %v2232_v10  ;;  %v2307_v28 = vsel %vm1151_vm9, %v2298_v50, %v2306_v52  ;;  %v1679_v36 = vpop.permute.xlu0 %1678  ;;  %v2281_v50 = vsel %vm1149_vm7, %v2273_v58, %v2280_v6 }
 0x58a   : > { %v2235_v54 = vsel %vm10559_vm10, %v2233_v56, %v2234_v8  ;;  %10641 = vst [vmem:[#allocation62_spill] sm:$0xff] %v8326_v7  ;;  %v8335_v41 = vsel %vm2390_vm0, %v8326_v7, %v2389_v23  ;;  %v2282_v10 = vsel %vm1151_vm9, %v2273_v58, %v2281_v50  ;;  %v8364_v58 = vperm.slane %v8350_v2, 0 }
 0x58b   : > { %2236 = vrot.lane.b32.xlu1 %v2235_v54, %s7098_s25  ;;  %1681 = vst.msk [vmem:[#allocation2 + $0x10] sm:$0xf] %vm10543_vm13, %v1679_v36  ;;  %v2405_v54 = vrot.slane %v8006_v27, 4 }
 0x58c   : > { %v2438_v60 = vld.sshfl [vmem:[#allocation1] sm:$0xff pattern:$0x75316420]  ;;  %10643 = vst [vmem:[#allocation64_spill] sm:$0xff] %v8355_v22 }
 0x58d   : > { %v2457_v8 = vpack.c.bf16 %v2438_v60, %v2438_v60  ;;  %v2459_v60 = vpack.c.bf16 %v8229_v53, %v8229_v53  ;;  %v2439_v53 = vld.sshfl [vmem:[#allocation1 + $0x8] sm:$0xff pattern:$0x75316420] }
 0x58e   : > { %v2251_v31 = vld [vmem:[#allocation1 + $0x31] ss:$2 sm:$0xff] }
 0x58f   : > { %2274 = vst.sshfl [vmem:[#allocation1 + $0x30] sm:$0xff pattern:$0x75316420] %v7742_v16  ;;  %v2323_v17 = vld [vmem:[#allocation1 + $0x21] ss:$2 sm:$0xff]  ;;  %v2258_v20 = vrot.slane %v2251_v31, 6 }
 0x590   : > { %2346 = vst.sshfl [vmem:[#allocation1 + $0x20] sm:$0xff pattern:$0x75316420] %v7932_v38  ;;  %v2869_v31 = vrot.slane %v8355_v22, 4  ;;  %v2331_v6 = vrot.slane %v2323_v17, 1 }
 0x591   : > { %v2259_v47 = vsel %vm10580_vm8, %v2258_v20, %v2257_v32 }
 0x592   : > { %v8343_v48 = vsel %vm10559_vm10, %v2258_v20, %v2259_v47  ;;  %v2411_v47 = vsel %vm2390_vm0, %v10644_v26, %v2405_v54 }
 0x593   : > { %2401 = vrot.lane.b32.xlu1 %v8335_v41, %s7095_s15  ;;  %10642 = vst [vmem:[#allocation63_spill] sm:$0xff] %v8343_v48  ;;  %v2412_v57 = vsel %vm2407_vm15, %v2411_v47, %v8006_v27 }
 0x596   : > { %v2276_v56 = vld [vmem:[#allocation1 + $0x31] ss:$2 sm:$0xff] }
 0x597   : > { %2299 = vst.sshfl [vmem:[#allocation1 + $0x30] sm:$0xff pattern:$0x75316420] %v7952_v46  ;;  %v2283_v32 = vrot.slane %v2276_v56, 7  ;;  %v8377_v56 = vsel %vm2390_vm0, %v8364_v58, %v2869_v31  ;;  %v2458_v31 = vpack.c.bf16 %v2439_v53, %v2439_v53 }
 0x598   : > { %v1729_v36 = vpop.permute.xlu0 %1728  ;;  %v2659_v53 = vld.sshfl [vmem:[#allocation1 + $0x10] sm:$0xff pattern:$0x75316420] }
 0x599   : > { %v2284_v52 = vsel %vm10580_vm8, %v2283_v32, %v2282_v10  ;;  %1731 = vst.msk [vmem:[#allocation2 + $0x10] sm:$0xf] %vm10541_vm14, %v1729_v36 }
 0x59a   : > { %v2285_v23 = vsel %vm10559_vm10, %v2283_v32, %v2284_v52  ;;  %v2330_v32 = vsel %vm1146_vm6, %v2328_v11, %v2329_v0  ;;  %v8405_v11 = vperm.slane %v8350_v2, 2  ;;  %v2460_v0 = vpack.c.bf16 %v8232_v19, %v8232_v19 }
 0x59b   : > { %2286 = vrot.lane.b32.xlu0 %v2285_v23, %s7099_s19  ;;  %2475 = vrot.lane.b32.xlu1 %v2457_v8, %s7100_s24  ;;  %v2332_v17 = vsel %vm1149_vm7, %v2331_v6, %v2330_v32 }
 0x59e   : > { %v2301_v20 = vld [vmem:[#allocation1 + $0x31] ss:$2 sm:$0xff] }
 0x59f   : > { %2324 = vst.sshfl [vmem:[#allocation1 + $0x30] sm:$0xff pattern:$0x75316420] %v7742_v16  ;;  %v2308_v50 = vrot.slane %v2301_v20, 7  ;;  %v2870_v20 = vrot.slane %v8400_v63, 4 }
 0x5a0   : > { %v8388_v10 = vld [vmem:[#allocation2 + $0x10] sm:$0xff] }
 0x5a1   : > { %v2309_v61 = vsel %vm10580_vm8, %v2308_v50, %v2307_v28  ;;  %v2422_v52 = vmul.f32 %v2412_v57, %v8388_v10  ;;  %v2333_v28 = vsel %vm1151_vm9, %v2331_v6, %v2332_v17  ;;  %v8413_v6 = vsel %vm2390_vm0, %v8405_v11, %v2870_v20 }
 0x5a2   : > { %v8386_v16 = vsel %vm10559_vm10, %v2308_v50, %v2309_v61  ;;  %v8419_v50 = vperm.slane %v8350_v2, 5 }
 0x5a3   : > { %10645 = vst [vmem:[#allocation65_spill] sm:$0xff] %v8386_v16  ;;  %2877 = vrot.lane.b32.xlu1 %v8377_v56, %s7101_s30  ;;  %2479 = vrot.lane.b32.xlu0 %v2459_v60, %s7100_s24  ;;  %v8423_v60 = vperm.slane %v8350_v2, 4 }
 0x5a4   : > { %2435 = vst [vmem:[#allocation1 + $0x20] ss:$2 sm:$0xff] %v2422_v52  ;;  %v2871_v19 = vrot.slane %v8419_v50, 4 }
 0x5a5   : > { %10646 = vst [vmem:[#allocation66_spill] sm:$0xff] %v8423_v60 }
 0x5a6   : > { %v2326_v8 = vld [vmem:[#allocation1 + $0x31] ss:$2 sm:$0xff]  ;;  %v8429_v17 = vsel %vm2390_vm0, %v8423_v60, %v2871_v19 }
 0x5a7   : > { %v2334_v23 = vsel %vm10580_vm8, %v2326_v8, %v2333_v28  ;;  %2349 = vst.sshfl [vmem:[#allocation1 + $0x30] sm:$0xff pattern:$0x75316420] %v7952_v46 }
 0x5a8   : > { %v2335_v36 = vsel %vm10559_vm10, %v2326_v8, %v2334_v23  ;;  %v2678_v8 = vpack.c.bf16 %v2659_v53, %v2659_v53  ;;  %vm10579_vm10 = vcmask 785408  }
 0x5a9   : > { %2336 = vrot.lane.b32.xlu2 %v2335_v36, %s7097_s29 }
 0x5ab   : > { %2477 = vrot.lane.b32.xlu0 %v2458_v31, %s7100_s24  ;;  %v2442_v26 = vld.sshfl [vmem:[#allocation1 + $0x20] sm:$0xff pattern:$0x75316420]  ;;  %v2443_v47 = vld.sshfl [vmem:[#allocation1 + $0x28] sm:$0xff pattern:$0x75316420] }
 0x5ac   : > { %2654 = vst [vmem:[#allocation1 + $0x20] ss:$2 sm:$0xff] %v8388_v10  ;;  %v2461_v57 = vpack.c.bf16 %v2442_v26, %v2442_v26  ;;  %v2462_v52 = vpack.c.bf16 %v2443_v47, %v2443_v47 }
 0x5b1   : > { %2481 = vrot.lane.b32.xlu2 %v2460_v0, %s7100_s24 }
 0x5b3   : > { %2879 = vrot.lane.b32.xlu0 %v8413_v6, %s7101_s30 }
 0x5b4   : > { %v1983_v32 = vpop.permute.xlu2 %1982 }
 0x5b9   : > { %2483 = vrot.lane.b32.xlu2 %v2461_v57, %s7100_s24 }
 0x5bb   : > { %v1933_v61 = vpop.permute.xlu1 %1932 }
 0x5bc   : > { %1935 = vst.msk [vmem:[#allocation2 + $0x18] sm:$0xf] %vm10544_vm12, %v1933_v61 }
 0x5bd   : > { %1985 = vst.msk [vmem:[#allocation2 + $0x18] sm:$0xf] %vm10543_vm13, %v1983_v32  ;;  %v8448_v32 = vperm.slane %v8350_v2, 7 }
 0x5c1   : > { %2881 = vrot.lane.b32.xlu2 %v8429_v17, %s7101_s30 }
 0x5c9   : > { %2485 = vrot.lane.b32.xlu2 %v2462_v52, %s7100_s24 }
 0x5d1   : > { %2698 = vrot.lane.b32.xlu2 %v2678_v8, %s7098_s25 }
 0x5db   : > { %v2033_v28 = vpop.permute.xlu0 %2032 }
 0x5dc   : > { %2035 = vst.msk [vmem:[#allocation2 + $0x18] sm:$0xf] %vm10541_vm14, %v2033_v28 }
 0x5e3   : > { %v8441_v47 = vld [vmem:[#allocation2 + $0x18] sm:$0xff] }
 0x5fd   : > { %v2237_v23 = vpop.permute.xlu1 %2236 }
 0x5fe   : > { %2239 = vst.msk [vmem:[#allocation2 + $0x20] sm:$0xf] %vm10544_vm12, %v2237_v23  ;;  %vm3223_vm12 = vcmask 7168  }
 0x603   : > { %v2337_v36 = vpop.permute.xlu2 %2336 }
 0x605   : > { %v2402_v31 = vpop.permute.xlu1 %2401 }
 0x606   : > { %v2406_v20 = vrot.slane %v2402_v31, 4 }
 0x608   : > { %v2413_v26 = vsel %vm2390_vm0, %v2405_v54, %v2406_v20 }
 0x609   : > { %v2414_v0 = vsel %vm2407_vm15, %v2413_v26, %v2402_v31 }
 0x60a   : > { %v2423_v57 = vmul.f32 %v2414_v0, %v8441_v47 }
 0x60b   : > { %v2482_v19 = vpop.permute.xlu2 %2481 }
 0x60c   : > { %2437 = vst [vmem:[#allocation1 + $0x30] ss:$2 sm:$0xff] %v2423_v57 }
 0x60d   : > { %v2287_v61 = vpop.permute.xlu0 %2286 }
 0x60e   : > { %2289 = vst.msk [vmem:[#allocation2 + $0x20] sm:$0xf] %vm10543_vm13, %v2287_v61  ;;  %v8461_v61 = vperm.slane %v8350_v2, 6  ;;  %vm2976_vm13 = vcmask 252928  }
 0x60f   : > { %2339 = vst.msk [vmem:[#allocation2 + $0x20] sm:$0xf] %vm10541_vm14, %v2337_v36  ;;  %vm3136_vm14 = vcmask 1039360  }
 0x613   : > { %v2484_v27 = vpop.permute.xlu2 %2483  ;;  %v2445_v54 = vld.sshfl [vmem:[#allocation1 + $0x38] sm:$0xff pattern:$0x75316420]  ;;  %v2444_v52 = vld.sshfl [vmem:[#allocation1 + $0x30] sm:$0xff pattern:$0x75316420] }
 0x614   : > { %v2497_v53 = vsel %vm2493_vm1, %v2482_v19, %v2484_v27  ;;  %v2464_v8 = vpack.c.bf16 %v2445_v54, %v2445_v54  ;;  %v2463_v28 = vpack.c.bf16 %v2444_v52, %v2444_v52  ;;  %2656 = vst [vmem:[#allocation1 + $0x30] ss:$2 sm:$0xff] %v8441_v47  ;;  %v2872_v54 = vrot.slane %v8448_v32, 4  ;;  %v2476_v52 = vpop.permute.xlu1 %2475 }
 0x615   : > { %v2480_v23 = vpop.permute.xlu0 %2479  ;;  %v2517_v31 = vsel %vm10578_vm2, %v2497_v53, 0 }
 0x616   : > { %v8453_v26 = vld [vmem:[#allocation2 + $0x20] sm:$0xff]  ;;  %v2496_v36 = vsel %vm2493_vm1, %v2480_v23, %v2482_v19  ;;  %2577 = vmatpush.bf16.msrb.mxu3 %v2517_v31  ;;  %2489 = vrot.lane.b32.xlu0 %v2464_v8, %s7100_s24  ;;  %v8468_v19 = vsel %vm2390_vm0, %v8461_v61, %v2872_v54 }
 0x617   : > { %v2424_v0 = vmul.f32 %v2406_v20, %v8453_v26  ;;  %2487 = vrot.lane.b32.xlu1 %v2463_v28, %s7100_s24  ;;  %v2514_v57 = vsel %vm10578_vm2, %v2496_v36, 0 }
 0x618   : > { %2564 = vmatpush.bf16.msra.mxu2 %v2514_v57 }
 0x619   : > { %2446 = vst [vmem:[#allocation1] ss:$2 sm:$0xff] %v2424_v0 }
 0x61b   : > { %v8464_v53 = vpop.permute.xlu2 %2881 }
 0x61c   : > { %v2878_v57 = vpop.permute.xlu1 %2877 }
 0x61d   : > { %v2478_v8 = vpop.permute.xlu0 %2477 }
 0x61e   : > { %v2494_v20 = vsel %vm2493_vm1, %v2476_v52, %v2478_v8  ;;  %v2495_v28 = vsel %vm2493_vm1, %v2478_v8, %v2480_v23  ;;  %2883 = vrot.lane.b32.xlu0 %v8468_v19, %s7101_s30  ;;  %v10540_v23 = vrot.slane %v8464_v53, 4 }
 0x61f   : > { %v2508_v2 = vsel %vm10578_vm2, %v2494_v20, 0  ;;  %v2511_v31 = vsel %vm10578_vm2, %v2495_v28, 0  ;;  %v2885_v28 = vrot.slane %v2878_v57, 4 }
 0x620   : > { %2538 = vmatpush.bf16.msra.mxu0 %v2508_v2  ;;  %2551 = vmatpush.bf16.msrb.mxu1 %v2511_v31  ;;  %v2447_v36 = vld.sshfl [vmem:[#allocation1] sm:$0xff pattern:$0x75316420]  ;;  %v2660_v31 = vld.sshfl [vmem:[#allocation1 + $0x18] sm:$0xff pattern:$0x75316420] }
 0x621   : > { %v2465_v0 = vpack.c.bf16 %v2447_v36, %v2447_v36  ;;  %2650 = vst [vmem:[#allocation1] ss:$2 sm:$0xff] %v8303_v49  ;;  %v2679_v43 = vpack.c.bf16 %v2660_v31, %v2660_v31 }
 0x623   : > { %v8477_v54 = vpop.permute.xlu2 %2485  ;;  %2491 = vrot.lane.b32.xlu1 %v2465_v0, %s7100_s24 }
 0x624   : > { %v2498_v52 = vsel %vm2493_vm1, %v2484_v27, %v8477_v54 }
 0x625   : > { %v2880_v8 = vpop.permute.xlu0 %2879  ;;  %v2520_v20 = vsel %vm10578_vm2, %v2498_v52, 0 }
 0x626   : > { %v2886_v2 = vrot.slane %v2880_v8, 4  ;;  %3124 = vrot.lane.b32.xlu0 %v7499_v33, %s7102_s12  ;;  %2590 = vmatpush.bf16.msrb.mxu0 %v2520_v20 }
 0x628   : > { %v2891_v36 = vsel %vm2390_vm0, %v2885_v28, %v2886_v2  ;;  %v2893_v0 = vsel %vm2390_vm0, %v2886_v2, %v10540_v23  ;;  %v2658_v45 = vld.sshfl [vmem:[#allocation1 + $0x8] sm:$0xff pattern:$0x75316420]  ;;  %v2657_v27 = vld.sshfl [vmem:[#allocation1] sm:$0xff pattern:$0x75316420]  ;;  %v2890_v23 = vsel %vm2889_vm3, %v2885_v28, %v2878_v57 }
 0x629   : > { %v2892_v29 = vsel %vm2889_vm3, %v2891_v36, %v2880_v8  ;;  %v2894_v52 = vsel %vm2889_vm3, %v2893_v0, %v8464_v53  ;;  %v2677_v48 = vpack.c.bf16 %v2658_v45, %v2658_v45  ;;  %2665 = vst [vmem:[#allocation1] ss:$2 sm:$0xff] %v8453_v26  ;;  %v2661_v2 = vld.sshfl [vmem:[#allocation1 + $0x20] sm:$0xff pattern:$0x75316420]  ;;  %v2676_v8 = vpack.c.bf16 %v2657_v27, %v2657_v27 }
 0x62a   : > { %v2903_v20 = vmul.f32 %v2892_v29, %v8208_v55  ;;  %v2904_v5 = vmul.f32 %v2894_v52, %v8388_v10  ;;  %v2662_v36 = vld.sshfl [vmem:[#allocation1 + $0x28] sm:$0xff pattern:$0x75316420]  ;;  %v2902_v45 = vmul.f32 %v2890_v23, %v8303_v49  ;;  %v2680_v0 = vpack.c.bf16 %v2661_v2, %v2661_v2  ;;  %v2663_v29 = vld.sshfl [vmem:[#allocation1 + $0x30] sm:$0xff pattern:$0x75316420] }
 0x62b   : > { %2696 = vrot.lane.b32.xlu2 %v2677_v48, %s7098_s25  ;;  %2700 = vrot.lane.b32.xlu1 %v2679_v43, %s7098_s25  ;;  %v2682_v43 = vpack.c.bf16 %v2663_v29, %v2663_v29  ;;  %v2664_v48 = vld.sshfl [vmem:[#allocation1 + $0x38] sm:$0xff pattern:$0x75316420]  ;;  %v2681_v23 = vpack.c.bf16 %v2662_v36, %v2662_v36 }
 0x62c   : > { %2916 = vst [vmem:[#allocation1 + $0x10] ss:$2 sm:$0xff] %v2903_v20  ;;  %v2683_v57 = vpack.c.bf16 %v2664_v48, %v2664_v48  ;;  %v2425_v48 = vld [vmem:[%s10512_s5] sm:$0xf] }
 0x62d   : > { %2918 = vst [vmem:[#allocation1 + $0x20] ss:$2 sm:$0xff] %v2904_v5  ;;  %6740 = vmatmul.msk.bf16.vlgmr.msrb.gmra.mxu1 %vm10577_vm4, %v2425_v48  ;;  %6739 = vmatmul.msk.bf16.vlgmr.msra.gmra.mxu0 %vm10577_vm4, %v2425_v48 }
 0x62e   : > { %2694 = vrot.lane.b32.xlu0 %v2676_v8, %s7098_s25  ;;  %6741 = vmatmul.msk.bf16.vlgmr.msra.gmra.mxu2 %vm10577_vm4, %v2425_v48 }
 0x62f   : > { %6742 = vmatmul.msk.bf16.vlgmr.msrb.gmra.mxu3 %vm10577_vm4, %v2425_v48 }
 0x630   : > { %v2666_v31 = vld.sshfl [vmem:[#allocation1] sm:$0xff pattern:$0x75316420] }
 0x631   : > { %2914 = vst [vmem:[#allocation1] ss:$2 sm:$0xff] %v2902_v45  ;;  %v2684_v5 = vpack.c.bf16 %v2666_v31, %v2666_v31 }
 0x633   : > { %3126 = vrot.lane.b32.xlu2 %v7508_v39, %s7102_s12  ;;  %2702 = vrot.lane.b32.xlu1 %v2680_v0, %s7098_s25  ;;  %v2924_v28 = vld.sshfl [vmem:[#allocation1 + $0x18] sm:$0xff pattern:$0x75316420]  ;;  %v2923_v20 = vld.sshfl [vmem:[#allocation1 + $0x10] sm:$0xff pattern:$0x75316420] }
 0x634   : > { %v2943_v27 = vpack.c.bf16 %v2924_v28, %v2924_v28  ;;  %v2942_v8 = vpack.c.bf16 %v2923_v20, %v2923_v20  ;;  %v2925_v45 = vld.sshfl [vmem:[#allocation1 + $0x20] sm:$0xff pattern:$0x75316420]  ;;  %v2926_v29 = vld.sshfl [vmem:[#allocation1 + $0x28] sm:$0xff pattern:$0x75316420] }
 0x635   : > { %v2944_v36 = vpack.c.bf16 %v2925_v45, %v2925_v45 }
 0x636   : > { %2706 = vrot.lane.b32.xlu0 %v2682_v43, %s7098_s25  ;;  %v2945_v43 = vpack.c.bf16 %v2926_v29, %v2926_v29 }
 0x638   : > { %v2921_v52 = vld.sshfl [vmem:[#allocation1] sm:$0xff pattern:$0x75316420]  ;;  %v2922_v31 = vld.sshfl [vmem:[#allocation1 + $0x8] sm:$0xff pattern:$0x75316420] }
 0x639   : > { %v2940_v2 = vpack.c.bf16 %v2921_v52, %v2921_v52  ;;  %v2941_v0 = vpack.c.bf16 %v2922_v31, %v2922_v31 }
 0x63b   : > { %2708 = vrot.lane.b32.xlu2 %v2683_v57, %s7098_s25  ;;  %3128 = vrot.lane.b32.xlu1 %v7527_v37, %s7102_s12  ;;  %v2699_v57 = vpop.permute.xlu2 %2698 }
 0x63d   : > { %6743 = vmatmul.msk.bf16.vlgmr.msrb.gmra.mxu0 %vm10577_vm4, %v2425_v48 }
 0x63e   : > { %2710 = vrot.lane.b32.xlu0 %v2684_v5, %s7098_s25 }
 0x643   : > { %3130 = vrot.lane.b32.xlu2 %v8335_v41, %s7102_s12  ;;  %2704 = vrot.lane.b32.xlu1 %v2681_v23, %s7098_s25 }
 0x646   : > { %2964 = vrot.lane.b32.xlu0 %v2943_v27, %s7103_s26 }
 0x64b   : > { %2958 = vrot.lane.b32.xlu2 %v2940_v2, %s7103_s26  ;;  %2962 = vrot.lane.b32.xlu1 %v2942_v8, %s7103_s26 }
 0x64e   : > { %2966 = vrot.lane.b32.xlu0 %v2944_v36, %s7103_s26 }
 0x653   : > { %2960 = vrot.lane.b32.xlu1 %v2941_v0, %s7103_s26 }
 0x656   : > { %2968 = vrot.lane.b32.xlu0 %v2945_v43, %s7103_s26 }
 0x685   : > { %v2697_v5 = vpop.permute.xlu2 %2696 }
 0x686   : > { %v2714_v28 = vsel %vm2712_vm11, %v2697_v5, %v2699_v57 }
 0x687   : > { %v2728_v45 = vsel %vm10578_vm2, %v2714_v28, 0 }
 0x688   : > { %v2490_v23 = vpop.permute.xlu0 %2489 }
 0x689   : > { %v2488_v27 = vpop.permute.xlu1 %2487 }
 0x68a   : > { %v2499_v52 = vsel %vm2493_vm1, %v8477_v54, %v2488_v27  ;;  %v2500_v20 = vsel %vm2493_vm1, %v2488_v27, %v2490_v23  ;;  %v10647_v54 = vrot.slane %v8464_v53, 4 }
 0x68b   : > { %v2523_v2 = vsel %vm10578_vm2, %v2499_v52, 0  ;;  %v2526_v8 = vsel %vm10578_vm2, %v2500_v20, 0 }
 0x68c   : > { %2603 = vmatpush.bf16.msra.mxu1 %v2523_v2  ;;  %2616 = vmatpush.bf16.msrb.mxu2 %v2526_v8 }
 0x68d   : > { %v8533_v36 = vpop.permute.xlu2 %3126 }
 0x68e   : > { %v10542_v8 = vrot.slane %v8533_v36, 4 }
 0x68f   : > { %6745 = vmatmul.msk.bf16.vlgmr.msrb.gmra.mxu2 %vm10577_vm4, %v2425_v48  ;;  %6744 = vmatmul.msk.bf16.vlgmr.msra.gmra.mxu1 %vm10577_vm4, %v2425_v48 }
 0x690   : > { %2768 = vmatpush.bf16.msrb.mxu1 %v2728_v45  ;;  %v2884_v31 = vpop.permute.xlu0 %2883 }
 0x691   : > { %v2888_v0 = vrot.slane %v2884_v31, 4 }
 0x693   : > { %v2895_v29 = vsel %vm2390_vm0, %v10647_v54, %v2888_v0  ;;  %v2906_v43 = vmul.f32 %v2888_v0, %v8453_v26 }
 0x694   : > { %v2896_v27 = vsel %vm2889_vm3, %v2895_v29, %v2884_v31 }
 0x695   : > { %v2905_v52 = vmul.f32 %v2896_v27, %v8441_v47  ;;  %2929 = vst [vmem:[#allocation1] ss:$2 sm:$0xff] %v2906_v43  ;;  %v8543_v28 = vpop.permute.xlu2 %2708  ;;  %v2492_v20 = vpop.permute.xlu1 %2491 }
 0x696   : > { %v2501_v2 = vsel %vm2493_vm1, %v2490_v23, %v2492_v20  ;;  %v8560_v20 = vld [vmem:[%s10512_s5 + $0x4] sm:$0xf] }
 0x697   : > { %2920 = vst [vmem:[#allocation1 + $0x30] ss:$2 sm:$0xff] %v2905_v52  ;;  %v2529_v45 = vsel %vm10578_vm2, %v2501_v2, 0 }
 0x698   : > { %2629 = vmatpush.bf16.msra.mxu3 %v2529_v45  ;;  %v3125_v53 = vpop.permute.xlu0 %3124 }
 0x699   : > { %v3132_v54 = vrot.slane %v3125_v53, 4 }
 0x69b   : > { %v3137_v0 = vsel %vm3136_vm14, %v3132_v54, %v3125_v53  ;;  %v3138_v31 = vsel %vm2390_vm0, %v3132_v54, %v10542_v8  ;;  %6746 = vmatmul.msk.bf16.vlgmr.msra.gmra.mxu3 %vm10577_vm4, %v2425_v48 }
 0x69c   : > { %v3139_v23 = vsel %vm3136_vm14, %v3138_v31, %v8533_v36  ;;  %v3149_v29 = vmul.f32 %v3137_v0, %v8303_v49  ;;  %v2930_v43 = vld.sshfl [vmem:[#allocation1] sm:$0xff pattern:$0x75316420] }
 0x69d   : > { %v3150_v27 = vmul.f32 %v3139_v23, %v8208_v55  ;;  %v2701_v52 = vpop.permute.xlu1 %2700  ;;  %v3131_v48 = vpop.permute.xlu2 %3130 }
 0x69e   : > { %v2715_v2 = vsel %vm2712_vm11, %v2699_v57, %v2701_v52  ;;  %v2928_v45 = vld.sshfl [vmem:[#allocation1 + $0x38] sm:$0xff pattern:$0x75316420]  ;;  %3161 = vst [vmem:[#allocation1] ss:$2 sm:$0xff] %v3149_v29  ;;  %v3135_v35 = vrot.slane %v3131_v48, 4 }
 0x69f   : > { %3163 = vst [vmem:[#allocation1 + $0x10] ss:$2 sm:$0xff] %v3150_v27  ;;  %v2731_v53 = vsel %vm10578_vm2, %v2715_v2, 0  ;;  %v2947_v54 = vpack.c.bf16 %v2928_v45, %v2928_v45  ;;  %v2927_v31 = vld.sshfl [vmem:[#allocation1 + $0x30] sm:$0xff pattern:$0x75316420]  ;;  %6749 = vmatmul.msk.bf16.vlgmr.msrb.gmra.mxu1 %vm10577_vm4, %v8560_v20 }
 0x6a0   : > { %2781 = vmatpush.bf16.msra.mxu2 %v2731_v53  ;;  %v2695_v0 = vpop.permute.xlu0 %2694  ;;  %v2946_v23 = vpack.c.bf16 %v2927_v31, %v2927_v31  ;;  %v3153_v45 = vmul.f32 %v3135_v35, %v8453_v26 }
 0x6a1   : > { %v2713_v8 = vsel %vm2712_vm11, %v2695_v0, %v2697_v5  ;;  %2972 = vrot.lane.b32.xlu1 %v2947_v54, %s7103_s26 }
 0x6a2   : > { %v2725_v57 = vsel %vm10578_vm2, %v2713_v8, 0  ;;  %2970 = vrot.lane.b32.xlu2 %v2946_v23, %s7103_s26 }
 0x6a3   : > { %2755 = vmatpush.bf16.msra.mxu0 %v2725_v57  ;;  %6750 = vmatmul.msk.bf16.vlgmr.msra.gmra.mxu2 %vm10577_vm4, %v8560_v20  ;;  %v2948_v57 = vpack.c.bf16 %v2930_v43, %v2930_v43 }
 0x6a5   : > { %v2703_v29 = vpop.permute.xlu1 %2702  ;;  %v3169_v27 = vld.sshfl [vmem:[#allocation1 + $0x8] sm:$0xff pattern:$0x75316420]  ;;  %v3168_v2 = vld.sshfl [vmem:[#allocation1] sm:$0xff pattern:$0x75316420] }
 0x6a6   : > { %v2716_v53 = vsel %vm2712_vm11, %v2701_v52, %v2703_v29  ;;  %v3171_v31 = vld.sshfl [vmem:[#allocation1 + $0x18] sm:$0xff pattern:$0x75316420]  ;;  %v3170_v5 = vld.sshfl [vmem:[#allocation1 + $0x10] sm:$0xff pattern:$0x75316420]  ;;  %6748 = vmatmul.msk.bf16.vlgmr.msra.gmra.mxu0 %vm10577_vm4, %v8560_v20  ;;  %v3188_v43 = vpack.c.bf16 %v3169_v27, %v3169_v27 }
 0x6a7   : > { %v2734_v8 = vsel %vm10578_vm2, %v2716_v53, 0  ;;  %v3190_v54 = vpack.c.bf16 %v3171_v31, %v3171_v31  ;;  %v3189_v0 = vpack.c.bf16 %v3170_v5, %v3170_v5  ;;  %3375 = vst [vmem:[#allocation1 + $0x10] ss:$2 sm:$0xff] %v8208_v55  ;;  %v10648_v5 = vrot.slane %v8533_v36, 4 }
 0x6a8   : > { %2794 = vmatpush.bf16.msrb.mxu3 %v2734_v8  ;;  %v2707_v23 = vpop.permute.xlu0 %2706  ;;  %3176 = vst [vmem:[#allocation1] ss:$2 sm:$0xff] %v3153_v45 }
 0x6a9   : > { %v2719_v44 = vsel %vm2712_vm11, %v2707_v23, %v8543_v28  ;;  %3211 = vrot.lane.b32.xlu0 %v3190_v54, %s7104_s27  ;;  %3209 = vrot.lane.b32.xlu1 %v3189_v0, %s7104_s27  ;;  %v3187_v0 = vpack.c.bf16 %v3168_v2, %v3168_v2 }
 0x6aa   : > { %2974 = vrot.lane.b32.xlu2 %v2948_v57, %s7103_s26  ;;  %v2743_v52 = vsel %vm10578_vm2, %v2719_v44, 0 }
 0x6ab   : > { %2833 = vmatpush.bf16.msrb.mxu2 %v2743_v52  ;;  %6751 = vmatmul.msk.bf16.vlgmr.msrb.gmra.mxu3 %vm10577_vm4, %v8560_v20 }
 0x6ad   : > { %v3129_v53 = vpop.permute.xlu1 %3128 }
 0x6ae   : > { %v3134_v31 = vrot.slane %v3129_v53, 4  ;;  %v3381_v13 = vld.sshfl [vmem:[#allocation1 + $0x10] sm:$0xff pattern:$0x75316420] }
 0x6af   : > { %v3177_v45 = vld.sshfl [vmem:[#allocation1] sm:$0xff pattern:$0x75316420] }
 0x6b0   : > { %v3140_v8 = vsel %vm2390_vm0, %v10648_v5, %v3134_v31  ;;  %v3142_v54 = vsel %vm2390_vm0, %v3134_v31, %v3135_v35  ;;  %v2711_v16 = vpop.permute.xlu0 %2710  ;;  %3373 = vst [vmem:[#allocation1] ss:$2 sm:$0xff] %v8303_v49 }
 0x6b1   : > { %v3141_v44 = vsel %vm3136_vm14, %v3140_v8, %v3129_v53  ;;  %v3143_v57 = vsel %vm3136_vm14, %v3142_v54, %v3131_v48  ;;  %v2720_v52 = vsel %vm2712_vm11, %v8543_v28, %v2711_v16  ;;  %3207 = vrot.lane.b32.xlu1 %v3188_v43, %s7104_s27 }
 0x6b2   : > { %v3151_v27 = vmul.f32 %v3141_v44, %v8388_v10  ;;  %v3152_v36 = vmul.f32 %v3143_v57, %v8441_v47  ;;  %v2746_v5 = vsel %vm10578_vm2, %v2720_v52, 0  ;;  %3205 = vrot.lane.b32.xlu2 %v3187_v0, %s7104_s27 }
 0x6b3   : > { %2846 = vmatpush.bf16.msra.mxu3 %v2746_v5  ;;  %6754 = vmatmul.msk.bf16.vlgmr.msrb.gmra.mxu2 %vm10577_vm4, %v8560_v20 }
 0x6b4   : > { %3165 = vst [vmem:[#allocation1 + $0x20] ss:$2 sm:$0xff] %v3151_v27 }
 0x6b5   : > { %3167 = vst [vmem:[#allocation1 + $0x30] ss:$2 sm:$0xff] %v3152_v36  ;;  %v2705_v35 = vpop.permute.xlu1 %2704 }
 0x6b6   : > { %v2717_v48 = vsel %vm2712_vm11, %v2703_v29, %v2705_v35  ;;  %v2718_v16 = vsel %vm2712_vm11, %v2705_v35, %v2707_v23 }
 0x6b7   : > { %v2737_v28 = vsel %vm10578_vm2, %v2717_v48, 0  ;;  %v2740_v2 = vsel %vm10578_vm2, %v2718_v16, 0  ;;  %v8606_v53 = vld.sshfl [vmem:[#allocation1 + $0x8] sm:$0xff pattern:$0x75316420]  ;;  %v2959_v48 = vpop.permute.xlu2 %2958 }
 0x6b8   : > { %2807 = vmatpush.bf16.msrb.mxu0 %v2737_v28  ;;  %2820 = vmatpush.bf16.msra.mxu1 %v2740_v2  ;;  %v2965_v31 = vpop.permute.xlu0 %2964  ;;  %3387 = vst [vmem:[#allocation1] ss:$2 sm:$0xff] %v8453_v26  ;;  %v3195_v28 = vpack.c.bf16 %v3177_v45, %v3177_v45 }
 0x6bb   : > { %v3172_v43 = vld.sshfl [vmem:[#allocation1 + $0x20] sm:$0xff pattern:$0x75316420]  ;;  %v3173_v8 = vld.sshfl [vmem:[#allocation1 + $0x28] sm:$0xff pattern:$0x75316420]  ;;  %6752 = vmatmul.msk.bf16.vlgmr.msrb.gmra.mxu0 %vm10577_vm4, %v8560_v20  ;;  %6753 = vmatmul.msk.bf16.vlgmr.msra.gmra.mxu1 %vm10577_vm4, %v8560_v20 }
 0x6bc   : > { %v3191_v29 = vpack.c.bf16 %v3172_v43, %v3172_v43  ;;  %v3175_v23 = vld.sshfl [vmem:[#allocation1 + $0x38] sm:$0xff pattern:$0x75316420]  ;;  %v3174_v54 = vld.sshfl [vmem:[#allocation1 + $0x30] sm:$0xff pattern:$0x75316420]  ;;  %6755 = vmatmul.msk.bf16.vlgmr.msra.gmra.mxu3 %vm10577_vm4, %v8560_v20  ;;  %v3192_v35 = vpack.c.bf16 %v3173_v8, %v3173_v8 }
 0x6bd   : > { %v2963_v0 = vpop.permute.xlu1 %2962  ;;  %v3194_v44 = vpack.c.bf16 %v3175_v23, %v3175_v23  ;;  %v3193_v57 = vpack.c.bf16 %v3174_v54, %v3174_v54  ;;  %3379 = vst [vmem:[#allocation1 + $0x30] ss:$2 sm:$0xff] %v8441_v47  ;;  %v6756_v54 = vld [vmem:[%s10512_s5 + $0x8] sm:$0xf] }
 0x6be   : > { %v2979_v52 = vsel %vm2976_vm13, %v2963_v0, %v2965_v31  ;;  %3213 = vrot.lane.b32.xlu0 %v3191_v29, %s7104_s27  ;;  %3377 = vst [vmem:[#allocation1 + $0x20] ss:$2 sm:$0xff] %v8388_v10 }
 0x6bf   : > { %3219 = vrot.lane.b32.xlu1 %v3194_v44, %s7104_s27  ;;  %3217 = vrot.lane.b32.xlu2 %v3193_v57, %s7104_s27  ;;  %v2995_v27 = vsel %vm10578_vm2, %v2979_v52, 0 }
 0x6c0   : > { %3045 = vmatpush.bf16.msra.mxu2 %v2995_v27  ;;  %v2967_v36 = vpop.permute.xlu0 %2966 }
 0x6c1   : > { %v2980_v20 = vsel %vm2976_vm13, %v2965_v31, %v2967_v36 }
 0x6c2   : > { %v2998_v5 = vsel %vm10578_vm2, %v2980_v20, 0 }
 0x6c3   : > { %3058 = vmatpush.bf16.msrb.mxu3 %v2998_v5  ;;  %6759 = vmatmul.msk.bf16.vlgmr.msra.gmra.mxu2 %vm10577_vm4, %v6756_v54 }
 0x6c4   : > { %v3385_v15 = vld.sshfl [vmem:[#allocation1 + $0x30] sm:$0xff pattern:$0x75316420] }
 0x6c5   : > { %v2961_v16 = vpop.permute.xlu1 %2960 }
 0x6c6   : > { %v2977_v2 = vsel %vm2976_vm13, %v2959_v48, %v2961_v16  ;;  %v2978_v43 = vsel %vm2976_vm13, %v2961_v16, %v2963_v0  ;;  %3215 = vrot.lane.b32.xlu0 %v3192_v35, %s7104_s27 }
 0x6c7   : > { %3546 = vrot.lane.b32.xlu1 %v8208_v55, %s7102_s12  ;;  %3221 = vrot.lane.b32.xlu2 %v3195_v28, %s7104_s27  ;;  %v2989_v31 = vsel %vm10578_vm2, %v2977_v2, 0  ;;  %v2992_v29 = vsel %vm10578_vm2, %v2978_v43, 0 }
 0x6c8   : > { %3019 = vmatpush.bf16.msra.mxu0 %v2989_v31  ;;  %3032 = vmatpush.bf16.msrb.mxu1 %v2992_v29  ;;  %v2969_v8 = vpop.permute.xlu0 %2968 }
 0x6c9   : > { %v2981_v45 = vsel %vm2976_vm13, %v2967_v36, %v2969_v8 }
 0x6ca   : > { %v3001_v23 = vsel %vm10578_vm2, %v2981_v45, 0 }
 0x6cb   : > { %6757 = vmatmul.msk.bf16.vlgmr.msra.gmra.mxu0 %vm10577_vm4, %v6756_v54  ;;  %6758 = vmatmul.msk.bf16.vlgmr.msrb.gmra.mxu1 %vm10577_vm4, %v6756_v54 }
 0x6cc   : > { %3071 = vmatpush.bf16.msrb.mxu0 %v3001_v23  ;;  %6760 = vmatmul.msk.bf16.vlgmr.msrb.gmra.mxu3 %vm10577_vm4, %v6756_v54 }
 0x6ce   : > { %3548 = vrot.lane.b32.xlu0 %v8388_v10, %s7102_s12 }
 0x6cf   : > { %3550 = vrot.lane.b32.xlu1 %v8441_v47, %s7102_s12  ;;  %3544 = vrot.lane.b32.xlu2 %v8303_v49, %s7102_s12 }
 0x6d6   : > { %3552 = vrot.lane.b32.xlu0 %v8453_v26, %s7102_s12 }
 0x6d7   : > { %3759 = vrot.lane.b32.xlu1 %v8388_v10, %s7101_s30  ;;  %3757 = vrot.lane.b32.xlu2 %v8208_v55, %s7101_s30 }
 0x6db   : > { %6761 = vmatmul.msk.bf16.vlgmr.msrb.gmra.mxu0 %vm10577_vm4, %v6756_v54 }
 0x6de   : > { %3761 = vrot.lane.b32.xlu0 %v8441_v47, %s7101_s30 }
 0x6df   : > { %3763 = vrot.lane.b32.xlu1 %v8453_v26, %s7101_s30  ;;  %3755 = vrot.lane.b32.xlu2 %v8303_v49, %s7101_s30 }
 0x6fc   : > { %v2971_v0 = vpop.permute.xlu2 %2970 }
 0x6fd   : > { %v2982_v44 = vsel %vm2976_vm13, %v2969_v8, %v2971_v0 }
 0x6fe   : > { %v3004_v57 = vsel %vm10578_vm2, %v2982_v44, 0 }
 0x6ff   : > { %3084 = vmatpush.bf16.msra.mxu1 %v3004_v57 }
 0x702   : > { %6762 = vmatmul.msk.bf16.vlgmr.msra.gmra.mxu1 %vm10577_vm4, %v6756_v54 }
 0x704   : > { %v2975_v52 = vpop.permute.xlu2 %2974 }
 0x70c   : > { %v3206_v27 = vpop.permute.xlu2 %3205 }
 0x713   : > { %v2973_v36 = vpop.permute.xlu1 %2972 }
 0x714   : > { %v2983_v20 = vsel %vm2976_vm13, %v2971_v0, %v2973_v36  ;;  %v2984_v5 = vsel %vm2976_vm13, %v2973_v36, %v2975_v52  ;;  %v3382_v52 = vld.sshfl [vmem:[#allocation1 + $0x18] sm:$0xff pattern:$0x75316420]  ;;  %v8686_v36 = vpop.f32.mrf.mxu0 }
 0x715   : > { %v3007_v35 = vsel %vm10578_vm2, %v2983_v20, 0  ;;  %v3010_v48 = vsel %vm10578_vm2, %v2984_v5, 0  ;;  %v8688_v20 = vpop.f32.mrf.mxu1 }
 0x716   : > { %3097 = vmatpush.bf16.msrb.mxu2 %v3007_v35  ;;  %3110 = vmatpush.bf16.msra.mxu3 %v3010_v48  ;;  %v3399_v35 = vpack.c.bf16 %v3382_v52, %v3382_v52  ;;  %v8690_v48 = vpop.f32.mrf.mxu2 }
 0x718   : > { %v3415_v18 = vsel %vm10578_vm2, %v3399_v35, 0 }
 0x719   : > { %v3218_v16 = vpop.permute.xlu2 %3217  ;;  %6763 = vmatmul.msk.bf16.vlgmr.msrb.gmra.mxu2 %vm10577_vm4, %v6756_v54  ;;  %6764 = vmatmul.msk.bf16.vlgmr.msra.gmra.mxu3 %vm10577_vm4, %v6756_v54  ;;  %v8678_v54 = vld [vmem:[%s10512_s5 + $0xc] sm:$0xf] }
 0x71b   : > { %v3210_v28 = vpop.permute.xlu1 %3209  ;;  %v3212_v2 = vpop.permute.xlu0 %3211 }
 0x71c   : > { %v3226_v43 = vsel %vm3223_vm12, %v3210_v28, %v3212_v2 }
 0x71d   : > { %v3242_v31 = vsel %vm10578_vm2, %v3226_v43, 0 }
 0x71e   : > { %3292 = vmatpush.bf16.msra.mxu2 %v3242_v31  ;;  %v2568_v35 = vpop.f32.mrf.mxu2 }
 0x721   : > { %v3222_v29 = vpop.permute.xlu2 %3221 }
 0x723   : > { %v3208_v8 = vpop.permute.xlu1 %3207 }
 0x724   : > { %v3224_v45 = vsel %vm3223_vm12, %v3206_v27, %v3208_v8  ;;  %v3225_v23 = vsel %vm3223_vm12, %v3208_v8, %v3210_v28  ;;  %v3383_v27 = vld.sshfl [vmem:[#allocation1 + $0x20] sm:$0xff pattern:$0x75316420] }
 0x725   : > { %v3236_v0 = vsel %vm10578_vm2, %v3224_v45, 0  ;;  %v3239_v44 = vsel %vm10578_vm2, %v3225_v23, 0 }
 0x726   : > { %3266 = vmatpush.bf16.msra.mxu0 %v3236_v0  ;;  %3279 = vmatpush.bf16.msrb.mxu1 %v3239_v44  ;;  %v3400_v0 = vpack.c.bf16 %v3383_v27, %v3383_v27  ;;  %v3386_v44 = vld.sshfl [vmem:[#allocation1 + $0x38] sm:$0xff pattern:$0x75316420]  ;;  %v3384_v27 = vld.sshfl [vmem:[#allocation1 + $0x28] sm:$0xff pattern:$0x75316420] }
 0x729   : > { %v3545_v57 = vpop.permute.xlu2 %3544  ;;  %6768 = vmatmul.msk.bf16.vlgmr.msra.gmra.mxu2 %vm10577_vm4, %v8678_v54  ;;  %6766 = vmatmul.msk.bf16.vlgmr.msra.gmra.mxu0 %vm10577_vm4, %v8678_v54 }
 0x72a   : > { %6767 = vmatmul.msk.bf16.vlgmr.msrb.gmra.mxu1 %vm10577_vm4, %v8678_v54  ;;  %v3554_v9 = vrot.slane %v3545_v57, 4 }
 0x730   : > { %v3214_v5 = vpop.permute.xlu0 %3213 }
 0x731   : > { %v3220_v28 = vpop.permute.xlu1 %3219  ;;  %v8692_v43 = vpop.permute.xlu2 %3757  ;;  %v3227_v31 = vsel %vm3223_vm12, %v3212_v2, %v3214_v5  ;;  %v3403_v2 = vpack.c.bf16 %v3386_v44, %v3386_v44 }
 0x732   : > { %v3230_v8 = vsel %vm3223_vm12, %v3218_v16, %v3220_v28  ;;  %v3231_v45 = vsel %vm3223_vm12, %v3220_v28, %v3222_v29  ;;  %v3245_v23 = vsel %vm10578_vm2, %v3227_v31, 0  ;;  %v3418_v29 = vsel %vm10578_vm2, %v3400_v0, 0 }
 0x733   : > { %3305 = vmatpush.bf16.msrb.mxu3 %v3245_v23  ;;  %v3254_v12 = vsel %vm10578_vm2, %v3230_v8, 0  ;;  %v3257_v52 = vsel %vm10578_vm2, %v3231_v45, 0  ;;  %v3397_v28 = vpack.c.bf16 %v8606_v53, %v8606_v53  ;;  %v3398_v31 = vpack.c.bf16 %v3381_v13, %v3381_v13  ;;  %v2542_v8 = vpop.f32.mrf.mxu0 }
 0x734   : > { %3344 = vmatpush.bf16.msrb.mxu2 %v3254_v12  ;;  %v2555_v12 = vpop.f32.mrf.mxu1  ;;  %v3402_v23 = vpack.c.bf16 %v3385_v15, %v3385_v15  ;;  %v3427_v0 = vsel %vm10578_vm2, %v3403_v2, 0  ;;  %v8713_v8 = vpop.f32.mrf.mxu3 }
 0x736   : > { %6769 = vmatmul.msk.bf16.vlgmr.msrb.gmra.mxu3 %vm10577_vm4, %v8678_v54 }
 0x737   : > { %3357 = vmatpush.bf16.msra.mxu3 %v3257_v52 }
 0x738   : > { %3465 = vmatpush.bf16.msra.mxu2 %v3415_v18  ;;  %v3216_v45 = vpop.permute.xlu0 %3215 }
 0x739   : > { %v3547_v52 = vpop.permute.xlu1 %3546  ;;  %v3228_v18 = vsel %vm3223_vm12, %v3214_v5, %v3216_v45  ;;  %v3229_v44 = vsel %vm3223_vm12, %v3216_v45, %v3218_v16  ;;  %6772 = vmatmul.msk.bf16.vlgmr.msrb.gmra.mxu2 %vm10577_vm4, %v8678_v54  ;;  %v3756_v53 = vpop.permute.xlu2 %3755  ;;  %v3409_v16 = vsel %vm10578_vm2, %v3397_v28, 0  ;;  %v3412_v5 = vsel %vm10578_vm2, %v3398_v31, 0 }
 0x73a   : > { %v3555_v30 = vrot.slane %v3547_v52, 4  ;;  %v3248_v13 = vsel %vm10578_vm2, %v3228_v18, 0  ;;  %v3251_v15 = vsel %vm10578_vm2, %v3229_v44, 0  ;;  %v3765_v2 = vrot.slane %v3756_v53, 4  ;;  %v8731_v44 = vpop.f32.mrf.mxu2 }
 0x73b   : > { %3478 = vmatpush.bf16.msrb.mxu3 %v3418_v29  ;;  %v3401_v29 = vpack.c.bf16 %v3384_v27, %v3384_v27  ;;  %3318 = vmatpush.bf16.msrb.mxu0 %v3248_v13  ;;  %v3424_v28 = vsel %vm10578_vm2, %v3402_v23, 0  ;;  %v3766_v31 = vrot.slane %v8692_v43, 4  ;;  %v8727_v35 = vpop.f32.mrf.mxu0 }
 0x73c   : > { %3517 = vmatpush.bf16.msrb.mxu2 %v3427_v0  ;;  %3331 = vmatpush.bf16.msra.mxu1 %v3251_v15  ;;  %v3559_v12 = vsel %vm2390_vm0, %v3554_v9, %v3555_v30  ;;  %v3388_v9 = vld.sshfl [vmem:[#allocation1] sm:$0xff pattern:$0x75316420]  ;;  %v2581_v23 = vpop.f32.mrf.mxu3 }
 0x73d   : > { %v3560_v57 = vsel %vm3136_vm14, %v3559_v12, %v3547_v52  ;;  %v3421_v45 = vsel %vm10578_vm2, %v3401_v29, 0  ;;  %v8729_v52 = vpop.f32.mrf.mxu1  ;;  %v3770_v0 = vsel %vm2390_vm0, %v3765_v2, %v3766_v31  ;;  %v3404_v15 = vpack.c.bf16 %v3388_v9, %v3388_v9 }
 0x73e   : > { %v3575_v27 = vmul.f32 %v3560_v57, %v8377_v56  ;;  %6770 = vmatmul.msk.bf16.vlgmr.msrb.gmra.mxu0 %vm10577_vm4, %v8678_v54 }
 0x73f   : > { %3439 = vmatpush.bf16.msra.mxu0 %v3409_v16  ;;  %6771 = vmatmul.msk.bf16.vlgmr.msra.gmra.mxu1 %vm10577_vm4, %v8678_v54 }
 0x740   : > { %3452 = vmatpush.bf16.msrb.mxu1 %v3412_v5  ;;  %v3549_v18 = vpop.permute.xlu0 %3548  ;;  %3585 = vst [vmem:[#allocation1] ss:$2 sm:$0xff] %v3575_v27  ;;  %v3771_v5 = vsel %vm2889_vm3, %v3770_v0, %v8692_v43 }
 0x741   : > { %v3551_v53 = vpop.permute.xlu1 %3550  ;;  %v3556_v13 = vrot.slane %v3549_v18, 4  ;;  %v3786_v43 = vmul.f32 %v3771_v5, %v7499_v33 }
 0x742   : > { %v3557_v29 = vrot.slane %v3551_v53, 4  ;;  %v2620_v23 = vpop.f32.mrf.mxu2 }
 0x743   : > { %3491 = vmatpush.bf16.msrb.mxu0 %v3421_v45  ;;  %v3561_v16 = vsel %vm2390_vm0, %v3555_v30, %v3556_v13  ;;  %v8748_v30 = vld [vmem:[%s10512_s5 + $0x10] sm:$0xf] }
 0x744   : > { %3504 = vmatpush.bf16.msra.mxu1 %v3424_v28  ;;  %v3562_v12 = vsel %vm3136_vm14, %v3561_v16, %v3549_v18  ;;  %v3563_v57 = vsel %vm2390_vm0, %v3556_v13, %v3557_v29  ;;  %v3430_v28 = vsel %vm10578_vm2, %v3404_v15, 0  ;;  %v2594_v18 = vpop.f32.mrf.mxu0 }
 0x745   : > { %v3564_v27 = vsel %vm3136_vm14, %v3563_v57, %v3551_v53  ;;  %v3576_v45 = vmul.f32 %v3562_v12, %v8413_v6  ;;  %v2607_v0 = vpop.f32.mrf.mxu1 }
 0x746   : > { %v3577_v2 = vmul.f32 %v3564_v27, %v8429_v17  ;;  %6773 = vmatmul.msk.bf16.vlgmr.msra.gmra.mxu3 %vm10577_vm4, %v8678_v54  ;;  %v8753_v27 = vpop.f32.mrf.mxu3 }
 0x747   : > { %3587 = vst [vmem:[#allocation1 + $0x10] ss:$2 sm:$0xff] %v3576_v45  ;;  %3530 = vmatpush.bf16.msra.mxu3 %v3430_v28  ;;  %v3592_v9 = vld.sshfl [vmem:[#allocation1] sm:$0xff pattern:$0x75316420] }
 0x748   : > { %3589 = vst [vmem:[#allocation1 + $0x20] ss:$2 sm:$0xff] %v3577_v2  ;;  %v3553_v53 = vpop.permute.xlu0 %3552  ;;  %v3593_v13 = vld.sshfl [vmem:[#allocation1 + $0x8] sm:$0xff pattern:$0x75316420]  ;;  %v3608_v15 = vpack.c.bf16 %v3592_v9, %v3592_v9 }
 0x749   : > { %v3760_v16 = vpop.permute.xlu1 %3759  ;;  %v3558_v54 = vrot.slane %v3553_v53, 4  ;;  %6777 = vmatmul.msk.bf16.vlgmr.msra.gmra.mxu2 %vm10577_vm4, %v8748_v30  ;;  %v3609_v12 = vpack.c.bf16 %v3593_v13, %v3593_v13  ;;  %3796 = vst [vmem:[#allocation1] ss:$2 sm:$0xff] %v3786_v43 }
 0x74a   : > { %v3767_v57 = vrot.slane %v3760_v16, 4  ;;  %v3620_v18 = vsel %vm10578_vm2, %v3608_v15, 0 }
 0x74b   : > { %v3565_v33 = vsel %vm2390_vm0, %v3557_v29, %v3558_v54  ;;  %v3623_v0 = vsel %vm10578_vm2, %v3609_v12, 0  ;;  %v8775_v54 = vpop.f32.mrf.mxu2 }
 0x74c   : > { %v3772_v5 = vsel %vm2390_vm0, %v3766_v31, %v3767_v57  ;;  %v3566_v45 = vsel %vm3136_vm14, %v3565_v33, %v3553_v53  ;;  %v8767_v53 = vpop.f32.mrf.mxu0 }
 0x74d   : > { %v3773_v2 = vsel %vm2889_vm3, %v3772_v5, %v3760_v16  ;;  %v3578_v28 = vmul.f32 %v3566_v45, %v8468_v19  ;;  %v8769_v13 = vpop.f32.mrf.mxu1 }
 0x74e   : > { %v3787_v9 = vmul.f32 %v3773_v2, %v7508_v39  ;;  %6775 = vmatmul.msk.bf16.vlgmr.msra.gmra.mxu0 %vm10577_vm4, %v8748_v30  ;;  %v3594_v29 = vld.sshfl [vmem:[#allocation1 + $0x10] sm:$0xff pattern:$0x75316420]  ;;  %v3595_v31 = vld.sshfl [vmem:[#allocation1 + $0x18] sm:$0xff pattern:$0x75316420]  ;;  %v2633_v2 = vpop.f32.mrf.mxu3 }
 0x74f   : > { %6776 = vmatmul.msk.bf16.vlgmr.msrb.gmra.mxu1 %vm10577_vm4, %v8748_v30  ;;  %3591 = vst [vmem:[#allocation1 + $0x30] ss:$2 sm:$0xff] %v3578_v28  ;;  %3650 = vmatpush.bf16.msra.mxu0 %v3620_v18  ;;  %v3610_v43 = vpack.c.bf16 %v3594_v29, %v3594_v29  ;;  %v3611_v5 = vpack.c.bf16 %v3595_v31, %v3595_v31  ;;  %v3596_v40 = vld.sshfl [vmem:[#allocation1 + $0x20] sm:$0xff pattern:$0x75316420] }
 0x750   : > { %3663 = vmatpush.bf16.msrb.mxu1 %v3623_v0  ;;  %v8771_v23 = vld.sshfl [vmem:[#allocation1] sm:$0xff pattern:$0x75316420]  ;;  %v8773_v16 = vld.sshfl [vmem:[#allocation1 + $0x8] sm:$0xff pattern:$0x75316420]  ;;  %v3762_v39 = vpop.permute.xlu0 %3761 }
 0x751   : > { %3968 = vst [vmem:[#allocation1] ss:$2 sm:$0xff] %v8303_v49  ;;  %v3764_v15 = vpop.permute.xlu1 %3763  ;;  %v3768_v12 = vrot.slane %v3762_v39, 4  ;;  %v3626_v33 = vsel %vm10578_vm2, %v3610_v43, 0  ;;  %v3629_v46 = vsel %vm10578_vm2, %v3611_v5, 0 }
 0x752   : > { %v3769_v45 = vrot.slane %v3764_v15, 4  ;;  %3676 = vmatpush.bf16.msra.mxu2 %v3626_v33  ;;  %3798 = vst [vmem:[#allocation1 + $0x10] ss:$2 sm:$0xff] %v3787_v9  ;;  %v3597_v31 = vld.sshfl [vmem:[#allocation1 + $0x28] sm:$0xff pattern:$0x75316420] }
 0x753   : > { %v3774_v28 = vsel %vm2390_vm0, %v3767_v57, %v3768_v12  ;;  %v3613_v5 = vpack.c.bf16 %v3597_v31, %v3597_v31 }
 0x754   : > { %v3775_v18 = vsel %vm2889_vm3, %v3774_v28, %v3762_v39  ;;  %v3776_v0 = vsel %vm2390_vm0, %v3768_v12, %v3769_v45  ;;  %v2759_v33 = vpop.f32.mrf.mxu0 }
 0x755   : > { %v3777_v29 = vsel %vm2889_vm3, %v3776_v0, %v3764_v15  ;;  %v3788_v25 = vmul.f32 %v3775_v18, %v7527_v37  ;;  %v2772_v12 = vpop.f32.mrf.mxu1  ;;  %v2785_v15 = vpop.f32.mrf.mxu2  ;;  %v3635_v18 = vsel %vm10578_vm2, %v3613_v5, 0 }
 0x756   : > { %v3789_v43 = vmul.f32 %v3777_v29, %v8335_v41  ;;  %6778 = vmatmul.msk.bf16.vlgmr.msrb.gmra.mxu3 %vm10577_vm4, %v8748_v30  ;;  %v3598_v9 = vld.sshfl [vmem:[#allocation1 + $0x30] sm:$0xff pattern:$0x75316420]  ;;  %v3599_v39 = vld.sshfl [vmem:[#allocation1 + $0x38] sm:$0xff pattern:$0x75316420]  ;;  %v3612_v41 = vpack.c.bf16 %v3596_v40, %v3596_v40  ;;  %v8794_v28 = vpop.f32.mrf.mxu3 }
 0x757   : > { %3689 = vmatpush.bf16.msrb.mxu3 %v3629_v46  ;;  %v3614_v57 = vpack.c.bf16 %v3598_v9, %v3598_v9  ;;  %3800 = vst [vmem:[#allocation1 + $0x20] ss:$2 sm:$0xff] %v3788_v25  ;;  %v3615_v12 = vpack.c.bf16 %v3599_v39, %v3599_v39 }
 0x758   : > { %v3975_v45 = vld.sshfl [vmem:[#allocation1 + $0x8] sm:$0xff pattern:$0x75316420]  ;;  %3802 = vst [vmem:[#allocation1 + $0x30] ss:$2 sm:$0xff] %v3789_v43  ;;  %v3632_v25 = vsel %vm10578_vm2, %v3612_v41, 0 }
 0x759   : > { %v3805_v37 = vld.sshfl [vmem:[#allocation1 + $0x10] sm:$0xff pattern:$0x75316420]  ;;  %v8788_v2 = vld.sshfl [vmem:[#allocation1 + $0x18] sm:$0xff pattern:$0x75316420]  ;;  %6781 = vmatmul.msk.bf16.vlgmr.msrb.gmra.mxu2 %vm10577_vm4, %v8748_v30 }
 0x75a   : > { %3970 = vst [vmem:[#allocation1 + $0x10] ss:$2 sm:$0xff] %v8208_v55  ;;  %v3638_v46 = vsel %vm10578_vm2, %v3614_v57, 0  ;;  %v3641_v5 = vsel %vm10578_vm2, %v3615_v12, 0 }
 0x75b   : > { %3728 = vmatpush.bf16.msrb.mxu2 %v3638_v46  ;;  %3982 = vst [vmem:[#allocation1] ss:$2 sm:$0xff] %v8453_v26  ;;  %v8822_v46 = vld [vmem:[%s10512_s5 + $0x14] sm:$0xf] }
 0x75c   : > { %v8808_v43 = vpop.f32.mrf.mxu0 }
 0x75d   : > { %v8810_v9 = vpop.f32.mrf.mxu1  ;;  %v8814_v57 = vpop.f32.mrf.mxu2 }
 0x75e   : > { %6779 = vmatmul.msk.bf16.vlgmr.msrb.gmra.mxu0 %vm10577_vm4, %v8748_v30  ;;  %v8803_v40 = vld.sshfl [vmem:[#allocation1 + $0x20] sm:$0xff pattern:$0x75316420]  ;;  %v8805_v0 = vld.sshfl [vmem:[#allocation1 + $0x28] sm:$0xff pattern:$0x75316420]  ;;  %v2798_v41 = vpop.f32.mrf.mxu3 }
 0x75f   : > { %6780 = vmatmul.msk.bf16.vlgmr.msra.gmra.mxu1 %vm10577_vm4, %v8748_v30  ;;  %3702 = vmatpush.bf16.msrb.mxu0 %v3632_v25  ;;  %3972 = vst [vmem:[#allocation1 + $0x20] ss:$2 sm:$0xff] %v8388_v10  ;;  %v3809_v29 = vld.sshfl [vmem:[#allocation1 + $0x30] sm:$0xff pattern:$0x75316420]  ;;  %v3821_v25 = vpack.c.bf16 %v3805_v37, %v3805_v37  ;;  %v3820_v37 = vpack.c.bf16 %v8773_v16, %v8773_v16 }
 0x760   : > { %3715 = vmatpush.bf16.msra.mxu1 %v3635_v18  ;;  %v8812_v31 = vld.sshfl [vmem:[#allocation1 + $0x38] sm:$0xff pattern:$0x75316420] }
 0x761   : > { %v3976_v33 = vld.sshfl [vmem:[#allocation1 + $0x10] sm:$0xff pattern:$0x75316420]  ;;  %3974 = vst [vmem:[#allocation1 + $0x30] ss:$2 sm:$0xff] %v8441_v47  ;;  %v3837_v12 = vsel %vm10578_vm2, %v3821_v25, 0 }
 0x762   : > { %v6980_v15 = vpack.i.bf16 %v3976_v33, %v3975_v45  ;;  %v3977_v18 = vld.sshfl [vmem:[#allocation1 + $0x18] sm:$0xff pattern:$0x75316420] }
 0x764   : > { %6981 = vrot.lane.b32.xlu2 %v6980_v15, %s7097_s29  ;;  %v2811_v45 = vpop.f32.mrf.mxu0 }
 0x765   : > { %v2824_v33 = vpop.f32.mrf.mxu1  ;;  %v2837_v15 = vpop.f32.mrf.mxu2 }
 0x766   : > { %6782 = vmatmul.msk.bf16.vlgmr.msra.gmra.mxu3 %vm10577_vm4, %v8748_v30  ;;  %v3979_v38 = vld.sshfl [vmem:[#allocation1 + $0x28] sm:$0xff pattern:$0x75316420]  ;;  %v3978_v39 = vld.sshfl [vmem:[#allocation1 + $0x20] sm:$0xff pattern:$0x75316420]  ;;  %v3819_v30 = vpack.c.bf16 %v8771_v23, %v8771_v23  ;;  %v3822_v33 = vpack.c.bf16 %v8788_v2, %v8788_v2  ;;  %v3825_v15 = vpack.c.bf16 %v3809_v29, %v3809_v29  ;;  %v3824_v29 = vpack.c.bf16 %v8805_v0, %v8805_v0 }
 0x767   : > { %3741 = vmatpush.bf16.msra.mxu3 %v3641_v5  ;;  %v6975_v59 = vpack.i.bf16 %v3978_v39, %v3977_v18  ;;  %v8834_v5 = vpop.f32.mrf.mxu3  ;;  %v3984_v18 = vld.sshfl [vmem:[#allocation1 + $0x8] sm:$0xff pattern:$0x75316420]  ;;  %v3983_v23 = vld.sshfl [vmem:[#allocation1] sm:$0xff pattern:$0x75316420] }
 0x768   : > { %v3981_v41 = vld.sshfl [vmem:[#allocation1 + $0x38] sm:$0xff pattern:$0x75316420]  ;;  %v3980_v39 = vld.sshfl [vmem:[#allocation1 + $0x30] sm:$0xff pattern:$0x75316420] }
 0x769   : > { %6786 = vmatmul.msk.bf16.vlgmr.msra.gmra.mxu2 %vm10577_vm4, %v8822_v46  ;;  %v6985_v1 = vpack.i.bf16 %v3981_v41, %v3979_v38  ;;  %6976 = vrot.lane.b32.xlu0 %v6975_v59, %s7097_s29  ;;  %v3831_v38 = vsel %vm10578_vm2, %v3819_v30, 0  ;;  %v3834_v59 = vsel %vm10578_vm2, %v3820_v37, 0  ;;  %v6990_v16 = vpack.i.bf16 %v3980_v39, %v3983_v23  ;;  %v2365_v2 = vld [vmem:[%s10513_s6] sm:$0xff] }
 0x76a   : > { %3887 = vmatpush.bf16.msra.mxu2 %v3837_v12  ;;  %v3840_v12 = vsel %vm10578_vm2, %v3822_v33, 0  ;;  %v6792_v33 = vld [vmem:[%s10512_s5 + $0x18] sm:$0xf] }
 0x76b   : > { %6986 = vrot.lane.b32.xlu1 %v6985_v1, %s7097_s29 }
 0x76c   : > { %4001 = vrot.lane.b32.xlu2 %v3984_v18, %s7097_s29  ;;  %v8844_v25 = vpop.f32.mrf.mxu0 }
 0x76d   : > { %v8846_v1 = vpop.f32.mrf.mxu1  ;;  %v8848_v45 = vpop.f32.mrf.mxu2 }
 0x76e   : > { %6784 = vmatmul.msk.bf16.vlgmr.msra.gmra.mxu0 %vm10577_vm4, %v8822_v46 }
 0x76f   : > { %6785 = vmatmul.msk.bf16.vlgmr.msrb.gmra.mxu1 %vm10577_vm4, %v8822_v46  ;;  %3861 = vmatpush.bf16.msra.mxu0 %v3831_v38  ;;  %v2850_v41 = vpop.f32.mrf.mxu3  ;;  %v3846_v38 = vsel %vm10578_vm2, %v3824_v29, 0 }
 0x770   : > { %3874 = vmatpush.bf16.msrb.mxu1 %v3834_v59  ;;  %v439_v59 = vld [vmem:[%s7300_s17 + $0x8] sm:$0xff] }
 0x771   : > { %6991 = vrot.lane.b32.xlu0 %v6990_v16, %s7097_s29 }
 0x773   : > { %4169 = vrot.lane.b32.xlu1 %v8208_v55, %s7095_s15  ;;  %v3849_v55 = vsel %vm10578_vm2, %v3825_v15, 0 }
 0x774   : > { %4167 = vrot.lane.b32.xlu2 %v8303_v49, %s7095_s15  ;;  %v3023_v30 = vpop.f32.mrf.mxu0  ;;  %v3823_v49 = vpack.c.bf16 %v8803_v40, %v8803_v40 }
 0x775   : > { %v3036_v37 = vpop.f32.mrf.mxu1  ;;  %v3049_v18 = vpop.f32.mrf.mxu2 }
 0x776   : > { %6787 = vmatmul.msk.bf16.vlgmr.msrb.gmra.mxu3 %vm10577_vm4, %v8822_v46 }
 0x777   : > { %3900 = vmatpush.bf16.msrb.mxu3 %v3840_v12  ;;  %v8872_v39 = vpop.f32.mrf.mxu3 }
 0x779   : > { %6790 = vmatmul.msk.bf16.vlgmr.msrb.gmra.mxu2 %vm10577_vm4, %v8822_v46  ;;  %4171 = vrot.lane.b32.xlu0 %v8388_v10, %s7095_s15  ;;  %v3843_v10 = vsel %vm10578_vm2, %v3823_v49, 0 }
 0x77a   : > { %3939 = vmatpush.bf16.msrb.mxu2 %v3849_v55 }
 0x77b   : > { %4173 = vrot.lane.b32.xlu1 %v8441_v47, %s7095_s15  ;;  %v3826_v47 = vpack.c.bf16 %v8812_v31, %v8812_v31 }
 0x77c   : > { %2373 = vperm.xlu2 %6973, %v2365_v2   ;;  %v8882_v40 = vpop.f32.mrf.mxu0 }
 0x77d   : > { %v3852_v16 = vsel %vm10578_vm2, %v3826_v47, 0 }
 0x77e   : > { %6788 = vmatmul.msk.bf16.vlgmr.msrb.gmra.mxu0 %vm10577_vm4, %v8822_v46 }
 0x77f   : > { %6789 = vmatmul.msk.bf16.vlgmr.msra.gmra.mxu1 %vm10577_vm4, %v8822_v46  ;;  %3913 = vmatpush.bf16.msrb.mxu0 %v3843_v10  ;;  %v8884_v0 = vpop.f32.mrf.mxu1  ;;  %v3062_v23 = vpop.f32.mrf.mxu3 }
 0x780   : > { %3926 = vmatpush.bf16.msra.mxu1 %v3846_v38 }
 0x781   : > { %4175 = vrot.lane.b32.xlu0 %v8453_v26, %s7095_s15 }
 0x784   : > { %4467 = vperm.xlu2 %6973, %v439_v59   ;;  %v3075_v41 = vpop.f32.mrf.mxu0 }
 0x786   : > { %6791 = vmatmul.msk.bf16.vlgmr.msra.gmra.mxu3 %vm10577_vm4, %v8822_v46 }
 0x787   : > { %3952 = vmatpush.bf16.msra.mxu3 %v3852_v16  ;;  %v3088_v15 = vpop.f32.mrf.mxu1 }
 0x789   : > { %6795 = vmatmul.msk.bf16.vlgmr.msra.gmra.mxu2 %vm10577_vm4, %v6792_v33 }
 0x78c   : > { %4539 = vrot.lane.b32.xlu2 %v7487_v3, %s7095_s15 }
 0x78e   : > { %6793 = vmatmul.msk.bf16.vlgmr.msra.gmra.mxu0 %vm10577_vm4, %v6792_v33 }
 0x78f   : > { %6794 = vmatmul.msk.bf16.vlgmr.msrb.gmra.mxu1 %vm10577_vm4, %v6792_v33 }
 0x794   : > { %4541 = vrot.lane.b32.xlu2 %v7501_v34, %s7095_s15 }
 0x796   : > { %6796 = vmatmul.msk.bf16.vlgmr.msrb.gmra.mxu3 %vm10577_vm4, %v6792_v33 }
 0x799   : > { %6799 = vmatmul.msk.bf16.vlgmr.msrb.gmra.mxu2 %vm10577_vm4, %v6792_v33 }
 0x79c   : > { %v8906_v26 = vpop.f32.mrf.mxu2  ;;  %v8908_v31 = vpop.f32.mrf.mxu3  ;;  %4543 = vrot.lane.b32.xlu2 %v7494_v4, %s7095_s15 }
 0x79e   : > { %6797 = vmatmul.msk.bf16.vlgmr.msrb.gmra.mxu0 %vm10577_vm4, %v6792_v33 }
 0x79f   : > { %6798 = vmatmul.msk.bf16.vlgmr.msra.gmra.mxu1 %vm10577_vm4, %v6792_v33 }
 0x7a4   : > { %v3101_v46 = vpop.f32.mrf.mxu2  ;;  %v3114_v12 = vpop.f32.mrf.mxu3  ;;  %4547 = vrot.lane.b32.xlu2 %v7517_v14, %s7095_s15 }
 0x7a6   : > { %6800 = vmatmul.msk.bf16.vlgmr.msra.gmra.mxu3 %vm10577_vm4, %v6792_v33  ;;  %v8917_v30 = vpop.f32.mrf.mxu0 }
 0x7a7   : > { %v8919_v37 = vpop.f32.mrf.mxu1 }
 0x7ac   : > { %v8921_v18 = vpop.f32.mrf.mxu2  ;;  %4549 = vrot.lane.b32.xlu2 %v8326_v7, %s7095_s15 }
 0x7ae   : > { %v3270_v2 = vpop.f32.mrf.mxu0 }
 0x7af   : > { %v3283_v55 = vpop.f32.mrf.mxu1 }
 0x7b4   : > { %v3296_v49 = vpop.f32.mrf.mxu2  ;;  %4551 = vrot.lane.b32.xlu2 %v8319_v51, %s7095_s15 }
 0x7b5   : > { %v8944_v49 = vld [vmem:[%s10512_s5 + $0x1c] sm:$0xf] }
 0x7b9   : > { %v3307_v29 = vpop.f32.mrf.mxu3 }
 0x7bb   : > { %v3320_v10 = vpop.f32.mrf.mxu0 }
 0x7bc   : > { %v3333_v38 = vpop.f32.mrf.mxu1  ;;  %v8927_v59 = vpop.f32.mrf.mxu2  ;;  %4950 = vrot.lane.b32.xlu2 %v8355_v22, %s7101_s30 }
 0x7be   : > { %v8931_v47 = vpop.permute.xlu2 %6981 }
 0x7bf   : > { %v10560_v23 = vunpack.i.h.bf16 %v8931_v47  ;;  %v6983_v16 = vunpack.i.l.bf16 %v8931_v47 }
 0x7c1   : > { %v3309_v33 = vpop.f32.mrf.mxu3  ;;  %v4004_v41 = vsel %vm10579_vm10, %v6983_v16, %v10560_v23 }
 0x7c2   : > { %v4020_v15 = vpack.c.bf16 %v4004_v41, %v4004_v41 }
 0x7c3   : > { %v3322_v46 = vpop.f32.mrf.mxu0 }
 0x7c4   : > { %v3335_v12 = vpop.f32.mrf.mxu1  ;;  %v4032_v2 = vsel %vm10578_vm2, %v4020_v15, 0  ;;  %v3348_v55 = vpop.f32.mrf.mxu2  ;;  %4956 = vrot.lane.b32.xlu2 %v8423_v60, %s7101_s30 }
 0x7c5   : > { %4062 = vmatpush.bf16.msra.mxu0 %v4032_v2 }
 0x7c6   : > { %v8946_v33 = vpop.permute.xlu2 %4001 }
 0x7c8   : > { %6802 = vmatmul.msk.bf16.vlgmr.msra.gmra.mxu0 %vm10577_vm4, %v8944_v49 }
 0x7c9   : > { %v3359_v16 = vpop.f32.mrf.mxu3 }
 0x7cb   : > { %v8950_v41 = vpop.f32.mrf.mxu0 }
 0x7cc   : > { %v8952_v46 = vpop.f32.mrf.mxu1  ;;  %v8954_v15 = vpop.f32.mrf.mxu2 }
 0x7ce   : > { %v8956_v12 = vpop.permute.xlu2 %4167 }
 0x7d1   : > { %v3361_v2 = vpop.f32.mrf.mxu3 }
 0x7d3   : > { %v3443_v55 = vpop.f32.mrf.mxu0 }
 0x7d4   : > { %v3456_v23 = vpop.f32.mrf.mxu1  ;;  %v3469_v42 = vpop.f32.mrf.mxu2 }
 0x7d6   : > { %v2374_v62 = vpop.permute.xlu2 %2373 }
 0x7d7   : > { %v2638_v24 = vadd.f32 %v8713_v8, %v2374_v62  ;;  %v2639_v21 = vadd.f32 %v8727_v35, %v2374_v62  ;;  %v2640_v60 = vadd.f32 %v8729_v52, %v2374_v62  ;;  %v2641_v22 = vadd.f32 %v8731_v44, %v2374_v62 }
 0x7d8   : > { %v2642_v51 = vadd.f32 %v8753_v27, %v2374_v62  ;;  %v2635_v7 = vadd.f32 %v8686_v36, %v2374_v62  ;;  %v2636_v14 = vadd.f32 %v8688_v20, %v2374_v62  ;;  %v2637_v2 = vadd.f32 %v8690_v48, %v2374_v62 }
 0x7d9   : > { %v2855_v23 = vadd.f32 %v8794_v28, %v2638_v24  ;;  %v3480_v42 = vpop.f32.mrf.mxu3  ;;  %v2856_v55 = vadd.f32 %v8808_v43, %v2639_v21  ;;  %v2857_v8 = vadd.f32 %v8810_v9, %v2640_v60  ;;  %v2858_v35 = vadd.f32 %v8814_v57, %v2641_v22 }
 0x7da   : > { %v2859_v52 = vadd.f32 %v8834_v5, %v2642_v51  ;;  %v2852_v44 = vadd.f32 %v8767_v53, %v2635_v7  ;;  %v2853_v27 = vadd.f32 %v8769_v13, %v2636_v14  ;;  %v2854_v36 = vadd.f32 %v8775_v54, %v2637_v2 }
 0x7db   : > { %v3119_v20 = vadd.f32 %v8872_v39, %v2855_v23  ;;  %v3120_v62 = vadd.f32 %v8882_v40, %v2856_v55  ;;  %v3493_v24 = vpop.f32.mrf.mxu0  ;;  %v3121_v48 = vadd.f32 %v8884_v0, %v2857_v8  ;;  %v3122_v60 = vadd.f32 %v8906_v26, %v2858_v35  ;;  %v6977_v28 = vpop.permute.xlu0 %6976 }
 0x7dc   : > { %v3506_v21 = vpop.f32.mrf.mxu1  ;;  %v3519_v22 = vpop.f32.mrf.mxu2  ;;  %v3123_v51 = vadd.f32 %v8908_v31, %v2859_v52  ;;  %v3116_v7 = vadd.f32 %v8844_v25, %v2852_v44  ;;  %v3117_v14 = vadd.f32 %v8846_v1, %v2853_v27  ;;  %v6979_v9 = vunpack.i.h.bf16 %v6977_v28 }
 0x7dd   : > { %v3366_v53 = vadd.f32 %v3307_v29, %v3119_v20  ;;  %v3367_v13 = vadd.f32 %v3320_v10, %v3120_v62  ;;  %v3368_v54 = vadd.f32 %v3333_v38, %v3121_v48  ;;  %v6987_v43 = vpop.permute.xlu1 %6986  ;;  %v6978_v5 = vunpack.i.l.bf16 %v6977_v28 }
 0x7de   : > { %v6988_v57 = vunpack.i.l.bf16 %v6987_v43  ;;  %v3369_v39 = vadd.f32 %v8927_v59, %v3122_v60  ;;  %v3118_v40 = vadd.f32 %v8848_v45, %v2854_v36  ;;  %v3370_v25 = vadd.f32 %v3359_v16, %v3123_v51 }
 0x7df   : > { %v8983_v0 = vadd.f32 %v3480_v42, %v3366_v53  ;;  %v8985_v26 = vadd.f32 %v3493_v24, %v3367_v13  ;;  %v8987_v31 = vadd.f32 %v3506_v21, %v3368_v54  ;;  %v10649_v1 = vunpack.i.h.bf16 %v8931_v47 }
 0x7e0   : > { %v8989_v2 = vadd.f32 %v3519_v22, %v3369_v39  ;;  %v4006_v10 = vsel %vm10579_vm10, %v6978_v5, %v6979_v9  ;;  %v4007_v38 = vsel %vm10579_vm10, %v6979_v9, %v6988_v57  ;;  %v3363_v55 = vadd.f32 %v8917_v30, %v3116_v7 }
 0x7e1   : > { %v4005_v29 = vsel %vm10579_vm10, %v10649_v1, %v6978_v5  ;;  %v3482_v59 = vpop.f32.mrf.mxu3  ;;  %v4022_v45 = vpack.c.bf16 %v4006_v10, %v4006_v10  ;;  %v4023_v42 = vpack.c.bf16 %v4007_v38, %v4007_v38  ;;  %v3364_v8 = vadd.f32 %v8919_v37, %v3117_v14 }
 0x7e2   : > { %v4021_v23 = vpack.c.bf16 %v4005_v29, %v4005_v29  ;;  %v3365_v16 = vadd.f32 %v8921_v18, %v3118_v40  ;;  %v3536_v36 = vadd.f32 %v8950_v41, %v3363_v55  ;;  %v6989_v24 = vunpack.i.h.bf16 %v6987_v43 }
 0x7e3   : > { %v4038_v47 = vsel %vm10578_vm2, %v4022_v45, 0  ;;  %v4041_v52 = vsel %vm10578_vm2, %v4023_v42, 0  ;;  %v3495_v44 = vpop.f32.mrf.mxu0  ;;  %v6992_v20 = vpop.permute.xlu0 %6991  ;;  %v3537_v30 = vadd.f32 %v8952_v46, %v3364_v8  ;;  %v4177_v60 = vrot.slane %v8956_v12, 4 }
 0x7e4   : > { %v4035_v35 = vsel %vm10578_vm2, %v4021_v23, 0  ;;  %v3508_v27 = vpop.f32.mrf.mxu1  ;;  %4088 = vmatpush.bf16.msra.mxu2 %v4038_v47  ;;  %v3521_v62 = vpop.f32.mrf.mxu2  ;;  %v3538_v37 = vadd.f32 %v8954_v15, %v3365_v16  ;;  %4101 = vmatpush.bf16.msrb.mxu3 %v4041_v52  ;;  %v6994_v48 = vunpack.i.h.bf16 %v6992_v20  ;;  %v6993_v21 = vunpack.i.l.bf16 %v6992_v20 }
 0x7e5   : > { %4075 = vmatpush.bf16.msrb.mxu1 %v4035_v35  ;;  %v4170_v18 = vpop.permute.xlu1 %4169 }
 0x7e6   : > { %v4178_v28 = vrot.slane %v4170_v18, 4  ;;  %v4008_v41 = vsel %vm10579_vm10, %v6988_v57, %v6994_v48  ;;  %v4009_v46 = vsel %vm10579_vm10, %v6994_v48, %v6989_v24  ;;  %v4010_v15 = vsel %vm10579_vm10, %v6989_v24, %v6993_v21 }
 0x7e7   : > { %6804 = vmatmul.msk.bf16.vlgmr.msra.gmra.mxu2 %vm10577_vm4, %v8944_v49  ;;  %6805 = vmatmul.msk.bf16.vlgmr.msrb.gmra.mxu3 %vm10577_vm4, %v8944_v49  ;;  %v4024_v51 = vpack.c.bf16 %v4008_v41, %v4008_v41  ;;  %v4025_v12 = vpack.c.bf16 %v4009_v46, %v4009_v46  ;;  %v4026_v7 = vpack.c.bf16 %v4010_v15, %v4010_v15  ;;  %v6810_v41 = vld [vmem:[%s10512_s5 + $0x20] sm:$0xf] }
 0x7e8   : > { %6803 = vmatmul.msk.bf16.vlgmr.msrb.gmra.mxu1 %vm10577_vm4, %v8944_v49  ;;  %v4182_v22 = vsel %vm2390_vm0, %v4177_v60, %v4178_v28  ;;  %v4011_v13 = vsel %vm10579_vm10, %v6993_v21, %v8946_v33 }
 0x7e9   : > { %v4183_v14 = vsel %vm2407_vm15, %v4182_v22, %v4170_v18  ;;  %v3532_v53 = vpop.f32.mrf.mxu3  ;;  %v4044_v9 = vsel %vm10578_vm2, %v4024_v51, 0  ;;  %v4047_v57 = vsel %vm10578_vm2, %v4025_v12, 0  ;;  %v4050_v5 = vsel %vm10578_vm2, %v4026_v7, 0 }
 0x7ea   : > { %v4194_v54 = vmul.f32 %v4183_v14, %v8377_v56  ;;  %v9020_v43 = vadd.f32 %v3532_v53, %v3370_v25  ;;  %4114 = vmatpush.bf16.msrb.mxu0 %v4044_v9  ;;  %4127 = vmatpush.bf16.msra.mxu1 %v4047_v57  ;;  %v4027_v39 = vpack.c.bf16 %v4011_v13, %v4011_v13 }
 0x7eb   : > { %v3652_v40 = vpop.f32.mrf.mxu0  ;;  %4140 = vmatpush.bf16.msrb.mxu2 %v4050_v5  ;;  %v4172_v56 = vpop.permute.xlu0 %4171 }
 0x7ec   : > { %v3665_v1 = vpop.f32.mrf.mxu1  ;;  %4204 = vst [vmem:[#allocation1] ss:$2 sm:$0xff] %v4194_v54  ;;  %v9025_v29 = vadd.f32 %v3652_v40, %v3536_v36  ;;  %v3678_v25 = vpop.f32.mrf.mxu2  ;;  %v4053_v10 = vsel %vm10578_vm2, %v4027_v39, 0  ;;  %v4179_v59 = vrot.slane %v4172_v56, 4 }
 0x7ed   : > { %v9027_v33 = vadd.f32 %v3665_v1, %v3537_v30  ;;  %v4174_v38 = vpop.permute.xlu1 %4173  ;;  %v9030_v23 = vadd.f32 %v3678_v25, %v3538_v37  ;;  %4153 = vmatpush.bf16.msra.mxu3 %v4053_v10  ;;  %6806 = vmatmul.msk.bf16.vlgmr.msrb.gmra.mxu0 %vm10577_vm4, %v8944_v49 }
 0x7ee   : > { %v4180_v45 = vrot.slane %v4174_v38, 4  ;;  %v4184_v42 = vsel %vm2390_vm0, %v4178_v28, %v4179_v59 }
 0x7ef   : > { %v4185_v55 = vsel %vm2407_vm15, %v4184_v42, %v4172_v56 }
 0x7f0   : > { %v4186_v8 = vsel %vm2390_vm0, %v4179_v59, %v4180_v45  ;;  %v4195_v35 = vmul.f32 %v4185_v55, %v8413_v6 }
 0x7f1   : > { %v4187_v16 = vsel %vm2407_vm15, %v4186_v8, %v4174_v38  ;;  %v3534_v47 = vpop.f32.mrf.mxu3 }
 0x7f2   : > { %v4196_v52 = vmul.f32 %v4187_v16, %v8429_v17  ;;  %4206 = vst [vmem:[#allocation1 + $0x10] ss:$2 sm:$0xff] %v4195_v35 }
 0x7f3   : > { %v3654_v44 = vpop.f32.mrf.mxu0  ;;  %v4211_v36 = vld.sshfl [vmem:[#allocation1] sm:$0xff pattern:$0x75316420]  ;;  %v4176_v20 = vpop.permute.xlu0 %4175  ;;  %v4212_v37 = vld.sshfl [vmem:[#allocation1 + $0x8] sm:$0xff pattern:$0x75316420] }
 0x7f4   : > { %v3667_v27 = vpop.f32.mrf.mxu1  ;;  %4208 = vst [vmem:[#allocation1 + $0x20] ss:$2 sm:$0xff] %v4196_v52  ;;  %v3680_v62 = vpop.f32.mrf.mxu2  ;;  %v4227_v30 = vpack.c.bf16 %v4211_v36, %v4211_v36  ;;  %v4181_v24 = vrot.slane %v4176_v20, 4  ;;  %v4228_v18 = vpack.c.bf16 %v4212_v37, %v4212_v37 }
 0x7f6   : > { %v4239_v48 = vsel %vm10578_vm2, %v4227_v30, 0  ;;  %v4188_v21 = vsel %vm2390_vm0, %v4180_v45, %v4181_v24  ;;  %v4242_v6 = vsel %vm10578_vm2, %v4228_v18, 0 }
 0x7f7   : > { %6808 = vmatmul.msk.bf16.vlgmr.msrb.gmra.mxu2 %vm10577_vm4, %v8944_v49  ;;  %v4189_v17 = vsel %vm2407_vm15, %v4188_v21, %v4176_v20  ;;  %6809 = vmatmul.msk.bf16.vlgmr.msra.gmra.mxu3 %vm10577_vm4, %v8944_v49 }
 0x7f8   : > { %6807 = vmatmul.msk.bf16.vlgmr.msra.gmra.mxu1 %vm10577_vm4, %v8944_v49  ;;  %4269 = vmatpush.bf16.msra.mxu0 %v4239_v48  ;;  %v4197_v60 = vmul.f32 %v4189_v17, %v8468_v19 }
 0x7f9   : > { %4282 = vmatpush.bf16.msrb.mxu1 %v4242_v6  ;;  %v3691_v28 = vpop.f32.mrf.mxu3  ;;  %v4213_v15 = vld.sshfl [vmem:[#allocation1 + $0x10] sm:$0xff pattern:$0x75316420]  ;;  %v4214_v22 = vld.sshfl [vmem:[#allocation1 + $0x18] sm:$0xff pattern:$0x75316420] }
 0x7fa   : > { %v3750_v46 = vadd.f32 %v3691_v28, %v8983_v0  ;;  %4210 = vst [vmem:[#allocation1 + $0x30] ss:$2 sm:$0xff] %v4197_v60  ;;  %v4229_v7 = vpack.c.bf16 %v4213_v15, %v4213_v15  ;;  %v4230_v14 = vpack.c.bf16 %v4214_v22, %v4214_v22 }
 0x7fb   : > { %v3704_v51 = vpop.f32.mrf.mxu0  ;;  %v4215_v53 = vld.sshfl [vmem:[#allocation1 + $0x20] sm:$0xff pattern:$0x75316420]  ;;  %v4216_v9 = vld.sshfl [vmem:[#allocation1 + $0x28] sm:$0xff pattern:$0x75316420] }
 0x7fc   : > { %v3717_v12 = vpop.f32.mrf.mxu1  ;;  %v3751_v49 = vadd.f32 %v3704_v51, %v8985_v26  ;;  %v3730_v13 = vpop.f32.mrf.mxu2  ;;  %v4231_v54 = vpack.c.bf16 %v4215_v53, %v4215_v53  ;;  %v4245_v5 = vsel %vm10578_vm2, %v4229_v7, 0  ;;  %v4248_v0 = vsel %vm10578_vm2, %v4230_v14, 0 }
 0x7fd   : > { %v3752_v19 = vadd.f32 %v3717_v12, %v8987_v31  ;;  %v3753_v57 = vadd.f32 %v3730_v13, %v8989_v2  ;;  %v4232_v39 = vpack.c.bf16 %v4216_v9, %v4216_v9  ;;  %6811 = vmatmul.msk.bf16.vlgmr.msra.gmra.mxu0 %vm10577_vm4, %v6810_v41  ;;  %4295 = vmatpush.bf16.msra.mxu2 %v4245_v5 }
 0x7fe   : > { %v4251_v40 = vsel %vm10578_vm2, %v4231_v54, 0  ;;  %4308 = vmatpush.bf16.msrb.mxu3 %v4248_v0 }
 0x7ff   : > { %4321 = vmatpush.bf16.msrb.mxu0 %v4251_v40  ;;  %v4254_v26 = vsel %vm10578_vm2, %v4232_v39, 0 }
 0x800   : > { %4334 = vmatpush.bf16.msra.mxu1 %v4254_v26 }
 0x801   : > { %v3693_v31 = vpop.f32.mrf.mxu3  ;;  %v4217_v1 = vld.sshfl [vmem:[#allocation1 + $0x30] sm:$0xff pattern:$0x75316420]  ;;  %v4218_v56 = vld.sshfl [vmem:[#allocation1 + $0x38] sm:$0xff pattern:$0x75316420] }
 0x802   : > { %v4233_v10 = vpack.c.bf16 %v4217_v1, %v4217_v1  ;;  %v4234_v38 = vpack.c.bf16 %v4218_v56, %v4218_v56 }
 0x803   : > { %v3706_v25 = vpop.f32.mrf.mxu0 }
 0x804   : > { %v3719_v2 = vpop.f32.mrf.mxu1  ;;  %v3732_v59 = vpop.f32.mrf.mxu2  ;;  %v4257_v45 = vsel %vm10578_vm2, %v4233_v10, 0  ;;  %v4260_v42 = vsel %vm10578_vm2, %v4234_v38, 0 }
 0x805   : > { %4347 = vmatpush.bf16.msrb.mxu2 %v4257_v45  ;;  %4360 = vmatpush.bf16.msra.mxu3 %v4260_v42 }
 0x807   : > { %6813 = vmatmul.msk.bf16.vlgmr.msra.gmra.mxu2 %vm10577_vm4, %v6810_v41  ;;  %6814 = vmatmul.msk.bf16.vlgmr.msrb.gmra.mxu3 %vm10577_vm4, %v6810_v41 }
 0x808   : > { %6812 = vmatmul.msk.bf16.vlgmr.msrb.gmra.mxu1 %vm10577_vm4, %v6810_v41 }
 0x809   : > { %v3743_v55 = vpop.f32.mrf.mxu3 }
 0x80a   : > { %v3754_v8 = vadd.f32 %v3743_v55, %v9020_v43 }
 0x80b   : > { %v3863_v16 = vpop.f32.mrf.mxu0 }
 0x80c   : > { %v3876_v35 = vpop.f32.mrf.mxu1  ;;  %v3958_v47 = vadd.f32 %v3863_v16, %v9025_v29  ;;  %v3889_v44 = vpop.f32.mrf.mxu2 }
 0x80d   : > { %v3959_v52 = vadd.f32 %v3876_v35, %v9027_v33  ;;  %v3960_v27 = vadd.f32 %v3889_v44, %v9030_v23  ;;  %6815 = vmatmul.msk.bf16.vlgmr.msrb.gmra.mxu0 %vm10577_vm4, %v6810_v41 }
 0x811   : > { %v3745_v36 = vpop.f32.mrf.mxu3 }
 0x813   : > { %v3865_v20 = vpop.f32.mrf.mxu0 }
 0x814   : > { %v3878_v62 = vpop.f32.mrf.mxu1  ;;  %v3891_v30 = vpop.f32.mrf.mxu2 }
 0x817   : > { %6817 = vmatmul.msk.bf16.vlgmr.msrb.gmra.mxu2 %vm10577_vm4, %v6810_v41  ;;  %6818 = vmatmul.msk.bf16.vlgmr.msra.gmra.mxu3 %vm10577_vm4, %v6810_v41 }
 0x818   : > { %6816 = vmatmul.msk.bf16.vlgmr.msra.gmra.mxu1 %vm10577_vm4, %v6810_v41 }
 0x819   : > { %v3902_v43 = vpop.f32.mrf.mxu3 }
 0x81a   : > { %v3961_v37 = vadd.f32 %v3902_v43, %v3750_v46 }
 0x81b   : > { %v3915_v29 = vpop.f32.mrf.mxu0 }
 0x81c   : > { %v3928_v24 = vpop.f32.mrf.mxu1  ;;  %v3962_v33 = vadd.f32 %v3915_v29, %v3751_v49  ;;  %v3941_v48 = vpop.f32.mrf.mxu2 }
 0x81d   : > { %v3963_v18 = vadd.f32 %v3928_v24, %v3752_v19  ;;  %v3964_v23 = vadd.f32 %v3941_v48, %v3753_v57 }
 0x821   : > { %v3904_v21 = vpop.f32.mrf.mxu3 }
 0x823   : > { %v3917_v6 = vpop.f32.mrf.mxu0 }
 0x824   : > { %v3930_v17 = vpop.f32.mrf.mxu1  ;;  %v3943_v60 = vpop.f32.mrf.mxu2 }
 0x829   : > { %v3954_v28 = vpop.f32.mrf.mxu3 }
 0x82a   : > { %v3965_v15 = vadd.f32 %v3954_v28, %v3754_v8 }
 0x831   : > { %v3956_v22 = vpop.f32.mrf.mxu3 }
 0x845   : > { %v4064_v51 = vpop.f32.mrf.mxu0 }
 0x846   : > { %v4159_v12 = vadd.f32 %v4064_v51, %v3958_v47 }
 0x84d   : > { %v4066_v7 = vpop.f32.mrf.mxu0 }
 0x865   : > { %v4077_v14 = vpop.f32.mrf.mxu1 }
 0x866   : > { %v4160_v56 = vadd.f32 %v4077_v14, %v3959_v52 }
 0x86a   : > { %v4090_v41 = vpop.f32.mrf.mxu2  ;;  %v4103_v53 = vpop.f32.mrf.mxu3 }
 0x86b   : > { %v4116_v46 = vpop.f32.mrf.mxu0  ;;  %v4161_v2 = vadd.f32 %v4090_v41, %v3960_v27  ;;  %v4162_v16 = vadd.f32 %v4103_v53, %v3961_v37 }
 0x86c   : > { %v4163_v30 = vadd.f32 %v4116_v46, %v3962_v33  ;;  %v10650_v33 = vld [vmem:[#allocation17_spill] sm:$0xff] }
 0x86d   : > { %v4079_v13 = vpop.f32.mrf.mxu1 }
 0x872   : > { %v4092_v54 = vpop.f32.mrf.mxu2  ;;  %v4105_v49 = vpop.f32.mrf.mxu3 }
 0x873   : > { %v4118_v19 = vpop.f32.mrf.mxu0 }
 0x875   : > { %v4129_v9 = vpop.f32.mrf.mxu1 }
 0x876   : > { %v4164_v43 = vadd.f32 %v4129_v9, %v3963_v18  ;;  %v7105_v18 = vmov 1024.0  }
 0x877   : > { %7015 = vrcp.f32 %v7105_v18 }
 0x87a   : > { %v4142_v57 = vpop.f32.mrf.mxu2  ;;  %v4155_v5 = vpop.f32.mrf.mxu3 }
 0x87b   : > { %v4271_v0 = vpop.f32.mrf.mxu0  ;;  %v4165_v27 = vadd.f32 %v4142_v57, %v3964_v23  ;;  %v4166_v6 = vadd.f32 %v4155_v5, %v3965_v15 }
 0x87c   : > { %v4366_v42 = vadd.f32 %v4271_v0, %v4159_v12 }
 0x87d   : > { %v4131_v39 = vpop.f32.mrf.mxu1  ;;  %v7016_v23 = vpop.eup %7015 }
 0x87e   : > { %v4384_v15 = vmul.f32 1024.0, %v7016_v23  ;;  %vm4388_vm4 = vweird.f32 %v7016_v23 }
 0x880   : > { %v4385_v41 = vsub.f32 1.0, %v4384_v15 }
 0x882   : > { %v4144_v40 = vpop.f32.mrf.mxu2  ;;  %v4157_v26 = vpop.f32.mrf.mxu3  ;;  %v4386_v53 = vmul.f32 %v7016_v23, %v4385_v41 }
 0x883   : > { %v4273_v31 = vpop.f32.mrf.mxu0 }
 0x884   : > { %v4387_v46 = vadd.f32 %v7016_v23, %v4386_v53 }
 0x885   : > { %v4284_v1 = vpop.f32.mrf.mxu1 }
 0x886   : > { %v4367_v10 = vadd.f32 %v4284_v1, %v4160_v56  ;;  %v4389_v13 = vsel %vm4388_vm4, %v7016_v23, %v4387_v46 }
 0x888   : > { %v4374_v8 = vadd.f32 %v4367_v10, %v4366_v42 }
 0x88a   : > { %v4297_v25 = vpop.f32.mrf.mxu2  ;;  %v4310_v38 = vpop.f32.mrf.mxu3 }
 0x88b   : > { %v4323_v59 = vpop.f32.mrf.mxu0  ;;  %v4368_v55 = vadd.f32 %v4297_v25, %v4161_v2  ;;  %v4369_v44 = vadd.f32 %v4310_v38, %v4162_v16 }
 0x88c   : > { %v4370_v52 = vadd.f32 %v4323_v59, %v4163_v30 }
 0x88d   : > { %v4286_v45 = vpop.f32.mrf.mxu1  ;;  %v4375_v35 = vadd.f32 %v4374_v8, %v4368_v55 }
 0x88f   : > { %v4376_v29 = vadd.f32 %v4375_v35, %v4369_v44 }
 0x891   : > { %v4377_v48 = vadd.f32 %v4376_v29, %v4370_v52 }
 0x892   : > { %v4299_v47 = vpop.f32.mrf.mxu2  ;;  %v4312_v36 = vpop.f32.mrf.mxu3 }
 0x893   : > { %v4325_v20 = vpop.f32.mrf.mxu0  ;;  %v7106_v36 = vmov 1023.0  }
 0x894   : > { %7017 = vrcp.f32 %v7106_v36 }
 0x895   : > { %v4336_v62 = vpop.f32.mrf.mxu1 }
 0x896   : > { %v4371_v24 = vadd.f32 %v4336_v62, %v4164_v43 }
 0x898   : > { %v4378_v17 = vadd.f32 %v4377_v48, %v4371_v24 }
 0x89a   : > { %v4349_v21 = vpop.f32.mrf.mxu2  ;;  %v4362_v28 = vpop.f32.mrf.mxu3 }
 0x89b   : > { %v4372_v60 = vadd.f32 %v4349_v21, %v4165_v27  ;;  %v4373_v51 = vadd.f32 %v4362_v28, %v4166_v6  ;;  %v7018_v20 = vpop.eup %7017 }
 0x89c   : > { %v4417_v62 = vmul.f32 1023.0, %v7018_v20  ;;  %vm4421_vm4 = vweird.f32 %v7018_v20 }
 0x89d   : > { %v4338_v22 = vpop.f32.mrf.mxu1  ;;  %v4379_v37 = vadd.f32 %v4378_v17, %v4372_v60 }
 0x89e   : > { %v4418_v30 = vsub.f32 1.0, %v4417_v62 }
 0x89f   : > { %v4380_v12 = vadd.f32 %v4379_v37, %v4373_v51 }
 0x8a0   : > { %v4419_v43 = vmul.f32 %v7018_v20, %v4418_v30 }
 0x8a1   : > { %4381 = vadd.xlane.f32.xlu1 %v4380_v12  ;;  %v9125_v12 = vpop.permute.xlu2 %4467 }
 0x8a2   : > { %v4351_v7 = vpop.f32.mrf.mxu2  ;;  %v4364_v14 = vpop.f32.mrf.mxu3  ;;  %v4420_v29 = vadd.f32 %v7018_v20, %v4419_v43 }
 0x8a9   : > { %v9128_v41 = vpop.permute.xlu2 %4539 }
 0x8ba   : > { %4545 = vrot.lane.b32.xlu1 %v10650_v33, %s7095_s15 }
 0x8c2   : > { %4954 = vrot.lane.b32.xlu1 %v8400_v63, %s7101_s30 }
 0x8ca   : > { %4948 = vrot.lane.b32.xlu1 %v8364_v58, %s7101_s30 }
 0x8d2   : > { %4962 = vrot.lane.b32.xlu1 %v8448_v32, %s7101_s30 }
 0x8da   : > { %5176 = vrot.lane.b32.xlu1 %v7487_v3, %s7102_s12 }
 0x8e2   : > { %5182 = vrot.lane.b32.xlu1 %v10650_v33, %s7102_s12 }
 0x914   : > { %v4382_v54 = vpop.xlane.xlu1 %4381 }
 0x915   : > { %v4390_v49 = vmul.f32 %v4389_v13, %v4382_v54 }
 0x917   : > { %v9088_v19 = vsub.f32 %v4366_v42, %v4390_v49  ;;  %v9090_v9 = vsub.f32 %v4367_v10, %v4390_v49  ;;  %v9092_v57 = vsub.f32 %v4368_v55, %v4390_v49  ;;  %v9094_v5 = vsub.f32 %v4369_v44, %v4390_v49  ;;  %v10651_v44 = vld [vmem:[#allocation15_spill] sm:$0xff] }
 0x918   : > { %v9100_v40 = vsub.f32 %v4370_v52, %v4390_v49  ;;  %v9104_v1 = vsub.f32 %v4371_v24, %v4390_v49  ;;  %v9108_v2 = vsub.f32 %v4372_v60, %v4390_v49  ;;  %v9112_v59 = vsub.f32 %v4373_v51, %v4390_v49 }
 0x919   : > { %v4399_v0 = vmul.f32 %v9088_v19, %v9088_v19  ;;  %v4400_v39 = vmul.f32 %v9090_v9, %v9090_v9  ;;  %v4401_v26 = vmul.f32 %v9092_v57, %v9092_v57  ;;  %v4402_v56 = vmul.f32 %v9094_v5, %v9094_v5 }
 0x91a   : > { %v4403_v10 = vmul.f32 %v9100_v40, %v9100_v40  ;;  %v4404_v45 = vmul.f32 %v9104_v1, %v9104_v1  ;;  %v4405_v55 = vmul.f32 %v9108_v2, %v9108_v2  ;;  %v4406_v16 = vmul.f32 %v9112_v59, %v9112_v59 }
 0x91b   : > { %v4407_v31 = vadd.f32 %v4400_v39, %v4399_v0  ;;  %v4422_v52 = vsel %vm4421_vm4, %v7018_v20, %v4420_v29  ;;  %v9132_v39 = vpop.permute.xlu2 %4541 }
 0x91d   : > { %v4408_v25 = vadd.f32 %v4407_v31, %v4401_v26  ;;  %v440_v31 = vld [vmem:[%s7300_s17 + $0x10] sm:$0xff] }
 0x91f   : > { %v4409_v38 = vadd.f32 %v4408_v25, %v4402_v56 }
 0x921   : > { %v4410_v42 = vadd.f32 %v4409_v38, %v4403_v10 }
 0x923   : > { %v4411_v8 = vadd.f32 %v4410_v42, %v4404_v45  ;;  %v9137_v45 = vpop.permute.xlu2 %4543 }
 0x925   : > { %v4412_v35 = vadd.f32 %v4411_v8, %v4405_v55  ;;  %v7107_v55 = vmov 0.0|0.0  }
 0x927   : > { %v4413_v47 = vadd.f32 %v4412_v35, %v4406_v16 }
 0x929   : > { %4414 = vadd.xlane.f32.xlu0 %v4413_v47 }
 0x92b   : > { %v9143_v42 = vpop.permute.xlu2 %4547 }
 0x92c   : > { %v9162_v20 = vpop.permute.xlu1 %4545 }
 0x933   : > { %v9147_v8 = vpop.permute.xlu2 %4549 }
 0x934   : > { %v9164_v30 = vpop.permute.xlu1 %4954 }
 0x93b   : > { %v9151_v16 = vpop.permute.xlu2 %4551 }
 0x93c   : > { %v9156_v35 = vsel %vm2407_vm15, %v9147_v8, %v9151_v16 }
 0x93d   : > { %4537 = vrot.lane.b32.xlu0 %v10651_v44, %s7095_s15 }
 0x943   : > { %v9158_v47 = vpop.permute.xlu2 %4950 }
 0x94b   : > { %v9160_v36 = vpop.permute.xlu2 %4956 }
 0x99c   : > { %v4415_v24 = vpop.xlane.xlu0 %4414 }
 0x99d   : > { %v4423_v27 = vmul.f32 %v4422_v52, %v4415_v24 }
 0x99f   : > { %7019 = vrsqrt.f32 %v4423_v27  ;;  %vm4431_vm2 = vcmp.eq.f32.partialorder %v4423_v27, inf  ;;  %v4434_v7 = vand.u32 2147483648, %v4423_v27  ;;  %vm4433_vm4 = vcmp.eq.f32.partialorder %v4423_v27, 0.0 }
 0x9a5   : > { %v7020_v48 = vpop.eup %7019 }
 0x9a6   : > { %v4425_v21 = vmul.f32 %v7020_v48, %v4423_v27 }
 0x9a8   : > { %v4426_v6 = vmul.f32 %v7020_v48, %v4425_v21 }
 0x9aa   : > { %v4427_v17 = vmul.f32 0.5, %v4426_v6 }
 0x9ac   : > { %v4428_v60 = vsub.f32 1.5, %v4427_v17 }
 0x9ae   : > { %v4429_v28 = vmul.f32 %v7020_v48, %v4428_v60 }
 0x9af   : > { %v9122_v22 = vpop.permute.xlu0 %4537 }
 0x9b0   : > { %v4430_v37 = vmul.f32 %v4429_v28, %v4423_v27  ;;  %v4569_v51 = vmul.f32 0.0, %v9122_v22 }
 0x9b2   : > { %v4432_v14 = vsel %vm4431_vm2, %v4423_v27, %v4430_v37  ;;  %v4579_v18 = vpack.c.bf16 %v4569_v51, %v4569_v51 }
 0x9b3   : > { %v4435_v23 = vsel %vm4433_vm4, %v4434_v7, %v4432_v14 }
 0x9b4   : > { %4597 = vrot.lane.b32.xlu0 %v4579_v18, %s7100_s24  ;;  %v4436_v15 = vadd.f32 1e-05, %v4435_v23 }
 0x9b6   : > { %7021 = vrcp.f32 %v4436_v15  ;;  %v4448_v54 = vand.u32 2147483648, %v4436_v15  ;;  %v4446_v0 = vand.u32 2147483647, %v4436_v15  ;;  %vm4442_vm2 = vweird.f32 %v4436_v15 }
 0x9b8   : > { %v4449_v56 = vor.u32 1.1754944e-38, %v4448_v54  ;;  %vm4447_vm8 = vcmp.eq.f32.partialorder %v4446_v0, 8.507059e+37 }
 0x9bc   : > { %v7022_v53 = vpop.eup %7021  ;;  %4952 = vrot.lane.b32.xlu0 %v8405_v11, %s7101_s30 }
 0x9bd   : > { %v4438_v46 = vmul.f32 %v7022_v53, %v4436_v15  ;;  %vm4443_vm10 = vweird.f32 %v7022_v53  ;;  %v9202_v15 = vpop.permute.xlu1 %4948 }
 0x9be   : > { %vm4444_vm4 = vmor %vm4442_vm2, %vm4443_vm10 }
 0x9bf   : > { %v4439_v13 = vsub.f32 1.0, %v4438_v46 }
 0x9c1   : > { %v4440_v49 = vmul.f32 %v7022_v53, %v4439_v13 }
 0x9c3   : > { %v4441_v26 = vadd.f32 %v7022_v53, %v4440_v49 }
 0x9c4   : > { %4960 = vrot.lane.b32.xlu0 %v8461_v61, %s7101_s30 }
 0x9c5   : > { %v4445_v25 = vsel %vm4444_vm4, %v7022_v53, %v4441_v26 }
 0x9c6   : > { %v4450_v10 = vsel %vm4447_vm8, %v4449_v56, %v4445_v25 }
 0x9c7   : > { %v4451_v38 = vmul.f32 %v4450_v10, %v440_v31 }
 0x9c9   : > { %4454 = vperm.xlu2 %6973, %v4451_v38   ;;  %v4555_v38 = vsel %vm2407_vm15, %v9132_v39, %v9137_v45 }
 0x9cc   : > { %5180 = vrot.lane.b32.xlu0 %v7494_v4, %s7102_s12 }
 0x9d1   : > { %4958 = vrot.lane.b32.xlu2 %v8419_v50, %s7101_s30 }
 0x9d9   : > { %4783 = vrot.lane.b32.xlu2 %v7107_v55, %s7098_s25 }
 0x9e1   : > { %5178 = vrot.lane.b32.xlu2 %v7501_v34, %s7102_s12 }
 0xa23   : > { %v4455_v62 = vpop.permute.xlu2 %4454 }
 0xa24   : > { %v4458_v43 = vmul.f32 %v4455_v62, %v9090_v9  ;;  %v4459_v29 = vmul.f32 %v4455_v62, %v9092_v57  ;;  %v4460_v52 = vmul.f32 %v4455_v62, %v9094_v5  ;;  %v4457_v24 = vmul.f32 %v4455_v62, %v9088_v19 }
 0xa25   : > { %v4462_v27 = vmul.f32 %v4455_v62, %v9104_v1  ;;  %v4463_v48 = vmul.f32 %v4455_v62, %v9108_v2  ;;  %v4464_v53 = vmul.f32 %v4455_v62, %v9112_v59  ;;  %v4461_v25 = vmul.f32 %v4455_v62, %v9100_v40  ;;  %v9239_v40 = vpop.permute.xlu1 %4962 }
 0xa26   : > { %v4471_v21 = vadd.f32 %v9125_v12, %v4458_v43  ;;  %v9173_v6 = vpop.permute.xlu0 %4597  ;;  %v4473_v17 = vadd.f32 %v9125_v12, %v4460_v52  ;;  %v4472_v60 = vadd.f32 %v9125_v12, %v4459_v29  ;;  %v4470_v1 = vadd.f32 %v9125_v12, %v4457_v24 }
 0xa27   : > { %v4476_v5 = vadd.f32 %v9125_v12, %v4463_v48  ;;  %v4475_v19 = vadd.f32 %v9125_v12, %v4462_v27  ;;  %v4477_v26 = vadd.f32 %v9125_v12, %v4464_v53  ;;  %v4556_v43 = vsel %vm2407_vm15, %v9137_v45, %v9162_v20 }
 0xa28   : > { %vm4481_vm8 = vcmp.ge.f32.partialorder %v4473_v17, 0.0  ;;  %v4489_v9 = vmul.f32 0.01, %v4473_v17  ;;  %vm4479_vm10 = vcmp.ge.f32.partialorder %v4471_v21, 0.0  ;;  %v4487_v57 = vmul.f32 0.01, %v4471_v21 }
 0xa29   : > { %vm4480_vm2 = vcmp.ge.f32.partialorder %v4472_v60, 0.0  ;;  %v4488_v37 = vmul.f32 0.01, %v4472_v60  ;;  %vm4483_vm4 = vcmp.ge.f32.partialorder %v4475_v19, 0.0  ;;  %v4491_v23 = vmul.f32 0.01, %v4475_v19 }
 0xa2a   : > { %v9180_v28 = vsel %vm4481_vm8, %v4473_v17, %v4489_v9  ;;  %v9182_v2 = vsel %vm4479_vm10, %v4471_v21, %v4487_v57  ;;  %vm4484_vm8 = vcmp.ge.f32.partialorder %v4476_v5, 0.0  ;;  %v4492_v13 = vmul.f32 0.01, %v4476_v5 }
 0xa2b   : > { %v9186_v51 = vpack.c.bf16 %v9180_v28, %v9180_v28  ;;  %v9190_v7 = vpack.c.bf16 %v9182_v2, %v9182_v2  ;;  %v9192_v14 = vsel %vm4480_vm2, %v4472_v60, %v4488_v37  ;;  %v4486_v54 = vmul.f32 0.01, %v4470_v1 }
 0xa2c   : > { %v9200_v18 = vpack.c.bf16 %v9192_v14, %v9192_v14  ;;  %vm4478_vm10 = vcmp.ge.f32.partialorder %v4470_v1, 0.0  ;;  %v9209_v49 = vsel %vm4483_vm4, %v4475_v19, %v4491_v23  ;;  %v9211_v0 = vsel %vm4484_vm8, %v4476_v5, %v4492_v13 }
 0xa2d   : > { %4791 = vrot.lane.b32.xlu1 %v9186_v51, %s7098_s25  ;;  %4787 = vrot.lane.b32.xlu2 %v9190_v7, %s7098_s25  ;;  %v9214_v31 = vsel %vm4478_vm10, %v4470_v1, %v4486_v54  ;;  %v9218_v56 = vpack.c.bf16 %v9209_v49, %v9209_v49  ;;  %v9222_v59 = vpack.c.bf16 %v9211_v0, %v9211_v0  ;;  %v4493_v29 = vmul.f32 0.01, %v4477_v26 }
 0xa2e   : > { %v9205_v46 = vpop.permute.xlu0 %4952  ;;  %4789 = vrot.lane.b32.xlu0 %v9200_v18, %s7098_s25  ;;  %v9231_v10 = vpack.c.bf16 %v9214_v31, %v9214_v31  ;;  %vm4485_vm2 = vcmp.ge.f32.partialorder %v4477_v26, 0.0  ;;  %v4572_v24 = vmul.f32 %v4555_v38, %v9192_v14  ;;  %v4573_v27 = vmul.f32 %v4556_v43, %v9180_v28  ;;  %v10652_v38 = vld [vmem:[#allocation16_spill] sm:$0xff] }
 0xa2f   : > { %v4474_v45 = vadd.f32 %v9125_v12, %v4461_v25  ;;  %v9253_v48 = vsel %vm4485_vm2, %v4477_v26, %v4493_v29  ;;  %v4553_v57 = vsel %vm2407_vm15, %v9122_v22, %v9128_v41  ;;  %v4554_v5 = vsel %vm2407_vm15, %v9128_v41, %v9132_v39  ;;  %v10654_v29 = vld [vmem:[#allocation61_spill] sm:$0xff] }
 0xa30   : > { %v4582_v21 = vpack.c.bf16 %v4572_v24, %v4572_v24  ;;  %v4583_v17 = vpack.c.bf16 %v4573_v27, %v4573_v27  ;;  %v9258_v9 = vpack.c.bf16 %v9253_v48, %v9253_v48  ;;  %v4570_v12 = vmul.f32 %v4553_v57, %v9214_v31 }
 0xa31   : > { %v4490_v60 = vmul.f32 0.01, %v4474_v45  ;;  %vm4482_vm4 = vcmp.ge.f32.partialorder %v4474_v45, 0.0  ;;  %v4571_v1 = vmul.f32 %v4554_v5, %v9182_v2  ;;  %v4558_v22 = vsel %vm2407_vm15, %v9143_v42, %v9147_v8 }
 0xa32   : > { %v4580_v37 = vpack.c.bf16 %v4570_v12, %v4570_v12  ;;  %v4577_v41 = vmul.f32 %v9151_v16, %v9253_v48  ;;  %v4575_v39 = vmul.f32 %v4558_v22, %v9209_v49  ;;  %v4576_v26 = vmul.f32 %v9156_v35, %v9211_v0  ;;  %v10653_v16 = vld [vmem:[#allocation62_spill] sm:$0xff] }
 0xa33   : > { %v9270_v19 = vsel %vm4482_vm4, %v4474_v45, %v4490_v60  ;;  %v4581_v53 = vpack.c.bf16 %v4571_v1, %v4571_v1  ;;  %v4980_v8 = vmul.f32 0.0, %v9202_v15  ;;  %v4557_v35 = vsel %vm2407_vm15, %v9162_v20, %v9143_v42  ;;  %v4959_v45 = vpop.permute.xlu2 %4958  ;;  %v10656_v60 = vld [vmem:[#allocation66_spill] sm:$0xff] }
 0xa34   : > { %v9275_v23 = vpack.c.bf16 %v9270_v19, %v9270_v19  ;;  %v4587_v13 = vpack.c.bf16 %v4577_v41, %v4577_v41  ;;  %v4585_v54 = vpack.c.bf16 %v4575_v39, %v4575_v39  ;;  %v4586_v25 = vpack.c.bf16 %v4576_v26, %v4576_v26  ;;  %v9345_v39 = vpop.permute.xlu1 %5176 }
 0xa35   : > { %4795 = vrot.lane.b32.xlu1 %v9218_v56, %s7098_s25  ;;  %4797 = vrot.lane.b32.xlu2 %v9222_v59, %s7098_s25  ;;  %v4991_v43 = vpack.c.bf16 %v4980_v8, %v4980_v8  ;;  %v4574_v24 = vmul.f32 %v4557_v35, %v9270_v19  ;;  %v4964_v12 = vsel %vm2889_vm3, %v9202_v15, %v9158_v47  ;;  %vm4623_vm8 = vcmask 64512  }
 0xa36   : > { %v9241_v62 = vpop.permute.xlu0 %4960  ;;  %4785 = vrot.lane.b32.xlu0 %v9231_v10, %s7098_s25  ;;  %v4981_v1 = vmul.f32 %v4964_v12, %v9214_v31  ;;  %v4967_v15 = vsel %vm2889_vm3, %v9164_v30, %v9160_v36  ;;  %vm10665_vm10 = vcmask 1047559  }
 0xa37   : > { %v9248_v52 = vsel %vm2889_vm3, %v9241_v62, %v9239_v40  ;;  %v4584_v27 = vpack.c.bf16 %v4574_v24, %v4574_v24  ;;  %v4984_v22 = vmul.f32 %v4967_v15, %v9180_v28 }
 0xa3b   : > { %v9318_v42 = vpop.permute.xlu2 %4783 }
 0xa3c   : > { %v9358_v8 = vpop.permute.xlu1 %5182 }
 0xa3d   : > { %4603 = vrot.lane.b32.xlu1 %v4582_v21, %s7100_s24  ;;  %4605 = vrot.lane.b32.xlu2 %v4583_v17, %s7100_s24  ;;  %v10655_v21 = vld [vmem:[#allocation64_spill] sm:$0xff]  ;;  %v4966_v17 = vsel %vm2889_vm3, %v9205_v46, %v9164_v30  ;;  %v4969_v30 = vsel %vm2889_vm3, %v4959_v45, %v9241_v62 }
 0xa3e   : > { %4799 = vrot.lane.b32.xlu0 %v9258_v9, %s7098_s25  ;;  %v4983_v20 = vmul.f32 %v4966_v17, %v9192_v14 }
 0xa40   : > { %v4994_v57 = vpack.c.bf16 %v4983_v20, %v4983_v20 }
 0xa43   : > { %v9329_v5 = vpop.permute.xlu2 %5178 }
 0xa45   : > { %4599 = vrot.lane.b32.xlu1 %v4580_v37, %s7100_s24  ;;  %4793 = vrot.lane.b32.xlu2 %v9275_v23, %s7098_s25  ;;  %v4988_v37 = vmul.f32 %v9239_v40, %v9253_v48 }
 0xa46   : > { %4601 = vrot.lane.b32.xlu0 %v4581_v53, %s7100_s24 }
 0xa47   : > { %v4999_v41 = vpack.c.bf16 %v4988_v37, %v4988_v37 }
 0xa4d   : > { %4613 = vrot.lane.b32.xlu1 %v4587_v13, %s7100_s24  ;;  %4609 = vrot.lane.b32.xlu2 %v4585_v54, %s7100_s24  ;;  %v4995_v13 = vpack.c.bf16 %v4984_v22, %v4984_v22  ;;  %v5181_v54 = vpop.permute.xlu0 %5180 }
 0xa4e   : > { %5174 = vrot.lane.b32.xlu0 %v10651_v44, %s7102_s12 }
 0xa55   : > { %5184 = vrot.lane.b32.xlu1 %v10652_v38, %s7102_s12  ;;  %5186 = vrot.lane.b32.xlu2 %v10653_v16, %s7102_s12 }
 0xa56   : > { %4611 = vrot.lane.b32.xlu0 %v4586_v25, %s7100_s24 }
 0xa5d   : > { %5547 = vrot.lane.b32.xlu2 %v8400_v63, %s7104_s27  ;;  %5009 = vrot.lane.b32.xlu1 %v4991_v43, %s7103_s26  ;;  %v4986_v43 = vmul.f32 %v4969_v30, %v9209_v49 }
 0xa5e   : > { %5188 = vrot.lane.b32.xlu0 %v10654_v29, %s7102_s12 }
 0xa5f   : > { %v4997_v24 = vpack.c.bf16 %v4986_v43, %v4986_v43 }
 0xa65   : > { %5541 = vrot.lane.b32.xlu2 %v8364_v58, %s7104_s27 }
 0xa66   : > { %4607 = vrot.lane.b32.xlu0 %v4584_v27, %s7100_s24 }
 0xa6d   : > { %5555 = vrot.lane.b32.xlu2 %v8448_v32, %s7104_s27 }
 0xa6e   : > { %5543 = vrot.lane.b32.xlu0 %v10655_v21, %s7104_s27 }
 0xa75   : > { %5775 = vrot.lane.b32.xlu2 %v7494_v4, %s7103_s26  ;;  %v4992_v4 = vpack.c.bf16 %v4981_v1, %v4981_v1 }
 0xa76   : > { %5549 = vrot.lane.b32.xlu0 %v10656_v60, %s7104_s27 }
 0xa7d   : > { %5015 = vrot.lane.b32.xlu2 %v4994_v57, %s7103_s26  ;;  %v5193_v57 = vsel %vm3136_vm14, %v5181_v54, %v9358_v8 }
 0xa7e   : > { %5551 = vrot.lane.b32.xlu0 %v8419_v50, %s7104_s27 }
 0xa85   : > { %5011 = vrot.lane.b32.xlu2 %v4992_v4, %s7103_s26 }
 0xa86   : > { %5771 = vrot.lane.b32.xlu0 %v7487_v3, %s7103_s26  ;;  %v5192_v3 = vsel %vm3136_vm14, %v9329_v5, %v5181_v54  ;;  %v9393_v54 = vld [vmem:[%s10514_s7] sm:$0x3] }
 0xa87   : > { %v9339_v53 = vpop.permute.xlu2 %4787  ;;  %v5209_v26 = vmul.f32 %v5192_v3, %v9192_v14 }
 0xa89   : > { %v5220_v35 = vpack.c.bf16 %v5209_v26, %v5209_v26 }
 0xa8d   : > { %5025 = vrot.lane.b32.xlu2 %v4999_v41, %s7103_s26 }
 0xa8e   : > { %5017 = vrot.lane.b32.xlu0 %v4995_v13, %s7103_s26 }
 0xa8f   : > { %v9349_v40 = vpop.permute.xlu2 %4797 }
 0xa95   : > { %5779 = vrot.lane.b32.xlu2 %v10652_v38, %s7103_s26  ;;  %v4968_v38 = vsel %vm2889_vm3, %v9160_v36, %v4959_v45  ;;  %v5210_v36 = vmul.f32 %v5193_v57, %v9180_v28 }
 0xa96   : > { %5777 = vrot.lane.b32.xlu0 %v10650_v33, %s7103_s26  ;;  %v4985_v17 = vmul.f32 %v4968_v38, %v9270_v19 }
 0xa97   : > { %v9362_v25 = vpop.permute.xlu2 %4605  ;;  %v5221_v4 = vpack.c.bf16 %v5210_v36, %v5210_v36 }
 0xa98   : > { %v4996_v20 = vpack.c.bf16 %v4985_v17, %v4985_v17 }
 0xa9d   : > { %5241 = vrot.lane.b32.xlu2 %v5220_v35, %s7104_s27 }
 0xa9e   : > { %5021 = vrot.lane.b32.xlu0 %v4997_v24, %s7103_s26 }
 0xa9f   : > { %v9369_v62 = vpop.permute.xlu2 %4793  ;;  %v9371_v27 = vpop.permute.xlu1 %4791 }
 0xaa0   : > { %v4790_v33 = vpop.permute.xlu0 %4789 }
 0xaa6   : > { %5019 = vrot.lane.b32.xlu0 %v4996_v20, %s7103_s26 }
 0xaa7   : > { %v9377_v12 = vpop.permute.xlu2 %4609  ;;  %v9379_v1 = vpop.permute.xlu1 %4795 }
 0xaa8   : > { %v9382_v45 = vpop.permute.xlu0 %4785 }
 0xaae   : > { %5243 = vrot.lane.b32.xlu0 %v5221_v4, %s7104_s27 }
 0xaaf   : > { %v9385_v37 = vpop.permute.xlu2 %5186  ;;  %v4604_v15 = vpop.permute.xlu1 %4603 }
 0xab0   : > { %v4618_v22 = vsel %vm2493_vm1, %v4604_v15, %v9362_v25  ;;  %v4800_v41 = vpop.permute.xlu0 %4799 }
 0xab1   : > { %v4637_v13 = vsel %vm2390_vm0, %v4618_v22, 0 }
 0xab2   : > { %4697 = vmatpush.bf16.msrb.mxu3 %v4637_v13 }
 0xab5   : > { %6822 = vmatmul.msk.bf16.vlgmr.msrb.gmra.mxu3 %vm4623_vm8, %v9393_v54 }
 0xab6   : > { %5781 = vrot.lane.b32.xlu0 %v10653_v16, %s7103_s26 }
 0xab7   : > { %v9399_v3 = vpop.permute.xlu2 %5547  ;;  %v4600_v30 = vpop.permute.xlu1 %4599 }
 0xab8   : > { %v4615_v26 = vsel %vm2493_vm1, %v9173_v6, %v4600_v30  ;;  %v4602_v43 = vpop.permute.xlu0 %4601 }
 0xab9   : > { %v4628_v35 = vsel %vm2390_vm0, %v4615_v26, 0  ;;  %v4617_v24 = vsel %vm2493_vm1, %v4602_v43, %v4604_v15  ;;  %v4616_v38 = vsel %vm2493_vm1, %v4600_v30, %v4602_v43  ;;  %v4803_v43 = vsel %vm2712_vm11, %v9339_v53, %v4790_v33 }
 0xaba   : > { %4658 = vmatpush.bf16.msra.mxu0 %v4628_v35  ;;  %v4634_v17 = vsel %vm2390_vm0, %v4617_v24, 0  ;;  %v4631_v20 = vsel %vm2390_vm0, %v4616_v38, 0  ;;  %v4804_v35 = vsel %vm2712_vm11, %v4790_v33, %v9371_v27  ;;  %v4807_v33 = vsel %vm2712_vm11, %v9379_v1, %v9349_v40 }
 0xabb   : > { %4671 = vmatpush.bf16.msrb.mxu1 %v4631_v20  ;;  %4684 = vmatpush.bf16.msra.mxu2 %v4634_v17 }
 0xabd   : > { %6819 = vmatmul.msk.bf16.vlgmr.msra.gmra.mxu0 %vm4623_vm8, %v9393_v54 }
 0xabe   : > { %6821 = vmatmul.msk.bf16.vlgmr.msra.gmra.mxu2 %vm4623_vm8, %v9393_v54  ;;  %6820 = vmatmul.msk.bf16.vlgmr.msrb.gmra.mxu1 %vm4623_vm8, %v9393_v54 }
 0xabf   : > { %v4614_v6 = vpop.permute.xlu1 %4613  ;;  %v9414_v57 = vpop.permute.xlu2 %5541 }
 0xac0   : > { %v5175_v16 = vpop.permute.xlu0 %5174 }
 0xac1   : > { %v5190_v36 = vsel %vm3136_vm14, %v5175_v16, %v9345_v39  ;;  %v5206_v4 = vmul.f32 0.0, %v5175_v16 }
 0xac2   : > { %v5207_v15 = vmul.f32 %v5190_v36, %v9214_v31 }
 0xac3   : > { %v5217_v22 = vpack.c.bf16 %v5206_v4, %v5206_v4 }
 0xac4   : > { %v5218_v13 = vpack.c.bf16 %v5207_v15, %v5207_v15 }
 0xac5   : > { %5235 = vrot.lane.b32.xlu1 %v5217_v22, %s7104_s27  ;;  %v4819_v22 = vsel %vm2390_vm0, %v4803_v43, 0 }
 0xac6   : > { %5237 = vrot.lane.b32.xlu2 %v5218_v13, %s7104_s27  ;;  %v4822_v13 = vsel %vm2390_vm0, %v4804_v35, 0 }
 0xac7   : > { %v9421_v30 = vpop.permute.xlu1 %5184  ;;  %v9436_v4 = vpop.permute.xlu2 %5555 }
 0xac8   : > { %v5195_v26 = vsel %vm3136_vm14, %v9421_v30, %v9385_v37  ;;  %v4612_v24 = vpop.permute.xlu0 %4611  ;;  %v5582_v35 = vmul.f32 0.0, %v9436_v4 }
 0xac9   : > { %v5212_v38 = vmul.f32 %v5195_v26, %v9209_v49  ;;  %v4621_v17 = vsel %vm2493_vm1, %v9377_v12, %v4612_v24  ;;  %v4622_v20 = vsel %vm2493_vm1, %v4612_v24, %v4614_v6  ;;  %v4808_v26 = vsel %vm2712_vm11, %v9349_v40, %v4800_v41 }
 0xaca   : > { %v4646_v16 = vsel %vm2390_vm0, %v4621_v17, 0  ;;  %v4649_v36 = vsel %vm2390_vm0, %v4622_v20, 0  ;;  %v4831_v6 = vsel %vm2390_vm0, %v4807_v33, 0  ;;  %v4834_v43 = vsel %vm2390_vm0, %v4808_v26, 0 }
 0xacb   : > { %v5223_v15 = vpack.c.bf16 %v5212_v38, %v5212_v38  ;;  %4736 = vmatpush.bf16.msrb.mxu2 %v4646_v16  ;;  %4749 = vmatpush.bf16.msra.mxu3 %v4649_v36  ;;  %v5593_v24 = vpack.c.bf16 %v5582_v35, %v5582_v35  ;;  %v4965_v38 = vsel %vm2889_vm3, %v9158_v47, %v9205_v46 }
 0xacc   : > { %v4982_v16 = vmul.f32 %v4965_v38, %v9182_v2  ;;  %v4801_v36 = vsel %vm2712_vm11, %v9318_v42, %v9382_v45  ;;  %v4802_v47 = vsel %vm2712_vm11, %v9382_v45, %v9339_v53  ;;  %v4805_v42 = vsel %vm2712_vm11, %v9371_v27, %v9369_v62 }
 0xacd   : > { %5545 = vrot.lane.b32.xlu1 %v8405_v11, %s7104_s27  ;;  %5247 = vrot.lane.b32.xlu0 %v5223_v15, %s7104_s27  ;;  %v4816_v53 = vsel %vm2390_vm0, %v4802_v47, 0  ;;  %v5191_v38 = vsel %vm3136_vm14, %v9345_v39, %v9329_v5 }
 0xace   : > { %6825 = vmatmul.msk.bf16.vlgmr.msrb.gmra.mxu2 %vm4623_vm8, %v9393_v54  ;;  %6826 = vmatmul.msk.bf16.vlgmr.msra.gmra.mxu3 %vm4623_vm8, %v9393_v54 }
 0xacf   : > { %4869 = vmatpush.bf16.msra.mxu2 %v4819_v22  ;;  %4882 = vmatpush.bf16.msrb.mxu3 %v4822_v13  ;;  %v9462_v20 = vpop.permute.xlu2 %5775  ;;  %v4993_v13 = vpack.c.bf16 %v4982_v16, %v4982_v16 }
 0xad0   : > { %v9455_v40 = vpop.permute.xlu0 %5188 }
 0xad1   : > { %v5214_v41 = vmul.f32 %v9455_v40, %v9253_v48 }
 0xad3   : > { %4921 = vmatpush.bf16.msrb.mxu2 %v4831_v6  ;;  %4934 = vmatpush.bf16.msra.mxu3 %v4834_v43  ;;  %v5225_v17 = vpack.c.bf16 %v5214_v41, %v5214_v41  ;;  %v4813_v6 = vsel %vm2390_vm0, %v4801_v36, 0 }
 0xad5   : > { %5553 = vrot.lane.b32.xlu1 %v8461_v61, %s7104_s27  ;;  %5251 = vrot.lane.b32.xlu2 %v5225_v17, %s7104_s27 }
 0xad6   : > { %5619 = vrot.lane.b32.xlu0 %v5593_v24, %s7102_s12 }
 0xad7   : > { %v9494_v45 = vpop.permute.xlu2 %5015 }
 0xad8   : > { %v4608_v46 = vpop.permute.xlu0 %4607 }
 0xad9   : > { %v4619_v15 = vsel %vm2493_vm1, %v9362_v25, %v4608_v46  ;;  %v4620_v22 = vsel %vm2493_vm1, %v4608_v46, %v9377_v12  ;;  %v4806_v25 = vsel %vm2712_vm11, %v9369_v62, %v9379_v1  ;;  %v4825_v12 = vsel %vm2390_vm0, %v4805_v42, 0  ;;  %v6827_v62 = vld [vmem:[%s10514_s7 + $0x2] sm:$0x3] }
 0xada   : > { %v4640_v33 = vsel %vm2390_vm0, %v4619_v15, 0  ;;  %v4643_v26 = vsel %vm2390_vm0, %v4620_v22, 0  ;;  %v4828_v27 = vsel %vm2390_vm0, %v4806_v25, 0  ;;  %vm10663_vm11 = vcmask 1043459  }
 0xadb   : > { %4710 = vmatpush.bf16.msrb.mxu0 %v4640_v33  ;;  %4723 = vmatpush.bf16.msra.mxu1 %v4643_v26  ;;  %v5194_v26 = vsel %vm3136_vm14, %v9358_v8, %v9421_v30  ;;  %vm10668_vm2 = vmmov %vm10663_vm11 }
 0xadc   : > { %vm10669_vm4 = vmmov %vm10668_vm2 }
 0xadd   : > { %5013 = vrot.lane.b32.xlu1 %v4993_v13, %s7103_s26  ;;  %6171 = vrot.lane.b32.xlu2 %v8405_v11, %s7100_s24  ;;  %v4987_v11 = vmul.f32 %v9248_v52, %v9211_v0 }
 0xade   : > { %6823 = vmatmul.msk.bf16.vlgmr.msrb.gmra.mxu0 %vm4623_vm8, %v9393_v54  ;;  %6824 = vmatmul.msk.bf16.vlgmr.msra.gmra.mxu1 %vm4623_vm8, %v9393_v54  ;;  %v5010_v54 = vpop.permute.xlu1 %5009 }
 0xadf   : > { %4843 = vmatpush.bf16.msra.mxu0 %v4813_v6  ;;  %4856 = vmatpush.bf16.msrb.mxu1 %v4816_v53  ;;  %v9513_v43 = vpop.permute.xlu2 %5011  ;;  %v4998_v41 = vpack.c.bf16 %v4987_v11, %v4987_v11  ;;  %v9569_v53 = vld [vmem:[%s10514_s7 + $0x4] sm:$0x3] }
 0xae0   : > { %v9503_v1 = vpop.permute.xlu0 %5543  ;;  %6831 = vmatmul.msk.bf16.vlgmr.msrb.gmra.mxu3 %vm4623_vm8, %v6827_v62  ;;  %6830 = vmatmul.msk.bf16.vlgmr.msra.gmra.mxu2 %vm4623_vm8, %v6827_v62  ;;  %v5027_v24 = vsel %vm2976_vm13, %v5010_v54, %v9513_v43 }
 0xae3   : > { %4895 = vmatpush.bf16.msrb.mxu0 %v4825_v12  ;;  %4908 = vmatpush.bf16.msra.mxu1 %v4828_v27 }
 0xae5   : > { %5773 = vrot.lane.b32.xlu1 %v7501_v34, %s7103_s26  ;;  %6007 = vrot.lane.b32.xlu2 %v9186_v51, %s7097_s29  ;;  %v5039_v34 = vsel %vm2390_vm0, %v5027_v24, 0 }
 0xae7   : > { %v9538_v36 = vpop.permute.xlu2 %5025 }
 0xae8   : > { %v9515_v35 = vpop.permute.xlu0 %5549 }
 0xae9   : > { %v5561_v30 = vsel %vm3223_vm12, %v9399_v3, %v9515_v35 }
 0xaed   : > { %5023 = vrot.lane.b32.xlu1 %v4998_v41, %s7103_s26  ;;  %6179 = vrot.lane.b32.xlu2 %v8461_v61, %s7100_s24  ;;  %v5208_v61 = vmul.f32 %v5191_v38, %v9182_v2 }
 0xaee   : > { %6828 = vmatmul.msk.bf16.vlgmr.msra.gmra.mxu0 %vm4623_vm8, %v6827_v62  ;;  %6829 = vmatmul.msk.bf16.vlgmr.msrb.gmra.mxu1 %vm4623_vm8, %v6827_v62 }
 0xaef   : > { %5069 = vmatpush.bf16.msra.mxu0 %v5039_v34  ;;  %v5219_v16 = vpack.c.bf16 %v5208_v61, %v5208_v61  ;;  %v9551_v15 = vpop.permute.xlu2 %5779  ;;  %v5574_v34 = vmul.f32 %v9414_v57, %v9214_v31 }
 0xaf0   : > { %v9525_v52 = vpop.permute.xlu0 %5551  ;;  %6834 = vmatmul.msk.bf16.vlgmr.msrb.gmra.mxu2 %vm4623_vm8, %v6827_v62  ;;  %6835 = vmatmul.msk.bf16.vlgmr.msra.gmra.mxu3 %vm4623_vm8, %v6827_v62 }
 0xaf5   : > { %5769 = vrot.lane.b32.xlu1 %v10651_v44, %s7103_s26  ;;  %v5196_v44 = vsel %vm3136_vm14, %v9385_v37, %v9455_v40  ;;  %v5211_v37 = vmul.f32 %v5194_v26, %v9270_v19 }
 0xaf6   : > { %v5213_v46 = vmul.f32 %v5196_v44, %v9211_v0 }
 0xaf7   : > { %v9584_v8 = vpop.permute.xlu2 %5241 }
 0xaf8   : > { %v9535_v17 = vpop.permute.xlu0 %5771  ;;  %v5224_v33 = vpack.c.bf16 %v5213_v46, %v5213_v46 }
 0xafd   : > { %5239 = vrot.lane.b32.xlu1 %v5219_v16, %s7104_s27 }
 0xafe   : > { %6832 = vmatmul.msk.bf16.vlgmr.msrb.gmra.mxu0 %vm4623_vm8, %v6827_v62  ;;  %6833 = vmatmul.msk.bf16.vlgmr.msra.gmra.mxu1 %vm4623_vm8, %v6827_v62 }
 0xb00   : > { %v5018_v47 = vpop.permute.xlu0 %5017 }
 0xb01   : > { %v5030_v5 = vsel %vm2976_vm13, %v9494_v45, %v5018_v47 }
 0xb02   : > { %v5048_v39 = vsel %vm2390_vm0, %v5030_v5, 0 }
 0xb03   : > { %5108 = vmatpush.bf16.msrb.mxu3 %v5048_v39  ;;  %v5562_v39 = vsel %vm3223_vm12, %v9515_v35, %v9525_v52 }
 0xb04   : > { %v5579_v44 = vmul.f32 %v5562_v39, %v9209_v49 }
 0xb05   : > { %5783 = vrot.lane.b32.xlu1 %v10654_v29, %s7103_s26  ;;  %v5222_v29 = vpack.c.bf16 %v5211_v37, %v5211_v37 }
 0xb06   : > { %6840 = vmatmul.msk.bf16.vlgmr.msrb.gmra.mxu3 %vm4623_vm8, %v9569_v53 }
 0xb08   : > { %v5778_v22 = vpop.permute.xlu0 %5777 }
 0xb09   : > { %v9555_v13 = vsel %vm2976_vm13, %v5778_v22, %v9551_v15 }
 0xb0d   : > { %5249 = vrot.lane.b32.xlu1 %v5224_v33, %s7104_s27 }
 0xb0e   : > { %6837 = vmatmul.msk.bf16.vlgmr.msra.gmra.mxu0 %vm4623_vm8, %v9569_v53 }
 0xb10   : > { %v9562_v40 = vpop.permute.xlu0 %5021 }
 0xb15   : > { %5245 = vrot.lane.b32.xlu1 %v5222_v29, %s7104_s27 }
 0xb18   : > { %v5020_v42 = vpop.permute.xlu0 %5019 }
 0xb19   : > { %v5031_v6 = vsel %vm2976_vm13, %v5018_v47, %v5020_v42  ;;  %v5585_v47 = vpack.c.bf16 %v5574_v34, %v5574_v34  ;;  %v5032_v46 = vsel %vm2976_vm13, %v5020_v42, %v9562_v40  ;;  %v5789_v42 = vsel %vm2976_vm13, %v9462_v20, %v5778_v22 }
 0xb1a   : > { %v5051_v25 = vsel %vm2390_vm0, %v5031_v6, 0  ;;  %v5590_v6 = vpack.c.bf16 %v5579_v44, %v5579_v44 }
 0xb1b   : > { %5121 = vmatpush.bf16.msrb.mxu0 %v5051_v25 }
 0xb1d   : > { %6169 = vrot.lane.b32.xlu1 %v10655_v21, %s7100_s24  ;;  %v5578_v21 = vmul.f32 %v5561_v30, %v9270_v19 }
 0xb1e   : > { %6841 = vmatmul.msk.bf16.vlgmr.msrb.gmra.mxu0 %vm4623_vm8, %v9569_v53 }
 0xb1f   : > { %v5589_v11 = vpack.c.bf16 %v5578_v21, %v5578_v21 }
 0xb20   : > { %v9592_v12 = vpop.permute.xlu2 %5237  ;;  %v9644_v22 = vpop.permute.xlu0 %5243 }
 0xb25   : > { %6175 = vrot.lane.b32.xlu1 %v10656_v60, %s7100_s24 }
 0xb28   : > { %v9664_v34 = vpop.permute.xlu0 %5781 }
 0xb2d   : > { %6005 = vrot.lane.b32.xlu1 %v9200_v18, %s7097_s29 }
 0xb35   : > { %6177 = vrot.lane.b32.xlu1 %v8419_v50, %s7100_s24 }
 0xb37   : > { %v5236_v60 = vpop.permute.xlu1 %5235 }
 0xb38   : > { %v5253_v27 = vsel %vm3223_vm12, %v5236_v60, %v9592_v12 }
 0xb39   : > { %v5265_v62 = vsel %vm2390_vm0, %v5253_v27, 0 }
 0xb3a   : > { %5295 = vmatpush.bf16.msra.mxu0 %v5265_v62  ;;  %v5256_v62 = vsel %vm3223_vm12, %v9584_v8, %v9644_v22 }
 0xb3d   : > { %5611 = vrot.lane.b32.xlu1 %v5589_v11, %s7102_s12 }
 0xb3f   : > { %v9598_v54 = vpop.permute.xlu1 %5545 }
 0xb40   : > { %v5559_v50 = vsel %vm3223_vm12, %v9503_v1, %v9598_v54 }
 0xb41   : > { %v5576_v41 = vmul.f32 %v5559_v50, %v9192_v14 }
 0xb43   : > { %v5587_v24 = vpack.c.bf16 %v5576_v41, %v5576_v41 }
 0xb45   : > { %6001 = vrot.lane.b32.xlu1 %v9231_v10, %s7097_s29  ;;  %5607 = vrot.lane.b32.xlu2 %v5587_v24, %s7102_s12 }
 0xb47   : > { %v5554_v38 = vpop.permute.xlu1 %5553 }
 0xb48   : > { %v5563_v61 = vsel %vm3223_vm12, %v9525_v52, %v5554_v38  ;;  %v5054_v52 = vsel %vm2390_vm0, %v5032_v46, 0  ;;  %v5564_v25 = vsel %vm3223_vm12, %v5554_v38, %v9436_v4 }
 0xb49   : > { %v5580_v16 = vmul.f32 %v5563_v61, %v9211_v0  ;;  %v5581_v4 = vmul.f32 %v5564_v25, %v9253_v48 }
 0xb4b   : > { %v5591_v5 = vpack.c.bf16 %v5580_v16, %v5580_v16  ;;  %v5592_v60 = vpack.c.bf16 %v5581_v4, %v5581_v4  ;;  %v5274_v16 = vsel %vm2390_vm0, %v5256_v62, 0  ;;  %v10662_v4 = vld [vmem:[#allocation50_spill] sm:$0xff] }
 0xb4d   : > { %5603 = vrot.lane.b32.xlu2 %v5585_v47, %s7102_s12  ;;  %5615 = vrot.lane.b32.xlu1 %v5591_v5, %s7102_s12  ;;  %v5791_v5 = vsel %vm2976_vm13, %v9551_v15, %v9664_v34  ;;  %v10658_v15 = vld [vmem:[#allocation14_spill] sm:$0xff] }
 0xb4e   : > { %v5808_v39 = vmul.f32 %v5791_v5, %v9211_v0 }
 0xb4f   : > { %v5014_v33 = vpop.permute.xlu1 %5013 }
 0xb50   : > { %v5028_v26 = vsel %vm2976_vm13, %v9513_v43, %v5014_v33  ;;  %v5029_v37 = vsel %vm2976_vm13, %v5014_v33, %v9494_v45  ;;  %v9641_v45 = vld [vmem:[%s10514_s7 + $0x6] sm:$0x3]  ;;  %v5806_v43 = vmul.f32 %v5789_v42, %v9270_v19  ;;  %v10659_v33 = vld [vmem:[#allocation46_spill] sm:$0xff] }
 0xb51   : > { %v5042_v29 = vsel %vm2390_vm0, %v5028_v26, 0  ;;  %v5045_v35 = vsel %vm2390_vm0, %v5029_v37, 0  ;;  %6846 = vmatmul.msk.bf16.vlgmr.msra.gmra.mxu0 %vm4623_vm8, %v9641_v45  ;;  %v1647_v26 = vrot.slane %v10659_v33, 7  ;;  %v5819_v37 = vpack.c.bf16 %v5808_v39, %v5808_v39  ;;  %v10667_v33 = vld [vmem:[#allocation25_spill] sm:$0xff] }
 0xb52   : > { %5082 = vmatpush.bf16.msrb.mxu1 %v5042_v29  ;;  %5095 = vmatpush.bf16.msra.mxu2 %v5045_v35  ;;  %v5817_v21 = vpack.c.bf16 %v5806_v43, %v5806_v43  ;;  %v10660_v29 = vld [vmem:[#allocation22_spill] sm:$0xff] }
 0xb53   : > { %v1548_v35 = vrot.slane %v10660_v29, 3  ;;  %v1522_v25 = vrot.slane %v10660_v29, 2 }
 0xb55   : > { %6003 = vrot.lane.b32.xlu2 %v9190_v7, %s7097_s29  ;;  %5613 = vrot.lane.b32.xlu1 %v5590_v6, %s7102_s12 }
 0xb56   : > { %5134 = vmatpush.bf16.msra.mxu1 %v5054_v52  ;;  %6839 = vmatmul.msk.bf16.vlgmr.msra.gmra.mxu2 %vm4623_vm8, %v9569_v53  ;;  %v10661_v52 = vld [vmem:[#allocation13_spill] sm:$0xff] }
 0xb57   : > { %6838 = vmatmul.msk.bf16.vlgmr.msrb.gmra.mxu1 %vm4623_vm8, %v9569_v53  ;;  %v9647_v30 = vpop.permute.xlu1 %5773  ;;  %v1549_v6 = vrot.slane %v10661_v52, 2  ;;  %v1523_v43 = vrot.slane %v10661_v52, 1 }
 0xb58   : > { %v5787_v27 = vsel %vm2976_vm13, %v9535_v17, %v9647_v30 }
 0xb59   : > { %v5804_v11 = vmul.f32 %v5787_v27, %v9192_v14  ;;  %v1550_v62 = vsel %vm1144_vm5, %v1549_v6, %v1548_v35 }
 0xb5b   : > { %v5815_v47 = vpack.c.bf16 %v5804_v11, %v5804_v11 }
 0xb5d   : > { %5617 = vrot.lane.b32.xlu2 %v5592_v60, %s7102_s12  ;;  %5839 = vrot.lane.b32.xlu1 %v5817_v21, %s7101_s30  ;;  %v1650_v21 = vrot.slane %v10662_v4, 6 }
 0xb5f   : > { %v5024_v50 = vpop.permute.xlu1 %5023 }
 0xb60   : > { %v5033_v41 = vsel %vm2976_vm13, %v9562_v40, %v5024_v50  ;;  %v5034_v24 = vsel %vm2976_vm13, %v5024_v50, %v9538_v36  ;;  %v10657_v36 = vld [vmem:[#allocation44_spill] sm:$0xff] }
 0xb61   : > { %v5057_v38 = vsel %vm2390_vm0, %v5033_v41, 0  ;;  %v5060_v61 = vsel %vm2390_vm0, %v5034_v24, 0  ;;  %v1644_v40 = vrot.slane %v10657_v36, 1  ;;  %v1551_v36 = vsel %vm1146_vm6, %v1549_v6, %v1550_v62 }
 0xb62   : > { %5147 = vmatpush.bf16.msrb.mxu2 %v5057_v38  ;;  %5160 = vmatpush.bf16.msra.mxu3 %v5060_v61 }
 0xb63   : > { %v1645_v46 = vsel %vm1144_vm5, %v10658_v15, %v1644_v40 }
 0xb64   : > { %v1646_v42 = vsel %vm1146_vm6, %v10658_v15, %v1645_v46  ;;  %v10666_v15 = vld [vmem:[#allocation34_spill] sm:$0xff] }
 0xb65   : > { %6015 = vrot.lane.b32.xlu1 %v9258_v9, %s7097_s29  ;;  %5835 = vrot.lane.b32.xlu2 %v5815_v47, %s7101_s30  ;;  %v1528_v46 = vrot.slane %v10666_v15, 7 }
 0xb66   : > { %5334 = vmatpush.bf16.msrb.mxu3 %v5274_v16  ;;  %6843 = vmatmul.msk.bf16.vlgmr.msrb.gmra.mxu2 %vm4623_vm8, %v9569_v53  ;;  %v10664_v16 = vld [vmem:[#allocation27_spill] sm:$0xff] }
 0xb67   : > { %6844 = vmatmul.msk.bf16.vlgmr.msra.gmra.mxu3 %vm4623_vm8, %v9569_v53  ;;  %v9681_v44 = vpop.permute.xlu1 %5769  ;;  %6842 = vmatmul.msk.bf16.vlgmr.msra.gmra.mxu1 %vm4623_vm8, %v9569_v53  ;;  %v1648_v53 = vsel %vm1149_vm7, %v1647_v26, %v1646_v42  ;;  %v1552_v47 = vrot.slane %v10664_v16, 1 }
 0xb68   : > { %v5802_v60 = vmul.f32 %v9681_v44, %v9214_v31  ;;  %v1649_v41 = vsel %vm1151_vm9, %v1647_v26, %v1648_v53  ;;  %v1340_v26 = vrot.slane %v10667_v33, 1  ;;  %v10670_v53 = vld [vmem:[#allocation10_spill] sm:$0xff]  ;;  %v5412_v33 = vsel %vm2390_vm0, %v9200_v18, 0 }
 0xb69   : > { %v1651_v61 = vsel %vm10663_vm11, %v1650_v21, %v1649_v41  ;;  %v1553_v40 = vsel %vm1149_vm7, %v1552_v47, %v1551_v36  ;;  %vm10672_vm11 = vmmov %vm10665_vm10  ;;  %v5807_v18 = vmul.f32 %v9555_v13, %v9209_v49 }
 0xb6a   : > { %v5813_v5 = vpack.c.bf16 %v5802_v60, %v5802_v60  ;;  %v1554_v6 = vsel %vm1151_vm9, %v1552_v47, %v1553_v40  ;;  %v1341_v4 = vsel %vm1144_vm5, %v10670_v53, %v1340_v26  ;;  %v5415_v26 = vsel %vm2390_vm0, %v9186_v51, 0 }
 0xb6b   : > { %v1342_v41 = vsel %vm1146_vm6, %v10670_v53, %v1341_v4  ;;  %v5424_v51 = vsel %vm2390_vm0, %v9222_v59, 0  ;;  %v10677_v4 = vld [vmem:[#allocation19_spill] sm:$0xff] }
 0xb6d   : > { %5843 = vrot.lane.b32.xlu1 %v5819_v37, %s7101_s30  ;;  %6017 = vrot.lane.b32.xlu2 %v7107_v55, %s7097_s29  ;;  %v1524_v55 = vsel %vm1144_vm5, %v1523_v43, %v1522_v25  ;;  %v1555_v25 = vsel %vm10668_vm2, %v10666_v15, %v1554_v6  ;;  %v10675_v6 = vld [vmem:[#allocation26_spill] sm:$0xff] }
 0xb6f   : > { %v5240_v27 = vpop.permute.xlu1 %5239 }
 0xb70   : > { %v5254_v11 = vsel %vm3223_vm12, %v9592_v12, %v5240_v27  ;;  %v5255_v50 = vsel %vm3223_vm12, %v5240_v27, %v9584_v8  ;;  %v1652_v12 = vsel %vm10665_vm10, %v1650_v21, %v1651_v61  ;;  %v1525_v8 = vsel %vm1146_vm6, %v1523_v43, %v1524_v55  ;;  %v10671_v21 = vld [vmem:[#allocation28_spill] sm:$0xff]  ;;  %v5252_v61 = vpop.permute.xlu2 %5251 }
 0xb71   : > { %v5268_v24 = vsel %vm2390_vm0, %v5254_v11, 0  ;;  %v5271_v38 = vsel %vm2390_vm0, %v5255_v50, 0  ;;  %v1526_v39 = vsel %vm1149_vm7, %v10664_v16, %v1525_v8  ;;  %v1343_v60 = vrot.slane %v10671_v21, 7 }
 0xb72   : > { %5308 = vmatpush.bf16.msrb.mxu1 %v5268_v24  ;;  %5321 = vmatpush.bf16.msra.mxu2 %v5271_v38  ;;  %v1527_v42 = vsel %vm1151_vm9, %v10664_v16, %v1526_v39  ;;  %v1556_v11 = vsel %vm10672_vm11, %v10666_v15, %v1555_v25  ;;  %v10673_v24 = vld [vmem:[#allocation41_spill] sm:$0xff]  ;;  %v1745_v21 = vrot.slane %v10677_v4, 2  ;;  %vm10683_vm11 = vmmov %vm10668_vm2 }
 0xb73   : > { %v1529_v43 = vsel %vm10669_vm4, %v1528_v46, %v1527_v42  ;;  %v1344_v55 = vsel %vm1149_vm7, %v1343_v60, %v1342_v41  ;;  %v1346_v38 = vrot.slane %v10673_v24, 6  ;;  %vm10674_vm4 = vmmov %vm10665_vm10  ;;  %v2104_v42 = vrot.slane %v10675_v6, 1  ;;  %v10676_v25 = vld [vmem:[#allocation49_spill] sm:$0xff]  ;;  %v10680_v24 = vld [vmem:[#allocation51_spill] sm:$0xff] }
 0xb74   : > { %v1530_v50 = vsel %vm10665_vm10, %v1528_v46, %v1529_v43  ;;  %v1345_v8 = vsel %vm1151_vm9, %v1343_v60, %v1344_v55  ;;  %v1744_v43 = vrot.slane %v10676_v25, 3  ;;  %vm10685_vm10 = vmmov %vm10668_vm2 }
 0xb75   : > { %1653 = vrot.lane.b32.xlu1 %v1652_v12, %s7098_s25  ;;  %5831 = vrot.lane.b32.xlu2 %v5813_v5, %s7101_s30  ;;  %v1347_v46 = vsel %vm10668_vm2, %v1346_v38, %v1345_v8  ;;  %vm10686_vm2 = vmmov %vm10674_vm4 }
 0xb76   : > { %6848 = vmatmul.msk.bf16.vlgmr.msra.gmra.mxu2 %vm4623_vm8, %v9641_v45  ;;  %v1746_v13 = vsel %vm1144_vm5, %v1745_v21, %v1744_v43 }
 0xb77   : > { %6849 = vmatmul.msk.bf16.vlgmr.msrb.gmra.mxu3 %vm4623_vm8, %v9641_v45  ;;  %v5784_v37 = vpop.permute.xlu1 %5783  ;;  %6847 = vmatmul.msk.bf16.vlgmr.msrb.gmra.mxu1 %vm4623_vm8, %v9641_v45 }
 0xb78   : > { %v5810_v35 = vmul.f32 0.0, %v5784_v37  ;;  %v5792_v62 = vsel %vm2976_vm13, %v9664_v34, %v5784_v37  ;;  %v5248_v34 = vpop.permute.xlu0 %5247 }
 0xb79   : > { %v5809_v47 = vmul.f32 %v5792_v62, %v9253_v48  ;;  %v10678_v62 = vld [vmem:[#allocation35_spill] sm:$0xff] }
 0xb7a   : > { %v5821_v27 = vpack.c.bf16 %v5810_v35, %v5810_v35  ;;  %v1348_v35 = vsel %vm10674_vm4, %v1346_v38, %v1347_v46  ;;  %v1748_v38 = vrot.slane %v10680_v24, 1  ;;  %vm10687_vm4 = vmmov %vm10686_vm2 }
 0xb7b   : > { %v5820_v37 = vpack.c.bf16 %v5809_v47, %v5809_v47 }
 0xb7c   : > { %5847 = vrot.lane.b32.xlu0 %v5821_v27, %s7101_s30 }
 0xb7d   : > { %1557 = vrot.lane.b32.xlu1 %v1556_v11, %s7097_s29  ;;  %1531 = vrot.lane.b32.xlu2 %v1530_v50, %s7099_s19  ;;  %v2105_v11 = vsel %vm1144_vm5, %v10678_v62, %v2104_v42  ;;  %v10679_v50 = vld [vmem:[#allocation38_spill] sm:$0xff]  ;;  %v5560_v42 = vsel %vm3223_vm12, %v9598_v54, %v9399_v3 }
 0xb7e   : > { %v2107_v41 = vrot.slane %v10679_v50, 7  ;;  %v2106_v47 = vsel %vm1146_vm6, %v10678_v62, %v2105_v11 }
 0xb7f   : > { %v5250_v5 = vpop.permute.xlu1 %5249 }
 0xb80   : > { %v5259_v12 = vsel %vm3223_vm12, %v5248_v34, %v5250_v5  ;;  %v5260_v36 = vsel %vm3223_vm12, %v5250_v5, %v5252_v61  ;;  %v5409_v61 = vsel %vm2390_vm0, %v9190_v7, 0  ;;  %v1747_v5 = vsel %vm1146_vm6, %v1745_v21, %v1746_v13 }
 0xb81   : > { %v5283_v40 = vsel %vm2390_vm0, %v5259_v12, 0  ;;  %v5286_v39 = vsel %vm2390_vm0, %v5260_v36, 0  ;;  %v10681_v12 = vld [vmem:[#allocation29_spill] sm:$0xff]  ;;  %v10682_v36 = vld [vmem:[#allocation40_spill] sm:$0xff]  ;;  %v1749_v8 = vsel %vm1149_vm7, %v1748_v38, %v1747_v5  ;;  %v10689_v5 = vld [vmem:[#allocation18_spill] sm:$0xff] }
 0xb82   : > { %5373 = vmatpush.bf16.msrb.mxu2 %v5283_v40  ;;  %5386 = vmatpush.bf16.msra.mxu3 %v5286_v39  ;;  %v2110_v7 = vrot.slane %v10682_v36, 6  ;;  %v5421_v40 = vsel %vm2390_vm0, %v9218_v56, 0 }
 0xb84   : > { %6173 = vrot.lane.b32.xlu0 %v8400_v63, %s7100_s24  ;;  %v5427_v63 = vsel %vm2390_vm0, %v9258_v9, 0 }
 0xb85   : > { %1349 = vrot.lane.b32.xlu1 %v1348_v35, %s7098_s25  ;;  %5845 = vrot.lane.b32.xlu2 %v5820_v37, %s7101_s30  ;;  %v10684_v37 = vld [vmem:[#allocation54_spill] sm:$0xff] }
 0xb86   : > { %5462 = vmatpush.bf16.msra.mxu2 %v5412_v33  ;;  %5475 = vmatpush.bf16.msrb.mxu3 %v5415_v26  ;;  %v1750_v33 = vsel %vm1151_vm9, %v1748_v38, %v1749_v8 }
 0xb87   : > { %6852 = vmatmul.msk.bf16.vlgmr.msrb.gmra.mxu2 %vm4623_vm8, %v9641_v45  ;;  %6853 = vmatmul.msk.bf16.vlgmr.msra.gmra.mxu3 %vm4623_vm8, %v9641_v45  ;;  %v5246_v53 = vpop.permute.xlu1 %5245  ;;  %v1751_v35 = vsel %vm10685_vm10, %v10684_v37, %v1750_v33  ;;  %v10693_v33 = vld [vmem:[#allocation52_spill] sm:$0xff] }
 0xb88   : > { %v5257_v60 = vsel %vm3223_vm12, %v9644_v22, %v5246_v53  ;;  %v5258_v27 = vsel %vm3223_vm12, %v5246_v53, %v5248_v34  ;;  %v5406_v22 = vsel %vm2390_vm0, %v9231_v10, 0  ;;  %v5818_v34 = vpack.c.bf16 %v5807_v18, %v5807_v18 }
 0xb89   : > { %v5277_v9 = vsel %vm2390_vm0, %v5257_v60, 0  ;;  %v5280_v55 = vsel %vm2390_vm0, %v5258_v27, 0  ;;  %v2108_v10 = vsel %vm1149_vm7, %v2107_v41, %v2106_v47 }
 0xb8a   : > { %5514 = vmatpush.bf16.msrb.mxu2 %v5424_v51  ;;  %5527 = vmatpush.bf16.msra.mxu3 %v5427_v63  ;;  %v2109_v46 = vsel %vm1151_vm9, %v2107_v41, %v2108_v10  ;;  %v1752_v51 = vsel %vm10687_vm4, %v10684_v37, %v1751_v35  ;;  %v5577_v63 = vmul.f32 %v5560_v42, %v9180_v28 }
 0xb8b   : > { %5347 = vmatpush.bf16.msrb.mxu0 %v5277_v9  ;;  %5360 = vmatpush.bf16.msra.mxu1 %v5280_v55  ;;  %v2111_v26 = vsel %vm10683_vm11, %v2110_v7, %v2109_v46  ;;  %v5786_v9 = vsel %vm2976_vm13, %v9681_v44, %v9535_v17  ;;  %v1499_v44 = vrot.slane %v10664_v16, 7  ;;  %vm10694_vm11 = vmmov %vm10685_vm10 }
 0xb8c   : > { %6167 = vrot.lane.b32.xlu0 %v8364_v58, %s7100_s24  ;;  %v5418_v58 = vsel %vm2390_vm0, %v9275_v23, 0  ;;  %v2112_v43 = vsel %vm10686_vm2, %v2110_v7, %v2111_v26  ;;  %v5588_v18 = vpack.c.bf16 %v5577_v63, %v5577_v63  ;;  %v1700_v26 = vrot.slane %v10693_v33, 7  ;;  %v9921_v63 = vpop.f32.mrf.mxu0  ;;  %vm10702_vm4 = vmmov %vm10694_vm11 }
 0xb8d   : > { %1253 = vrot.lane.b32.xlu1 %v10681_v12, %s7097_s29  ;;  %5841 = vrot.lane.b32.xlu2 %v5818_v34, %s7101_s30  ;;  %v10688_v34 = vld [vmem:[#allocation47_spill] sm:$0xff]  ;;  %v1695_v12 = vrot.slane %v10689_v5, 1 }
 0xb8e   : > { %6850 = vmatmul.msk.bf16.vlgmr.msrb.gmra.mxu0 %vm4623_vm8, %v9641_v45  ;;  %6851 = vmatmul.msk.bf16.vlgmr.msra.gmra.mxu1 %vm4623_vm8, %v9641_v45  ;;  %v9818_v45 = vpop.permute.xlu2 %6171  ;;  %v1694_v47 = vrot.slane %v10688_v34, 2  ;;  %v9943_v34 = vpop.permute.xlu0 %5619 }
 0xb8f   : > { %5436 = vmatpush.bf16.msra.mxu0 %v5406_v22  ;;  %5449 = vmatpush.bf16.msrb.mxu1 %v5409_v61  ;;  %v9811_v39 = vpop.permute.xlu1 %6169  ;;  %v1502_v61 = vrot.slane %v10666_v15, 6 }
 0xb90   : > { %v6185_v25 = vsel %vm2493_vm1, %v9811_v39, %v9818_v45  ;;  %v1696_v8 = vsel %vm1144_vm5, %v1695_v12, %v1694_v47 }
 0xb91   : > { %v6202_v3 = vmul.f32 %v6185_v25, %v9192_v14  ;;  %v9916_v25 = vpop.f32.mrf.mxu2 }
 0xb93   : > { %5488 = vmatpush.bf16.msrb.mxu0 %v5418_v58  ;;  %5501 = vmatpush.bf16.msra.mxu1 %v5421_v40  ;;  %v6213_v53 = vpack.c.bf16 %v6202_v3, %v6202_v3  ;;  %v1697_v58 = vsel %vm1146_vm6, %v1695_v12, %v1696_v8  ;;  %v10692_v40 = vld [vmem:[#allocation48_spill] sm:$0xff]  ;;  %v9923_v3 = vpop.f32.mrf.mxu1 }
 0xb94   : > { %6009 = vrot.lane.b32.xlu0 %v9275_v23, %s7097_s29  ;;  %v5558_v23 = vsel %vm3223_vm12, %v9414_v57, %v9503_v1  ;;  %v5788_v57 = vsel %vm2976_vm13, %v9647_v30, %v9462_v20  ;;  %vm10690_vm12 = vmmov %vm10685_vm10  ;;  %v1698_v46 = vsel %vm1149_vm7, %v10692_v40, %v1697_v58 }
 0xb95   : > { %2113 = vrot.lane.b32.xlu1 %v2112_v43, %s7098_s25  ;;  %1753 = vrot.lane.b32.xlu2 %v1752_v51, %s7097_s29  ;;  %v5575_v4 = vmul.f32 %v5558_v23, %v9182_v2  ;;  %v5805_v1 = vmul.f32 %v5788_v57, %v9180_v28  ;;  %vm10691_vm13 = vmmov %vm10686_vm2  ;;  %v1699_v35 = vsel %vm1151_vm9, %v10692_v40, %v1698_v46  ;;  %v9918_v43 = vpop.f32.mrf.mxu3 }
 0xb96   : > { %v9867_v13 = vpop.permute.xlu2 %6007  ;;  %v1701_v42 = vsel %vm10694_vm11, %v1700_v26, %v1699_v35  ;;  %vm10695_vm10 = vmmov %vm10686_vm2  ;;  %vm10701_vm2 = vcmask 519424  }
 0xb97   : > { %v9835_v54 = vpop.permute.xlu1 %6175  ;;  %v5586_v60 = vpack.c.bf16 %v5575_v4, %v5575_v4  ;;  %v5816_v41 = vpack.c.bf16 %v5805_v1, %v5805_v1  ;;  %v1702_v51 = vsel %vm10695_vm10, %v1700_v26, %v1701_v42  ;;  %v10697_v4 = vld [vmem:[#allocation11_spill] sm:$0xff]  ;;  %vm10705_vm11 = vmmov %vm10702_vm4 }
 0xb9c   : > { %5609 = vrot.lane.b32.xlu0 %v5588_v18, %s7102_s12  ;;  %v10696_v18 = vld [vmem:[#allocation32_spill] sm:$0xff] }
 0xb9d   : > { %6233 = vrot.lane.b32.xlu1 %v6213_v53, %s7095_s15  ;;  %v1390_v23 = vrot.slane %v10696_v18, 2  ;;  %v2130_v18 = vrot.slane %v10675_v6, 2 }
 0xb9e   : > { %v9881_v38 = vpop.permute.xlu2 %6179 }
 0xb9f   : > { %v9843_v21 = vpop.permute.xlu1 %6005 }
 0xba4   : > { %5605 = vrot.lane.b32.xlu0 %v5586_v60, %s7102_s12  ;;  %v1391_v60 = vrot.slane %v10697_v4, 1 }
 0xba6   : > { %v1392_v1 = vsel %vm1144_vm5, %v1391_v60, %v1390_v23  ;;  %v2131_v23 = vrot.slane %v10678_v62, 1 }
 0xba7   : > { %v9846_v14 = vpop.permute.xlu1 %6177 }
 0xbac   : > { %6181 = vrot.lane.b32.xlu0 %v8448_v32, %s7100_s24  ;;  %v5803_v32 = vmul.f32 %v5786_v9, %v9182_v2  ;;  %v4701_v9 = vpop.f32.mrf.mxu3  ;;  %s6910_s24 = sshll.u32 %s10808_s21, 5 }
 0xbad   : > { %v2132_v9 = vsel %vm1144_vm5, %v2131_v23, %v2130_v18  ;;  %s10484_s28 = scalar_lea.vmem %s10518_s11, %s6910_s24 }
 0xbae   : > { %v5814_v20 = vpack.c.bf16 %v5803_v32, %v5803_v32  ;;  %v1393_v32 = vsel %vm1146_vm6, %v1391_v60, %v1392_v1 }
 0xbaf   : > { %v9850_v27 = vpop.permute.xlu1 %5611 }
 0xbb4   : > { %6013 = vrot.lane.b32.xlu0 %v9222_v59, %s7097_s29  ;;  %v1496_v59 = vrot.slane %v10660_v29, 1  ;;  %v9953_v8 = vpop.f32.mrf.mxu3 }
 0xbb6   : > { %v1497_v17 = vsel %vm1144_vm5, %v10661_v52, %v1496_v59  ;;  %v4675_v59 = vpop.f32.mrf.mxu1 }
 0xbb7   : > { %v9858_v11 = vpop.permute.xlu1 %6001  ;;  %v1498_v22 = vsel %vm1146_vm6, %v10661_v52, %v1497_v17  ;;  %v9903_v52 = vpop.permute.xlu2 %5607  ;;  %v10698_v17 = vld [vmem:[#allocation30_spill] sm:$0xff] }
 0xbb8   : > { %v1500_v29 = vsel %vm1149_vm7, %v1499_v44, %v1498_v22 }
 0xbb9   : > { %v1501_v16 = vsel %vm1151_vm9, %v1499_v44, %v1500_v29  ;;  %v10699_v44 = vld [vmem:[#allocation37_spill] sm:$0xff]  ;;  %v10700_v29 = vld [vmem:[#allocation43_spill] sm:$0xff] }
 0xbba   : > { %v1503_v7 = vsel %vm10690_vm12, %v1502_v61, %v1501_v16  ;;  %v1394_v22 = vsel %vm1149_vm7, %v10699_v44, %v1393_v32  ;;  %vm10703_vm12 = vmmov %vm10695_vm10 }
 0xbbb   : > { %v1504_v15 = vsel %vm10691_vm13, %v1502_v61, %v1503_v7  ;;  %v1396_v61 = vrot.slane %v10700_v29, 7  ;;  %v1395_v12 = vsel %vm1151_vm9, %v10699_v44, %v1394_v22  ;;  %vm10704_vm13 = vmmov %vm10701_vm2  ;;  %v2136_v29 = vrot.slane %v10682_v36, 7 }
 0xbbc   : > { %5837 = vrot.lane.b32.xlu0 %v5816_v41, %s7101_s30  ;;  %v4688_v41 = vpop.f32.mrf.mxu2  ;;  %v4753_v35 = vpop.f32.mrf.mxu3 }
 0xbbd   : > { %v1397_v16 = vsel %vm10702_vm4, %v1396_v61, %v1395_v12 }
 0xbbe   : > { %v9958_v58 = vpop.f32.mrf.mxu1 }
 0xbbf   : > { %v9865_v55 = vpop.permute.xlu1 %5615  ;;  %v9927_v53 = vpop.permute.xlu2 %5603 }
 0xbc4   : > { %5833 = vrot.lane.b32.xlu0 %v5814_v20, %s7101_s30  ;;  %v4662_v20 = vpop.f32.mrf.mxu0  ;;  %v9951_v7 = vpop.f32.mrf.mxu2 }
 0xbc5   : > { %v9977_v59 = vpop.f32.mrf.mxu3 }
 0xbc7   : > { %v9871_v30 = vpop.permute.xlu1 %5613  ;;  %v9945_v47 = vpop.permute.xlu2 %6003 }
 0xbc8   : > { %v9876_v24 = vsel %vm3136_vm14, %v9871_v30, %v9865_v55 }
 0xbcc   : > { %6011 = vrot.lane.b32.xlu0 %v9218_v56, %s7097_s29  ;;  %v6854_v56 = vld [vmem:[%s10514_s7 + $0x8] sm:$0x3]  ;;  %v4740_v26 = vpop.f32.mrf.mxu2 }
 0xbcd   : > { %6857 = vmatmul.msk.bf16.vlgmr.msra.gmra.mxu2 %vm4623_vm8, %v6854_v56  ;;  %6858 = vmatmul.msk.bf16.vlgmr.msrb.gmra.mxu3 %vm4623_vm8, %v6854_v56  ;;  %v4886_v18 = vpop.f32.mrf.mxu3 }
 0xbce   : > { %6855 = vmatmul.msk.bf16.vlgmr.msra.gmra.mxu0 %vm4623_vm8, %v6854_v56  ;;  %6856 = vmatmul.msk.bf16.vlgmr.msrb.gmra.mxu1 %vm4623_vm8, %v6854_v56 }
 0xbcf   : > { %v9891_v10 = vpop.permute.xlu1 %5839  ;;  %v5618_v33 = vpop.permute.xlu2 %5617 }
 0xbd4   : > { %1505 = vrot.lane.b32.xlu0 %v1504_v15, %s7098_s25  ;;  %v9956_v15 = vpop.f32.mrf.mxu0  ;;  %v9975_v20 = vpop.f32.mrf.mxu2 }
 0xbd7   : > { %v9911_v37 = vpop.permute.xlu1 %6015 }
 0xbdc   : > { %1703 = vrot.lane.b32.xlu0 %v1702_v51, %s7099_s19  ;;  %v4714_v42 = vpop.f32.mrf.mxu0  ;;  %v4727_v51 = vpop.f32.mrf.mxu1 }
 0xbdd   : > { %6861 = vmatmul.msk.bf16.vlgmr.msrb.gmra.mxu2 %vm4623_vm8, %v6854_v56  ;;  %6862 = vmatmul.msk.bf16.vlgmr.msra.gmra.mxu3 %vm4623_vm8, %v6854_v56  ;;  %v2342_v42 = vld [vmem:[#allocation1 + $0x1] ss:$2 sm:$0xff]  ;;  %v4873_v51 = vpop.f32.mrf.mxu2 }
 0xbde   : > { %6859 = vmatmul.msk.bf16.vlgmr.msrb.gmra.mxu0 %vm4623_vm8, %v6854_v56  ;;  %6860 = vmatmul.msk.bf16.vlgmr.msra.gmra.mxu1 %vm4623_vm8, %v6854_v56  ;;  %v1398_v56 = vsel %vm10703_vm12, %v1396_v61, %v1397_v16  ;;  %v9988_v61 = vpop.permute.xlu2 %5835  ;;  %vm10708_vm12 = vmmov %vm10695_vm10 }
 0xbdf   : > { %v9930_v57 = vpop.permute.xlu1 %5843 }
 0xbe4   : > { %1199 = vrot.lane.b32.xlu0 %v10698_v17, %s7098_s25  ;;  %v2133_v17 = vsel %vm1146_vm6, %v2131_v23, %v2132_v9  ;;  %v9980_v44 = vpop.f32.mrf.mxu0  ;;  %v9982_v22 = vpop.f32.mrf.mxu1  ;;  %v6189_v23 = vsel %vm2493_vm1, %v9846_v14, %v9881_v38  ;;  %v2352_v9 = vrot.slane %v2342_v42, 3 }
 0xbe5   : > { %v10012_v18 = vpop.f32.mrf.mxu2 }
 0xbe7   : > { %v1654_v5 = vpop.permute.xlu1 %1653 }
 0xbe8   : > { %1656 = vst.msk [vmem:[#allocation3 + $0xc] sm:$0xf] %vm10701_vm2, %v1654_v5 }
 0xbec   : > { %1399 = vrot.lane.b32.xlu0 %v1398_v56, %s7099_s19 }
 0xbee   : > { %v9961_v40 = vpop.permute.xlu0 %5847 }
 0xbef   : > { %v9963_v46 = vpop.permute.xlu1 %1557 }
 0xbf6   : > { %v9967_v4 = vpop.permute.xlu0 %6173 }
 0xbf7   : > { %v6187_v60 = vsel %vm2493_vm1, %v9967_v4, %v9835_v54  ;;  %v1350_v1 = vpop.permute.xlu1 %1349 }
 0xbf8   : > { %v6204_v41 = vmul.f32 %v6187_v60, %v9270_v19  ;;  %1352 = vst.msk [vmem:[#allocation3 + $0x4] sm:$0xf] %vm10704_vm13, %v1350_v1  ;;  %v2134_v19 = vsel %vm1149_vm7, %v10679_v50, %v2133_v17  ;;  %v4847_v1 = vpop.f32.mrf.mxu0  ;;  %v6206_v17 = vmul.f32 %v6189_v23, %v9211_v0  ;;  %vm10719_vm13 = vmmov %vm10695_vm10 }
 0xbf9   : > { %v2135_v56 = vsel %vm1151_vm9, %v10679_v50, %v2134_v19  ;;  %v10014_v1 = vpop.f32.mrf.mxu3 }
 0xbfa   : > { %v6215_v32 = vpack.c.bf16 %v6204_v41, %v6204_v41  ;;  %v2137_v26 = vsel %vm10705_vm11, %v2136_v29, %v2135_v56  ;;  %v4860_v41 = vpop.f32.mrf.mxu1  ;;  %v10008_v56 = vpop.permute.xlu2 %6017  ;;  %vm10732_vm11 = vmmov %vm10702_vm4 }
 0xbfb   : > { %v2138_v60 = vsel %vm10695_vm10, %v2136_v29, %v2137_v26  ;;  %v6217_v26 = vpack.c.bf16 %v6206_v17, %v6206_v17  ;;  %v5629_v41 = vsel %vm3136_vm14, %v5618_v33, %v9943_v34  ;;  %vm10733_vm10 = vmmov %vm10702_vm4 }
 0xbfc   : > { %6237 = vrot.lane.b32.xlu0 %v6215_v32, %s7095_s15  ;;  %v2348_v32 = vld [vmem:[#allocation1 + $0x21] ss:$2 sm:$0xff]  ;;  %v5655_v34 = vsel %vm2390_vm0, %v5629_v41, 0  ;;  %v6188_v41 = vsel %vm2493_vm1, %v9835_v54, %v9846_v14 }
 0xbfd   : > { %v2356_v29 = vrot.slane %v2348_v32, 1 }
 0xbfe   : > { %v9990_v5 = vpop.permute.xlu0 %6167 }
 0xbff   : > { %v6200_v12 = vmul.f32 %v9990_v5, %v9214_v31  ;;  %v9994_v16 = vpop.permute.xlu1 %1253  ;;  %v2345_v31 = vld [vmem:[#allocation1 + $0x11] ss:$2 sm:$0xff] }
 0xc01   : > { %v6211_v35 = vpack.c.bf16 %v6200_v12, %v6200_v12  ;;  %v2353_v12 = vrot.slane %v2345_v31, 2  ;;  %v2351_v31 = vld [vmem:[#allocation1 + $0x31] ss:$2 sm:$0xff] }
 0xc02   : > { %v10019_v0 = vpop.f32.mrf.mxu1 }
 0xc03   : > { %6229 = vrot.lane.b32.xlu1 %v6211_v35, %s7095_s15  ;;  %v2354_v35 = vsel %vm1144_vm5, %v2353_v12, %v2352_v9  ;;  %10707 = vst [vmem:[#allocation15_spill] sm:$0xff] %v10019_v0  ;;  %v5628_v9 = vsel %vm3136_vm14, %v9865_v55, %v5618_v33  ;;  %v10037_v55 = vpop.permute.xlu2 %5831  ;;  %v10042_v33 = vld [vmem:[%s10514_s7 + $0xa] sm:$0x3] }
 0xc04   : > { %2139 = vrot.lane.b32.xlu0 %v2138_v60, %s7099_s19  ;;  %v2355_v42 = vsel %vm1146_vm6, %v2353_v12, %v2354_v35  ;;  %v10017_v60 = vpop.f32.mrf.mxu0  ;;  %v5652_v0 = vsel %vm2390_vm0, %v5628_v9, 0 }
 0xc05   : > { %10706 = vst [vmem:[#allocation17_spill] sm:$0xff] %v10017_v60  ;;  %v2357_v23 = vsel %vm1149_vm7, %v2356_v29, %v2355_v42 }
 0xc06   : > { %v10006_v19 = vpop.permute.xlu0 %6009 }
 0xc07   : > { %v2114_v51 = vpop.permute.xlu1 %2113 }
 0xc08   : > { %2116 = vst.msk [vmem:[#allocation3 + $0x18] sm:$0xf] %vm10701_vm2, %v2114_v51  ;;  %v2358_v51 = vsel %vm1151_vm9, %v2356_v29, %v2357_v23  ;;  %v4925_v29 = vpop.f32.mrf.mxu2  ;;  %v4938_v23 = vpop.f32.mrf.mxu3  ;;  %vm10734_vm2 = vcmask 785408  }
 0xc09   : > { %v2359_v42 = vsel %vm10702_vm4, %v2351_v31, %v2358_v51  ;;  %v10710_v51 = vld [vmem:[#allocation20_spill] sm:$0xff] }
 0xc0c   : > { %6241 = vrot.lane.b32.xlu0 %v6217_v26, %s7095_s15 }
 0xc0e   : > { %v5610_v32 = vpop.permute.xlu0 %5609 }
 0xc0f   : > { %v5624_v17 = vsel %vm3136_vm14, %v9903_v52, %v5610_v32  ;;  %v5625_v12 = vsel %vm3136_vm14, %v5610_v32, %v9850_v27  ;;  %v2360_v32 = vsel %vm10708_vm12, %v2351_v31, %v2359_v42  ;;  %v5626_v31 = vsel %vm3136_vm14, %v9850_v27, %v9871_v30 }
 0xc10   : > { %v5640_v35 = vsel %vm2390_vm0, %v5624_v17, 0  ;;  %v5643_v26 = vsel %vm2390_vm0, %v5625_v12, 0  ;;  %v4899_v17 = vpop.f32.mrf.mxu0  ;;  %v4912_v12 = vpop.f32.mrf.mxu1  ;;  %v6205_v42 = vmul.f32 %v6188_v41, %v9209_v49  ;;  %v5646_v23 = vsel %vm2390_vm0, %v5626_v31, 0  ;;  %v10715_v41 = vld [vmem:[#allocation33_spill] sm:$0xff]  ;;  %v10716_v31 = vld [vmem:[#allocation36_spill] sm:$0xff] }
 0xc11   : > { %5690 = vmatpush.bf16.msra.mxu2 %v5640_v35  ;;  %5703 = vmatpush.bf16.msrb.mxu3 %v5643_v26  ;;  %v1827_v35 = vrot.slane %v10710_v51, 1  ;;  %v10069_v49 = vpop.f32.mrf.mxu2  ;;  %v10071_v30 = vpop.f32.mrf.mxu3 }
 0xc12   : > { %10711 = vst [vmem:[#allocation16_spill] sm:$0xff] %v10069_v49  ;;  %v10082_v12 = vpop.permute.xlu2 %1531 }
 0xc13   : > { %10712 = vst [vmem:[#allocation62_spill] sm:$0xff] %v10071_v30 }
 0xc14   : > { %6866 = vmatmul.msk.bf16.vlgmr.msra.gmra.mxu2 %vm4623_vm8, %v10042_v33  ;;  %2361 = vrot.lane.b32.xlu0 %v2360_v32, %s7097_s29  ;;  %v5649_v32 = vsel %vm2390_vm0, %v9876_v24, 0 }
 0xc15   : > { %5742 = vmatpush.bf16.msrb.mxu2 %v5652_v0  ;;  %5755 = vmatpush.bf16.msra.mxu3 %v5655_v34  ;;  %v10709_v0 = vld [vmem:[#allocation23_spill] sm:$0xff] }
 0xc16   : > { %6867 = vmatmul.msk.bf16.vlgmr.msrb.gmra.mxu3 %vm4623_vm8, %v10042_v33  ;;  %v1826_v9 = vrot.slane %v10709_v0, 2  ;;  %v5606_v26 = vpop.permute.xlu0 %5605 }
 0xc17   : > { %v5622_v54 = vsel %vm3136_vm14, %v9927_v53, %v5606_v26  ;;  %v5623_v14 = vsel %vm3136_vm14, %v5606_v26, %v9903_v52  ;;  %v6216_v52 = vpack.c.bf16 %v6205_v42, %v6205_v42  ;;  %v1832_v26 = vrot.slane %v10716_v31, 7  ;;  %vm10717_vm14 = vmmov %vm10702_vm4 }
 0xc18   : > { %v5634_v34 = vsel %vm2390_vm0, %v5622_v54, 0  ;;  %v5637_v29 = vsel %vm2390_vm0, %v5623_v14, 0  ;;  %v1828_v27 = vsel %vm1144_vm5, %v1827_v35, %v1826_v9  ;;  %v10073_v53 = vpop.f32.mrf.mxu0  ;;  %v10075_v17 = vpop.f32.mrf.mxu1  ;;  %vm10735_vm4 = vmmov %vm10734_vm2 }
 0xc19   : > { %5664 = vmatpush.bf16.msra.mxu0 %v5634_v34  ;;  %5677 = vmatpush.bf16.msrb.mxu1 %v5637_v29  ;;  %10713 = vst [vmem:[#allocation61_spill] sm:$0xff] %v10073_v53  ;;  %v1829_v24 = vsel %vm1146_vm6, %v1827_v35, %v1828_v27  ;;  %v5099_v27 = vpop.f32.mrf.mxu2 }
 0xc1a   : > { %10714 = vst [vmem:[#allocation64_spill] sm:$0xff] %v10075_v17  ;;  %v1830_v9 = vsel %vm1149_vm7, %v10715_v41, %v1829_v24  ;;  %v10718_v24 = vld [vmem:[#allocation39_spill] sm:$0xff] }
 0xc1b   : > { %v1831_v29 = vsel %vm1151_vm9, %v10715_v41, %v1830_v9  ;;  %v1440_v17 = vrot.slane %v10718_v24, 3  ;;  %v10720_v9 = vld [vmem:[#allocation12_spill] sm:$0xff]  ;;  %v10724_v27 = vld [vmem:[#allocation31_spill] sm:$0xff] }
 0xc1c   : > { %6864 = vmatmul.msk.bf16.vlgmr.msra.gmra.mxu0 %vm4623_vm8, %v10042_v33  ;;  %6865 = vmatmul.msk.bf16.vlgmr.msrb.gmra.mxu1 %vm4623_vm8, %v10042_v33 }
 0xc1d   : > { %5716 = vmatpush.bf16.msrb.mxu0 %v5646_v23  ;;  %5729 = vmatpush.bf16.msra.mxu1 %v5649_v32  ;;  %v1833_v23 = vsel %vm10717_vm14, %v1832_v26, %v1831_v29  ;;  %v1803_v29 = vrot.slane %v10715_v41, 7  ;;  %vm10736_vm14 = vmmov %vm10708_vm12 }
 0xc1e   : > { %6239 = vrot.lane.b32.xlu0 %v6216_v52, %s7095_s15  ;;  %v6182_v42 = vpop.permute.xlu0 %6181  ;;  %v5112_v52 = vpop.f32.mrf.mxu3 }
 0xc1f   : > { %v6190_v54 = vsel %vm2493_vm1, %v9881_v38, %v6182_v42  ;;  %v6208_v14 = vmul.f32 0.0, %v6182_v42  ;;  %v1834_v38 = vsel %vm10719_vm13, %v1832_v26, %v1833_v23  ;;  %v1441_v42 = vrot.slane %v10720_v9, 2  ;;  %vm10739_vm13 = vmmov %vm10733_vm10 }
 0xc20   : > { %v6207_v34 = vmul.f32 %v6190_v54, %v9253_v48  ;;  %v5073_v53 = vpop.f32.mrf.mxu0  ;;  %v5086_v30 = vpop.f32.mrf.mxu1  ;;  %v1800_v48 = vrot.slane %v10709_v0, 1 }
 0xc21   : > { %v6219_v35 = vpack.c.bf16 %v6208_v14, %v6208_v14  ;;  %v5846_v53 = vpop.permute.xlu2 %5845  ;;  %v1442_v30 = vsel %vm1144_vm5, %v1441_v42, %v1440_v17  ;;  %v10721_v14 = vld [vmem:[#allocation42_spill] sm:$0xff]  ;;  %v10113_v23 = vpop.f32.mrf.mxu2 }
 0xc22   : > { %v6218_v32 = vpack.c.bf16 %v6207_v34, %v6207_v34  ;;  %v1444_v34 = vrot.slane %v10721_v14, 1  ;;  %v1801_v26 = vsel %vm1144_vm5, %v10710_v51, %v1800_v48  ;;  %10722 = vst [vmem:[#allocation66_spill] sm:$0xff] %v10113_v23  ;;  %v10727_v48 = vld [vmem:[#allocation65_spill] sm:$0xff] }
 0xc23   : > { %6245 = vrot.lane.b32.xlu2 %v6219_v35, %s7095_s15  ;;  %v1443_v35 = vsel %vm1146_vm6, %v1441_v42, %v1442_v30  ;;  %v1802_v17 = vsel %vm1146_vm6, %v10710_v51, %v1801_v26  ;;  %v1806_v42 = vrot.slane %v10716_v31, 6  ;;  %v10728_v30 = vld [vmem:[#allocation56_spill] sm:$0xff]  ;;  %v5856_v26 = vsel %vm2889_vm3, %v9930_v57, %v5846_v53 }
 0xc24   : > { %6243 = vrot.lane.b32.xlu1 %v6218_v32, %s7095_s15  ;;  %6870 = vmatmul.msk.bf16.vlgmr.msrb.gmra.mxu2 %vm4623_vm8, %v10042_v33  ;;  %v1445_v52 = vsel %vm1149_vm7, %v1444_v34, %v1443_v35  ;;  %v1804_v9 = vsel %vm1149_vm7, %v1803_v29, %v1802_v17  ;;  %v1998_v14 = vrot.slane %v10728_v30, 2  ;;  %v10729_v35 = vld [vmem:[#allocation60_spill] sm:$0xff] }
 0xc25   : > { %v10730_v17 = vld [vmem:[#allocation24_spill] sm:$0xff]  ;;  %v1805_v23 = vsel %vm1151_vm9, %v1803_v29, %v1804_v9  ;;  %v10162_v29 = vld [vmem:[%s10514_s7 + $0xc] sm:$0x3] }
 0xc26   : > { %1835 = vrot.lane.b32.xlu0 %v1834_v38, %s7099_s19  ;;  %6871 = vmatmul.msk.bf16.vlgmr.msra.gmra.mxu3 %vm4623_vm8, %v10042_v33  ;;  %v10105_v54 = vpop.permute.xlu0 %6013  ;;  %v10115_v32 = vpop.f32.mrf.mxu3 }
 0xc27   : > { %10723 = vst [vmem:[#allocation44_spill] sm:$0xff] %v10115_v32  ;;  %v10731_v32 = vld [vmem:[#allocation45_spill] sm:$0xff] }
 0xc28   : > { %v10122_v24 = vpop.f32.mrf.mxu0  ;;  %v10124_v38 = vpop.f32.mrf.mxu1 }
 0xc29   : > { %10725 = vst [vmem:[#allocation14_spill] sm:$0xff] %v10122_v24  ;;  %v1999_v24 = vrot.slane %v10730_v17, 1  ;;  %v5880_v17 = vsel %vm2390_vm0, %v5856_v26, 0 }
 0xc2a   : > { %10726 = vst [vmem:[#allocation46_spill] sm:$0xff] %v10124_v38  ;;  %v1446_v38 = vsel %vm1151_vm9, %v1444_v34, %v1445_v52  ;;  %v6022_v52 = vsel %vm10734_vm2, %v9843_v21, %v9867_v13 }
 0xc2b   : > { %1226 = vrot.lane.b32.xlu2 %v10724_v27, %s7099_s19  ;;  %v5857_v27 = vsel %vm2889_vm3, %v5846_v53, %v9961_v40  ;;  %v1807_v53 = vsel %vm10733_vm10, %v1806_v42, %v1805_v23  ;;  %v2000_v34 = vsel %vm1144_vm5, %v1999_v24, %v1998_v14  ;;  %v6186_v23 = vsel %vm2493_vm1, %v9818_v45, %v9967_v4  ;;  %vm10742_vm10 = vmmov %vm10708_vm12 }
 0xc2c   : > { %2311 = vrot.lane.b32.xlu1 %v10727_v48, %s7099_s19  ;;  %6868 = vmatmul.msk.bf16.vlgmr.msrb.gmra.mxu0 %vm4623_vm8, %v10042_v33  ;;  %v5883_v60 = vsel %vm2390_vm0, %v5857_v27, 0  ;;  %v1808_v26 = vsel %vm10736_vm14, %v1806_v42, %v1807_v53  ;;  %v2001_v27 = vsel %vm1146_vm6, %v1999_v24, %v2000_v34  ;;  %v6038_v45 = vsel %vm2390_vm0, %v6022_v52, 0 }
 0xc2d   : > { %6869 = vmatmul.msk.bf16.vlgmr.msra.gmra.mxu1 %vm4623_vm8, %v10042_v33  ;;  %v1447_v33 = vsel %vm10732_vm11, %v10731_v32, %v1446_v38  ;;  %v6023_v38 = vsel %vm10735_vm4, %v9867_v13, %v10006_v19  ;;  %v10737_v13 = vld [vmem:[#allocation57_spill] sm:$0xff]  ;;  %vm10740_vm11 = vmmov %vm10734_vm2  ;;  %vm10745_vm4 = vcmask 519424  }
 0xc2e   : > { %2057 = vrot.lane.b32.xlu0 %v10729_v35, %s7097_s29  ;;  %v5838_v48 = vpop.permute.xlu0 %5837  ;;  %v1448_v9 = vsel %vm10708_vm12, %v10731_v32, %v1447_v33  ;;  %v5164_v14 = vpop.f32.mrf.mxu3  ;;  %v2002_v4 = vsel %vm1149_vm7, %v10737_v13, %v2001_v27  ;;  %v6203_v33 = vmul.f32 %v6186_v23, %v9180_v28  ;;  %v6041_v42 = vsel %vm2390_vm0, %v6023_v38, 0 }
 0xc2f   : > { %v5852_v30 = vsel %vm2889_vm3, %v9988_v61, %v5838_v48  ;;  %v5853_v35 = vsel %vm2889_vm3, %v5838_v48, %v9891_v10  ;;  %v5842_v48 = vpop.permute.xlu2 %5841  ;;  %v2003_v52 = vsel %vm1151_vm9, %v10737_v13, %v2002_v4  ;;  %vm10746_vm12 = vcmask 781824  }
 0xc30   : > { %v5868_v49 = vsel %vm2390_vm0, %v5852_v30, 0  ;;  %v5871_v40 = vsel %vm2390_vm0, %v5853_v35, 0  ;;  %v5125_v30 = vpop.f32.mrf.mxu0  ;;  %v5138_v35 = vpop.f32.mrf.mxu1  ;;  %v5854_v24 = vsel %vm2889_vm3, %v9891_v10, %v5842_v48  ;;  %v6214_v38 = vpack.c.bf16 %v6203_v33, %v6203_v33 }
 0xc31   : > { %5918 = vmatpush.bf16.msra.mxu2 %v5868_v49  ;;  %5931 = vmatpush.bf16.msrb.mxu3 %v5871_v40  ;;  %v5151_v49 = vpop.f32.mrf.mxu2  ;;  %v5855_v40 = vsel %vm2889_vm3, %v5842_v48, %v9930_v57  ;;  %v6020_v57 = vsel %vm10740_vm11, %v9858_v11, %v9945_v47  ;;  %v5874_v48 = vsel %vm2390_vm0, %v5854_v24, 0 }
 0xc33   : > { %1449 = vrot.lane.b32.xlu2 %v1448_v9, %s7097_s29  ;;  %v6184_v9 = vsel %vm2493_vm1, %v9990_v5, %v9811_v39  ;;  %vm10743_vm1 = vmmov %vm10734_vm2 }
 0xc34   : > { %1809 = vrot.lane.b32.xlu1 %v1808_v26, %s7098_s25  ;;  %6875 = vmatmul.msk.bf16.vlgmr.msra.gmra.mxu2 %vm4623_vm8, %v10162_v29  ;;  %v6026_v35 = vsel %vm10743_vm1, %v10105_v54, %v9911_v37  ;;  %vm10747_vm14 = vmmov %vm10743_vm1 }
 0xc35   : > { %5970 = vmatpush.bf16.msrb.mxu2 %v5880_v17  ;;  %5983 = vmatpush.bf16.msra.mxu3 %v5883_v60  ;;  %v10738_v60 = vld [vmem:[#allocation59_spill] sm:$0xff]  ;;  %v6050_v24 = vsel %vm2390_vm0, %v6026_v35, 0  ;;  %vm10749_vm11 = vmmov %vm10743_vm1 }
 0xc36   : > { %v2004_v32 = vrot.slane %v10738_v60, 7  ;;  %6876 = vmatmul.msk.bf16.vlgmr.msrb.gmra.mxu3 %vm4623_vm8, %v10162_v29  ;;  %v5834_v53 = vpop.permute.xlu0 %5833  ;;  %v10212_v11 = vpop.f32.mrf.mxu3  ;;  %v2156_v60 = vrot.slane %v10675_v6, 3 }
 0xc37   : > { %v5850_v34 = vsel %vm2889_vm3, %v10037_v55, %v5834_v53  ;;  %v5851_v28 = vsel %vm2889_vm3, %v5834_v53, %v9988_v61  ;;  %v5877_v55 = vsel %vm2390_vm0, %v5855_v40, 0  ;;  %vm10741_vm3 = vmmov %vm10734_vm2 }
 0xc38   : > { %v5862_v17 = vsel %vm2390_vm0, %v5850_v34, 0  ;;  %v5865_v23 = vsel %vm2390_vm0, %v5851_v28, 0  ;;  %v2005_v10 = vsel %vm10739_vm13, %v2004_v32, %v2003_v52  ;;  %v6021_v61 = vsel %vm10741_vm3, %v9945_v47, %v9843_v21  ;;  %v10216_v26 = vpop.f32.mrf.mxu0  ;;  %v10218_v27 = vpop.f32.mrf.mxu1  ;;  %vm10744_vm2 = vmmov %vm10743_vm1 }
 0xc39   : > { %6088 = vmatpush.bf16.msra.mxu2 %v6038_v45  ;;  %6101 = vmatpush.bf16.msrb.mxu3 %v6041_v42  ;;  %v10210_v49 = vpop.f32.mrf.mxu2  ;;  %v2006_v14 = vsel %vm10742_vm10, %v2004_v32, %v2005_v10  ;;  %v6032_v21 = vsel %vm2390_vm0, %v6020_v57, 0  ;;  %v6035_v39 = vsel %vm2390_vm0, %v6021_v61, 0  ;;  %v6201_v47 = vmul.f32 %v6184_v9, %v9182_v2  ;;  %v4520_v45 = vld [vmem:[%s10515_s8] sm:$0xf]  ;;  %vm10752_vm3 = vmmov %vm10746_vm12  ;;  %v10754_v61 = vld [vmem:[#allocation21_spill] sm:$0xff] }
 0xc3a   : > { %5892 = vmatpush.bf16.msra.mxu0 %v5862_v17  ;;  %5905 = vmatpush.bf16.msrb.mxu1 %v5865_v23  ;;  %v6027_v13 = vsel %vm10744_vm2, %v9911_v37, %v10008_v56  ;;  %v2157_v32 = vrot.slane %v10678_v62, 2  ;;  %v2160_v62 = vrot.slane %v10679_v50, 1  ;;  %vm10748_vm13 = vcmask 1044224   ;;  %v10750_v50 = vld [vmem:[#allocation63_spill] sm:$0xff]  ;;  %v10751_v17 = vld [vmem:[#allocation53_spill] sm:$0xff] }
 0xc3b   : > { %6235 = vrot.lane.b32.xlu2 %v6214_v38, %s7095_s15  ;;  %v6212_v30 = vpack.c.bf16 %v6201_v47, %v6201_v47  ;;  %v6053_v40 = vsel %vm2390_vm0, %v6027_v13, 0  ;;  %v1948_v23 = vrot.slane %v10751_v17, 1  ;;  %vm10753_vm10 = vcmask 1043459   ;;  %vm10756_vm1 = vmmov %vm10748_vm13 }
 0xc3c   : > { %2007 = vrot.lane.b32.xlu1 %v2006_v14, %s7099_s19  ;;  %v2158_v6 = vsel %vm1144_vm5, %v2157_v32, %v2156_v60  ;;  %v10755_v14 = vld [vmem:[#allocation55_spill] sm:$0xff]  ;;  %vm10757_vm2 = vcmask 1047559  }
 0xc3d   : > { %6873 = vmatmul.msk.bf16.vlgmr.msra.gmra.mxu0 %vm4623_vm8, %v10162_v29  ;;  %6874 = vmatmul.msk.bf16.vlgmr.msrb.gmra.mxu1 %vm4623_vm8, %v10162_v29  ;;  %v2159_v34 = vsel %vm1146_vm6, %v2157_v32, %v2158_v6  ;;  %v1949_v9 = vsel %vm1144_vm5, %v10754_v61, %v1948_v23 }
 0xc3e   : > { %5944 = vmatpush.bf16.msrb.mxu0 %v5874_v48  ;;  %5957 = vmatpush.bf16.msra.mxu1 %v5877_v55  ;;  %v6012_v5 = vpop.permute.xlu0 %6011  ;;  %v5338_v4 = vpop.f32.mrf.mxu3  ;;  %v1950_v47 = vsel %vm1146_vm6, %v10754_v61, %v1949_v9 }
 0xc3f   : > { %v6024_v56 = vsel %vm10747_vm14, %v10006_v19, %v6012_v5  ;;  %v6025_v53 = vsel %vm10749_vm11, %v6012_v5, %v10105_v54  ;;  %v1754_v55 = vpop.permute.xlu2 %1753  ;;  %v1853_v4 = vrot.slane %v10710_v51, 2  ;;  %vm10760_vm14 = vmmov %vm10757_vm2 }
 0xc40   : > { %v5299_v33 = vpop.f32.mrf.mxu0  ;;  %v5312_v42 = vpop.f32.mrf.mxu1  ;;  %v6047_v54 = vsel %vm2390_vm0, %v6025_v53, 0  ;;  %vm10766_vm11 = vmmov %vm10756_vm1 }
 0xc41   : > { %v5325_v2 = vpop.f32.mrf.mxu2 }
 0xc42   : > { %6062 = vmatpush.bf16.msra.mxu0 %v6032_v21  ;;  %6075 = vmatpush.bf16.msrb.mxu1 %v6035_v39  ;;  %v1951_v21 = vrot.slane %v10755_v14, 7  ;;  %v1852_v2 = vrot.slane %v10709_v0, 3  ;;  %v1856_v0 = vrot.slane %v10715_v41, 1 }
 0xc43   : > { %6231 = vrot.lane.b32.xlu2 %v6212_v30, %s7095_s15 }
 0xc44   : > { %4533 = vperm.xlu1 %6974, %v4520_v45   ;;  %6879 = vmatmul.msk.bf16.vlgmr.msrb.gmra.mxu2 %vm4623_vm8, %v10162_v29  ;;  %v1952_v35 = vsel %vm1149_vm7, %v1951_v21, %v1950_v47  ;;  %v10758_v45 = vld [vmem:[#allocation58_spill] sm:$0xff] }
 0xc45   : > { %6140 = vmatpush.bf16.msrb.mxu2 %v6050_v24  ;;  %v1954_v13 = vrot.slane %v10758_v45, 6  ;;  %v1953_v33 = vsel %vm1151_vm9, %v1951_v21, %v1952_v35  ;;  %v6234_v45 = vpop.permute.xlu1 %6233 }
 0xc46   : > { %6880 = vmatmul.msk.bf16.vlgmr.msra.gmra.mxu3 %vm4623_vm8, %v10162_v29  ;;  %v1506_v37 = vpop.permute.xlu0 %1505  ;;  %v10260_v52 = vpop.f32.mrf.mxu3 }
 0xc47   : > { %6153 = vmatpush.bf16.msra.mxu3 %v6053_v40  ;;  %1508 = vst.msk [vmem:[#allocation3 + $0x8] sm:$0xf] %vm10745_vm4, %v1506_v37  ;;  %v1854_v40 = vsel %vm1144_vm5, %v1853_v4, %v1852_v2  ;;  %vm10761_vm5 = vmmov %vm10752_vm3 }
 0xc48   : > { %1534 = vst.msk [vmem:[#allocation3 + $0x8] sm:$0xf] %vm10746_vm12, %v10082_v12  ;;  %v2161_v12 = vsel %vm1149_vm7, %v2160_v62, %v2159_v34  ;;  %v10266_v19 = vpop.f32.mrf.mxu0  ;;  %v10268_v10 = vpop.f32.mrf.mxu1  ;;  %vm10759_vm12 = vmmov %vm10753_vm10  ;;  %v1855_v37 = vsel %vm1146_vm6, %v1853_v4, %v1854_v40 }
 0xc49   : > { %1560 = vst.msk [vmem:[#allocation3 + $0x8] sm:$0xf] %vm10748_vm13, %v9963_v46  ;;  %v10258_v28 = vpop.f32.mrf.mxu2  ;;  %v6044_v46 = vsel %vm2390_vm0, %v6024_v56, 0  ;;  %v2162_v48 = vsel %vm1151_vm9, %v2160_v62, %v2161_v12  ;;  %v1955_v24 = vsel %vm10759_vm12, %v1954_v13, %v1953_v33  ;;  %v1857_v56 = vsel %vm1149_vm7, %v1856_v0, %v1855_v37  ;;  %vm10762_vm6 = vmmov %vm10753_vm10 }
 0xc4a   : > { %v2163_v38 = vsel %vm10753_vm10, %v10682_v36, %v2162_v48  ;;  %v1956_v51 = vsel %vm10760_vm14, %v1954_v13, %v1955_v24  ;;  %vm10763_vm13 = vmmov %vm10757_vm2  ;;  %v6574_v48 = vld [vmem:[%s10517_s10] sm:$0xf]  ;;  %vm10768_vm10 = vcmask 1041408  }
 0xc4b   : > { %2261 = vrot.lane.b32.xlu2 %v10750_v50, %s7098_s25  ;;  %v2164_v39 = vsel %vm10757_vm2, %v10682_v36, %v2163_v38  ;;  %v1858_v50 = vsel %vm1151_vm9, %v1856_v0, %v1857_v56  ;;  %vm10764_vm7 = vmmov %vm10752_vm3 }
 0xc4c   : > { %v1859_v12 = vsel %vm10762_vm6, %v10716_v31, %v1858_v50  ;;  %vm10765_vm9 = vmmov %vm10752_vm3 }
 0xc4d   : > { %6877 = vmatmul.msk.bf16.vlgmr.msrb.gmra.mxu0 %vm4623_vm8, %v10162_v29  ;;  %6878 = vmatmul.msk.bf16.vlgmr.msra.gmra.mxu1 %vm4623_vm8, %v10162_v29  ;;  %v6881_v29 = vld [vmem:[%s10514_s7 + $0xe] sm:$0x3]  ;;  %v1860_v17 = vsel %vm10763_vm13, %v10716_v31, %v1859_v12  ;;  %vm10772_vm12 = vmmov %vm10761_vm5 }
 0xc4e   : > { %6114 = vmatpush.bf16.msrb.mxu0 %v6044_v46  ;;  %6127 = vmatpush.bf16.msra.mxu1 %v6047_v54  ;;  %v1704_v57 = vpop.permute.xlu0 %1703  ;;  %v5390_v30 = vpop.f32.mrf.mxu3  ;;  %vm10775_vm6 = vmmov %vm10764_vm7 }
 0xc4f   : > { %1706 = vst.msk [vmem:[#allocation3 + $0xc] sm:$0xf] %vm10752_vm3, %v1704_v57  ;;  %vm10767_vm3 = vmmov %vm10756_vm1 }
 0xc50   : > { %1756 = vst.msk [vmem:[#allocation3 + $0xc] sm:$0xf] %vm10756_vm1, %v1754_v55  ;;  %v5351_v60 = vpop.f32.mrf.mxu0  ;;  %v5364_v32 = vpop.f32.mrf.mxu1  ;;  %vm10769_vm1 = vmmov %vm10768_vm10 }
 0xc51   : > { %v5377_v5 = vpop.f32.mrf.mxu2  ;;  %vm10771_vm2 = vmmov %vm10769_vm1 }
 0xc52   : > { %vm10773_vm14 = vmmov %vm10767_vm3 }
 0xc53   : > { %2165 = vrot.lane.b32.xlu2 %v2164_v39, %s7097_s29  ;;  %vm10776_vm13 = vmmov %vm10767_vm3 }
 0xc54   : > { %6884 = vmatmul.msk.bf16.vlgmr.msra.gmra.mxu2 %vm4623_vm8, %v6881_v29 }
 0xc56   : > { %6885 = vmatmul.msk.bf16.vlgmr.msrb.gmra.mxu3 %vm4623_vm8, %v6881_v29  ;;  %v1200_v36 = vpop.permute.xlu0 %1199  ;;  %v10307_v62 = vpop.f32.mrf.mxu3 }
 0xc57   : > { %v6397_v42 = vld [vmem:[#allocation3 + $0x8] sm:$0xff]  ;;  %1202 = vst.msk [vmem:[#allocation3] sm:$0xf] %vm10745_vm4, %v1200_v36 }
 0xc58   : > { %6406 = vst [vmem:[#allocation1 + $0x10] ss:$2 sm:$0xff] %v6397_v42  ;;  %v10311_v53 = vpop.f32.mrf.mxu0  ;;  %v10313_v34 = vpop.f32.mrf.mxu1 }
 0xc59   : > { %v10305_v6 = vpop.f32.mrf.mxu2 }
 0xc5b   : > { %1957 = vrot.lane.b32.xlu2 %v1956_v51, %s7098_s25 }
 0xc5d   : > { %6882 = vmatmul.msk.bf16.vlgmr.msra.gmra.mxu0 %vm4623_vm8, %v6881_v29  ;;  %6883 = vmatmul.msk.bf16.vlgmr.msrb.gmra.mxu1 %vm4623_vm8, %v6881_v29 }
 0xc5e   : > { %v1400_v41 = vpop.permute.xlu0 %1399  ;;  %v5479_v46 = vpop.f32.mrf.mxu3 }
 0xc5f   : > { %1402 = vst.msk [vmem:[#allocation3 + $0x4] sm:$0xf] %vm10761_vm5, %v1400_v41  ;;  %v6413_v60 = vld.sshfl [vmem:[#allocation1 + $0x10] sm:$0xff pattern:$0x75316420]  ;;  %vm10774_vm5 = vmmov %vm10745_vm4 }
 0xc60   : > { %v5440_v54 = vpop.f32.mrf.mxu0  ;;  %v5453_v57 = vpop.f32.mrf.mxu1  ;;  %v6414_v32 = vld.sshfl [vmem:[#allocation1 + $0x18] sm:$0xff pattern:$0x75316420]  ;;  %v6429_v0 = vpack.c.bf16 %v6413_v60, %v6413_v60  ;;  %v6890_v46 = vld [vmem:[%s10514_s7 + $0x10] sm:$0x3] }
 0xc61   : > { %v5466_v23 = vpop.f32.mrf.mxu2  ;;  %v6430_v51 = vpack.c.bf16 %v6414_v32, %v6414_v32 }
 0xc63   : > { %1861 = vrot.lane.b32.xlu2 %v1860_v17, %s7097_s29 }
 0xc64   : > { %6888 = vmatmul.msk.bf16.vlgmr.msrb.gmra.mxu2 %vm4623_vm8, %v6881_v29 }
 0xc66   : > { %6889 = vmatmul.msk.bf16.vlgmr.msra.gmra.mxu3 %vm4623_vm8, %v6881_v29  ;;  %v10331_v38 = vpop.f32.mrf.mxu3 }
 0xc68   : > { %v10333_v31 = vpop.f32.mrf.mxu0  ;;  %v10335_v61 = vpop.f32.mrf.mxu1 }
 0xc69   : > { %v10329_v55 = vpop.f32.mrf.mxu2 }
 0xc6b   : > { %6577 = vperm.xlu2 %6973, %v6574_v48  }
 0xc6d   : > { %6886 = vmatmul.msk.bf16.vlgmr.msrb.gmra.mxu0 %vm4623_vm8, %v6881_v29  ;;  %6887 = vmatmul.msk.bf16.vlgmr.msra.gmra.mxu1 %vm4623_vm8, %v6881_v29 }
 0xc6e   : > { %v6238_v9 = vpop.permute.xlu0 %6237  ;;  %v5531_v21 = vpop.f32.mrf.mxu3 }
 0xc6f   : > { %v6448_v21 = vsel %vm10769_vm1, %v6430_v51, 0 }
 0xc70   : > { %v5492_v39 = vpop.f32.mrf.mxu0  ;;  %v5505_v47 = vpop.f32.mrf.mxu1 }
 0xc71   : > { %v5518_v14 = vpop.f32.mrf.mxu2 }
 0xc72   : > { %v6445_v14 = vsel %vm10768_vm10, %v6429_v0, 0 }
 0xc75   : > { %v6230_v4 = vpop.permute.xlu1 %6229 }
 0xc76   : > { %v2140_v5 = vpop.permute.xlu0 %2139 }
 0xc77   : > { %2142 = vst.msk [vmem:[#allocation3 + $0x18] sm:$0xf] %vm10764_vm7, %v2140_v5  ;;  %vm10777_vm7 = vmmov %vm10745_vm4 }
 0xc7d   : > { %v6246_v30 = vpop.permute.xlu2 %6245 }
 0xc7e   : > { %v6242_v13 = vpop.permute.xlu0 %6241 }
 0xc85   : > { %v1227_v35 = vpop.permute.xlu2 %1226 }
 0xc86   : > { %1229 = vst.msk [vmem:[#allocation3] sm:$0xf] %vm10765_vm9, %v1227_v35  ;;  %v10344_v29 = vpop.permute.xlu0 %2361  ;;  %vm10778_vm9 = vmmov %vm10775_vm6 }
 0xc87   : > { %1256 = vst.msk [vmem:[#allocation3] sm:$0xf] %vm10766_vm11, %v9994_v16  ;;  %vm10786_vm11 = vcmask 31744  }
 0xc8d   : > { %v1450_v2 = vpop.permute.xlu2 %1449 }
 0xc8e   : > { %1452 = vst.msk [vmem:[#allocation3 + $0x4] sm:$0xf] %vm10767_vm3, %v1450_v2 }
 0xc90   : > { %v6240_v48 = vpop.permute.xlu0 %6239 }
 0xc91   : > { %v6252_v39 = vsel %vm2407_vm15, %v6238_v9, %v6240_v48  ;;  %v6253_v47 = vsel %vm2407_vm15, %v6240_v48, %v6242_v13 }
 0xc92   : > { %v6272_v0 = vsel %vm2390_vm0, %v6252_v39, 0 }
 0xc95   : > { %v6396_v36 = vld [vmem:[#allocation3] sm:$0xff]  ;;  %v6236_v33 = vpop.permute.xlu2 %6235 }
 0xc96   : > { %6404 = vst [vmem:[#allocation1] ss:$2 sm:$0xff] %v6396_v36  ;;  %v6250_v42 = vsel %vm2407_vm15, %v6234_v45, %v6236_v33  ;;  %v6251_v24 = vsel %vm2407_vm15, %v6236_v33, %v6238_v9  ;;  %v6244_v40 = vpop.permute.xlu1 %6243  ;;  %v6275_v9 = vsel %vm2390_vm0, %v6253_v47, 0 }
 0xc97   : > { %v6266_v16 = vsel %vm2390_vm0, %v6250_v42, 0  ;;  %v6269_v37 = vsel %vm2390_vm0, %v6251_v24, 0  ;;  %v6254_v56 = vsel %vm2407_vm15, %v6242_v13, %v6244_v40  ;;  %v6255_v41 = vsel %vm2407_vm15, %v6244_v40, %v6246_v30  ;;  %v10352_v50 = vpop.f32.mrf.mxu2 }
 0xc98   : > { %v6278_v12 = vsel %vm2390_vm0, %v6254_v56, 0  ;;  %v6281_v17 = vsel %vm2390_vm0, %v6255_v41, 0  ;;  %6316 = vmatpush.bf16.msra.mxu2 %v6266_v16  ;;  %6329 = vmatpush.bf16.msrb.mxu3 %v6269_v37 }
 0xc99   : > { %v10356_v23 = vpop.f32.mrf.mxu3  ;;  %v10361_v54 = vpop.f32.mrf.mxu0 }
 0xc9a   : > { %v10363_v57 = vpop.f32.mrf.mxu1 }
 0xc9b   : > { %6893 = vmatmul.msk.bf16.vlgmr.msra.gmra.mxu2 %vm4623_vm8, %v6890_v46  ;;  %6894 = vmatmul.msk.bf16.vlgmr.msrb.gmra.mxu3 %vm4623_vm8, %v6890_v46 }
 0xc9c   : > { %6368 = vmatpush.bf16.msrb.mxu2 %v6278_v12  ;;  %6381 = vmatpush.bf16.msra.mxu3 %v6281_v17  ;;  %v1836_v17 = vpop.permute.xlu0 %1835 }
 0xc9d   : > { %v6232_v5 = vpop.permute.xlu2 %6231  ;;  %v6411_v30 = vld.sshfl [vmem:[#allocation1] sm:$0xff pattern:$0x75316420]  ;;  %v6412_v35 = vld.sshfl [vmem:[#allocation1 + $0x8] sm:$0xff pattern:$0x75316420] }
 0xc9e   : > { %v6248_v2 = vsel %vm2407_vm15, %v6230_v4, %v6232_v5  ;;  %v6249_v60 = vsel %vm2407_vm15, %v6232_v5, %v6234_v45  ;;  %v2312_v32 = vpop.permute.xlu1 %2311  ;;  %v6427_v24 = vpack.c.bf16 %v6411_v30, %v6411_v30  ;;  %v6428_v40 = vpack.c.bf16 %v6412_v35, %v6412_v35  ;;  %vm10770_vm15 = vmmov %vm10769_vm1 }
 0xc9f   : > { %v6260_v36 = vsel %vm2390_vm0, %v6248_v2, 0  ;;  %v6263_v33 = vsel %vm2390_vm0, %v6249_v60, 0  ;;  %v5694_v42 = vpop.f32.mrf.mxu2 }
 0xca0   : > { %6495 = vmatpush.bf16.msra.mxu2 %v6445_v14  ;;  %6508 = vmatpush.bf16.msrb.mxu3 %v6448_v21  ;;  %v6439_v45 = vsel %vm10770_vm15, %v6427_v24, 0  ;;  %v6442_v4 = vsel %vm10771_vm2, %v6428_v40, 0  ;;  %vm10793_vm15 = vmmov %vm10769_vm1 }
 0xca1   : > { %v5707_v13 = vpop.f32.mrf.mxu3  ;;  %6290 = vmatpush.bf16.msra.mxu0 %v6260_v36  ;;  %6303 = vmatpush.bf16.msrb.mxu1 %v6263_v33  ;;  %v5668_v51 = vpop.f32.mrf.mxu0 }
 0xca2   : > { %v5681_v16 = vpop.f32.mrf.mxu1 }
 0xca4   : > { %6891 = vmatmul.msk.bf16.vlgmr.msra.gmra.mxu0 %vm4623_vm8, %v6890_v46  ;;  %6892 = vmatmul.msk.bf16.vlgmr.msrb.gmra.mxu1 %vm4623_vm8, %v6890_v46  ;;  %v2058_v40 = vpop.permute.xlu0 %2057 }
 0xca5   : > { %6342 = vmatpush.bf16.msrb.mxu0 %v6272_v0  ;;  %6355 = vmatpush.bf16.msra.mxu1 %v6275_v9  ;;  %v2262_v37 = vpop.permute.xlu2 %2261  ;;  %v10411_v0 = vld [vmem:[%s10516_s9] sm:$0x3] }
 0xca6   : > { %2264 = vst.msk [vmem:[#allocation3 + $0x1c] sm:$0xf] %vm10745_vm4, %v2262_v37  ;;  %v1810_v56 = vpop.permute.xlu1 %1809  ;;  %v10780_v37 = vld [vmem:[#allocation17_spill] sm:$0xff] }
 0xca7   : > { %2314 = vst.msk [vmem:[#allocation3 + $0x1c] sm:$0xf] %vm10772_vm12, %v2312_v32  ;;  %v10383_v41 = vpop.f32.mrf.mxu2 }
 0xca8   : > { %2364 = vst.msk [vmem:[#allocation3 + $0x1c] sm:$0xf] %vm10773_vm14, %v10344_v29 }
 0xca9   : > { %6469 = vmatpush.bf16.msra.mxu0 %v6439_v45  ;;  %6482 = vmatpush.bf16.msrb.mxu1 %v6442_v4  ;;  %v10387_v12 = vpop.f32.mrf.mxu3  ;;  %1812 = vst.msk [vmem:[#allocation3 + $0x10] sm:$0xf] %vm10774_vm5, %v1810_v56  ;;  %v10390_v48 = vpop.f32.mrf.mxu0  ;;  %v10781_v56 = vld [vmem:[#allocation15_spill] sm:$0xff]  ;;  %vm10798_vm5 = vmmov %vm10769_vm1 }
 0xcaa   : > { %1838 = vst.msk [vmem:[#allocation3 + $0x10] sm:$0xf] %vm10775_vm6, %v1836_v17  ;;  %v10393_v14 = vpop.f32.mrf.mxu1  ;;  %v10782_v17 = vld [vmem:[#allocation16_spill] sm:$0xff]  ;;  %vm10799_vm6 = vmmov %vm10769_vm1 }
 0xcab   : > { %6897 = vmatmul.msk.bf16.vlgmr.msrb.gmra.mxu2 %vm4623_vm8, %v6890_v46  ;;  %6898 = vmatmul.msk.bf16.vlgmr.msra.gmra.mxu3 %vm4623_vm8, %v6890_v46 }
 0xcad   : > { %v2166_v21 = vpop.permute.xlu2 %2165 }
 0xcae   : > { %2168 = vst.msk [vmem:[#allocation3 + $0x18] sm:$0xf] %vm10776_vm13, %v2166_v21  ;;  %v2008_v39 = vpop.permute.xlu1 %2007 }
 0xcaf   : > { %v5746_v29 = vpop.f32.mrf.mxu2 }
 0xcb0   : > { %v10784_v29 = vld [vmem:[#allocation61_spill] sm:$0xff] }
 0xcb1   : > { %v5759_v47 = vpop.f32.mrf.mxu3  ;;  %v5720_v5 = vpop.f32.mrf.mxu0 }
 0xcb2   : > { %v5733_v30 = vpop.f32.mrf.mxu1  ;;  %v10785_v47 = vld [vmem:[#allocation64_spill] sm:$0xff] }
 0xcb3   : > { %v10790_v30 = vld [vmem:[#allocation14_spill] sm:$0xff] }
 0xcb4   : > { %6895 = vmatmul.msk.bf16.vlgmr.msrb.gmra.mxu0 %vm4623_vm8, %v6890_v46  ;;  %6896 = vmatmul.msk.bf16.vlgmr.msra.gmra.mxu1 %vm4623_vm8, %v6890_v46  ;;  %vm10779_vm8 = vmmov %vm10767_vm3 }
 0xcb5   : > { %v6399_v35 = vld [vmem:[#allocation3 + $0x18] sm:$0xff]  ;;  %v1958_v2 = vpop.permute.xlu2 %1957  ;;  %vm10787_vm3 = vmmov %vm10786_vm11 }
 0xcb6   : > { %6410 = vst [vmem:[#allocation1 + $0x30] ss:$2 sm:$0xff] %v6399_v35  ;;  %v4534_v60 = vpop.permute.xlu1 %4533  ;;  %vm10792_vm10 = vmmov %vm10779_vm8 }
 0xcb7   : > { %1960 = vst.msk [vmem:[#allocation3 + $0x14] sm:$0xf] %vm10777_vm7, %v1958_v2  ;;  %v4757_v32 = vadd.f32 %v9916_v25, %v4534_v60  ;;  %v10402_v36 = vpop.f32.mrf.mxu2  ;;  %v4758_v33 = vadd.f32 %v9918_v43, %v4534_v60  ;;  %v4755_v42 = vadd.f32 %v9921_v63, %v4534_v60  ;;  %v4756_v24 = vadd.f32 %v9923_v3, %v4534_v60  ;;  %v10791_v2 = vld [vmem:[#allocation46_spill] sm:$0xff]  ;;  %vm10794_vm2 = vmmov %vm10787_vm3 }
 0xcb8   : > { %2010 = vst.msk [vmem:[#allocation3 + $0x14] sm:$0xf] %vm10778_vm9, %v2008_v39  ;;  %v4761_v9 = vadd.f32 %v9951_v7, %v4534_v60  ;;  %v4762_v25 = vadd.f32 %v9953_v8, %v4534_v60  ;;  %v4759_v13 = vadd.f32 %v9956_v15, %v4534_v60  ;;  %v4760_v43 = vadd.f32 %v9958_v58, %v4534_v60  ;;  %v10783_v39 = vld [vmem:[#allocation62_spill] sm:$0xff]  ;;  %vm10795_vm4 = vmmov %vm10794_vm2 }
 0xcb9   : > { %v5933_v46 = vpop.f32.mrf.mxu3  ;;  %2060 = vst.msk [vmem:[#allocation3 + $0x14] sm:$0xf] %vm10779_vm8, %v2058_v40  ;;  %v4942_v63 = vadd.f32 %v9975_v20, %v4757_v32  ;;  %v4943_v3 = vadd.f32 %v9977_v59, %v4758_v33  ;;  %v4940_v51 = vadd.f32 %v9980_v44, %v4755_v42  ;;  %v4941_v45 = vadd.f32 %v9982_v22, %v4756_v24  ;;  %v10788_v22 = vld [vmem:[#allocation66_spill] sm:$0xff]  ;;  %vm10796_vm12 = vmmov %vm10794_vm2 }
 0xcba   : > { %v5894_v16 = vpop.f32.mrf.mxu0  ;;  %v5907_v4 = vpop.f32.mrf.mxu1  ;;  %v4946_v7 = vadd.f32 %v10012_v18, %v4761_v9  ;;  %v4947_v8 = vadd.f32 %v10014_v1, %v4762_v25  ;;  %v4944_v15 = vadd.f32 %v10780_v37, %v4759_v13  ;;  %v4945_v58 = vadd.f32 %v10781_v56, %v4760_v43  ;;  %v10789_v1 = vld [vmem:[#allocation44_spill] sm:$0xff]  ;;  %vm10797_vm14 = vmmov %vm10794_vm2 }
 0xcbb   : > { %v5168_v21 = vadd.f32 %v10782_v17, %v4942_v63  ;;  %v5169_v20 = vadd.f32 %v10783_v39, %v4943_v3  ;;  %v5166_v59 = vadd.f32 %v10784_v29, %v4940_v51  ;;  %v5167_v44 = vadd.f32 %v10785_v47, %v4941_v45  ;;  %6901 = vmatmul.msk.bf16.vlgmr.msra.gmra.mxu2 %vm10786_vm11, %v10411_v0  ;;  %vm10800_vm13 = vmmov %vm10794_vm2 }
 0xcbc   : > { %6902 = vmatmul.msk.bf16.vlgmr.msrb.gmra.mxu3 %vm10787_vm3, %v10411_v0  ;;  %v5172_v18 = vadd.f32 %v10788_v22, %v4946_v7  ;;  %v5173_v5 = vadd.f32 %v10789_v1, %v4947_v8  ;;  %v5170_v35 = vadd.f32 %v10790_v30, %v4944_v15  ;;  %v5171_v60 = vadd.f32 %v10791_v2, %v4945_v58  ;;  %vm10801_vm7 = vmmov %vm10794_vm2 }
 0xcbd   : > { %v5394_v32 = vadd.f32 %v10210_v49, %v5168_v21  ;;  %v5395_v33 = vadd.f32 %v10212_v11, %v5169_v20  ;;  %v5392_v42 = vadd.f32 %v10216_v26, %v5166_v59  ;;  %v5393_v24 = vadd.f32 %v10218_v27, %v5167_v44  ;;  %v1862_v40 = vpop.permute.xlu2 %1861  ;;  %v6417_v9 = vld.sshfl [vmem:[#allocation1 + $0x30] sm:$0xff pattern:$0x75316420]  ;;  %v6418_v25 = vld.sshfl [vmem:[#allocation1 + $0x38] sm:$0xff pattern:$0x75316420] }
 0xcbe   : > { %1864 = vst.msk [vmem:[#allocation3 + $0x10] sm:$0xf] %vm10792_vm10, %v1862_v40  ;;  %v6433_v13 = vpack.c.bf16 %v6417_v9, %v6417_v9  ;;  %v6434_v43 = vpack.c.bf16 %v6418_v25, %v6418_v25  ;;  %v5398_v63 = vadd.f32 %v10258_v28, %v5172_v18  ;;  %v5399_v3 = vadd.f32 %v10260_v52, %v5173_v5 }
 0xcbf   : > { %v5535_v51 = vadd.f32 %v10305_v6, %v5394_v32  ;;  %v5536_v49 = vadd.f32 %v10307_v62, %v5395_v33  ;;  %v5533_v11 = vadd.f32 %v10311_v53, %v5392_v42  ;;  %v5534_v26 = vadd.f32 %v10313_v34, %v5393_v24  ;;  %v5922_v27 = vpop.f32.mrf.mxu2 }
 0xcc0   : > { %v6457_v7 = vsel %vm10769_vm1, %v6433_v13, 0  ;;  %v6460_v8 = vsel %vm10793_vm15, %v6434_v43, 0  ;;  %v5539_v53 = vadd.f32 %v10329_v55, %v5398_v63  ;;  %v5540_v34 = vadd.f32 %v10331_v38, %v5399_v3 }
 0xcc1   : > { %v5935_v45 = vpop.f32.mrf.mxu3  ;;  %v5763_v37 = vadd.f32 %v10352_v50, %v5535_v51  ;;  %v5764_v28 = vadd.f32 %v10356_v23, %v5536_v49  ;;  %v5761_v52 = vadd.f32 %v10361_v54, %v5533_v11  ;;  %v5762_v6 = vadd.f32 %v10363_v57, %v5534_v26  ;;  %6547 = vmatpush.bf16.msrb.mxu2 %v6457_v7 }
 0xcc2   : > { %v5896_v15 = vpop.f32.mrf.mxu0  ;;  %v5909_v62 = vpop.f32.mrf.mxu1  ;;  %6560 = vmatpush.bf16.msra.mxu3 %v6460_v8  ;;  %v5396_v56 = vadd.f32 %v10266_v19, %v5170_v35  ;;  %v5397_v58 = vadd.f32 %v10268_v10, %v5171_v60  ;;  %v5767_v19 = vadd.f32 %v10383_v41, %v5539_v53  ;;  %v5768_v57 = vadd.f32 %v10387_v12, %v5540_v34 }
 0xcc3   : > { %v5991_v50 = vadd.f32 %v10402_v36, %v5763_v37  ;;  %v5992_v17 = vadd.f32 %v5933_v46, %v5764_v28  ;;  %v5989_v23 = vadd.f32 %v5894_v16, %v5761_v52  ;;  %v5990_v21 = vadd.f32 %v5907_v4, %v5762_v6 }
 0xcc4   : > { %6899 = vmatmul.msk.bf16.vlgmr.msra.gmra.mxu0 %vm10794_vm2, %v10411_v0  ;;  %6900 = vmatmul.msk.bf16.vlgmr.msrb.gmra.mxu1 %vm10795_vm4, %v10411_v0  ;;  %v5537_v54 = vadd.f32 %v10333_v31, %v5396_v56  ;;  %v5538_v38 = vadd.f32 %v10335_v61, %v5397_v58 }
 0xcc5   : > { %v6398_v55 = vld [vmem:[#allocation3 + $0x10] sm:$0xff] }
 0xcc6   : > { %6408 = vst [vmem:[#allocation1 + $0x20] ss:$2 sm:$0xff] %v6398_v55  ;;  %v5765_v16 = vadd.f32 %v10390_v48, %v5537_v54  ;;  %v5766_v20 = vadd.f32 %v10393_v14, %v5538_v38 }
 0xcc7   : > { %v5972_v10 = vpop.f32.mrf.mxu2 }
 0xcc8   : > { %v5995_v36 = vadd.f32 %v5972_v10, %v5767_v19 }
 0xcc9   : > { %v5985_v46 = vpop.f32.mrf.mxu3 }
 0xcca   : > { %v5996_v4 = vadd.f32 %v5985_v46, %v5768_v57  ;;  %v5946_v39 = vpop.f32.mrf.mxu0  ;;  %v5959_v59 = vpop.f32.mrf.mxu1 }
 0xccb   : > { %v5993_v29 = vadd.f32 %v5946_v39, %v5765_v16  ;;  %v5994_v31 = vadd.f32 %v5959_v59, %v5766_v20  ;;  %6905 = vmatmul.msk.bf16.vlgmr.msrb.gmra.mxu2 %vm10796_vm12, %v10411_v0  ;;  %v6578_v39 = vpop.permute.xlu2 %6577 }
 0xccc   : > { %6906 = vmatmul.msk.bf16.vlgmr.msra.gmra.mxu3 %vm10797_vm14, %v10411_v0 }
 0xccd   : > { %v6415_v61 = vld.sshfl [vmem:[#allocation1 + $0x20] sm:$0xff pattern:$0x75316420]  ;;  %v6416_v41 = vld.sshfl [vmem:[#allocation1 + $0x28] sm:$0xff pattern:$0x75316420] }
 0xcce   : > { %v6431_v12 = vpack.c.bf16 %v6415_v61, %v6415_v61  ;;  %v6432_v47 = vpack.c.bf16 %v6416_v41, %v6416_v41 }
 0xccf   : > { %v5974_v44 = vpop.f32.mrf.mxu2 }
 0xcd0   : > { %v6451_v48 = vsel %vm10798_vm5, %v6431_v12, 0  ;;  %v6454_v18 = vsel %vm10799_vm6, %v6432_v47, 0 }
 0xcd1   : > { %v5987_v22 = vpop.f32.mrf.mxu3  ;;  %6521 = vmatpush.bf16.msrb.mxu0 %v6451_v48  ;;  %6534 = vmatpush.bf16.msra.mxu1 %v6454_v18 }
 0xcd2   : > { %v5948_v14 = vpop.f32.mrf.mxu0  ;;  %v5961_v1 = vpop.f32.mrf.mxu1 }
 0xcd4   : > { %6903 = vmatmul.msk.bf16.vlgmr.msrb.gmra.mxu0 %vm10800_vm13, %v10411_v0  ;;  %6904 = vmatmul.msk.bf16.vlgmr.msra.gmra.mxu1 %vm10801_vm7, %v10411_v0 }
 0xcd7   : > { %v6090_v5 = vpop.f32.mrf.mxu2 }
 0xcd8   : > { %v6161_v30 = vadd.f32 %v6090_v5, %v5991_v50 }
 0xcd9   : > { %v6103_v35 = vpop.f32.mrf.mxu3 }
 0xcda   : > { %v6162_v2 = vadd.f32 %v6103_v35, %v5992_v17  ;;  %v6064_v60 = vpop.f32.mrf.mxu0  ;;  %v6077_v33 = vpop.f32.mrf.mxu1 }
 0xcdb   : > { %v6159_v32 = vadd.f32 %v6064_v60, %v5989_v23  ;;  %v6160_v42 = vadd.f32 %v6077_v33, %v5990_v21 }
 0xcdf   : > { %v6092_v24 = vpop.f32.mrf.mxu2 }
 0xce1   : > { %v6105_v40 = vpop.f32.mrf.mxu3 }
 0xce2   : > { %v6066_v9 = vpop.f32.mrf.mxu0  ;;  %v6079_v25 = vpop.f32.mrf.mxu1 }
 0xce7   : > { %v6142_v13 = vpop.f32.mrf.mxu2 }
 0xce8   : > { %v6165_v43 = vadd.f32 %v6142_v13, %v5995_v36 }
 0xce9   : > { %v6155_v63 = vpop.f32.mrf.mxu3 }
 0xcea   : > { %v6166_v3 = vadd.f32 %v6155_v63, %v5996_v4  ;;  %v6116_v51 = vpop.f32.mrf.mxu0  ;;  %v6129_v11 = vpop.f32.mrf.mxu1 }
 0xceb   : > { %v6163_v49 = vadd.f32 %v6116_v51, %v5993_v29  ;;  %v6164_v0 = vadd.f32 %v6129_v11, %v5994_v31 }
 0xcef   : > { %v6144_v26 = vpop.f32.mrf.mxu2 }
 0xcf1   : > { %v6157_v27 = vpop.f32.mrf.mxu3 }
 0xcf2   : > { %v6118_v45 = vpop.f32.mrf.mxu0  ;;  %v6131_v7 = vpop.f32.mrf.mxu1 }
 0xd1e   : > { %v6318_v8 = vpop.f32.mrf.mxu2  ;;  %v6331_v37 = vpop.f32.mrf.mxu3 }
 0xd1f   : > { %v6389_v55 = vadd.f32 %v6318_v8, %v6161_v30  ;;  %v6390_v38 = vadd.f32 %v6331_v37, %v6162_v2 }
 0xd21   : > { %v6292_v28 = vpop.f32.mrf.mxu0  ;;  %v6305_v52 = vpop.f32.mrf.mxu1 }
 0xd22   : > { %v6387_v57 = vadd.f32 %v6292_v28, %v6159_v32  ;;  %v6388_v36 = vadd.f32 %v6305_v52, %v6160_v42 }
 0xd26   : > { %v6320_v6 = vpop.f32.mrf.mxu2  ;;  %v6333_v15 = vpop.f32.mrf.mxu3 }
 0xd29   : > { %v6294_v62 = vpop.f32.mrf.mxu0  ;;  %v6307_v53 = vpop.f32.mrf.mxu1 }
 0xd2e   : > { %v6370_v34 = vpop.f32.mrf.mxu2  ;;  %v6383_v56 = vpop.f32.mrf.mxu3 }
 0xd2f   : > { %v6393_v30 = vadd.f32 %v6370_v34, %v6165_v43  ;;  %v6394_v35 = vadd.f32 %v6383_v56, %v6166_v3 }
 0xd31   : > { %v6344_v58 = vpop.f32.mrf.mxu0  ;;  %v6357_v50 = vpop.f32.mrf.mxu1 }
 0xd32   : > { %v6391_v32 = vadd.f32 %v6344_v58, %v6163_v49  ;;  %v6392_v33 = vadd.f32 %v6357_v50, %v6164_v0 }
 0xd36   : > { %v6372_v17 = vpop.f32.mrf.mxu2  ;;  %v6385_v23 = vpop.f32.mrf.mxu3 }
 0xd39   : > { %v6346_v21 = vpop.f32.mrf.mxu0  ;;  %v6359_v54 = vpop.f32.mrf.mxu1 }
 0xd3e   : > { %v6497_v19 = vpop.f32.mrf.mxu2 }
 0xd3f   : > { %v6510_v10 = vpop.f32.mrf.mxu3  ;;  %v6568_v46 = vadd.f32 %v6497_v19, %v6389_v55 }
 0xd40   : > { %v6569_v16 = vadd.f32 %v6510_v10, %v6390_v38 }
 0xd41   : > { %v6471_v4 = vpop.f32.mrf.mxu0  ;;  %v6484_v20 = vpop.f32.mrf.mxu1  ;;  %v6582_v61 = vadd.f32 %v6578_v39, %v6568_v46 }
 0xd42   : > { %v6583_v29 = vadd.f32 %v6578_v39, %v6569_v16  ;;  %v6566_v59 = vadd.f32 %v6471_v4, %v6387_v57  ;;  %v6567_v31 = vadd.f32 %v6484_v20, %v6388_v36 }
 0xd44   : > { %v6597_v41 = vrot.slane %v6583_v29, 4  ;;  %v6581_v12 = vadd.f32 %v6578_v39, %v6567_v31  ;;  %v6580_v44 = vadd.f32 %v6578_v39, %v6566_v59 }
 0xd46   : > { %v6601_v47 = vsel %vm2390_vm0, %v6582_v61, %v6597_v41  ;;  %v6596_v22 = vrot.slane %v6581_v12, 4  ;;  %v6499_v48 = vpop.f32.mrf.mxu2 }
 0xd47   : > { %6609 = vst [vmem:[%s10484_s28 + $0x8] sm:$0xff] %v6601_v47  ;;  %v6512_v18 = vpop.f32.mrf.mxu3 }
 0xd48   : > { %v6600_v14 = vsel %vm2390_vm0, %v6580_v44, %v6596_v22 }
 0xd49   : > { %v6473_v1 = vpop.f32.mrf.mxu0  ;;  %6608 = vst [vmem:[%s10484_s28] sm:$0xff] %v6600_v14  ;;  %v6486_v5 = vpop.f32.mrf.mxu1 }
 0xd4e   : > { %v6549_v2 = vpop.f32.mrf.mxu2 }
 0xd4f   : > { %v6562_v60 = vpop.f32.mrf.mxu3  ;;  %v6572_v42 = vadd.f32 %v6549_v2, %v6393_v30 }
 0xd50   : > { %v6573_v24 = vadd.f32 %v6562_v60, %v6394_v35 }
 0xd51   : > { %v6523_v40 = vpop.f32.mrf.mxu0  ;;  %v6536_v9 = vpop.f32.mrf.mxu1  ;;  %v6586_v51 = vadd.f32 %v6578_v39, %v6572_v42 }
 0xd52   : > { %v6587_v25 = vadd.f32 %v6578_v39, %v6573_v24  ;;  %v6570_v13 = vadd.f32 %v6523_v40, %v6391_v32  ;;  %v6571_v63 = vadd.f32 %v6536_v9, %v6392_v33 }
 0xd54   : > { %v6599_v11 = vrot.slane %v6587_v25, 4  ;;  %v6585_v26 = vadd.f32 %v6578_v39, %v6571_v63  ;;  %v6584_v43 = vadd.f32 %v6578_v39, %v6570_v13 }
 0xd56   : > { %v6603_v27 = vsel %vm2390_vm0, %v6586_v51, %v6599_v11  ;;  %v6598_v3 = vrot.slane %v6585_v26, 4  ;;  %v6551_v45 = vpop.f32.mrf.mxu2 }
 0xd57   : > { %6611 = vst [vmem:[%s10484_s28 + $0x18] sm:$0xff] %v6603_v27  ;;  %v6564_v49 = vpop.f32.mrf.mxu3 }
 0xd58   : > { %v6602_v0 = vsel %vm2390_vm0, %v6584_v43, %v6598_v3 }
 0xd59   : > { %6610 = vst [vmem:[%s10484_s28 + $0x10] sm:$0xff] %v6602_v0  ;;  %v6525_v7 = vpop.f32.mrf.mxu0  ;;  %v6538_v8 = vpop.f32.mrf.mxu1 }
 0xd5a PF: > { %s10802_s21 = sld [smem:[#allocation8_spill]]  ;;  %p21_p7 = scmp.ge.s32.totalorder %s7190_s22, 4  }
 0xd5b   : > { %s10803_s19 = sld [smem:[#allocation9_spill]]  ;;  %s10804_s17 = smov %s7080_s18 }
 0xd5c   : > { %s10806_s20 = smov %s7190_s22  ;;  %23 = sbr.rel (!%p21_p7) target bundleno = 3 (0x3), region = 286 }
 0xd60   : > { %s10805_s18 = smov %s10802_s21 }
 0xd61   :  { %6633 = vsyncpa [#allocation6], 1 }
 0xd62   :  { %6635 = vsyncpa [#allocation6 + $0x1], 1 }

</bundles_post_ra>
